<compile_context>
chip_gen: v7x
topology: tpu7x:2x2x1
jax: 0.10.0
libtpu: 0.0.40
codegen_flags: <defaults>
</compile_context>

<pallas_src>
import functools

import numpy as np
import jax
import jax.numpy as jnp
from jax.experimental import pallas as pl
from jax.experimental.pallas import tpu as pltpu


def convnet_kernel(x_ref, cw_ref, cb_ref, tw_ref, tb_ref, o_ref, *,
                   C, K, L, sub_rows, compute_dtype):
    """One (block_n, L_pad) batch tile: Conv1d(1,C,K) + ReLU + ConvTranspose1d(C,1,K)."""
    TN, Lp = x_ref.shape
    Lc = L - K + 1                      # valid-conv output length (stride 1)
    n_sub = TN // sub_rows
    cdt = compute_dtype

    # Hoisted out of the sub-slab loop: JAX does not CSE broadcast_in_dim, and
    # the SMEM scalar weight / bias reads only need to happen once per step.
    valid = jax.lax.broadcasted_iota(jnp.int32, (sub_rows, Lp), 1) < Lc
    cw = [cw_ref[i].astype(cdt) for i in range(C * K)]   # conv weights  (compute dtype)
    cb = [cb_ref[c].astype(cdt) for c in range(C)]       # conv biases   (compute dtype)
    tw = [tw_ref[i] for i in range(C * K)]               # tconv weights (f32 tap acc)
    tb = tb_ref[0]                                       # tconv bias    (f32)

    def sub_slab(r0):
        # One (sub_rows, Lp) slab -- small enough to stay register-resident.
        x = x_ref[pl.ds(r0, sub_rows), :].astype(cdt)
        # Conv tap shifts along lanes (XLU): xs[j][n, t] = x[n, t + j].
        xs = [x] + [pltpu.roll(x, Lp - j, 1) for j in range(1, K)]

        # g[j][n, t] = sum_c tw[c, j] * relu(conv_c(x))[n, t]  (f32 accumulators).
        g = [None] * K
        for c in range(C):
            h_c = xs[0] * cw[c * K]
            for j in range(1, K):
                h_c = h_c + xs[j] * cw[c * K + j]
            h_c = jnp.maximum(h_c + cb[c], 0)            # ReLU (compute dtype)
            for j in range(K):
                contrib = h_c * tw[c * K + j]            # promotes to f32
                g[j] = contrib if g[j] is None else g[j] + contrib

        # Mask conv-invalid lanes (t >= Lc), fold the tconv bias into tap 0,
        # then overlap-add the remaining taps via lane rolls (XLU).
        acc = jnp.where(valid, g[0], 0.0) + tb
        for j in range(1, K):
            acc = acc + pltpu.roll(jnp.where(valid, g[j], 0.0), j, 1)
        o_ref[pl.ds(r0, sub_rows), :] = acc.astype(o_ref.dtype)

    if n_sub <= 2:
        for s in range(n_sub):                           # static offsets, fully unrolled
            sub_slab(s * sub_rows)
    else:
        @pl.loop(0, n_sub)
        def _(s):
            sub_slab(pl.multiple_of(s * sub_rows, sub_rows))


def _round_up(a, m):
    return ((a + m - 1) // m) * m


def _default_compute_dtype():
    """bf16 VALU exists on v6e / v7x; v5e and older keep f32."""
    try:
        kind = jax.devices()[0].device_kind.lower()
    except Exception:
        return jnp.float32
    if any(tag in kind for tag in ("v6", "v7", "7x")):
        return jnp.bfloat16
    return jnp.float32


def _pick_block_n(n_rows, l_pad, in_itemsize, sub_rows):
    """L_pad-aware batch tile:
    (a) keep the double-buffered in+out tiles at ~16 MiB so they fit v7x's
        64 MiB (32 MiB scoped) VMEM;
    (b) once there is enough work for >=2 meaningful grid steps, split so
        v7x's second TensorCore gets half (no effect on 1-TC v5e/v6e)."""
    vmem_budget = 16 << 20
    per_row = 2 * l_pad * (in_itemsize + 4)              # 2 bufs x (input + f32 output)
    vmem_rows = max(sub_rows, (vmem_budget // per_row) // sub_rows * sub_rows)
    block_n = min(n_rows, vmem_rows)
    # ~32K elements per step keeps each grid step at a few microseconds of VALU
    # work (per-step overhead is ~0.35 us); below that, run a single step.
    min_step_rows = _round_up(max(sub_rows, -(-(1 << 15) // l_pad)), sub_rows)
    if block_n >= n_rows and n_rows >= 2 * min_step_rows:
        block_n = _round_up(-(-n_rows // 2), sub_rows)
    return max(sub_rows, block_n)


def convnet_forward(x, conv_w, conv_b, tconv_w, tconv_b, *,
                    block_n=None, compute_dtype=None):
    """x: (N, L) f32.  conv_w: (C, 1, K), conv_b: (C,),
    tconv_w: (C, 1, K) (ConvTranspose1d (in, out, K) layout), tconv_b: (1,).
    Returns (N, L) f32."""
    x = jnp.asarray(x, jnp.float32)
    N, L = x.shape
    C, _, K = conv_w.shape

    if compute_dtype is None:
        compute_dtype = _default_compute_dtype()
    in_itemsize = jnp.dtype(compute_dtype).itemsize
    sub_rows = 16 if in_itemsize < 4 else 8              # one packed vreg row-group

    # Lane-dense slab: pad L to a multiple of 128; batch rides the sublanes.
    # (If very short L were the real workload, packing several sequences per
    #  128-lane row with a per-segment valid mask would recover the padded lanes.)
    L_pad = _round_up(L, 128)
    N_pad0 = _round_up(N, sub_rows)
    if block_n is None:
        block_n = _pick_block_n(N_pad0, L_pad, in_itemsize, sub_rows)
    block_n = _round_up(min(block_n, max(N_pad0, sub_rows)), sub_rows)
    N_pad = _round_up(N_pad0, block_n)

    # x streamed at compute precision (halves HBM/VMEM bytes on the bf16 path).
    x_p = jnp.pad(x, ((0, N_pad - N), (0, L_pad - L))).astype(compute_dtype)

    # Flattened weights / biases -> SMEM scalars (free scalar path in-kernel).
    cw = jnp.asarray(conv_w, jnp.float32)[:, 0, :].reshape(-1)    # (C*K,)
    cb = jnp.asarray(conv_b, jnp.float32).reshape(-1)             # (C,)
    tw = jnp.asarray(tconv_w, jnp.float32)[:, 0, :].reshape(-1)   # (C*K,)
    tb = jnp.asarray(tconv_b, jnp.float32).reshape(-1)            # (1,)

    kernel = functools.partial(convnet_kernel, C=C, K=K, L=L,
                               sub_rows=sub_rows, compute_dtype=compute_dtype)
    smem = pl.BlockSpec(memory_space=pltpu.MemorySpace.SMEM)

    cost = pl.CostEstimate(
        flops=4 * N_pad * L_pad * C * K,
        transcendentals=0,
        bytes_accessed=int(x_p.size) * in_itemsize + N_pad * L_pad * 4
                       + 4 * (2 * C * K + C + 1))

    y_p = pl.pallas_call(
        kernel,
        out_shape=jax.ShapeDtypeStruct((N_pad, L_pad), jnp.float32),
        grid=(N_pad // block_n,),
        in_specs=[
            pl.BlockSpec((block_n, L_pad), lambda i: (i, 0)),  # x: batch-tiled VMEM
            smem, smem, smem, smem,                            # weights/biases: SMEM
        ],
        out_specs=pl.BlockSpec((block_n, L_pad), lambda i: (i, 0)),
        compiler_params=pltpu.CompilerParams(
            dimension_semantics=("parallel",),                 # megacore shard on v7x
            vmem_limit_bytes=32 * 1024 * 1024),
        cost_estimate=cost,
    )(x_p, cw, cb, tw, tb)

    return y_p[:N, :L]


def reference_forward(x, conv_w, conv_b, tconv_w, tconv_b):
    """Pure numpy reference matching PyTorch Conv1d / ConvTranspose1d semantics."""
    x = np.asarray(x, np.float32)
    conv_w = np.asarray(conv_w, np.float32)
    conv_b = np.asarray(conv_b, np.float32)
    tconv_w = np.asarray(tconv_w, np.float32)
    tconv_b = np.asarray(tconv_b, np.float32)

    N, L = x.shape
    C, _, K = conv_w.shape
    Lc = L - K + 1

    h = np.zeros((N, C, Lc), np.float32)
    for j in range(K):
        h += conv_w[None, :, 0, j, None] * x[:, None, j:j + Lc]
    h += conv_b[None, :, None]
    h = np.maximum(h, 0.0)

    y = np.full((N, L), tconv_b[0], np.float32)
    for j in range(K):
        y[:, j:j + Lc] += np.einsum("nct,c->nt", h, tconv_w[:, 0, j])
    return y


if __name__ == "__main__":
    kernel_size, length, out_chan = 3, 10, 32     # module defaults from the spec

    key = jax.random.PRNGKey(0)
    kx, k1, k2, k3, k4, kx2 = jax.random.split(key, 6)

    conv_w = 0.3 * jax.random.normal(k1, (out_chan, 1, kernel_size), jnp.float32)
    conv_b = 0.1 * jax.random.normal(k2, (out_chan,), jnp.float32)
    tconv_w = 0.3 * jax.random.normal(k3, (out_chan, 1, kernel_size), jnp.float32)
    tconv_b = 0.1 * jax.random.normal(k4, (1,), jnp.float32)

    def run(xx, dtype):
        return jax.block_until_ready(
            convnet_forward(xx, conv_w, conv_b, tconv_w, tconv_b, compute_dtype=dtype))

    cdt = _default_compute_dtype()

    # Case 1: the module's natural shapes (N=16, L=10) -> one grid step.
    x = jax.random.normal(kx, (16, length), jnp.float32)
    try:
        y = run(x, cdt)
    except Exception:
        # Conservative fallback: if the bf16 path fails to lower on this chip
        # generation, rerun everything in f32 (always supported).
        cdt = jnp.float32
        y = run(x, cdt)
    tol = dict(rtol=2e-2, atol=5e-2) if cdt == jnp.bfloat16 else dict(rtol=1e-5, atol=2e-5)
    np.testing.assert_allclose(
        np.asarray(y), reference_forward(x, conv_w, conv_b, tconv_w, tconv_b), **tol)

    # Case 2: larger batch / length -> exercises the in-kernel sub-slab loop and
    # a multi-step "parallel" batch grid (sharded across both TCs on v7x).
    x2 = jax.random.normal(kx2, (1200, 50), jnp.float32)
    y2 = run(x2, cdt)
    np.testing.assert_allclose(
        np.asarray(y2), reference_forward(x2, conv_w, conv_b, tconv_w, tconv_b), **tol)

    print("KERNEL_OK")
</pallas_src>

<mosaic_0001>
module attributes {stable_mosaic.version = 11 : i64} {
  func.func @convnet_kernel(%arg0: i32, %arg1: memref<16x128xf32, #tpu.memory_space<vmem>>, %arg2: memref<96xf32, #tpu.memory_space<smem>>, %arg3: memref<32xf32, #tpu.memory_space<smem>>, %arg4: memref<96xf32, #tpu.memory_space<smem>>, %arg5: memref<1xf32, #tpu.memory_space<smem>>, %arg6: memref<16x128xf32, #tpu.memory_space<vmem>>) attributes {dimension_semantics = [#tpu.dimension_semantics<parallel>], iteration_bounds = array<i64: 1>, scalar_prefetch = 0 : i64, scratch_operands = 0 : i64, tpu.core_type = #tpu.core_type<tc>, window_params = [{transform_indices = @transform_0, window_bounds = array<i64: 16, 128>}, {transform_indices = @transform_1, window_bounds = array<i64: 96>}, {transform_indices = @transform_2, window_bounds = array<i64: 32>}, {transform_indices = @transform_3, window_bounds = array<i64: 96>}, {transform_indices = @transform_4, window_bounds = array<i64: 1>}, {transform_indices = @transform_5, window_bounds = array<i64: 16, 128>}]} {
    %0 = tpu.iota {dimensions = array<i32: 1>} : vector<8x128xi32>
    %c8_i32 = arith.constant 8 : i32
    %1 = vector.broadcast %c8_i32 : i32 to vector<8x128xi32>
    %2 = arith.cmpi slt, %0, %1 : vector<8x128xi32>
    %c0 = arith.constant 0 : index
    %3 = memref.load %arg2[%c0] : memref<96xf32, #tpu.memory_space<smem>>
    %c1 = arith.constant 1 : index
    %4 = memref.load %arg2[%c1] : memref<96xf32, #tpu.memory_space<smem>>
    %c2 = arith.constant 2 : index
    %5 = memref.load %arg2[%c2] : memref<96xf32, #tpu.memory_space<smem>>
    %c3 = arith.constant 3 : index
    %6 = memref.load %arg2[%c3] : memref<96xf32, #tpu.memory_space<smem>>
    %c4 = arith.constant 4 : index
    %7 = memref.load %arg2[%c4] : memref<96xf32, #tpu.memory_space<smem>>
    %c5 = arith.constant 5 : index
    %8 = memref.load %arg2[%c5] : memref<96xf32, #tpu.memory_space<smem>>
    %c6 = arith.constant 6 : index
    %9 = memref.load %arg2[%c6] : memref<96xf32, #tpu.memory_space<smem>>
    %c7 = arith.constant 7 : index
    %10 = memref.load %arg2[%c7] : memref<96xf32, #tpu.memory_space<smem>>
    %c8 = arith.constant 8 : index
    %11 = memref.load %arg2[%c8] : memref<96xf32, #tpu.memory_space<smem>>
    %c9 = arith.constant 9 : index
    %12 = memref.load %arg2[%c9] : memref<96xf32, #tpu.memory_space<smem>>
    %c10 = arith.constant 10 : index
    %13 = memref.load %arg2[%c10] : memref<96xf32, #tpu.memory_space<smem>>
    %c11 = arith.constant 11 : index
    %14 = memref.load %arg2[%c11] : memref<96xf32, #tpu.memory_space<smem>>
    %c12 = arith.constant 12 : index
    %15 = memref.load %arg2[%c12] : memref<96xf32, #tpu.memory_space<smem>>
    %c13 = arith.constant 13 : index
    %16 = memref.load %arg2[%c13] : memref<96xf32, #tpu.memory_space<smem>>
    %c14 = arith.constant 14 : index
    %17 = memref.load %arg2[%c14] : memref<96xf32, #tpu.memory_space<smem>>
    %c15 = arith.constant 15 : index
    %18 = memref.load %arg2[%c15] : memref<96xf32, #tpu.memory_space<smem>>
    %c16 = arith.constant 16 : index
    %19 = memref.load %arg2[%c16] : memref<96xf32, #tpu.memory_space<smem>>
    %c17 = arith.constant 17 : index
    %20 = memref.load %arg2[%c17] : memref<96xf32, #tpu.memory_space<smem>>
    %c18 = arith.constant 18 : index
    %21 = memref.load %arg2[%c18] : memref<96xf32, #tpu.memory_space<smem>>
    %c19 = arith.constant 19 : index
    %22 = memref.load %arg2[%c19] : memref<96xf32, #tpu.memory_space<smem>>
    %c20 = arith.constant 20 : index
    %23 = memref.load %arg2[%c20] : memref<96xf32, #tpu.memory_space<smem>>
    %c21 = arith.constant 21 : index
    %24 = memref.load %arg2[%c21] : memref<96xf32, #tpu.memory_space<smem>>
    %c22 = arith.constant 22 : index
    %25 = memref.load %arg2[%c22] : memref<96xf32, #tpu.memory_space<smem>>
    %c23 = arith.constant 23 : index
    %26 = memref.load %arg2[%c23] : memref<96xf32, #tpu.memory_space<smem>>
    %c24 = arith.constant 24 : index
    %27 = memref.load %arg2[%c24] : memref<96xf32, #tpu.memory_space<smem>>
    %c25 = arith.constant 25 : index
    %28 = memref.load %arg2[%c25] : memref<96xf32, #tpu.memory_space<smem>>
    %c26 = arith.constant 26 : index
    %29 = memref.load %arg2[%c26] : memref<96xf32, #tpu.memory_space<smem>>
    %c27 = arith.constant 27 : index
    %30 = memref.load %arg2[%c27] : memref<96xf32, #tpu.memory_space<smem>>
    %c28 = arith.constant 28 : index
    %31 = memref.load %arg2[%c28] : memref<96xf32, #tpu.memory_space<smem>>
    %c29 = arith.constant 29 : index
    %32 = memref.load %arg2[%c29] : memref<96xf32, #tpu.memory_space<smem>>
    %c30 = arith.constant 30 : index
    %33 = memref.load %arg2[%c30] : memref<96xf32, #tpu.memory_space<smem>>
    %c31 = arith.constant 31 : index
    %34 = memref.load %arg2[%c31] : memref<96xf32, #tpu.memory_space<smem>>
    %c32 = arith.constant 32 : index
    %35 = memref.load %arg2[%c32] : memref<96xf32, #tpu.memory_space<smem>>
    %c33 = arith.constant 33 : index
    %36 = memref.load %arg2[%c33] : memref<96xf32, #tpu.memory_space<smem>>
    %c34 = arith.constant 34 : index
    %37 = memref.load %arg2[%c34] : memref<96xf32, #tpu.memory_space<smem>>
    %c35 = arith.constant 35 : index
    %38 = memref.load %arg2[%c35] : memref<96xf32, #tpu.memory_space<smem>>
    %c36 = arith.constant 36 : index
    %39 = memref.load %arg2[%c36] : memref<96xf32, #tpu.memory_space<smem>>
    %c37 = arith.constant 37 : index
    %40 = memref.load %arg2[%c37] : memref<96xf32, #tpu.memory_space<smem>>
    %c38 = arith.constant 38 : index
    %41 = memref.load %arg2[%c38] : memref<96xf32, #tpu.memory_space<smem>>
    %c39 = arith.constant 39 : index
    %42 = memref.load %arg2[%c39] : memref<96xf32, #tpu.memory_space<smem>>
    %c40 = arith.constant 40 : index
    %43 = memref.load %arg2[%c40] : memref<96xf32, #tpu.memory_space<smem>>
    %c41 = arith.constant 41 : index
    %44 = memref.load %arg2[%c41] : memref<96xf32, #tpu.memory_space<smem>>
    %c42 = arith.constant 42 : index
    %45 = memref.load %arg2[%c42] : memref<96xf32, #tpu.memory_space<smem>>
    %c43 = arith.constant 43 : index
    %46 = memref.load %arg2[%c43] : memref<96xf32, #tpu.memory_space<smem>>
    %c44 = arith.constant 44 : index
    %47 = memref.load %arg2[%c44] : memref<96xf32, #tpu.memory_space<smem>>
    %c45 = arith.constant 45 : index
    %48 = memref.load %arg2[%c45] : memref<96xf32, #tpu.memory_space<smem>>
    %c46 = arith.constant 46 : index
    %49 = memref.load %arg2[%c46] : memref<96xf32, #tpu.memory_space<smem>>
    %c47 = arith.constant 47 : index
    %50 = memref.load %arg2[%c47] : memref<96xf32, #tpu.memory_space<smem>>
    %c48 = arith.constant 48 : index
    %51 = memref.load %arg2[%c48] : memref<96xf32, #tpu.memory_space<smem>>
    %c49 = arith.constant 49 : index
    %52 = memref.load %arg2[%c49] : memref<96xf32, #tpu.memory_space<smem>>
    %c50 = arith.constant 50 : index
    %53 = memref.load %arg2[%c50] : memref<96xf32, #tpu.memory_space<smem>>
    %c51 = arith.constant 51 : index
    %54 = memref.load %arg2[%c51] : memref<96xf32, #tpu.memory_space<smem>>
    %c52 = arith.constant 52 : index
    %55 = memref.load %arg2[%c52] : memref<96xf32, #tpu.memory_space<smem>>
    %c53 = arith.constant 53 : index
    %56 = memref.load %arg2[%c53] : memref<96xf32, #tpu.memory_space<smem>>
    %c54 = arith.constant 54 : index
    %57 = memref.load %arg2[%c54] : memref<96xf32, #tpu.memory_space<smem>>
    %c55 = arith.constant 55 : index
    %58 = memref.load %arg2[%c55] : memref<96xf32, #tpu.memory_space<smem>>
    %c56 = arith.constant 56 : index
    %59 = memref.load %arg2[%c56] : memref<96xf32, #tpu.memory_space<smem>>
    %c57 = arith.constant 57 : index
    %60 = memref.load %arg2[%c57] : memref<96xf32, #tpu.memory_space<smem>>
    %c58 = arith.constant 58 : index
    %61 = memref.load %arg2[%c58] : memref<96xf32, #tpu.memory_space<smem>>
    %c59 = arith.constant 59 : index
    %62 = memref.load %arg2[%c59] : memref<96xf32, #tpu.memory_space<smem>>
    %c60 = arith.constant 60 : index
    %63 = memref.load %arg2[%c60] : memref<96xf32, #tpu.memory_space<smem>>
    %c61 = arith.constant 61 : index
    %64 = memref.load %arg2[%c61] : memref<96xf32, #tpu.memory_space<smem>>
    %c62 = arith.constant 62 : index
    %65 = memref.load %arg2[%c62] : memref<96xf32, #tpu.memory_space<smem>>
    %c63 = arith.constant 63 : index
    %66 = memref.load %arg2[%c63] : memref<96xf32, #tpu.memory_space<smem>>
    %c64 = arith.constant 64 : index
    %67 = memref.load %arg2[%c64] : memref<96xf32, #tpu.memory_space<smem>>
    %c65 = arith.constant 65 : index
    %68 = memref.load %arg2[%c65] : memref<96xf32, #tpu.memory_space<smem>>
    %c66 = arith.constant 66 : index
    %69 = memref.load %arg2[%c66] : memref<96xf32, #tpu.memory_space<smem>>
    %c67 = arith.constant 67 : index
    %70 = memref.load %arg2[%c67] : memref<96xf32, #tpu.memory_space<smem>>
    %c68 = arith.constant 68 : index
    %71 = memref.load %arg2[%c68] : memref<96xf32, #tpu.memory_space<smem>>
    %c69 = arith.constant 69 : index
    %72 = memref.load %arg2[%c69] : memref<96xf32, #tpu.memory_space<smem>>
    %c70 = arith.constant 70 : index
    %73 = memref.load %arg2[%c70] : memref<96xf32, #tpu.memory_space<smem>>
    %c71 = arith.constant 71 : index
    %74 = memref.load %arg2[%c71] : memref<96xf32, #tpu.memory_space<smem>>
    %c72 = arith.constant 72 : index
    %75 = memref.load %arg2[%c72] : memref<96xf32, #tpu.memory_space<smem>>
    %c73 = arith.constant 73 : index
    %76 = memref.load %arg2[%c73] : memref<96xf32, #tpu.memory_space<smem>>
    %c74 = arith.constant 74 : index
    %77 = memref.load %arg2[%c74] : memref<96xf32, #tpu.memory_space<smem>>
    %c75 = arith.constant 75 : index
    %78 = memref.load %arg2[%c75] : memref<96xf32, #tpu.memory_space<smem>>
    %c76 = arith.constant 76 : index
    %79 = memref.load %arg2[%c76] : memref<96xf32, #tpu.memory_space<smem>>
    %c77 = arith.constant 77 : index
    %80 = memref.load %arg2[%c77] : memref<96xf32, #tpu.memory_space<smem>>
    %c78 = arith.constant 78 : index
    %81 = memref.load %arg2[%c78] : memref<96xf32, #tpu.memory_space<smem>>
    %c79 = arith.constant 79 : index
    %82 = memref.load %arg2[%c79] : memref<96xf32, #tpu.memory_space<smem>>
    %c80 = arith.constant 80 : index
    %83 = memref.load %arg2[%c80] : memref<96xf32, #tpu.memory_space<smem>>
    %c81 = arith.constant 81 : index
    %84 = memref.load %arg2[%c81] : memref<96xf32, #tpu.memory_space<smem>>
    %c82 = arith.constant 82 : index
    %85 = memref.load %arg2[%c82] : memref<96xf32, #tpu.memory_space<smem>>
    %c83 = arith.constant 83 : index
    %86 = memref.load %arg2[%c83] : memref<96xf32, #tpu.memory_space<smem>>
    %c84 = arith.constant 84 : index
    %87 = memref.load %arg2[%c84] : memref<96xf32, #tpu.memory_space<smem>>
    %c85 = arith.constant 85 : index
    %88 = memref.load %arg2[%c85] : memref<96xf32, #tpu.memory_space<smem>>
    %c86 = arith.constant 86 : index
    %89 = memref.load %arg2[%c86] : memref<96xf32, #tpu.memory_space<smem>>
    %c87 = arith.constant 87 : index
    %90 = memref.load %arg2[%c87] : memref<96xf32, #tpu.memory_space<smem>>
    %c88 = arith.constant 88 : index
    %91 = memref.load %arg2[%c88] : memref<96xf32, #tpu.memory_space<smem>>
    %c89 = arith.constant 89 : index
    %92 = memref.load %arg2[%c89] : memref<96xf32, #tpu.memory_space<smem>>
    %c90 = arith.constant 90 : index
    %93 = memref.load %arg2[%c90] : memref<96xf32, #tpu.memory_space<smem>>
    %c91 = arith.constant 91 : index
    %94 = memref.load %arg2[%c91] : memref<96xf32, #tpu.memory_space<smem>>
    %c92 = arith.constant 92 : index
    %95 = memref.load %arg2[%c92] : memref<96xf32, #tpu.memory_space<smem>>
    %c93 = arith.constant 93 : index
    %96 = memref.load %arg2[%c93] : memref<96xf32, #tpu.memory_space<smem>>
    %c94 = arith.constant 94 : index
    %97 = memref.load %arg2[%c94] : memref<96xf32, #tpu.memory_space<smem>>
    %c95 = arith.constant 95 : index
    %98 = memref.load %arg2[%c95] : memref<96xf32, #tpu.memory_space<smem>>
    %c0_0 = arith.constant 0 : index
    %99 = memref.load %arg3[%c0_0] : memref<32xf32, #tpu.memory_space<smem>>
    %c1_1 = arith.constant 1 : index
    %100 = memref.load %arg3[%c1_1] : memref<32xf32, #tpu.memory_space<smem>>
    %c2_2 = arith.constant 2 : index
    %101 = memref.load %arg3[%c2_2] : memref<32xf32, #tpu.memory_space<smem>>
    %c3_3 = arith.constant 3 : index
    %102 = memref.load %arg3[%c3_3] : memref<32xf32, #tpu.memory_space<smem>>
    %c4_4 = arith.constant 4 : index
    %103 = memref.load %arg3[%c4_4] : memref<32xf32, #tpu.memory_space<smem>>
    %c5_5 = arith.constant 5 : index
    %104 = memref.load %arg3[%c5_5] : memref<32xf32, #tpu.memory_space<smem>>
    %c6_6 = arith.constant 6 : index
    %105 = memref.load %arg3[%c6_6] : memref<32xf32, #tpu.memory_space<smem>>
    %c7_7 = arith.constant 7 : index
    %106 = memref.load %arg3[%c7_7] : memref<32xf32, #tpu.memory_space<smem>>
    %c8_8 = arith.constant 8 : index
    %107 = memref.load %arg3[%c8_8] : memref<32xf32, #tpu.memory_space<smem>>
    %c9_9 = arith.constant 9 : index
    %108 = memref.load %arg3[%c9_9] : memref<32xf32, #tpu.memory_space<smem>>
    %c10_10 = arith.constant 10 : index
    %109 = memref.load %arg3[%c10_10] : memref<32xf32, #tpu.memory_space<smem>>
    %c11_11 = arith.constant 11 : index
    %110 = memref.load %arg3[%c11_11] : memref<32xf32, #tpu.memory_space<smem>>
    %c12_12 = arith.constant 12 : index
    %111 = memref.load %arg3[%c12_12] : memref<32xf32, #tpu.memory_space<smem>>
    %c13_13 = arith.constant 13 : index
    %112 = memref.load %arg3[%c13_13] : memref<32xf32, #tpu.memory_space<smem>>
    %c14_14 = arith.constant 14 : index
    %113 = memref.load %arg3[%c14_14] : memref<32xf32, #tpu.memory_space<smem>>
    %c15_15 = arith.constant 15 : index
    %114 = memref.load %arg3[%c15_15] : memref<32xf32, #tpu.memory_space<smem>>
    %c16_16 = arith.constant 16 : index
    %115 = memref.load %arg3[%c16_16] : memref<32xf32, #tpu.memory_space<smem>>
    %c17_17 = arith.constant 17 : index
    %116 = memref.load %arg3[%c17_17] : memref<32xf32, #tpu.memory_space<smem>>
    %c18_18 = arith.constant 18 : index
    %117 = memref.load %arg3[%c18_18] : memref<32xf32, #tpu.memory_space<smem>>
    %c19_19 = arith.constant 19 : index
    %118 = memref.load %arg3[%c19_19] : memref<32xf32, #tpu.memory_space<smem>>
    %c20_20 = arith.constant 20 : index
    %119 = memref.load %arg3[%c20_20] : memref<32xf32, #tpu.memory_space<smem>>
    %c21_21 = arith.constant 21 : index
    %120 = memref.load %arg3[%c21_21] : memref<32xf32, #tpu.memory_space<smem>>
    %c22_22 = arith.constant 22 : index
    %121 = memref.load %arg3[%c22_22] : memref<32xf32, #tpu.memory_space<smem>>
    %c23_23 = arith.constant 23 : index
    %122 = memref.load %arg3[%c23_23] : memref<32xf32, #tpu.memory_space<smem>>
    %c24_24 = arith.constant 24 : index
    %123 = memref.load %arg3[%c24_24] : memref<32xf32, #tpu.memory_space<smem>>
    %c25_25 = arith.constant 25 : index
    %124 = memref.load %arg3[%c25_25] : memref<32xf32, #tpu.memory_space<smem>>
    %c26_26 = arith.constant 26 : index
    %125 = memref.load %arg3[%c26_26] : memref<32xf32, #tpu.memory_space<smem>>
    %c27_27 = arith.constant 27 : index
    %126 = memref.load %arg3[%c27_27] : memref<32xf32, #tpu.memory_space<smem>>
    %c28_28 = arith.constant 28 : index
    %127 = memref.load %arg3[%c28_28] : memref<32xf32, #tpu.memory_space<smem>>
    %c29_29 = arith.constant 29 : index
    %128 = memref.load %arg3[%c29_29] : memref<32xf32, #tpu.memory_space<smem>>
    %c30_30 = arith.constant 30 : index
    %129 = memref.load %arg3[%c30_30] : memref<32xf32, #tpu.memory_space<smem>>
    %c31_31 = arith.constant 31 : index
    %130 = memref.load %arg3[%c31_31] : memref<32xf32, #tpu.memory_space<smem>>
    %c0_32 = arith.constant 0 : index
    %131 = memref.load %arg4[%c0_32] : memref<96xf32, #tpu.memory_space<smem>>
    %c1_33 = arith.constant 1 : index
    %132 = memref.load %arg4[%c1_33] : memref<96xf32, #tpu.memory_space<smem>>
    %c2_34 = arith.constant 2 : index
    %133 = memref.load %arg4[%c2_34] : memref<96xf32, #tpu.memory_space<smem>>
    %c3_35 = arith.constant 3 : index
    %134 = memref.load %arg4[%c3_35] : memref<96xf32, #tpu.memory_space<smem>>
    %c4_36 = arith.constant 4 : index
    %135 = memref.load %arg4[%c4_36] : memref<96xf32, #tpu.memory_space<smem>>
    %c5_37 = arith.constant 5 : index
    %136 = memref.load %arg4[%c5_37] : memref<96xf32, #tpu.memory_space<smem>>
    %c6_38 = arith.constant 6 : index
    %137 = memref.load %arg4[%c6_38] : memref<96xf32, #tpu.memory_space<smem>>
    %c7_39 = arith.constant 7 : index
    %138 = memref.load %arg4[%c7_39] : memref<96xf32, #tpu.memory_space<smem>>
    %c8_40 = arith.constant 8 : index
    %139 = memref.load %arg4[%c8_40] : memref<96xf32, #tpu.memory_space<smem>>
    %c9_41 = arith.constant 9 : index
    %140 = memref.load %arg4[%c9_41] : memref<96xf32, #tpu.memory_space<smem>>
    %c10_42 = arith.constant 10 : index
    %141 = memref.load %arg4[%c10_42] : memref<96xf32, #tpu.memory_space<smem>>
    %c11_43 = arith.constant 11 : index
    %142 = memref.load %arg4[%c11_43] : memref<96xf32, #tpu.memory_space<smem>>
    %c12_44 = arith.constant 12 : index
    %143 = memref.load %arg4[%c12_44] : memref<96xf32, #tpu.memory_space<smem>>
    %c13_45 = arith.constant 13 : index
    %144 = memref.load %arg4[%c13_45] : memref<96xf32, #tpu.memory_space<smem>>
    %c14_46 = arith.constant 14 : index
    %145 = memref.load %arg4[%c14_46] : memref<96xf32, #tpu.memory_space<smem>>
    %c15_47 = arith.constant 15 : index
    %146 = memref.load %arg4[%c15_47] : memref<96xf32, #tpu.memory_space<smem>>
    %c16_48 = arith.constant 16 : index
    %147 = memref.load %arg4[%c16_48] : memref<96xf32, #tpu.memory_space<smem>>
    %c17_49 = arith.constant 17 : index
    %148 = memref.load %arg4[%c17_49] : memref<96xf32, #tpu.memory_space<smem>>
    %c18_50 = arith.constant 18 : index
    %149 = memref.load %arg4[%c18_50] : memref<96xf32, #tpu.memory_space<smem>>
    %c19_51 = arith.constant 19 : index
    %150 = memref.load %arg4[%c19_51] : memref<96xf32, #tpu.memory_space<smem>>
    %c20_52 = arith.constant 20 : index
    %151 = memref.load %arg4[%c20_52] : memref<96xf32, #tpu.memory_space<smem>>
    %c21_53 = arith.constant 21 : index
    %152 = memref.load %arg4[%c21_53] : memref<96xf32, #tpu.memory_space<smem>>
    %c22_54 = arith.constant 22 : index
    %153 = memref.load %arg4[%c22_54] : memref<96xf32, #tpu.memory_space<smem>>
    %c23_55 = arith.constant 23 : index
    %154 = memref.load %arg4[%c23_55] : memref<96xf32, #tpu.memory_space<smem>>
    %c24_56 = arith.constant 24 : index
    %155 = memref.load %arg4[%c24_56] : memref<96xf32, #tpu.memory_space<smem>>
    %c25_57 = arith.constant 25 : index
    %156 = memref.load %arg4[%c25_57] : memref<96xf32, #tpu.memory_space<smem>>
    %c26_58 = arith.constant 26 : index
    %157 = memref.load %arg4[%c26_58] : memref<96xf32, #tpu.memory_space<smem>>
    %c27_59 = arith.constant 27 : index
    %158 = memref.load %arg4[%c27_59] : memref<96xf32, #tpu.memory_space<smem>>
    %c28_60 = arith.constant 28 : index
    %159 = memref.load %arg4[%c28_60] : memref<96xf32, #tpu.memory_space<smem>>
    %c29_61 = arith.constant 29 : index
    %160 = memref.load %arg4[%c29_61] : memref<96xf32, #tpu.memory_space<smem>>
    %c30_62 = arith.constant 30 : index
    %161 = memref.load %arg4[%c30_62] : memref<96xf32, #tpu.memory_space<smem>>
    %c31_63 = arith.constant 31 : index
    %162 = memref.load %arg4[%c31_63] : memref<96xf32, #tpu.memory_space<smem>>
    %c32_64 = arith.constant 32 : index
    %163 = memref.load %arg4[%c32_64] : memref<96xf32, #tpu.memory_space<smem>>
    %c33_65 = arith.constant 33 : index
    %164 = memref.load %arg4[%c33_65] : memref<96xf32, #tpu.memory_space<smem>>
    %c34_66 = arith.constant 34 : index
    %165 = memref.load %arg4[%c34_66] : memref<96xf32, #tpu.memory_space<smem>>
    %c35_67 = arith.constant 35 : index
    %166 = memref.load %arg4[%c35_67] : memref<96xf32, #tpu.memory_space<smem>>
    %c36_68 = arith.constant 36 : index
    %167 = memref.load %arg4[%c36_68] : memref<96xf32, #tpu.memory_space<smem>>
    %c37_69 = arith.constant 37 : index
    %168 = memref.load %arg4[%c37_69] : memref<96xf32, #tpu.memory_space<smem>>
    %c38_70 = arith.constant 38 : index
    %169 = memref.load %arg4[%c38_70] : memref<96xf32, #tpu.memory_space<smem>>
    %c39_71 = arith.constant 39 : index
    %170 = memref.load %arg4[%c39_71] : memref<96xf32, #tpu.memory_space<smem>>
    %c40_72 = arith.constant 40 : index
    %171 = memref.load %arg4[%c40_72] : memref<96xf32, #tpu.memory_space<smem>>
    %c41_73 = arith.constant 41 : index
    %172 = memref.load %arg4[%c41_73] : memref<96xf32, #tpu.memory_space<smem>>
    %c42_74 = arith.constant 42 : index
    %173 = memref.load %arg4[%c42_74] : memref<96xf32, #tpu.memory_space<smem>>
    %c43_75 = arith.constant 43 : index
    %174 = memref.load %arg4[%c43_75] : memref<96xf32, #tpu.memory_space<smem>>
    %c44_76 = arith.constant 44 : index
    %175 = memref.load %arg4[%c44_76] : memref<96xf32, #tpu.memory_space<smem>>
    %c45_77 = arith.constant 45 : index
    %176 = memref.load %arg4[%c45_77] : memref<96xf32, #tpu.memory_space<smem>>
    %c46_78 = arith.constant 46 : index
    %177 = memref.load %arg4[%c46_78] : memref<96xf32, #tpu.memory_space<smem>>
    %c47_79 = arith.constant 47 : index
    %178 = memref.load %arg4[%c47_79] : memref<96xf32, #tpu.memory_space<smem>>
    %c48_80 = arith.constant 48 : index
    %179 = memref.load %arg4[%c48_80] : memref<96xf32, #tpu.memory_space<smem>>
    %c49_81 = arith.constant 49 : index
    %180 = memref.load %arg4[%c49_81] : memref<96xf32, #tpu.memory_space<smem>>
    %c50_82 = arith.constant 50 : index
    %181 = memref.load %arg4[%c50_82] : memref<96xf32, #tpu.memory_space<smem>>
    %c51_83 = arith.constant 51 : index
    %182 = memref.load %arg4[%c51_83] : memref<96xf32, #tpu.memory_space<smem>>
    %c52_84 = arith.constant 52 : index
    %183 = memref.load %arg4[%c52_84] : memref<96xf32, #tpu.memory_space<smem>>
    %c53_85 = arith.constant 53 : index
    %184 = memref.load %arg4[%c53_85] : memref<96xf32, #tpu.memory_space<smem>>
    %c54_86 = arith.constant 54 : index
    %185 = memref.load %arg4[%c54_86] : memref<96xf32, #tpu.memory_space<smem>>
    %c55_87 = arith.constant 55 : index
    %186 = memref.load %arg4[%c55_87] : memref<96xf32, #tpu.memory_space<smem>>
    %c56_88 = arith.constant 56 : index
    %187 = memref.load %arg4[%c56_88] : memref<96xf32, #tpu.memory_space<smem>>
    %c57_89 = arith.constant 57 : index
    %188 = memref.load %arg4[%c57_89] : memref<96xf32, #tpu.memory_space<smem>>
    %c58_90 = arith.constant 58 : index
    %189 = memref.load %arg4[%c58_90] : memref<96xf32, #tpu.memory_space<smem>>
    %c59_91 = arith.constant 59 : index
    %190 = memref.load %arg4[%c59_91] : memref<96xf32, #tpu.memory_space<smem>>
    %c60_92 = arith.constant 60 : index
    %191 = memref.load %arg4[%c60_92] : memref<96xf32, #tpu.memory_space<smem>>
    %c61_93 = arith.constant 61 : index
    %192 = memref.load %arg4[%c61_93] : memref<96xf32, #tpu.memory_space<smem>>
    %c62_94 = arith.constant 62 : index
    %193 = memref.load %arg4[%c62_94] : memref<96xf32, #tpu.memory_space<smem>>
    %c63_95 = arith.constant 63 : index
    %194 = memref.load %arg4[%c63_95] : memref<96xf32, #tpu.memory_space<smem>>
    %c64_96 = arith.constant 64 : index
    %195 = memref.load %arg4[%c64_96] : memref<96xf32, #tpu.memory_space<smem>>
    %c65_97 = arith.constant 65 : index
    %196 = memref.load %arg4[%c65_97] : memref<96xf32, #tpu.memory_space<smem>>
    %c66_98 = arith.constant 66 : index
    %197 = memref.load %arg4[%c66_98] : memref<96xf32, #tpu.memory_space<smem>>
    %c67_99 = arith.constant 67 : index
    %198 = memref.load %arg4[%c67_99] : memref<96xf32, #tpu.memory_space<smem>>
    %c68_100 = arith.constant 68 : index
    %199 = memref.load %arg4[%c68_100] : memref<96xf32, #tpu.memory_space<smem>>
    %c69_101 = arith.constant 69 : index
    %200 = memref.load %arg4[%c69_101] : memref<96xf32, #tpu.memory_space<smem>>
    %c70_102 = arith.constant 70 : index
    %201 = memref.load %arg4[%c70_102] : memref<96xf32, #tpu.memory_space<smem>>
    %c71_103 = arith.constant 71 : index
    %202 = memref.load %arg4[%c71_103] : memref<96xf32, #tpu.memory_space<smem>>
    %c72_104 = arith.constant 72 : index
    %203 = memref.load %arg4[%c72_104] : memref<96xf32, #tpu.memory_space<smem>>
    %c73_105 = arith.constant 73 : index
    %204 = memref.load %arg4[%c73_105] : memref<96xf32, #tpu.memory_space<smem>>
    %c74_106 = arith.constant 74 : index
    %205 = memref.load %arg4[%c74_106] : memref<96xf32, #tpu.memory_space<smem>>
    %c75_107 = arith.constant 75 : index
    %206 = memref.load %arg4[%c75_107] : memref<96xf32, #tpu.memory_space<smem>>
    %c76_108 = arith.constant 76 : index
    %207 = memref.load %arg4[%c76_108] : memref<96xf32, #tpu.memory_space<smem>>
    %c77_109 = arith.constant 77 : index
    %208 = memref.load %arg4[%c77_109] : memref<96xf32, #tpu.memory_space<smem>>
    %c78_110 = arith.constant 78 : index
    %209 = memref.load %arg4[%c78_110] : memref<96xf32, #tpu.memory_space<smem>>
    %c79_111 = arith.constant 79 : index
    %210 = memref.load %arg4[%c79_111] : memref<96xf32, #tpu.memory_space<smem>>
    %c80_112 = arith.constant 80 : index
    %211 = memref.load %arg4[%c80_112] : memref<96xf32, #tpu.memory_space<smem>>
    %c81_113 = arith.constant 81 : index
    %212 = memref.load %arg4[%c81_113] : memref<96xf32, #tpu.memory_space<smem>>
    %c82_114 = arith.constant 82 : index
    %213 = memref.load %arg4[%c82_114] : memref<96xf32, #tpu.memory_space<smem>>
    %c83_115 = arith.constant 83 : index
    %214 = memref.load %arg4[%c83_115] : memref<96xf32, #tpu.memory_space<smem>>
    %c84_116 = arith.constant 84 : index
    %215 = memref.load %arg4[%c84_116] : memref<96xf32, #tpu.memory_space<smem>>
    %c85_117 = arith.constant 85 : index
    %216 = memref.load %arg4[%c85_117] : memref<96xf32, #tpu.memory_space<smem>>
    %c86_118 = arith.constant 86 : index
    %217 = memref.load %arg4[%c86_118] : memref<96xf32, #tpu.memory_space<smem>>
    %c87_119 = arith.constant 87 : index
    %218 = memref.load %arg4[%c87_119] : memref<96xf32, #tpu.memory_space<smem>>
    %c88_120 = arith.constant 88 : index
    %219 = memref.load %arg4[%c88_120] : memref<96xf32, #tpu.memory_space<smem>>
    %c89_121 = arith.constant 89 : index
    %220 = memref.load %arg4[%c89_121] : memref<96xf32, #tpu.memory_space<smem>>
    %c90_122 = arith.constant 90 : index
    %221 = memref.load %arg4[%c90_122] : memref<96xf32, #tpu.memory_space<smem>>
    %c91_123 = arith.constant 91 : index
    %222 = memref.load %arg4[%c91_123] : memref<96xf32, #tpu.memory_space<smem>>
    %c92_124 = arith.constant 92 : index
    %223 = memref.load %arg4[%c92_124] : memref<96xf32, #tpu.memory_space<smem>>
    %c93_125 = arith.constant 93 : index
    %224 = memref.load %arg4[%c93_125] : memref<96xf32, #tpu.memory_space<smem>>
    %c94_126 = arith.constant 94 : index
    %225 = memref.load %arg4[%c94_126] : memref<96xf32, #tpu.memory_space<smem>>
    %c95_127 = arith.constant 95 : index
    %226 = memref.load %arg4[%c95_127] : memref<96xf32, #tpu.memory_space<smem>>
    %c0_128 = arith.constant 0 : index
    %227 = memref.load %arg5[%c0_128] : memref<1xf32, #tpu.memory_space<smem>>
    %c0_129 = arith.constant 0 : index
    %c0_130 = arith.constant 0 : index
    %228 = vector.load %arg1[%c0_129, %c0_130] : memref<16x128xf32, #tpu.memory_space<vmem>>, vector<8x128xf32>
    %c127_i32 = arith.constant 127 : i32
    %229 = tpu.dynamic_rotate %228 by %c127_i32 dim 1 : vector<8x128xf32>, i32 -> vector<8x128xf32>
    %c126_i32 = arith.constant 126 : i32
    %230 = tpu.dynamic_rotate %228 by %c126_i32 dim 1 : vector<8x128xf32>, i32 -> vector<8x128xf32>
    %231 = vector.broadcast %3 : f32 to vector<8x128xf32>
    %232 = arith.mulf %228, %231 : vector<8x128xf32>
    %233 = vector.broadcast %4 : f32 to vector<8x128xf32>
    %234 = arith.mulf %229, %233 : vector<8x128xf32>
    %235 = arith.addf %232, %234 : vector<8x128xf32>
    %236 = vector.broadcast %5 : f32 to vector<8x128xf32>
    %237 = arith.mulf %230, %236 : vector<8x128xf32>
    %238 = arith.addf %235, %237 : vector<8x128xf32>
    %239 = vector.broadcast %99 : f32 to vector<8x128xf32>
    %240 = arith.addf %238, %239 : vector<8x128xf32>
    %cst = arith.constant 0.000000e+00 : f32
    %241 = vector.broadcast %cst : f32 to vector<8x128xf32>
    %242 = arith.maximumf %240, %241 : vector<8x128xf32>
    %243 = vector.broadcast %131 : f32 to vector<8x128xf32>
    %244 = arith.mulf %242, %243 : vector<8x128xf32>
    %245 = vector.broadcast %132 : f32 to vector<8x128xf32>
    %246 = arith.mulf %242, %245 : vector<8x128xf32>
    %247 = vector.broadcast %133 : f32 to vector<8x128xf32>
    %248 = arith.mulf %242, %247 : vector<8x128xf32>
    %249 = vector.broadcast %6 : f32 to vector<8x128xf32>
    %250 = arith.mulf %228, %249 : vector<8x128xf32>
    %251 = vector.broadcast %7 : f32 to vector<8x128xf32>
    %252 = arith.mulf %229, %251 : vector<8x128xf32>
    %253 = arith.addf %250, %252 : vector<8x128xf32>
    %254 = vector.broadcast %8 : f32 to vector<8x128xf32>
    %255 = arith.mulf %230, %254 : vector<8x128xf32>
    %256 = arith.addf %253, %255 : vector<8x128xf32>
    %257 = vector.broadcast %100 : f32 to vector<8x128xf32>
    %258 = arith.addf %256, %257 : vector<8x128xf32>
    %cst_131 = arith.constant 0.000000e+00 : f32
    %259 = vector.broadcast %cst_131 : f32 to vector<8x128xf32>
    %260 = arith.maximumf %258, %259 : vector<8x128xf32>
    %261 = vector.broadcast %134 : f32 to vector<8x128xf32>
    %262 = arith.mulf %260, %261 : vector<8x128xf32>
    %263 = arith.addf %244, %262 : vector<8x128xf32>
    %264 = vector.broadcast %135 : f32 to vector<8x128xf32>
    %265 = arith.mulf %260, %264 : vector<8x128xf32>
    %266 = arith.addf %246, %265 : vector<8x128xf32>
    %267 = vector.broadcast %136 : f32 to vector<8x128xf32>
    %268 = arith.mulf %260, %267 : vector<8x128xf32>
    %269 = arith.addf %248, %268 : vector<8x128xf32>
    %270 = vector.broadcast %9 : f32 to vector<8x128xf32>
    %271 = arith.mulf %228, %270 : vector<8x128xf32>
    %272 = vector.broadcast %10 : f32 to vector<8x128xf32>
    %273 = arith.mulf %229, %272 : vector<8x128xf32>
    %274 = arith.addf %271, %273 : vector<8x128xf32>
    %275 = vector.broadcast %11 : f32 to vector<8x128xf32>
    %276 = arith.mulf %230, %275 : vector<8x128xf32>
    %277 = arith.addf %274, %276 : vector<8x128xf32>
    %278 = vector.broadcast %101 : f32 to vector<8x128xf32>
    %279 = arith.addf %277, %278 : vector<8x128xf32>
    %cst_132 = arith.constant 0.000000e+00 : f32
    %280 = vector.broadcast %cst_132 : f32 to vector<8x128xf32>
    %281 = arith.maximumf %279, %280 : vector<8x128xf32>
    %282 = vector.broadcast %137 : f32 to vector<8x128xf32>
    %283 = arith.mulf %281, %282 : vector<8x128xf32>
    %284 = arith.addf %263, %283 : vector<8x128xf32>
    %285 = vector.broadcast %138 : f32 to vector<8x128xf32>
    %286 = arith.mulf %281, %285 : vector<8x128xf32>
    %287 = arith.addf %266, %286 : vector<8x128xf32>
    %288 = vector.broadcast %139 : f32 to vector<8x128xf32>
    %289 = arith.mulf %281, %288 : vector<8x128xf32>
    %290 = arith.addf %269, %289 : vector<8x128xf32>
    %291 = vector.broadcast %12 : f32 to vector<8x128xf32>
    %292 = arith.mulf %228, %291 : vector<8x128xf32>
    %293 = vector.broadcast %13 : f32 to vector<8x128xf32>
    %294 = arith.mulf %229, %293 : vector<8x128xf32>
    %295 = arith.addf %292, %294 : vector<8x128xf32>
    %296 = vector.broadcast %14 : f32 to vector<8x128xf32>
    %297 = arith.mulf %230, %296 : vector<8x128xf32>
    %298 = arith.addf %295, %297 : vector<8x128xf32>
    %299 = vector.broadcast %102 : f32 to vector<8x128xf32>
    %300 = arith.addf %298, %299 : vector<8x128xf32>
    %cst_133 = arith.constant 0.000000e+00 : f32
    %301 = vector.broadcast %cst_133 : f32 to vector<8x128xf32>
    %302 = arith.maximumf %300, %301 : vector<8x128xf32>
    %303 = vector.broadcast %140 : f32 to vector<8x128xf32>
    %304 = arith.mulf %302, %303 : vector<8x128xf32>
    %305 = arith.addf %284, %304 : vector<8x128xf32>
    %306 = vector.broadcast %141 : f32 to vector<8x128xf32>
    %307 = arith.mulf %302, %306 : vector<8x128xf32>
    %308 = arith.addf %287, %307 : vector<8x128xf32>
    %309 = vector.broadcast %142 : f32 to vector<8x128xf32>
    %310 = arith.mulf %302, %309 : vector<8x128xf32>
    %311 = arith.addf %290, %310 : vector<8x128xf32>
    %312 = vector.broadcast %15 : f32 to vector<8x128xf32>
    %313 = arith.mulf %228, %312 : vector<8x128xf32>
    %314 = vector.broadcast %16 : f32 to vector<8x128xf32>
    %315 = arith.mulf %229, %314 : vector<8x128xf32>
    %316 = arith.addf %313, %315 : vector<8x128xf32>
    %317 = vector.broadcast %17 : f32 to vector<8x128xf32>
    %318 = arith.mulf %230, %317 : vector<8x128xf32>
    %319 = arith.addf %316, %318 : vector<8x128xf32>
    %320 = vector.broadcast %103 : f32 to vector<8x128xf32>
    %321 = arith.addf %319, %320 : vector<8x128xf32>
    %cst_134 = arith.constant 0.000000e+00 : f32
    %322 = vector.broadcast %cst_134 : f32 to vector<8x128xf32>
    %323 = arith.maximumf %321, %322 : vector<8x128xf32>
    %324 = vector.broadcast %143 : f32 to vector<8x128xf32>
    %325 = arith.mulf %323, %324 : vector<8x128xf32>
    %326 = arith.addf %305, %325 : vector<8x128xf32>
    %327 = vector.broadcast %144 : f32 to vector<8x128xf32>
    %328 = arith.mulf %323, %327 : vector<8x128xf32>
    %329 = arith.addf %308, %328 : vector<8x128xf32>
    %330 = vector.broadcast %145 : f32 to vector<8x128xf32>
    %331 = arith.mulf %323, %330 : vector<8x128xf32>
    %332 = arith.addf %311, %331 : vector<8x128xf32>
    %333 = vector.broadcast %18 : f32 to vector<8x128xf32>
    %334 = arith.mulf %228, %333 : vector<8x128xf32>
    %335 = vector.broadcast %19 : f32 to vector<8x128xf32>
    %336 = arith.mulf %229, %335 : vector<8x128xf32>
    %337 = arith.addf %334, %336 : vector<8x128xf32>
    %338 = vector.broadcast %20 : f32 to vector<8x128xf32>
    %339 = arith.mulf %230, %338 : vector<8x128xf32>
    %340 = arith.addf %337, %339 : vector<8x128xf32>
    %341 = vector.broadcast %104 : f32 to vector<8x128xf32>
    %342 = arith.addf %340, %341 : vector<8x128xf32>
    %cst_135 = arith.constant 0.000000e+00 : f32
    %343 = vector.broadcast %cst_135 : f32 to vector<8x128xf32>
    %344 = arith.maximumf %342, %343 : vector<8x128xf32>
    %345 = vector.broadcast %146 : f32 to vector<8x128xf32>
    %346 = arith.mulf %344, %345 : vector<8x128xf32>
    %347 = arith.addf %326, %346 : vector<8x128xf32>
    %348 = vector.broadcast %147 : f32 to vector<8x128xf32>
    %349 = arith.mulf %344, %348 : vector<8x128xf32>
    %350 = arith.addf %329, %349 : vector<8x128xf32>
    %351 = vector.broadcast %148 : f32 to vector<8x128xf32>
    %352 = arith.mulf %344, %351 : vector<8x128xf32>
    %353 = arith.addf %332, %352 : vector<8x128xf32>
    %354 = vector.broadcast %21 : f32 to vector<8x128xf32>
    %355 = arith.mulf %228, %354 : vector<8x128xf32>
    %356 = vector.broadcast %22 : f32 to vector<8x128xf32>
    %357 = arith.mulf %229, %356 : vector<8x128xf32>
    %358 = arith.addf %355, %357 : vector<8x128xf32>
    %359 = vector.broadcast %23 : f32 to vector<8x128xf32>
    %360 = arith.mulf %230, %359 : vector<8x128xf32>
    %361 = arith.addf %358, %360 : vector<8x128xf32>
    %362 = vector.broadcast %105 : f32 to vector<8x128xf32>
    %363 = arith.addf %361, %362 : vector<8x128xf32>
    %cst_136 = arith.constant 0.000000e+00 : f32
    %364 = vector.broadcast %cst_136 : f32 to vector<8x128xf32>
    %365 = arith.maximumf %363, %364 : vector<8x128xf32>
    %366 = vector.broadcast %149 : f32 to vector<8x128xf32>
    %367 = arith.mulf %365, %366 : vector<8x128xf32>
    %368 = arith.addf %347, %367 : vector<8x128xf32>
    %369 = vector.broadcast %150 : f32 to vector<8x128xf32>
    %370 = arith.mulf %365, %369 : vector<8x128xf32>
    %371 = arith.addf %350, %370 : vector<8x128xf32>
    %372 = vector.broadcast %151 : f32 to vector<8x128xf32>
    %373 = arith.mulf %365, %372 : vector<8x128xf32>
    %374 = arith.addf %353, %373 : vector<8x128xf32>
    %375 = vector.broadcast %24 : f32 to vector<8x128xf32>
    %376 = arith.mulf %228, %375 : vector<8x128xf32>
    %377 = vector.broadcast %25 : f32 to vector<8x128xf32>
    %378 = arith.mulf %229, %377 : vector<8x128xf32>
    %379 = arith.addf %376, %378 : vector<8x128xf32>
    %380 = vector.broadcast %26 : f32 to vector<8x128xf32>
    %381 = arith.mulf %230, %380 : vector<8x128xf32>
    %382 = arith.addf %379, %381 : vector<8x128xf32>
    %383 = vector.broadcast %106 : f32 to vector<8x128xf32>
    %384 = arith.addf %382, %383 : vector<8x128xf32>
    %cst_137 = arith.constant 0.000000e+00 : f32
    %385 = vector.broadcast %cst_137 : f32 to vector<8x128xf32>
    %386 = arith.maximumf %384, %385 : vector<8x128xf32>
    %387 = vector.broadcast %152 : f32 to vector<8x128xf32>
    %388 = arith.mulf %386, %387 : vector<8x128xf32>
    %389 = arith.addf %368, %388 : vector<8x128xf32>
    %390 = vector.broadcast %153 : f32 to vector<8x128xf32>
    %391 = arith.mulf %386, %390 : vector<8x128xf32>
    %392 = arith.addf %371, %391 : vector<8x128xf32>
    %393 = vector.broadcast %154 : f32 to vector<8x128xf32>
    %394 = arith.mulf %386, %393 : vector<8x128xf32>
    %395 = arith.addf %374, %394 : vector<8x128xf32>
    %396 = vector.broadcast %27 : f32 to vector<8x128xf32>
    %397 = arith.mulf %228, %396 : vector<8x128xf32>
    %398 = vector.broadcast %28 : f32 to vector<8x128xf32>
    %399 = arith.mulf %229, %398 : vector<8x128xf32>
    %400 = arith.addf %397, %399 : vector<8x128xf32>
    %401 = vector.broadcast %29 : f32 to vector<8x128xf32>
    %402 = arith.mulf %230, %401 : vector<8x128xf32>
    %403 = arith.addf %400, %402 : vector<8x128xf32>
    %404 = vector.broadcast %107 : f32 to vector<8x128xf32>
    %405 = arith.addf %403, %404 : vector<8x128xf32>
    %cst_138 = arith.constant 0.000000e+00 : f32
    %406 = vector.broadcast %cst_138 : f32 to vector<8x128xf32>
    %407 = arith.maximumf %405, %406 : vector<8x128xf32>
    %408 = vector.broadcast %155 : f32 to vector<8x128xf32>
    %409 = arith.mulf %407, %408 : vector<8x128xf32>
    %410 = arith.addf %389, %409 : vector<8x128xf32>
    %411 = vector.broadcast %156 : f32 to vector<8x128xf32>
    %412 = arith.mulf %407, %411 : vector<8x128xf32>
    %413 = arith.addf %392, %412 : vector<8x128xf32>
    %414 = vector.broadcast %157 : f32 to vector<8x128xf32>
    %415 = arith.mulf %407, %414 : vector<8x128xf32>
    %416 = arith.addf %395, %415 : vector<8x128xf32>
    %417 = vector.broadcast %30 : f32 to vector<8x128xf32>
    %418 = arith.mulf %228, %417 : vector<8x128xf32>
    %419 = vector.broadcast %31 : f32 to vector<8x128xf32>
    %420 = arith.mulf %229, %419 : vector<8x128xf32>
    %421 = arith.addf %418, %420 : vector<8x128xf32>
    %422 = vector.broadcast %32 : f32 to vector<8x128xf32>
    %423 = arith.mulf %230, %422 : vector<8x128xf32>
    %424 = arith.addf %421, %423 : vector<8x128xf32>
    %425 = vector.broadcast %108 : f32 to vector<8x128xf32>
    %426 = arith.addf %424, %425 : vector<8x128xf32>
    %cst_139 = arith.constant 0.000000e+00 : f32
    %427 = vector.broadcast %cst_139 : f32 to vector<8x128xf32>
    %428 = arith.maximumf %426, %427 : vector<8x128xf32>
    %429 = vector.broadcast %158 : f32 to vector<8x128xf32>
    %430 = arith.mulf %428, %429 : vector<8x128xf32>
    %431 = arith.addf %410, %430 : vector<8x128xf32>
    %432 = vector.broadcast %159 : f32 to vector<8x128xf32>
    %433 = arith.mulf %428, %432 : vector<8x128xf32>
    %434 = arith.addf %413, %433 : vector<8x128xf32>
    %435 = vector.broadcast %160 : f32 to vector<8x128xf32>
    %436 = arith.mulf %428, %435 : vector<8x128xf32>
    %437 = arith.addf %416, %436 : vector<8x128xf32>
    %438 = vector.broadcast %33 : f32 to vector<8x128xf32>
    %439 = arith.mulf %228, %438 : vector<8x128xf32>
    %440 = vector.broadcast %34 : f32 to vector<8x128xf32>
    %441 = arith.mulf %229, %440 : vector<8x128xf32>
    %442 = arith.addf %439, %441 : vector<8x128xf32>
    %443 = vector.broadcast %35 : f32 to vector<8x128xf32>
    %444 = arith.mulf %230, %443 : vector<8x128xf32>
    %445 = arith.addf %442, %444 : vector<8x128xf32>
    %446 = vector.broadcast %109 : f32 to vector<8x128xf32>
    %447 = arith.addf %445, %446 : vector<8x128xf32>
    %cst_140 = arith.constant 0.000000e+00 : f32
    %448 = vector.broadcast %cst_140 : f32 to vector<8x128xf32>
    %449 = arith.maximumf %447, %448 : vector<8x128xf32>
    %450 = vector.broadcast %161 : f32 to vector<8x128xf32>
    %451 = arith.mulf %449, %450 : vector<8x128xf32>
    %452 = arith.addf %431, %451 : vector<8x128xf32>
    %453 = vector.broadcast %162 : f32 to vector<8x128xf32>
    %454 = arith.mulf %449, %453 : vector<8x128xf32>
    %455 = arith.addf %434, %454 : vector<8x128xf32>
    %456 = vector.broadcast %163 : f32 to vector<8x128xf32>
    %457 = arith.mulf %449, %456 : vector<8x128xf32>
    %458 = arith.addf %437, %457 : vector<8x128xf32>
    %459 = vector.broadcast %36 : f32 to vector<8x128xf32>
    %460 = arith.mulf %228, %459 : vector<8x128xf32>
    %461 = vector.broadcast %37 : f32 to vector<8x128xf32>
    %462 = arith.mulf %229, %461 : vector<8x128xf32>
    %463 = arith.addf %460, %462 : vector<8x128xf32>
    %464 = vector.broadcast %38 : f32 to vector<8x128xf32>
    %465 = arith.mulf %230, %464 : vector<8x128xf32>
    %466 = arith.addf %463, %465 : vector<8x128xf32>
    %467 = vector.broadcast %110 : f32 to vector<8x128xf32>
    %468 = arith.addf %466, %467 : vector<8x128xf32>
    %cst_141 = arith.constant 0.000000e+00 : f32
    %469 = vector.broadcast %cst_141 : f32 to vector<8x128xf32>
    %470 = arith.maximumf %468, %469 : vector<8x128xf32>
    %471 = vector.broadcast %164 : f32 to vector<8x128xf32>
    %472 = arith.mulf %470, %471 : vector<8x128xf32>
    %473 = arith.addf %452, %472 : vector<8x128xf32>
    %474 = vector.broadcast %165 : f32 to vector<8x128xf32>
    %475 = arith.mulf %470, %474 : vector<8x128xf32>
    %476 = arith.addf %455, %475 : vector<8x128xf32>
    %477 = vector.broadcast %166 : f32 to vector<8x128xf32>
    %478 = arith.mulf %470, %477 : vector<8x128xf32>
    %479 = arith.addf %458, %478 : vector<8x128xf32>
    %480 = vector.broadcast %39 : f32 to vector<8x128xf32>
    %481 = arith.mulf %228, %480 : vector<8x128xf32>
    %482 = vector.broadcast %40 : f32 to vector<8x128xf32>
    %483 = arith.mulf %229, %482 : vector<8x128xf32>
    %484 = arith.addf %481, %483 : vector<8x128xf32>
    %485 = vector.broadcast %41 : f32 to vector<8x128xf32>
    %486 = arith.mulf %230, %485 : vector<8x128xf32>
    %487 = arith.addf %484, %486 : vector<8x128xf32>
    %488 = vector.broadcast %111 : f32 to vector<8x128xf32>
    %489 = arith.addf %487, %488 : vector<8x128xf32>
    %cst_142 = arith.constant 0.000000e+00 : f32
    %490 = vector.broadcast %cst_142 : f32 to vector<8x128xf32>
    %491 = arith.maximumf %489, %490 : vector<8x128xf32>
    %492 = vector.broadcast %167 : f32 to vector<8x128xf32>
    %493 = arith.mulf %491, %492 : vector<8x128xf32>
    %494 = arith.addf %473, %493 : vector<8x128xf32>
    %495 = vector.broadcast %168 : f32 to vector<8x128xf32>
    %496 = arith.mulf %491, %495 : vector<8x128xf32>
    %497 = arith.addf %476, %496 : vector<8x128xf32>
    %498 = vector.broadcast %169 : f32 to vector<8x128xf32>
    %499 = arith.mulf %491, %498 : vector<8x128xf32>
    %500 = arith.addf %479, %499 : vector<8x128xf32>
    %501 = vector.broadcast %42 : f32 to vector<8x128xf32>
    %502 = arith.mulf %228, %501 : vector<8x128xf32>
    %503 = vector.broadcast %43 : f32 to vector<8x128xf32>
    %504 = arith.mulf %229, %503 : vector<8x128xf32>
    %505 = arith.addf %502, %504 : vector<8x128xf32>
    %506 = vector.broadcast %44 : f32 to vector<8x128xf32>
    %507 = arith.mulf %230, %506 : vector<8x128xf32>
    %508 = arith.addf %505, %507 : vector<8x128xf32>
    %509 = vector.broadcast %112 : f32 to vector<8x128xf32>
    %510 = arith.addf %508, %509 : vector<8x128xf32>
    %cst_143 = arith.constant 0.000000e+00 : f32
    %511 = vector.broadcast %cst_143 : f32 to vector<8x128xf32>
    %512 = arith.maximumf %510, %511 : vector<8x128xf32>
    %513 = vector.broadcast %170 : f32 to vector<8x128xf32>
    %514 = arith.mulf %512, %513 : vector<8x128xf32>
    %515 = arith.addf %494, %514 : vector<8x128xf32>
    %516 = vector.broadcast %171 : f32 to vector<8x128xf32>
    %517 = arith.mulf %512, %516 : vector<8x128xf32>
    %518 = arith.addf %497, %517 : vector<8x128xf32>
    %519 = vector.broadcast %172 : f32 to vector<8x128xf32>
    %520 = arith.mulf %512, %519 : vector<8x128xf32>
    %521 = arith.addf %500, %520 : vector<8x128xf32>
    %522 = vector.broadcast %45 : f32 to vector<8x128xf32>
    %523 = arith.mulf %228, %522 : vector<8x128xf32>
    %524 = vector.broadcast %46 : f32 to vector<8x128xf32>
    %525 = arith.mulf %229, %524 : vector<8x128xf32>
    %526 = arith.addf %523, %525 : vector<8x128xf32>
    %527 = vector.broadcast %47 : f32 to vector<8x128xf32>
    %528 = arith.mulf %230, %527 : vector<8x128xf32>
    %529 = arith.addf %526, %528 : vector<8x128xf32>
    %530 = vector.broadcast %113 : f32 to vector<8x128xf32>
    %531 = arith.addf %529, %530 : vector<8x128xf32>
    %cst_144 = arith.constant 0.000000e+00 : f32
    %532 = vector.broadcast %cst_144 : f32 to vector<8x128xf32>
    %533 = arith.maximumf %531, %532 : vector<8x128xf32>
    %534 = vector.broadcast %173 : f32 to vector<8x128xf32>
    %535 = arith.mulf %533, %534 : vector<8x128xf32>
    %536 = arith.addf %515, %535 : vector<8x128xf32>
    %537 = vector.broadcast %174 : f32 to vector<8x128xf32>
    %538 = arith.mulf %533, %537 : vector<8x128xf32>
    %539 = arith.addf %518, %538 : vector<8x128xf32>
    %540 = vector.broadcast %175 : f32 to vector<8x128xf32>
    %541 = arith.mulf %533, %540 : vector<8x128xf32>
    %542 = arith.addf %521, %541 : vector<8x128xf32>
    %543 = vector.broadcast %48 : f32 to vector<8x128xf32>
    %544 = arith.mulf %228, %543 : vector<8x128xf32>
    %545 = vector.broadcast %49 : f32 to vector<8x128xf32>
    %546 = arith.mulf %229, %545 : vector<8x128xf32>
    %547 = arith.addf %544, %546 : vector<8x128xf32>
    %548 = vector.broadcast %50 : f32 to vector<8x128xf32>
    %549 = arith.mulf %230, %548 : vector<8x128xf32>
    %550 = arith.addf %547, %549 : vector<8x128xf32>
    %551 = vector.broadcast %114 : f32 to vector<8x128xf32>
    %552 = arith.addf %550, %551 : vector<8x128xf32>
    %cst_145 = arith.constant 0.000000e+00 : f32
    %553 = vector.broadcast %cst_145 : f32 to vector<8x128xf32>
    %554 = arith.maximumf %552, %553 : vector<8x128xf32>
    %555 = vector.broadcast %176 : f32 to vector<8x128xf32>
    %556 = arith.mulf %554, %555 : vector<8x128xf32>
    %557 = arith.addf %536, %556 : vector<8x128xf32>
    %558 = vector.broadcast %177 : f32 to vector<8x128xf32>
    %559 = arith.mulf %554, %558 : vector<8x128xf32>
    %560 = arith.addf %539, %559 : vector<8x128xf32>
    %561 = vector.broadcast %178 : f32 to vector<8x128xf32>
    %562 = arith.mulf %554, %561 : vector<8x128xf32>
    %563 = arith.addf %542, %562 : vector<8x128xf32>
    %564 = vector.broadcast %51 : f32 to vector<8x128xf32>
    %565 = arith.mulf %228, %564 : vector<8x128xf32>
    %566 = vector.broadcast %52 : f32 to vector<8x128xf32>
    %567 = arith.mulf %229, %566 : vector<8x128xf32>
    %568 = arith.addf %565, %567 : vector<8x128xf32>
    %569 = vector.broadcast %53 : f32 to vector<8x128xf32>
    %570 = arith.mulf %230, %569 : vector<8x128xf32>
    %571 = arith.addf %568, %570 : vector<8x128xf32>
    %572 = vector.broadcast %115 : f32 to vector<8x128xf32>
    %573 = arith.addf %571, %572 : vector<8x128xf32>
    %cst_146 = arith.constant 0.000000e+00 : f32
    %574 = vector.broadcast %cst_146 : f32 to vector<8x128xf32>
    %575 = arith.maximumf %573, %574 : vector<8x128xf32>
    %576 = vector.broadcast %179 : f32 to vector<8x128xf32>
    %577 = arith.mulf %575, %576 : vector<8x128xf32>
    %578 = arith.addf %557, %577 : vector<8x128xf32>
    %579 = vector.broadcast %180 : f32 to vector<8x128xf32>
    %580 = arith.mulf %575, %579 : vector<8x128xf32>
    %581 = arith.addf %560, %580 : vector<8x128xf32>
    %582 = vector.broadcast %181 : f32 to vector<8x128xf32>
    %583 = arith.mulf %575, %582 : vector<8x128xf32>
    %584 = arith.addf %563, %583 : vector<8x128xf32>
    %585 = vector.broadcast %54 : f32 to vector<8x128xf32>
    %586 = arith.mulf %228, %585 : vector<8x128xf32>
    %587 = vector.broadcast %55 : f32 to vector<8x128xf32>
    %588 = arith.mulf %229, %587 : vector<8x128xf32>
    %589 = arith.addf %586, %588 : vector<8x128xf32>
    %590 = vector.broadcast %56 : f32 to vector<8x128xf32>
    %591 = arith.mulf %230, %590 : vector<8x128xf32>
    %592 = arith.addf %589, %591 : vector<8x128xf32>
    %593 = vector.broadcast %116 : f32 to vector<8x128xf32>
    %594 = arith.addf %592, %593 : vector<8x128xf32>
    %cst_147 = arith.constant 0.000000e+00 : f32
    %595 = vector.broadcast %cst_147 : f32 to vector<8x128xf32>
    %596 = arith.maximumf %594, %595 : vector<8x128xf32>
    %597 = vector.broadcast %182 : f32 to vector<8x128xf32>
    %598 = arith.mulf %596, %597 : vector<8x128xf32>
    %599 = arith.addf %578, %598 : vector<8x128xf32>
    %600 = vector.broadcast %183 : f32 to vector<8x128xf32>
    %601 = arith.mulf %596, %600 : vector<8x128xf32>
    %602 = arith.addf %581, %601 : vector<8x128xf32>
    %603 = vector.broadcast %184 : f32 to vector<8x128xf32>
    %604 = arith.mulf %596, %603 : vector<8x128xf32>
    %605 = arith.addf %584, %604 : vector<8x128xf32>
    %606 = vector.broadcast %57 : f32 to vector<8x128xf32>
    %607 = arith.mulf %228, %606 : vector<8x128xf32>
    %608 = vector.broadcast %58 : f32 to vector<8x128xf32>
    %609 = arith.mulf %229, %608 : vector<8x128xf32>
    %610 = arith.addf %607, %609 : vector<8x128xf32>
    %611 = vector.broadcast %59 : f32 to vector<8x128xf32>
    %612 = arith.mulf %230, %611 : vector<8x128xf32>
    %613 = arith.addf %610, %612 : vector<8x128xf32>
    %614 = vector.broadcast %117 : f32 to vector<8x128xf32>
    %615 = arith.addf %613, %614 : vector<8x128xf32>
    %cst_148 = arith.constant 0.000000e+00 : f32
    %616 = vector.broadcast %cst_148 : f32 to vector<8x128xf32>
    %617 = arith.maximumf %615, %616 : vector<8x128xf32>
    %618 = vector.broadcast %185 : f32 to vector<8x128xf32>
    %619 = arith.mulf %617, %618 : vector<8x128xf32>
    %620 = arith.addf %599, %619 : vector<8x128xf32>
    %621 = vector.broadcast %186 : f32 to vector<8x128xf32>
    %622 = arith.mulf %617, %621 : vector<8x128xf32>
    %623 = arith.addf %602, %622 : vector<8x128xf32>
    %624 = vector.broadcast %187 : f32 to vector<8x128xf32>
    %625 = arith.mulf %617, %624 : vector<8x128xf32>
    %626 = arith.addf %605, %625 : vector<8x128xf32>
    %627 = vector.broadcast %60 : f32 to vector<8x128xf32>
    %628 = arith.mulf %228, %627 : vector<8x128xf32>
    %629 = vector.broadcast %61 : f32 to vector<8x128xf32>
    %630 = arith.mulf %229, %629 : vector<8x128xf32>
    %631 = arith.addf %628, %630 : vector<8x128xf32>
    %632 = vector.broadcast %62 : f32 to vector<8x128xf32>
    %633 = arith.mulf %230, %632 : vector<8x128xf32>
    %634 = arith.addf %631, %633 : vector<8x128xf32>
    %635 = vector.broadcast %118 : f32 to vector<8x128xf32>
    %636 = arith.addf %634, %635 : vector<8x128xf32>
    %cst_149 = arith.constant 0.000000e+00 : f32
    %637 = vector.broadcast %cst_149 : f32 to vector<8x128xf32>
    %638 = arith.maximumf %636, %637 : vector<8x128xf32>
    %639 = vector.broadcast %188 : f32 to vector<8x128xf32>
    %640 = arith.mulf %638, %639 : vector<8x128xf32>
    %641 = arith.addf %620, %640 : vector<8x128xf32>
    %642 = vector.broadcast %189 : f32 to vector<8x128xf32>
    %643 = arith.mulf %638, %642 : vector<8x128xf32>
    %644 = arith.addf %623, %643 : vector<8x128xf32>
    %645 = vector.broadcast %190 : f32 to vector<8x128xf32>
    %646 = arith.mulf %638, %645 : vector<8x128xf32>
    %647 = arith.addf %626, %646 : vector<8x128xf32>
    %648 = vector.broadcast %63 : f32 to vector<8x128xf32>
    %649 = arith.mulf %228, %648 : vector<8x128xf32>
    %650 = vector.broadcast %64 : f32 to vector<8x128xf32>
    %651 = arith.mulf %229, %650 : vector<8x128xf32>
    %652 = arith.addf %649, %651 : vector<8x128xf32>
    %653 = vector.broadcast %65 : f32 to vector<8x128xf32>
    %654 = arith.mulf %230, %653 : vector<8x128xf32>
    %655 = arith.addf %652, %654 : vector<8x128xf32>
    %656 = vector.broadcast %119 : f32 to vector<8x128xf32>
    %657 = arith.addf %655, %656 : vector<8x128xf32>
    %cst_150 = arith.constant 0.000000e+00 : f32
    %658 = vector.broadcast %cst_150 : f32 to vector<8x128xf32>
    %659 = arith.maximumf %657, %658 : vector<8x128xf32>
    %660 = vector.broadcast %191 : f32 to vector<8x128xf32>
    %661 = arith.mulf %659, %660 : vector<8x128xf32>
    %662 = arith.addf %641, %661 : vector<8x128xf32>
    %663 = vector.broadcast %192 : f32 to vector<8x128xf32>
    %664 = arith.mulf %659, %663 : vector<8x128xf32>
    %665 = arith.addf %644, %664 : vector<8x128xf32>
    %666 = vector.broadcast %193 : f32 to vector<8x128xf32>
    %667 = arith.mulf %659, %666 : vector<8x128xf32>
    %668 = arith.addf %647, %667 : vector<8x128xf32>
    %669 = vector.broadcast %66 : f32 to vector<8x128xf32>
    %670 = arith.mulf %228, %669 : vector<8x128xf32>
    %671 = vector.broadcast %67 : f32 to vector<8x128xf32>
    %672 = arith.mulf %229, %671 : vector<8x128xf32>
    %673 = arith.addf %670, %672 : vector<8x128xf32>
    %674 = vector.broadcast %68 : f32 to vector<8x128xf32>
    %675 = arith.mulf %230, %674 : vector<8x128xf32>
    %676 = arith.addf %673, %675 : vector<8x128xf32>
    %677 = vector.broadcast %120 : f32 to vector<8x128xf32>
    %678 = arith.addf %676, %677 : vector<8x128xf32>
    %cst_151 = arith.constant 0.000000e+00 : f32
    %679 = vector.broadcast %cst_151 : f32 to vector<8x128xf32>
    %680 = arith.maximumf %678, %679 : vector<8x128xf32>
    %681 = vector.broadcast %194 : f32 to vector<8x128xf32>
    %682 = arith.mulf %680, %681 : vector<8x128xf32>
    %683 = arith.addf %662, %682 : vector<8x128xf32>
    %684 = vector.broadcast %195 : f32 to vector<8x128xf32>
    %685 = arith.mulf %680, %684 : vector<8x128xf32>
    %686 = arith.addf %665, %685 : vector<8x128xf32>
    %687 = vector.broadcast %196 : f32 to vector<8x128xf32>
    %688 = arith.mulf %680, %687 : vector<8x128xf32>
    %689 = arith.addf %668, %688 : vector<8x128xf32>
    %690 = vector.broadcast %69 : f32 to vector<8x128xf32>
    %691 = arith.mulf %228, %690 : vector<8x128xf32>
    %692 = vector.broadcast %70 : f32 to vector<8x128xf32>
    %693 = arith.mulf %229, %692 : vector<8x128xf32>
    %694 = arith.addf %691, %693 : vector<8x128xf32>
    %695 = vector.broadcast %71 : f32 to vector<8x128xf32>
    %696 = arith.mulf %230, %695 : vector<8x128xf32>
    %697 = arith.addf %694, %696 : vector<8x128xf32>
    %698 = vector.broadcast %121 : f32 to vector<8x128xf32>
    %699 = arith.addf %697, %698 : vector<8x128xf32>
    %cst_152 = arith.constant 0.000000e+00 : f32
    %700 = vector.broadcast %cst_152 : f32 to vector<8x128xf32>
    %701 = arith.maximumf %699, %700 : vector<8x128xf32>
    %702 = vector.broadcast %197 : f32 to vector<8x128xf32>
    %703 = arith.mulf %701, %702 : vector<8x128xf32>
    %704 = arith.addf %683, %703 : vector<8x128xf32>
    %705 = vector.broadcast %198 : f32 to vector<8x128xf32>
    %706 = arith.mulf %701, %705 : vector<8x128xf32>
    %707 = arith.addf %686, %706 : vector<8x128xf32>
    %708 = vector.broadcast %199 : f32 to vector<8x128xf32>
    %709 = arith.mulf %701, %708 : vector<8x128xf32>
    %710 = arith.addf %689, %709 : vector<8x128xf32>
    %711 = vector.broadcast %72 : f32 to vector<8x128xf32>
    %712 = arith.mulf %228, %711 : vector<8x128xf32>
    %713 = vector.broadcast %73 : f32 to vector<8x128xf32>
    %714 = arith.mulf %229, %713 : vector<8x128xf32>
    %715 = arith.addf %712, %714 : vector<8x128xf32>
    %716 = vector.broadcast %74 : f32 to vector<8x128xf32>
    %717 = arith.mulf %230, %716 : vector<8x128xf32>
    %718 = arith.addf %715, %717 : vector<8x128xf32>
    %719 = vector.broadcast %122 : f32 to vector<8x128xf32>
    %720 = arith.addf %718, %719 : vector<8x128xf32>
    %cst_153 = arith.constant 0.000000e+00 : f32
    %721 = vector.broadcast %cst_153 : f32 to vector<8x128xf32>
    %722 = arith.maximumf %720, %721 : vector<8x128xf32>
    %723 = vector.broadcast %200 : f32 to vector<8x128xf32>
    %724 = arith.mulf %722, %723 : vector<8x128xf32>
    %725 = arith.addf %704, %724 : vector<8x128xf32>
    %726 = vector.broadcast %201 : f32 to vector<8x128xf32>
    %727 = arith.mulf %722, %726 : vector<8x128xf32>
    %728 = arith.addf %707, %727 : vector<8x128xf32>
    %729 = vector.broadcast %202 : f32 to vector<8x128xf32>
    %730 = arith.mulf %722, %729 : vector<8x128xf32>
    %731 = arith.addf %710, %730 : vector<8x128xf32>
    %732 = vector.broadcast %75 : f32 to vector<8x128xf32>
    %733 = arith.mulf %228, %732 : vector<8x128xf32>
    %734 = vector.broadcast %76 : f32 to vector<8x128xf32>
    %735 = arith.mulf %229, %734 : vector<8x128xf32>
    %736 = arith.addf %733, %735 : vector<8x128xf32>
    %737 = vector.broadcast %77 : f32 to vector<8x128xf32>
    %738 = arith.mulf %230, %737 : vector<8x128xf32>
    %739 = arith.addf %736, %738 : vector<8x128xf32>
    %740 = vector.broadcast %123 : f32 to vector<8x128xf32>
    %741 = arith.addf %739, %740 : vector<8x128xf32>
    %cst_154 = arith.constant 0.000000e+00 : f32
    %742 = vector.broadcast %cst_154 : f32 to vector<8x128xf32>
    %743 = arith.maximumf %741, %742 : vector<8x128xf32>
    %744 = vector.broadcast %203 : f32 to vector<8x128xf32>
    %745 = arith.mulf %743, %744 : vector<8x128xf32>
    %746 = arith.addf %725, %745 : vector<8x128xf32>
    %747 = vector.broadcast %204 : f32 to vector<8x128xf32>
    %748 = arith.mulf %743, %747 : vector<8x128xf32>
    %749 = arith.addf %728, %748 : vector<8x128xf32>
    %750 = vector.broadcast %205 : f32 to vector<8x128xf32>
    %751 = arith.mulf %743, %750 : vector<8x128xf32>
    %752 = arith.addf %731, %751 : vector<8x128xf32>
    %753 = vector.broadcast %78 : f32 to vector<8x128xf32>
    %754 = arith.mulf %228, %753 : vector<8x128xf32>
    %755 = vector.broadcast %79 : f32 to vector<8x128xf32>
    %756 = arith.mulf %229, %755 : vector<8x128xf32>
    %757 = arith.addf %754, %756 : vector<8x128xf32>
    %758 = vector.broadcast %80 : f32 to vector<8x128xf32>
    %759 = arith.mulf %230, %758 : vector<8x128xf32>
    %760 = arith.addf %757, %759 : vector<8x128xf32>
    %761 = vector.broadcast %124 : f32 to vector<8x128xf32>
    %762 = arith.addf %760, %761 : vector<8x128xf32>
    %cst_155 = arith.constant 0.000000e+00 : f32
    %763 = vector.broadcast %cst_155 : f32 to vector<8x128xf32>
    %764 = arith.maximumf %762, %763 : vector<8x128xf32>
    %765 = vector.broadcast %206 : f32 to vector<8x128xf32>
    %766 = arith.mulf %764, %765 : vector<8x128xf32>
    %767 = arith.addf %746, %766 : vector<8x128xf32>
    %768 = vector.broadcast %207 : f32 to vector<8x128xf32>
    %769 = arith.mulf %764, %768 : vector<8x128xf32>
    %770 = arith.addf %749, %769 : vector<8x128xf32>
    %771 = vector.broadcast %208 : f32 to vector<8x128xf32>
    %772 = arith.mulf %764, %771 : vector<8x128xf32>
    %773 = arith.addf %752, %772 : vector<8x128xf32>
    %774 = vector.broadcast %81 : f32 to vector<8x128xf32>
    %775 = arith.mulf %228, %774 : vector<8x128xf32>
    %776 = vector.broadcast %82 : f32 to vector<8x128xf32>
    %777 = arith.mulf %229, %776 : vector<8x128xf32>
    %778 = arith.addf %775, %777 : vector<8x128xf32>
    %779 = vector.broadcast %83 : f32 to vector<8x128xf32>
    %780 = arith.mulf %230, %779 : vector<8x128xf32>
    %781 = arith.addf %778, %780 : vector<8x128xf32>
    %782 = vector.broadcast %125 : f32 to vector<8x128xf32>
    %783 = arith.addf %781, %782 : vector<8x128xf32>
    %cst_156 = arith.constant 0.000000e+00 : f32
    %784 = vector.broadcast %cst_156 : f32 to vector<8x128xf32>
    %785 = arith.maximumf %783, %784 : vector<8x128xf32>
    %786 = vector.broadcast %209 : f32 to vector<8x128xf32>
    %787 = arith.mulf %785, %786 : vector<8x128xf32>
    %788 = arith.addf %767, %787 : vector<8x128xf32>
    %789 = vector.broadcast %210 : f32 to vector<8x128xf32>
    %790 = arith.mulf %785, %789 : vector<8x128xf32>
    %791 = arith.addf %770, %790 : vector<8x128xf32>
    %792 = vector.broadcast %211 : f32 to vector<8x128xf32>
    %793 = arith.mulf %785, %792 : vector<8x128xf32>
    %794 = arith.addf %773, %793 : vector<8x128xf32>
    %795 = vector.broadcast %84 : f32 to vector<8x128xf32>
    %796 = arith.mulf %228, %795 : vector<8x128xf32>
    %797 = vector.broadcast %85 : f32 to vector<8x128xf32>
    %798 = arith.mulf %229, %797 : vector<8x128xf32>
    %799 = arith.addf %796, %798 : vector<8x128xf32>
    %800 = vector.broadcast %86 : f32 to vector<8x128xf32>
    %801 = arith.mulf %230, %800 : vector<8x128xf32>
    %802 = arith.addf %799, %801 : vector<8x128xf32>
    %803 = vector.broadcast %126 : f32 to vector<8x128xf32>
    %804 = arith.addf %802, %803 : vector<8x128xf32>
    %cst_157 = arith.constant 0.000000e+00 : f32
    %805 = vector.broadcast %cst_157 : f32 to vector<8x128xf32>
    %806 = arith.maximumf %804, %805 : vector<8x128xf32>
    %807 = vector.broadcast %212 : f32 to vector<8x128xf32>
    %808 = arith.mulf %806, %807 : vector<8x128xf32>
    %809 = arith.addf %788, %808 : vector<8x128xf32>
    %810 = vector.broadcast %213 : f32 to vector<8x128xf32>
    %811 = arith.mulf %806, %810 : vector<8x128xf32>
    %812 = arith.addf %791, %811 : vector<8x128xf32>
    %813 = vector.broadcast %214 : f32 to vector<8x128xf32>
    %814 = arith.mulf %806, %813 : vector<8x128xf32>
    %815 = arith.addf %794, %814 : vector<8x128xf32>
    %816 = vector.broadcast %87 : f32 to vector<8x128xf32>
    %817 = arith.mulf %228, %816 : vector<8x128xf32>
    %818 = vector.broadcast %88 : f32 to vector<8x128xf32>
    %819 = arith.mulf %229, %818 : vector<8x128xf32>
    %820 = arith.addf %817, %819 : vector<8x128xf32>
    %821 = vector.broadcast %89 : f32 to vector<8x128xf32>
    %822 = arith.mulf %230, %821 : vector<8x128xf32>
    %823 = arith.addf %820, %822 : vector<8x128xf32>
    %824 = vector.broadcast %127 : f32 to vector<8x128xf32>
    %825 = arith.addf %823, %824 : vector<8x128xf32>
    %cst_158 = arith.constant 0.000000e+00 : f32
    %826 = vector.broadcast %cst_158 : f32 to vector<8x128xf32>
    %827 = arith.maximumf %825, %826 : vector<8x128xf32>
    %828 = vector.broadcast %215 : f32 to vector<8x128xf32>
    %829 = arith.mulf %827, %828 : vector<8x128xf32>
    %830 = arith.addf %809, %829 : vector<8x128xf32>
    %831 = vector.broadcast %216 : f32 to vector<8x128xf32>
    %832 = arith.mulf %827, %831 : vector<8x128xf32>
    %833 = arith.addf %812, %832 : vector<8x128xf32>
    %834 = vector.broadcast %217 : f32 to vector<8x128xf32>
    %835 = arith.mulf %827, %834 : vector<8x128xf32>
    %836 = arith.addf %815, %835 : vector<8x128xf32>
    %837 = vector.broadcast %90 : f32 to vector<8x128xf32>
    %838 = arith.mulf %228, %837 : vector<8x128xf32>
    %839 = vector.broadcast %91 : f32 to vector<8x128xf32>
    %840 = arith.mulf %229, %839 : vector<8x128xf32>
    %841 = arith.addf %838, %840 : vector<8x128xf32>
    %842 = vector.broadcast %92 : f32 to vector<8x128xf32>
    %843 = arith.mulf %230, %842 : vector<8x128xf32>
    %844 = arith.addf %841, %843 : vector<8x128xf32>
    %845 = vector.broadcast %128 : f32 to vector<8x128xf32>
    %846 = arith.addf %844, %845 : vector<8x128xf32>
    %cst_159 = arith.constant 0.000000e+00 : f32
    %847 = vector.broadcast %cst_159 : f32 to vector<8x128xf32>
    %848 = arith.maximumf %846, %847 : vector<8x128xf32>
    %849 = vector.broadcast %218 : f32 to vector<8x128xf32>
    %850 = arith.mulf %848, %849 : vector<8x128xf32>
    %851 = arith.addf %830, %850 : vector<8x128xf32>
    %852 = vector.broadcast %219 : f32 to vector<8x128xf32>
    %853 = arith.mulf %848, %852 : vector<8x128xf32>
    %854 = arith.addf %833, %853 : vector<8x128xf32>
    %855 = vector.broadcast %220 : f32 to vector<8x128xf32>
    %856 = arith.mulf %848, %855 : vector<8x128xf32>
    %857 = arith.addf %836, %856 : vector<8x128xf32>
    %858 = vector.broadcast %93 : f32 to vector<8x128xf32>
    %859 = arith.mulf %228, %858 : vector<8x128xf32>
    %860 = vector.broadcast %94 : f32 to vector<8x128xf32>
    %861 = arith.mulf %229, %860 : vector<8x128xf32>
    %862 = arith.addf %859, %861 : vector<8x128xf32>
    %863 = vector.broadcast %95 : f32 to vector<8x128xf32>
    %864 = arith.mulf %230, %863 : vector<8x128xf32>
    %865 = arith.addf %862, %864 : vector<8x128xf32>
    %866 = vector.broadcast %129 : f32 to vector<8x128xf32>
    %867 = arith.addf %865, %866 : vector<8x128xf32>
    %cst_160 = arith.constant 0.000000e+00 : f32
    %868 = vector.broadcast %cst_160 : f32 to vector<8x128xf32>
    %869 = arith.maximumf %867, %868 : vector<8x128xf32>
    %870 = vector.broadcast %221 : f32 to vector<8x128xf32>
    %871 = arith.mulf %869, %870 : vector<8x128xf32>
    %872 = arith.addf %851, %871 : vector<8x128xf32>
    %873 = vector.broadcast %222 : f32 to vector<8x128xf32>
    %874 = arith.mulf %869, %873 : vector<8x128xf32>
    %875 = arith.addf %854, %874 : vector<8x128xf32>
    %876 = vector.broadcast %223 : f32 to vector<8x128xf32>
    %877 = arith.mulf %869, %876 : vector<8x128xf32>
    %878 = arith.addf %857, %877 : vector<8x128xf32>
    %879 = vector.broadcast %96 : f32 to vector<8x128xf32>
    %880 = arith.mulf %228, %879 : vector<8x128xf32>
    %881 = vector.broadcast %97 : f32 to vector<8x128xf32>
    %882 = arith.mulf %229, %881 : vector<8x128xf32>
    %883 = arith.addf %880, %882 : vector<8x128xf32>
    %884 = vector.broadcast %98 : f32 to vector<8x128xf32>
    %885 = arith.mulf %230, %884 : vector<8x128xf32>
    %886 = arith.addf %883, %885 : vector<8x128xf32>
    %887 = vector.broadcast %130 : f32 to vector<8x128xf32>
    %888 = arith.addf %886, %887 : vector<8x128xf32>
    %cst_161 = arith.constant 0.000000e+00 : f32
    %889 = vector.broadcast %cst_161 : f32 to vector<8x128xf32>
    %890 = arith.maximumf %888, %889 : vector<8x128xf32>
    %891 = vector.broadcast %224 : f32 to vector<8x128xf32>
    %892 = arith.mulf %890, %891 : vector<8x128xf32>
    %893 = arith.addf %872, %892 : vector<8x128xf32>
    %894 = vector.broadcast %225 : f32 to vector<8x128xf32>
    %895 = arith.mulf %890, %894 : vector<8x128xf32>
    %896 = arith.addf %875, %895 : vector<8x128xf32>
    %897 = vector.broadcast %226 : f32 to vector<8x128xf32>
    %898 = arith.mulf %890, %897 : vector<8x128xf32>
    %899 = arith.addf %878, %898 : vector<8x128xf32>
    %cst_162 = arith.constant 0.000000e+00 : f32
    %900 = vector.broadcast %cst_162 : f32 to vector<8x128xf32>
    %901 = arith.select %2, %893, %900 : vector<8x128xi1>, vector<8x128xf32>
    %902 = vector.broadcast %227 : f32 to vector<8x128xf32>
    %903 = arith.addf %901, %902 : vector<8x128xf32>
    %cst_163 = arith.constant 0.000000e+00 : f32
    %904 = vector.broadcast %cst_163 : f32 to vector<8x128xf32>
    %905 = arith.select %2, %896, %904 : vector<8x128xi1>, vector<8x128xf32>
    %c1_i32 = arith.constant 1 : i32
    %906 = tpu.dynamic_rotate %905 by %c1_i32 dim 1 : vector<8x128xf32>, i32 -> vector<8x128xf32>
    %907 = arith.addf %903, %906 : vector<8x128xf32>
    %cst_164 = arith.constant 0.000000e+00 : f32
    %908 = vector.broadcast %cst_164 : f32 to vector<8x128xf32>
    %909 = arith.select %2, %899, %908 : vector<8x128xi1>, vector<8x128xf32>
    %c2_i32 = arith.constant 2 : i32
    %910 = tpu.dynamic_rotate %909 by %c2_i32 dim 1 : vector<8x128xf32>, i32 -> vector<8x128xf32>
    %911 = arith.addf %907, %910 : vector<8x128xf32>
    %c0_165 = arith.constant 0 : index
    %c0_166 = arith.constant 0 : index
    %912 = vector.load %arg6[%c0_165, %c0_166] : memref<16x128xf32, #tpu.memory_space<vmem>>, vector<8x128xf32>
    tpu.vector_store %arg6[%c0_165, %c0_166], %911 {strides = array<i32>} : memref<16x128xf32, #tpu.memory_space<vmem>>, vector<8x128xf32>,
    %c8_167 = arith.constant 8 : index
    %c0_168 = arith.constant 0 : index
    %913 = vector.load %arg1[%c8_167, %c0_168] : memref<16x128xf32, #tpu.memory_space<vmem>>, vector<8x128xf32>
    %c127_i32_169 = arith.constant 127 : i32
    %914 = tpu.dynamic_rotate %913 by %c127_i32_169 dim 1 : vector<8x128xf32>, i32 -> vector<8x128xf32>
    %c126_i32_170 = arith.constant 126 : i32
    %915 = tpu.dynamic_rotate %913 by %c126_i32_170 dim 1 : vector<8x128xf32>, i32 -> vector<8x128xf32>
    %916 = vector.broadcast %3 : f32 to vector<8x128xf32>
    %917 = arith.mulf %913, %916 : vector<8x128xf32>
    %918 = vector.broadcast %4 : f32 to vector<8x128xf32>
    %919 = arith.mulf %914, %918 : vector<8x128xf32>
    %920 = arith.addf %917, %919 : vector<8x128xf32>
    %921 = vector.broadcast %5 : f32 to vector<8x128xf32>
    %922 = arith.mulf %915, %921 : vector<8x128xf32>
    %923 = arith.addf %920, %922 : vector<8x128xf32>
    %924 = vector.broadcast %99 : f32 to vector<8x128xf32>
    %925 = arith.addf %923, %924 : vector<8x128xf32>
    %cst_171 = arith.constant 0.000000e+00 : f32
    %926 = vector.broadcast %cst_171 : f32 to vector<8x128xf32>
    %927 = arith.maximumf %925, %926 : vector<8x128xf32>
    %928 = vector.broadcast %131 : f32 to vector<8x128xf32>
    %929 = arith.mulf %927, %928 : vector<8x128xf32>
    %930 = vector.broadcast %132 : f32 to vector<8x128xf32>
    %931 = arith.mulf %927, %930 : vector<8x128xf32>
    %932 = vector.broadcast %133 : f32 to vector<8x128xf32>
    %933 = arith.mulf %927, %932 : vector<8x128xf32>
    %934 = vector.broadcast %6 : f32 to vector<8x128xf32>
    %935 = arith.mulf %913, %934 : vector<8x128xf32>
    %936 = vector.broadcast %7 : f32 to vector<8x128xf32>
    %937 = arith.mulf %914, %936 : vector<8x128xf32>
    %938 = arith.addf %935, %937 : vector<8x128xf32>
    %939 = vector.broadcast %8 : f32 to vector<8x128xf32>
    %940 = arith.mulf %915, %939 : vector<8x128xf32>
    %941 = arith.addf %938, %940 : vector<8x128xf32>
    %942 = vector.broadcast %100 : f32 to vector<8x128xf32>
    %943 = arith.addf %941, %942 : vector<8x128xf32>
    %cst_172 = arith.constant 0.000000e+00 : f32
    %944 = vector.broadcast %cst_172 : f32 to vector<8x128xf32>
    %945 = arith.maximumf %943, %944 : vector<8x128xf32>
    %946 = vector.broadcast %134 : f32 to vector<8x128xf32>
    %947 = arith.mulf %945, %946 : vector<8x128xf32>
    %948 = arith.addf %929, %947 : vector<8x128xf32>
    %949 = vector.broadcast %135 : f32 to vector<8x128xf32>
    %950 = arith.mulf %945, %949 : vector<8x128xf32>
    %951 = arith.addf %931, %950 : vector<8x128xf32>
    %952 = vector.broadcast %136 : f32 to vector<8x128xf32>
    %953 = arith.mulf %945, %952 : vector<8x128xf32>
    %954 = arith.addf %933, %953 : vector<8x128xf32>
    %955 = vector.broadcast %9 : f32 to vector<8x128xf32>
    %956 = arith.mulf %913, %955 : vector<8x128xf32>
    %957 = vector.broadcast %10 : f32 to vector<8x128xf32>
    %958 = arith.mulf %914, %957 : vector<8x128xf32>
    %959 = arith.addf %956, %958 : vector<8x128xf32>
    %960 = vector.broadcast %11 : f32 to vector<8x128xf32>
    %961 = arith.mulf %915, %960 : vector<8x128xf32>
    %962 = arith.addf %959, %961 : vector<8x128xf32>
    %963 = vector.broadcast %101 : f32 to vector<8x128xf32>
    %964 = arith.addf %962, %963 : vector<8x128xf32>
    %cst_173 = arith.constant 0.000000e+00 : f32
    %965 = vector.broadcast %cst_173 : f32 to vector<8x128xf32>
    %966 = arith.maximumf %964, %965 : vector<8x128xf32>
    %967 = vector.broadcast %137 : f32 to vector<8x128xf32>
    %968 = arith.mulf %966, %967 : vector<8x128xf32>
    %969 = arith.addf %948, %968 : vector<8x128xf32>
    %970 = vector.broadcast %138 : f32 to vector<8x128xf32>
    %971 = arith.mulf %966, %970 : vector<8x128xf32>
    %972 = arith.addf %951, %971 : vector<8x128xf32>
    %973 = vector.broadcast %139 : f32 to vector<8x128xf32>
    %974 = arith.mulf %966, %973 : vector<8x128xf32>
    %975 = arith.addf %954, %974 : vector<8x128xf32>
    %976 = vector.broadcast %12 : f32 to vector<8x128xf32>
    %977 = arith.mulf %913, %976 : vector<8x128xf32>
    %978 = vector.broadcast %13 : f32 to vector<8x128xf32>
    %979 = arith.mulf %914, %978 : vector<8x128xf32>
    %980 = arith.addf %977, %979 : vector<8x128xf32>
    %981 = vector.broadcast %14 : f32 to vector<8x128xf32>
    %982 = arith.mulf %915, %981 : vector<8x128xf32>
    %983 = arith.addf %980, %982 : vector<8x128xf32>
    %984 = vector.broadcast %102 : f32 to vector<8x128xf32>
    %985 = arith.addf %983, %984 : vector<8x128xf32>
    %cst_174 = arith.constant 0.000000e+00 : f32
    %986 = vector.broadcast %cst_174 : f32 to vector<8x128xf32>
    %987 = arith.maximumf %985, %986 : vector<8x128xf32>
    %988 = vector.broadcast %140 : f32 to vector<8x128xf32>
    %989 = arith.mulf %987, %988 : vector<8x128xf32>
    %990 = arith.addf %969, %989 : vector<8x128xf32>
    %991 = vector.broadcast %141 : f32 to vector<8x128xf32>
    %992 = arith.mulf %987, %991 : vector<8x128xf32>
    %993 = arith.addf %972, %992 : vector<8x128xf32>
    %994 = vector.broadcast %142 : f32 to vector<8x128xf32>
    %995 = arith.mulf %987, %994 : vector<8x128xf32>
    %996 = arith.addf %975, %995 : vector<8x128xf32>
    %997 = vector.broadcast %15 : f32 to vector<8x128xf32>
    %998 = arith.mulf %913, %997 : vector<8x128xf32>
    %999 = vector.broadcast %16 : f32 to vector<8x128xf32>
    %1000 = arith.mulf %914, %999 : vector<8x128xf32>
    %1001 = arith.addf %998, %1000 : vector<8x128xf32>
    %1002 = vector.broadcast %17 : f32 to vector<8x128xf32>
    %1003 = arith.mulf %915, %1002 : vector<8x128xf32>
    %1004 = arith.addf %1001, %1003 : vector<8x128xf32>
    %1005 = vector.broadcast %103 : f32 to vector<8x128xf32>
    %1006 = arith.addf %1004, %1005 : vector<8x128xf32>
    %cst_175 = arith.constant 0.000000e+00 : f32
    %1007 = vector.broadcast %cst_175 : f32 to vector<8x128xf32>
    %1008 = arith.maximumf %1006, %1007 : vector<8x128xf32>
    %1009 = vector.broadcast %143 : f32 to vector<8x128xf32>
    %1010 = arith.mulf %1008, %1009 : vector<8x128xf32>
    %1011 = arith.addf %990, %1010 : vector<8x128xf32>
    %1012 = vector.broadcast %144 : f32 to vector<8x128xf32>
    %1013 = arith.mulf %1008, %1012 : vector<8x128xf32>
    %1014 = arith.addf %993, %1013 : vector<8x128xf32>
    %1015 = vector.broadcast %145 : f32 to vector<8x128xf32>
    %1016 = arith.mulf %1008, %1015 : vector<8x128xf32>
    %1017 = arith.addf %996, %1016 : vector<8x128xf32>
    %1018 = vector.broadcast %18 : f32 to vector<8x128xf32>
    %1019 = arith.mulf %913, %1018 : vector<8x128xf32>
    %1020 = vector.broadcast %19 : f32 to vector<8x128xf32>
    %1021 = arith.mulf %914, %1020 : vector<8x128xf32>
    %1022 = arith.addf %1019, %1021 : vector<8x128xf32>
    %1023 = vector.broadcast %20 : f32 to vector<8x128xf32>
    %1024 = arith.mulf %915, %1023 : vector<8x128xf32>
    %1025 = arith.addf %1022, %1024 : vector<8x128xf32>
    %1026 = vector.broadcast %104 : f32 to vector<8x128xf32>
    %1027 = arith.addf %1025, %1026 : vector<8x128xf32>
    %cst_176 = arith.constant 0.000000e+00 : f32
    %1028 = vector.broadcast %cst_176 : f32 to vector<8x128xf32>
    %1029 = arith.maximumf %1027, %1028 : vector<8x128xf32>
    %1030 = vector.broadcast %146 : f32 to vector<8x128xf32>
    %1031 = arith.mulf %1029, %1030 : vector<8x128xf32>
    %1032 = arith.addf %1011, %1031 : vector<8x128xf32>
    %1033 = vector.broadcast %147 : f32 to vector<8x128xf32>
    %1034 = arith.mulf %1029, %1033 : vector<8x128xf32>
    %1035 = arith.addf %1014, %1034 : vector<8x128xf32>
    %1036 = vector.broadcast %148 : f32 to vector<8x128xf32>
    %1037 = arith.mulf %1029, %1036 : vector<8x128xf32>
    %1038 = arith.addf %1017, %1037 : vector<8x128xf32>
    %1039 = vector.broadcast %21 : f32 to vector<8x128xf32>
    %1040 = arith.mulf %913, %1039 : vector<8x128xf32>
    %1041 = vector.broadcast %22 : f32 to vector<8x128xf32>
    %1042 = arith.mulf %914, %1041 : vector<8x128xf32>
    %1043 = arith.addf %1040, %1042 : vector<8x128xf32>
    %1044 = vector.broadcast %23 : f32 to vector<8x128xf32>
    %1045 = arith.mulf %915, %1044 : vector<8x128xf32>
    %1046 = arith.addf %1043, %1045 : vector<8x128xf32>
    %1047 = vector.broadcast %105 : f32 to vector<8x128xf32>
    %1048 = arith.addf %1046, %1047 : vector<8x128xf32>
    %cst_177 = arith.constant 0.000000e+00 : f32
    %1049 = vector.broadcast %cst_177 : f32 to vector<8x128xf32>
    %1050 = arith.maximumf %1048, %1049 : vector<8x128xf32>
    %1051 = vector.broadcast %149 : f32 to vector<8x128xf32>
    %1052 = arith.mulf %1050, %1051 : vector<8x128xf32>
    %1053 = arith.addf %1032, %1052 : vector<8x128xf32>
    %1054 = vector.broadcast %150 : f32 to vector<8x128xf32>
    %1055 = arith.mulf %1050, %1054 : vector<8x128xf32>
    %1056 = arith.addf %1035, %1055 : vector<8x128xf32>
    %1057 = vector.broadcast %151 : f32 to vector<8x128xf32>
    %1058 = arith.mulf %1050, %1057 : vector<8x128xf32>
    %1059 = arith.addf %1038, %1058 : vector<8x128xf32>
    %1060 = vector.broadcast %24 : f32 to vector<8x128xf32>
    %1061 = arith.mulf %913, %1060 : vector<8x128xf32>
    %1062 = vector.broadcast %25 : f32 to vector<8x128xf32>
    %1063 = arith.mulf %914, %1062 : vector<8x128xf32>
    %1064 = arith.addf %1061, %1063 : vector<8x128xf32>
    %1065 = vector.broadcast %26 : f32 to vector<8x128xf32>
    %1066 = arith.mulf %915, %1065 : vector<8x128xf32>
    %1067 = arith.addf %1064, %1066 : vector<8x128xf32>
    %1068 = vector.broadcast %106 : f32 to vector<8x128xf32>
    %1069 = arith.addf %1067, %1068 : vector<8x128xf32>
    %cst_178 = arith.constant 0.000000e+00 : f32
    %1070 = vector.broadcast %cst_178 : f32 to vector<8x128xf32>
    %1071 = arith.maximumf %1069, %1070 : vector<8x128xf32>
    %1072 = vector.broadcast %152 : f32 to vector<8x128xf32>
    %1073 = arith.mulf %1071, %1072 : vector<8x128xf32>
    %1074 = arith.addf %1053, %1073 : vector<8x128xf32>
    %1075 = vector.broadcast %153 : f32 to vector<8x128xf32>
    %1076 = arith.mulf %1071, %1075 : vector<8x128xf32>
    %1077 = arith.addf %1056, %1076 : vector<8x128xf32>
    %1078 = vector.broadcast %154 : f32 to vector<8x128xf32>
    %1079 = arith.mulf %1071, %1078 : vector<8x128xf32>
    %1080 = arith.addf %1059, %1079 : vector<8x128xf32>
    %1081 = vector.broadcast %27 : f32 to vector<8x128xf32>
    %1082 = arith.mulf %913, %1081 : vector<8x128xf32>
    %1083 = vector.broadcast %28 : f32 to vector<8x128xf32>
    %1084 = arith.mulf %914, %1083 : vector<8x128xf32>
    %1085 = arith.addf %1082, %1084 : vector<8x128xf32>
    %1086 = vector.broadcast %29 : f32 to vector<8x128xf32>
    %1087 = arith.mulf %915, %1086 : vector<8x128xf32>
    %1088 = arith.addf %1085, %1087 : vector<8x128xf32>
    %1089 = vector.broadcast %107 : f32 to vector<8x128xf32>
    %1090 = arith.addf %1088, %1089 : vector<8x128xf32>
    %cst_179 = arith.constant 0.000000e+00 : f32
    %1091 = vector.broadcast %cst_179 : f32 to vector<8x128xf32>
    %1092 = arith.maximumf %1090, %1091 : vector<8x128xf32>
    %1093 = vector.broadcast %155 : f32 to vector<8x128xf32>
    %1094 = arith.mulf %1092, %1093 : vector<8x128xf32>
    %1095 = arith.addf %1074, %1094 : vector<8x128xf32>
    %1096 = vector.broadcast %156 : f32 to vector<8x128xf32>
    %1097 = arith.mulf %1092, %1096 : vector<8x128xf32>
    %1098 = arith.addf %1077, %1097 : vector<8x128xf32>
    %1099 = vector.broadcast %157 : f32 to vector<8x128xf32>
    %1100 = arith.mulf %1092, %1099 : vector<8x128xf32>
    %1101 = arith.addf %1080, %1100 : vector<8x128xf32>
    %1102 = vector.broadcast %30 : f32 to vector<8x128xf32>
    %1103 = arith.mulf %913, %1102 : vector<8x128xf32>
    %1104 = vector.broadcast %31 : f32 to vector<8x128xf32>
    %1105 = arith.mulf %914, %1104 : vector<8x128xf32>
    %1106 = arith.addf %1103, %1105 : vector<8x128xf32>
    %1107 = vector.broadcast %32 : f32 to vector<8x128xf32>
    %1108 = arith.mulf %915, %1107 : vector<8x128xf32>
    %1109 = arith.addf %1106, %1108 : vector<8x128xf32>
    %1110 = vector.broadcast %108 : f32 to vector<8x128xf32>
    %1111 = arith.addf %1109, %1110 : vector<8x128xf32>
    %cst_180 = arith.constant 0.000000e+00 : f32
    %1112 = vector.broadcast %cst_180 : f32 to vector<8x128xf32>
    %1113 = arith.maximumf %1111, %1112 : vector<8x128xf32>
    %1114 = vector.broadcast %158 : f32 to vector<8x128xf32>
    %1115 = arith.mulf %1113, %1114 : vector<8x128xf32>
    %1116 = arith.addf %1095, %1115 : vector<8x128xf32>
    %1117 = vector.broadcast %159 : f32 to vector<8x128xf32>
    %1118 = arith.mulf %1113, %1117 : vector<8x128xf32>
    %1119 = arith.addf %1098, %1118 : vector<8x128xf32>
    %1120 = vector.broadcast %160 : f32 to vector<8x128xf32>
    %1121 = arith.mulf %1113, %1120 : vector<8x128xf32>
    %1122 = arith.addf %1101, %1121 : vector<8x128xf32>
    %1123 = vector.broadcast %33 : f32 to vector<8x128xf32>
    %1124 = arith.mulf %913, %1123 : vector<8x128xf32>
    %1125 = vector.broadcast %34 : f32 to vector<8x128xf32>
    %1126 = arith.mulf %914, %1125 : vector<8x128xf32>
    %1127 = arith.addf %1124, %1126 : vector<8x128xf32>
    %1128 = vector.broadcast %35 : f32 to vector<8x128xf32>
    %1129 = arith.mulf %915, %1128 : vector<8x128xf32>
    %1130 = arith.addf %1127, %1129 : vector<8x128xf32>
    %1131 = vector.broadcast %109 : f32 to vector<8x128xf32>
    %1132 = arith.addf %1130, %1131 : vector<8x128xf32>
    %cst_181 = arith.constant 0.000000e+00 : f32
    %1133 = vector.broadcast %cst_181 : f32 to vector<8x128xf32>
    %1134 = arith.maximumf %1132, %1133 : vector<8x128xf32>
    %1135 = vector.broadcast %161 : f32 to vector<8x128xf32>
    %1136 = arith.mulf %1134, %1135 : vector<8x128xf32>
    %1137 = arith.addf %1116, %1136 : vector<8x128xf32>
    %1138 = vector.broadcast %162 : f32 to vector<8x128xf32>
    %1139 = arith.mulf %1134, %1138 : vector<8x128xf32>
    %1140 = arith.addf %1119, %1139 : vector<8x128xf32>
    %1141 = vector.broadcast %163 : f32 to vector<8x128xf32>
    %1142 = arith.mulf %1134, %1141 : vector<8x128xf32>
    %1143 = arith.addf %1122, %1142 : vector<8x128xf32>
    %1144 = vector.broadcast %36 : f32 to vector<8x128xf32>
    %1145 = arith.mulf %913, %1144 : vector<8x128xf32>
    %1146 = vector.broadcast %37 : f32 to vector<8x128xf32>
    %1147 = arith.mulf %914, %1146 : vector<8x128xf32>
    %1148 = arith.addf %1145, %1147 : vector<8x128xf32>
    %1149 = vector.broadcast %38 : f32 to vector<8x128xf32>
    %1150 = arith.mulf %915, %1149 : vector<8x128xf32>
    %1151 = arith.addf %1148, %1150 : vector<8x128xf32>
    %1152 = vector.broadcast %110 : f32 to vector<8x128xf32>
    %1153 = arith.addf %1151, %1152 : vector<8x128xf32>
    %cst_182 = arith.constant 0.000000e+00 : f32
    %1154 = vector.broadcast %cst_182 : f32 to vector<8x128xf32>
    %1155 = arith.maximumf %1153, %1154 : vector<8x128xf32>
    %1156 = vector.broadcast %164 : f32 to vector<8x128xf32>
    %1157 = arith.mulf %1155, %1156 : vector<8x128xf32>
    %1158 = arith.addf %1137, %1157 : vector<8x128xf32>
    %1159 = vector.broadcast %165 : f32 to vector<8x128xf32>
    %1160 = arith.mulf %1155, %1159 : vector<8x128xf32>
    %1161 = arith.addf %1140, %1160 : vector<8x128xf32>
    %1162 = vector.broadcast %166 : f32 to vector<8x128xf32>
    %1163 = arith.mulf %1155, %1162 : vector<8x128xf32>
    %1164 = arith.addf %1143, %1163 : vector<8x128xf32>
    %1165 = vector.broadcast %39 : f32 to vector<8x128xf32>
    %1166 = arith.mulf %913, %1165 : vector<8x128xf32>
    %1167 = vector.broadcast %40 : f32 to vector<8x128xf32>
    %1168 = arith.mulf %914, %1167 : vector<8x128xf32>
    %1169 = arith.addf %1166, %1168 : vector<8x128xf32>
    %1170 = vector.broadcast %41 : f32 to vector<8x128xf32>
    %1171 = arith.mulf %915, %1170 : vector<8x128xf32>
    %1172 = arith.addf %1169, %1171 : vector<8x128xf32>
    %1173 = vector.broadcast %111 : f32 to vector<8x128xf32>
    %1174 = arith.addf %1172, %1173 : vector<8x128xf32>
    %cst_183 = arith.constant 0.000000e+00 : f32
    %1175 = vector.broadcast %cst_183 : f32 to vector<8x128xf32>
    %1176 = arith.maximumf %1174, %1175 : vector<8x128xf32>
    %1177 = vector.broadcast %167 : f32 to vector<8x128xf32>
    %1178 = arith.mulf %1176, %1177 : vector<8x128xf32>
    %1179 = arith.addf %1158, %1178 : vector<8x128xf32>
    %1180 = vector.broadcast %168 : f32 to vector<8x128xf32>
    %1181 = arith.mulf %1176, %1180 : vector<8x128xf32>
    %1182 = arith.addf %1161, %1181 : vector<8x128xf32>
    %1183 = vector.broadcast %169 : f32 to vector<8x128xf32>
    %1184 = arith.mulf %1176, %1183 : vector<8x128xf32>
    %1185 = arith.addf %1164, %1184 : vector<8x128xf32>
    %1186 = vector.broadcast %42 : f32 to vector<8x128xf32>
    %1187 = arith.mulf %913, %1186 : vector<8x128xf32>
    %1188 = vector.broadcast %43 : f32 to vector<8x128xf32>
    %1189 = arith.mulf %914, %1188 : vector<8x128xf32>
    %1190 = arith.addf %1187, %1189 : vector<8x128xf32>
    %1191 = vector.broadcast %44 : f32 to vector<8x128xf32>
    %1192 = arith.mulf %915, %1191 : vector<8x128xf32>
    %1193 = arith.addf %1190, %1192 : vector<8x128xf32>
    %1194 = vector.broadcast %112 : f32 to vector<8x128xf32>
    %1195 = arith.addf %1193, %1194 : vector<8x128xf32>
    %cst_184 = arith.constant 0.000000e+00 : f32
    %1196 = vector.broadcast %cst_184 : f32 to vector<8x128xf32>
    %1197 = arith.maximumf %1195, %1196 : vector<8x128xf32>
    %1198 = vector.broadcast %170 : f32 to vector<8x128xf32>
    %1199 = arith.mulf %1197, %1198 : vector<8x128xf32>
    %1200 = arith.addf %1179, %1199 : vector<8x128xf32>
    %1201 = vector.broadcast %171 : f32 to vector<8x128xf32>
    %1202 = arith.mulf %1197, %1201 : vector<8x128xf32>
    %1203 = arith.addf %1182, %1202 : vector<8x128xf32>
    %1204 = vector.broadcast %172 : f32 to vector<8x128xf32>
    %1205 = arith.mulf %1197, %1204 : vector<8x128xf32>
    %1206 = arith.addf %1185, %1205 : vector<8x128xf32>
    %1207 = vector.broadcast %45 : f32 to vector<8x128xf32>
    %1208 = arith.mulf %913, %1207 : vector<8x128xf32>
    %1209 = vector.broadcast %46 : f32 to vector<8x128xf32>
    %1210 = arith.mulf %914, %1209 : vector<8x128xf32>
    %1211 = arith.addf %1208, %1210 : vector<8x128xf32>
    %1212 = vector.broadcast %47 : f32 to vector<8x128xf32>
    %1213 = arith.mulf %915, %1212 : vector<8x128xf32>
    %1214 = arith.addf %1211, %1213 : vector<8x128xf32>
    %1215 = vector.broadcast %113 : f32 to vector<8x128xf32>
    %1216 = arith.addf %1214, %1215 : vector<8x128xf32>
    %cst_185 = arith.constant 0.000000e+00 : f32
    %1217 = vector.broadcast %cst_185 : f32 to vector<8x128xf32>
    %1218 = arith.maximumf %1216, %1217 : vector<8x128xf32>
    %1219 = vector.broadcast %173 : f32 to vector<8x128xf32>
    %1220 = arith.mulf %1218, %1219 : vector<8x128xf32>
    %1221 = arith.addf %1200, %1220 : vector<8x128xf32>
    %1222 = vector.broadcast %174 : f32 to vector<8x128xf32>
    %1223 = arith.mulf %1218, %1222 : vector<8x128xf32>
    %1224 = arith.addf %1203, %1223 : vector<8x128xf32>
    %1225 = vector.broadcast %175 : f32 to vector<8x128xf32>
    %1226 = arith.mulf %1218, %1225 : vector<8x128xf32>
    %1227 = arith.addf %1206, %1226 : vector<8x128xf32>
    %1228 = vector.broadcast %48 : f32 to vector<8x128xf32>
    %1229 = arith.mulf %913, %1228 : vector<8x128xf32>
    %1230 = vector.broadcast %49 : f32 to vector<8x128xf32>
    %1231 = arith.mulf %914, %1230 : vector<8x128xf32>
    %1232 = arith.addf %1229, %1231 : vector<8x128xf32>
    %1233 = vector.broadcast %50 : f32 to vector<8x128xf32>
    %1234 = arith.mulf %915, %1233 : vector<8x128xf32>
    %1235 = arith.addf %1232, %1234 : vector<8x128xf32>
    %1236 = vector.broadcast %114 : f32 to vector<8x128xf32>
    %1237 = arith.addf %1235, %1236 : vector<8x128xf32>
    %cst_186 = arith.constant 0.000000e+00 : f32
    %1238 = vector.broadcast %cst_186 : f32 to vector<8x128xf32>
    %1239 = arith.maximumf %1237, %1238 : vector<8x128xf32>
    %1240 = vector.broadcast %176 : f32 to vector<8x128xf32>
    %1241 = arith.mulf %1239, %1240 : vector<8x128xf32>
    %1242 = arith.addf %1221, %1241 : vector<8x128xf32>
    %1243 = vector.broadcast %177 : f32 to vector<8x128xf32>
    %1244 = arith.mulf %1239, %1243 : vector<8x128xf32>
    %1245 = arith.addf %1224, %1244 : vector<8x128xf32>
    %1246 = vector.broadcast %178 : f32 to vector<8x128xf32>
    %1247 = arith.mulf %1239, %1246 : vector<8x128xf32>
    %1248 = arith.addf %1227, %1247 : vector<8x128xf32>
    %1249 = vector.broadcast %51 : f32 to vector<8x128xf32>
    %1250 = arith.mulf %913, %1249 : vector<8x128xf32>
    %1251 = vector.broadcast %52 : f32 to vector<8x128xf32>
    %1252 = arith.mulf %914, %1251 : vector<8x128xf32>
    %1253 = arith.addf %1250, %1252 : vector<8x128xf32>
    %1254 = vector.broadcast %53 : f32 to vector<8x128xf32>
    %1255 = arith.mulf %915, %1254 : vector<8x128xf32>
    %1256 = arith.addf %1253, %1255 : vector<8x128xf32>
    %1257 = vector.broadcast %115 : f32 to vector<8x128xf32>
    %1258 = arith.addf %1256, %1257 : vector<8x128xf32>
    %cst_187 = arith.constant 0.000000e+00 : f32
    %1259 = vector.broadcast %cst_187 : f32 to vector<8x128xf32>
    %1260 = arith.maximumf %1258, %1259 : vector<8x128xf32>
    %1261 = vector.broadcast %179 : f32 to vector<8x128xf32>
    %1262 = arith.mulf %1260, %1261 : vector<8x128xf32>
    %1263 = arith.addf %1242, %1262 : vector<8x128xf32>
    %1264 = vector.broadcast %180 : f32 to vector<8x128xf32>
    %1265 = arith.mulf %1260, %1264 : vector<8x128xf32>
    %1266 = arith.addf %1245, %1265 : vector<8x128xf32>
    %1267 = vector.broadcast %181 : f32 to vector<8x128xf32>
    %1268 = arith.mulf %1260, %1267 : vector<8x128xf32>
    %1269 = arith.addf %1248, %1268 : vector<8x128xf32>
    %1270 = vector.broadcast %54 : f32 to vector<8x128xf32>
    %1271 = arith.mulf %913, %1270 : vector<8x128xf32>
    %1272 = vector.broadcast %55 : f32 to vector<8x128xf32>
    %1273 = arith.mulf %914, %1272 : vector<8x128xf32>
    %1274 = arith.addf %1271, %1273 : vector<8x128xf32>
    %1275 = vector.broadcast %56 : f32 to vector<8x128xf32>
    %1276 = arith.mulf %915, %1275 : vector<8x128xf32>
    %1277 = arith.addf %1274, %1276 : vector<8x128xf32>
    %1278 = vector.broadcast %116 : f32 to vector<8x128xf32>
    %1279 = arith.addf %1277, %1278 : vector<8x128xf32>
    %cst_188 = arith.constant 0.000000e+00 : f32
    %1280 = vector.broadcast %cst_188 : f32 to vector<8x128xf32>
    %1281 = arith.maximumf %1279, %1280 : vector<8x128xf32>
    %1282 = vector.broadcast %182 : f32 to vector<8x128xf32>
    %1283 = arith.mulf %1281, %1282 : vector<8x128xf32>
    %1284 = arith.addf %1263, %1283 : vector<8x128xf32>
    %1285 = vector.broadcast %183 : f32 to vector<8x128xf32>
    %1286 = arith.mulf %1281, %1285 : vector<8x128xf32>
    %1287 = arith.addf %1266, %1286 : vector<8x128xf32>
    %1288 = vector.broadcast %184 : f32 to vector<8x128xf32>
    %1289 = arith.mulf %1281, %1288 : vector<8x128xf32>
    %1290 = arith.addf %1269, %1289 : vector<8x128xf32>
    %1291 = vector.broadcast %57 : f32 to vector<8x128xf32>
    %1292 = arith.mulf %913, %1291 : vector<8x128xf32>
    %1293 = vector.broadcast %58 : f32 to vector<8x128xf32>
    %1294 = arith.mulf %914, %1293 : vector<8x128xf32>
    %1295 = arith.addf %1292, %1294 : vector<8x128xf32>
    %1296 = vector.broadcast %59 : f32 to vector<8x128xf32>
    %1297 = arith.mulf %915, %1296 : vector<8x128xf32>
    %1298 = arith.addf %1295, %1297 : vector<8x128xf32>
    %1299 = vector.broadcast %117 : f32 to vector<8x128xf32>
    %1300 = arith.addf %1298, %1299 : vector<8x128xf32>
    %cst_189 = arith.constant 0.000000e+00 : f32
    %1301 = vector.broadcast %cst_189 : f32 to vector<8x128xf32>
    %1302 = arith.maximumf %1300, %1301 : vector<8x128xf32>
    %1303 = vector.broadcast %185 : f32 to vector<8x128xf32>
    %1304 = arith.mulf %1302, %1303 : vector<8x128xf32>
    %1305 = arith.addf %1284, %1304 : vector<8x128xf32>
    %1306 = vector.broadcast %186 : f32 to vector<8x128xf32>
    %1307 = arith.mulf %1302, %1306 : vector<8x128xf32>
    %1308 = arith.addf %1287, %1307 : vector<8x128xf32>
    %1309 = vector.broadcast %187 : f32 to vector<8x128xf32>
    %1310 = arith.mulf %1302, %1309 : vector<8x128xf32>
    %1311 = arith.addf %1290, %1310 : vector<8x128xf32>
    %1312 = vector.broadcast %60 : f32 to vector<8x128xf32>
    %1313 = arith.mulf %913, %1312 : vector<8x128xf32>
    %1314 = vector.broadcast %61 : f32 to vector<8x128xf32>
    %1315 = arith.mulf %914, %1314 : vector<8x128xf32>
    %1316 = arith.addf %1313, %1315 : vector<8x128xf32>
    %1317 = vector.broadcast %62 : f32 to vector<8x128xf32>
    %1318 = arith.mulf %915, %1317 : vector<8x128xf32>
    %1319 = arith.addf %1316, %1318 : vector<8x128xf32>
    %1320 = vector.broadcast %118 : f32 to vector<8x128xf32>
    %1321 = arith.addf %1319, %1320 : vector<8x128xf32>
    %cst_190 = arith.constant 0.000000e+00 : f32
    %1322 = vector.broadcast %cst_190 : f32 to vector<8x128xf32>
    %1323 = arith.maximumf %1321, %1322 : vector<8x128xf32>
    %1324 = vector.broadcast %188 : f32 to vector<8x128xf32>
    %1325 = arith.mulf %1323, %1324 : vector<8x128xf32>
    %1326 = arith.addf %1305, %1325 : vector<8x128xf32>
    %1327 = vector.broadcast %189 : f32 to vector<8x128xf32>
    %1328 = arith.mulf %1323, %1327 : vector<8x128xf32>
    %1329 = arith.addf %1308, %1328 : vector<8x128xf32>
    %1330 = vector.broadcast %190 : f32 to vector<8x128xf32>
    %1331 = arith.mulf %1323, %1330 : vector<8x128xf32>
    %1332 = arith.addf %1311, %1331 : vector<8x128xf32>
    %1333 = vector.broadcast %63 : f32 to vector<8x128xf32>
    %1334 = arith.mulf %913, %1333 : vector<8x128xf32>
    %1335 = vector.broadcast %64 : f32 to vector<8x128xf32>
    %1336 = arith.mulf %914, %1335 : vector<8x128xf32>
    %1337 = arith.addf %1334, %1336 : vector<8x128xf32>
    %1338 = vector.broadcast %65 : f32 to vector<8x128xf32>
    %1339 = arith.mulf %915, %1338 : vector<8x128xf32>
    %1340 = arith.addf %1337, %1339 : vector<8x128xf32>
    %1341 = vector.broadcast %119 : f32 to vector<8x128xf32>
    %1342 = arith.addf %1340, %1341 : vector<8x128xf32>
    %cst_191 = arith.constant 0.000000e+00 : f32
    %1343 = vector.broadcast %cst_191 : f32 to vector<8x128xf32>
    %1344 = arith.maximumf %1342, %1343 : vector<8x128xf32>
    %1345 = vector.broadcast %191 : f32 to vector<8x128xf32>
    %1346 = arith.mulf %1344, %1345 : vector<8x128xf32>
    %1347 = arith.addf %1326, %1346 : vector<8x128xf32>
    %1348 = vector.broadcast %192 : f32 to vector<8x128xf32>
    %1349 = arith.mulf %1344, %1348 : vector<8x128xf32>
    %1350 = arith.addf %1329, %1349 : vector<8x128xf32>
    %1351 = vector.broadcast %193 : f32 to vector<8x128xf32>
    %1352 = arith.mulf %1344, %1351 : vector<8x128xf32>
    %1353 = arith.addf %1332, %1352 : vector<8x128xf32>
    %1354 = vector.broadcast %66 : f32 to vector<8x128xf32>
    %1355 = arith.mulf %913, %1354 : vector<8x128xf32>
    %1356 = vector.broadcast %67 : f32 to vector<8x128xf32>
    %1357 = arith.mulf %914, %1356 : vector<8x128xf32>
    %1358 = arith.addf %1355, %1357 : vector<8x128xf32>
    %1359 = vector.broadcast %68 : f32 to vector<8x128xf32>
    %1360 = arith.mulf %915, %1359 : vector<8x128xf32>
    %1361 = arith.addf %1358, %1360 : vector<8x128xf32>
    %1362 = vector.broadcast %120 : f32 to vector<8x128xf32>
    %1363 = arith.addf %1361, %1362 : vector<8x128xf32>
    %cst_192 = arith.constant 0.000000e+00 : f32
    %1364 = vector.broadcast %cst_192 : f32 to vector<8x128xf32>
    %1365 = arith.maximumf %1363, %1364 : vector<8x128xf32>
    %1366 = vector.broadcast %194 : f32 to vector<8x128xf32>
    %1367 = arith.mulf %1365, %1366 : vector<8x128xf32>
    %1368 = arith.addf %1347, %1367 : vector<8x128xf32>
    %1369 = vector.broadcast %195 : f32 to vector<8x128xf32>
    %1370 = arith.mulf %1365, %1369 : vector<8x128xf32>
    %1371 = arith.addf %1350, %1370 : vector<8x128xf32>
    %1372 = vector.broadcast %196 : f32 to vector<8x128xf32>
    %1373 = arith.mulf %1365, %1372 : vector<8x128xf32>
    %1374 = arith.addf %1353, %1373 : vector<8x128xf32>
    %1375 = vector.broadcast %69 : f32 to vector<8x128xf32>
    %1376 = arith.mulf %913, %1375 : vector<8x128xf32>
    %1377 = vector.broadcast %70 : f32 to vector<8x128xf32>
    %1378 = arith.mulf %914, %1377 : vector<8x128xf32>
    %1379 = arith.addf %1376, %1378 : vector<8x128xf32>
    %1380 = vector.broadcast %71 : f32 to vector<8x128xf32>
    %1381 = arith.mulf %915, %1380 : vector<8x128xf32>
    %1382 = arith.addf %1379, %1381 : vector<8x128xf32>
    %1383 = vector.broadcast %121 : f32 to vector<8x128xf32>
    %1384 = arith.addf %1382, %1383 : vector<8x128xf32>
    %cst_193 = arith.constant 0.000000e+00 : f32
    %1385 = vector.broadcast %cst_193 : f32 to vector<8x128xf32>
    %1386 = arith.maximumf %1384, %1385 : vector<8x128xf32>
    %1387 = vector.broadcast %197 : f32 to vector<8x128xf32>
    %1388 = arith.mulf %1386, %1387 : vector<8x128xf32>
    %1389 = arith.addf %1368, %1388 : vector<8x128xf32>
    %1390 = vector.broadcast %198 : f32 to vector<8x128xf32>
    %1391 = arith.mulf %1386, %1390 : vector<8x128xf32>
    %1392 = arith.addf %1371, %1391 : vector<8x128xf32>
    %1393 = vector.broadcast %199 : f32 to vector<8x128xf32>
    %1394 = arith.mulf %1386, %1393 : vector<8x128xf32>
    %1395 = arith.addf %1374, %1394 : vector<8x128xf32>
    %1396 = vector.broadcast %72 : f32 to vector<8x128xf32>
    %1397 = arith.mulf %913, %1396 : vector<8x128xf32>
    %1398 = vector.broadcast %73 : f32 to vector<8x128xf32>
    %1399 = arith.mulf %914, %1398 : vector<8x128xf32>
    %1400 = arith.addf %1397, %1399 : vector<8x128xf32>
    %1401 = vector.broadcast %74 : f32 to vector<8x128xf32>
    %1402 = arith.mulf %915, %1401 : vector<8x128xf32>
    %1403 = arith.addf %1400, %1402 : vector<8x128xf32>
    %1404 = vector.broadcast %122 : f32 to vector<8x128xf32>
    %1405 = arith.addf %1403, %1404 : vector<8x128xf32>
    %cst_194 = arith.constant 0.000000e+00 : f32
    %1406 = vector.broadcast %cst_194 : f32 to vector<8x128xf32>
    %1407 = arith.maximumf %1405, %1406 : vector<8x128xf32>
    %1408 = vector.broadcast %200 : f32 to vector<8x128xf32>
    %1409 = arith.mulf %1407, %1408 : vector<8x128xf32>
    %1410 = arith.addf %1389, %1409 : vector<8x128xf32>
    %1411 = vector.broadcast %201 : f32 to vector<8x128xf32>
    %1412 = arith.mulf %1407, %1411 : vector<8x128xf32>
    %1413 = arith.addf %1392, %1412 : vector<8x128xf32>
    %1414 = vector.broadcast %202 : f32 to vector<8x128xf32>
    %1415 = arith.mulf %1407, %1414 : vector<8x128xf32>
    %1416 = arith.addf %1395, %1415 : vector<8x128xf32>
    %1417 = vector.broadcast %75 : f32 to vector<8x128xf32>
    %1418 = arith.mulf %913, %1417 : vector<8x128xf32>
    %1419 = vector.broadcast %76 : f32 to vector<8x128xf32>
    %1420 = arith.mulf %914, %1419 : vector<8x128xf32>
    %1421 = arith.addf %1418, %1420 : vector<8x128xf32>
    %1422 = vector.broadcast %77 : f32 to vector<8x128xf32>
    %1423 = arith.mulf %915, %1422 : vector<8x128xf32>
    %1424 = arith.addf %1421, %1423 : vector<8x128xf32>
    %1425 = vector.broadcast %123 : f32 to vector<8x128xf32>
    %1426 = arith.addf %1424, %1425 : vector<8x128xf32>
    %cst_195 = arith.constant 0.000000e+00 : f32
    %1427 = vector.broadcast %cst_195 : f32 to vector<8x128xf32>
    %1428 = arith.maximumf %1426, %1427 : vector<8x128xf32>
    %1429 = vector.broadcast %203 : f32 to vector<8x128xf32>
    %1430 = arith.mulf %1428, %1429 : vector<8x128xf32>
    %1431 = arith.addf %1410, %1430 : vector<8x128xf32>
    %1432 = vector.broadcast %204 : f32 to vector<8x128xf32>
    %1433 = arith.mulf %1428, %1432 : vector<8x128xf32>
    %1434 = arith.addf %1413, %1433 : vector<8x128xf32>
    %1435 = vector.broadcast %205 : f32 to vector<8x128xf32>
    %1436 = arith.mulf %1428, %1435 : vector<8x128xf32>
    %1437 = arith.addf %1416, %1436 : vector<8x128xf32>
    %1438 = vector.broadcast %78 : f32 to vector<8x128xf32>
    %1439 = arith.mulf %913, %1438 : vector<8x128xf32>
    %1440 = vector.broadcast %79 : f32 to vector<8x128xf32>
    %1441 = arith.mulf %914, %1440 : vector<8x128xf32>
    %1442 = arith.addf %1439, %1441 : vector<8x128xf32>
    %1443 = vector.broadcast %80 : f32 to vector<8x128xf32>
    %1444 = arith.mulf %915, %1443 : vector<8x128xf32>
    %1445 = arith.addf %1442, %1444 : vector<8x128xf32>
    %1446 = vector.broadcast %124 : f32 to vector<8x128xf32>
    %1447 = arith.addf %1445, %1446 : vector<8x128xf32>
    %cst_196 = arith.constant 0.000000e+00 : f32
    %1448 = vector.broadcast %cst_196 : f32 to vector<8x128xf32>
    %1449 = arith.maximumf %1447, %1448 : vector<8x128xf32>
    %1450 = vector.broadcast %206 : f32 to vector<8x128xf32>
    %1451 = arith.mulf %1449, %1450 : vector<8x128xf32>
    %1452 = arith.addf %1431, %1451 : vector<8x128xf32>
    %1453 = vector.broadcast %207 : f32 to vector<8x128xf32>
    %1454 = arith.mulf %1449, %1453 : vector<8x128xf32>
    %1455 = arith.addf %1434, %1454 : vector<8x128xf32>
    %1456 = vector.broadcast %208 : f32 to vector<8x128xf32>
    %1457 = arith.mulf %1449, %1456 : vector<8x128xf32>
    %1458 = arith.addf %1437, %1457 : vector<8x128xf32>
    %1459 = vector.broadcast %81 : f32 to vector<8x128xf32>
    %1460 = arith.mulf %913, %1459 : vector<8x128xf32>
    %1461 = vector.broadcast %82 : f32 to vector<8x128xf32>
    %1462 = arith.mulf %914, %1461 : vector<8x128xf32>
    %1463 = arith.addf %1460, %1462 : vector<8x128xf32>
    %1464 = vector.broadcast %83 : f32 to vector<8x128xf32>
    %1465 = arith.mulf %915, %1464 : vector<8x128xf32>
    %1466 = arith.addf %1463, %1465 : vector<8x128xf32>
    %1467 = vector.broadcast %125 : f32 to vector<8x128xf32>
    %1468 = arith.addf %1466, %1467 : vector<8x128xf32>
    %cst_197 = arith.constant 0.000000e+00 : f32
    %1469 = vector.broadcast %cst_197 : f32 to vector<8x128xf32>
    %1470 = arith.maximumf %1468, %1469 : vector<8x128xf32>
    %1471 = vector.broadcast %209 : f32 to vector<8x128xf32>
    %1472 = arith.mulf %1470, %1471 : vector<8x128xf32>
    %1473 = arith.addf %1452, %1472 : vector<8x128xf32>
    %1474 = vector.broadcast %210 : f32 to vector<8x128xf32>
    %1475 = arith.mulf %1470, %1474 : vector<8x128xf32>
    %1476 = arith.addf %1455, %1475 : vector<8x128xf32>
    %1477 = vector.broadcast %211 : f32 to vector<8x128xf32>
    %1478 = arith.mulf %1470, %1477 : vector<8x128xf32>
    %1479 = arith.addf %1458, %1478 : vector<8x128xf32>
    %1480 = vector.broadcast %84 : f32 to vector<8x128xf32>
    %1481 = arith.mulf %913, %1480 : vector<8x128xf32>
    %1482 = vector.broadcast %85 : f32 to vector<8x128xf32>
    %1483 = arith.mulf %914, %1482 : vector<8x128xf32>
    %1484 = arith.addf %1481, %1483 : vector<8x128xf32>
    %1485 = vector.broadcast %86 : f32 to vector<8x128xf32>
    %1486 = arith.mulf %915, %1485 : vector<8x128xf32>
    %1487 = arith.addf %1484, %1486 : vector<8x128xf32>
    %1488 = vector.broadcast %126 : f32 to vector<8x128xf32>
    %1489 = arith.addf %1487, %1488 : vector<8x128xf32>
    %cst_198 = arith.constant 0.000000e+00 : f32
    %1490 = vector.broadcast %cst_198 : f32 to vector<8x128xf32>
    %1491 = arith.maximumf %1489, %1490 : vector<8x128xf32>
    %1492 = vector.broadcast %212 : f32 to vector<8x128xf32>
    %1493 = arith.mulf %1491, %1492 : vector<8x128xf32>
    %1494 = arith.addf %1473, %1493 : vector<8x128xf32>
    %1495 = vector.broadcast %213 : f32 to vector<8x128xf32>
    %1496 = arith.mulf %1491, %1495 : vector<8x128xf32>
    %1497 = arith.addf %1476, %1496 : vector<8x128xf32>
    %1498 = vector.broadcast %214 : f32 to vector<8x128xf32>
    %1499 = arith.mulf %1491, %1498 : vector<8x128xf32>
    %1500 = arith.addf %1479, %1499 : vector<8x128xf32>
    %1501 = vector.broadcast %87 : f32 to vector<8x128xf32>
    %1502 = arith.mulf %913, %1501 : vector<8x128xf32>
    %1503 = vector.broadcast %88 : f32 to vector<8x128xf32>
    %1504 = arith.mulf %914, %1503 : vector<8x128xf32>
    %1505 = arith.addf %1502, %1504 : vector<8x128xf32>
    %1506 = vector.broadcast %89 : f32 to vector<8x128xf32>
    %1507 = arith.mulf %915, %1506 : vector<8x128xf32>
    %1508 = arith.addf %1505, %1507 : vector<8x128xf32>
    %1509 = vector.broadcast %127 : f32 to vector<8x128xf32>
    %1510 = arith.addf %1508, %1509 : vector<8x128xf32>
    %cst_199 = arith.constant 0.000000e+00 : f32
    %1511 = vector.broadcast %cst_199 : f32 to vector<8x128xf32>
    %1512 = arith.maximumf %1510, %1511 : vector<8x128xf32>
    %1513 = vector.broadcast %215 : f32 to vector<8x128xf32>
    %1514 = arith.mulf %1512, %1513 : vector<8x128xf32>
    %1515 = arith.addf %1494, %1514 : vector<8x128xf32>
    %1516 = vector.broadcast %216 : f32 to vector<8x128xf32>
    %1517 = arith.mulf %1512, %1516 : vector<8x128xf32>
    %1518 = arith.addf %1497, %1517 : vector<8x128xf32>
    %1519 = vector.broadcast %217 : f32 to vector<8x128xf32>
    %1520 = arith.mulf %1512, %1519 : vector<8x128xf32>
    %1521 = arith.addf %1500, %1520 : vector<8x128xf32>
    %1522 = vector.broadcast %90 : f32 to vector<8x128xf32>
    %1523 = arith.mulf %913, %1522 : vector<8x128xf32>
    %1524 = vector.broadcast %91 : f32 to vector<8x128xf32>
    %1525 = arith.mulf %914, %1524 : vector<8x128xf32>
    %1526 = arith.addf %1523, %1525 : vector<8x128xf32>
    %1527 = vector.broadcast %92 : f32 to vector<8x128xf32>
    %1528 = arith.mulf %915, %1527 : vector<8x128xf32>
    %1529 = arith.addf %1526, %1528 : vector<8x128xf32>
    %1530 = vector.broadcast %128 : f32 to vector<8x128xf32>
    %1531 = arith.addf %1529, %1530 : vector<8x128xf32>
    %cst_200 = arith.constant 0.000000e+00 : f32
    %1532 = vector.broadcast %cst_200 : f32 to vector<8x128xf32>
    %1533 = arith.maximumf %1531, %1532 : vector<8x128xf32>
    %1534 = vector.broadcast %218 : f32 to vector<8x128xf32>
    %1535 = arith.mulf %1533, %1534 : vector<8x128xf32>
    %1536 = arith.addf %1515, %1535 : vector<8x128xf32>
    %1537 = vector.broadcast %219 : f32 to vector<8x128xf32>
    %1538 = arith.mulf %1533, %1537 : vector<8x128xf32>
    %1539 = arith.addf %1518, %1538 : vector<8x128xf32>
    %1540 = vector.broadcast %220 : f32 to vector<8x128xf32>
    %1541 = arith.mulf %1533, %1540 : vector<8x128xf32>
    %1542 = arith.addf %1521, %1541 : vector<8x128xf32>
    %1543 = vector.broadcast %93 : f32 to vector<8x128xf32>
    %1544 = arith.mulf %913, %1543 : vector<8x128xf32>
    %1545 = vector.broadcast %94 : f32 to vector<8x128xf32>
    %1546 = arith.mulf %914, %1545 : vector<8x128xf32>
    %1547 = arith.addf %1544, %1546 : vector<8x128xf32>
    %1548 = vector.broadcast %95 : f32 to vector<8x128xf32>
    %1549 = arith.mulf %915, %1548 : vector<8x128xf32>
    %1550 = arith.addf %1547, %1549 : vector<8x128xf32>
    %1551 = vector.broadcast %129 : f32 to vector<8x128xf32>
    %1552 = arith.addf %1550, %1551 : vector<8x128xf32>
    %cst_201 = arith.constant 0.000000e+00 : f32
    %1553 = vector.broadcast %cst_201 : f32 to vector<8x128xf32>
    %1554 = arith.maximumf %1552, %1553 : vector<8x128xf32>
    %1555 = vector.broadcast %221 : f32 to vector<8x128xf32>
    %1556 = arith.mulf %1554, %1555 : vector<8x128xf32>
    %1557 = arith.addf %1536, %1556 : vector<8x128xf32>
    %1558 = vector.broadcast %222 : f32 to vector<8x128xf32>
    %1559 = arith.mulf %1554, %1558 : vector<8x128xf32>
    %1560 = arith.addf %1539, %1559 : vector<8x128xf32>
    %1561 = vector.broadcast %223 : f32 to vector<8x128xf32>
    %1562 = arith.mulf %1554, %1561 : vector<8x128xf32>
    %1563 = arith.addf %1542, %1562 : vector<8x128xf32>
    %1564 = vector.broadcast %96 : f32 to vector<8x128xf32>
    %1565 = arith.mulf %913, %1564 : vector<8x128xf32>
    %1566 = vector.broadcast %97 : f32 to vector<8x128xf32>
    %1567 = arith.mulf %914, %1566 : vector<8x128xf32>
    %1568 = arith.addf %1565, %1567 : vector<8x128xf32>
    %1569 = vector.broadcast %98 : f32 to vector<8x128xf32>
    %1570 = arith.mulf %915, %1569 : vector<8x128xf32>
    %1571 = arith.addf %1568, %1570 : vector<8x128xf32>
    %1572 = vector.broadcast %130 : f32 to vector<8x128xf32>
    %1573 = arith.addf %1571, %1572 : vector<8x128xf32>
    %cst_202 = arith.constant 0.000000e+00 : f32
    %1574 = vector.broadcast %cst_202 : f32 to vector<8x128xf32>
    %1575 = arith.maximumf %1573, %1574 : vector<8x128xf32>
    %1576 = vector.broadcast %224 : f32 to vector<8x128xf32>
    %1577 = arith.mulf %1575, %1576 : vector<8x128xf32>
    %1578 = arith.addf %1557, %1577 : vector<8x128xf32>
    %1579 = vector.broadcast %225 : f32 to vector<8x128xf32>
    %1580 = arith.mulf %1575, %1579 : vector<8x128xf32>
    %1581 = arith.addf %1560, %1580 : vector<8x128xf32>
    %1582 = vector.broadcast %226 : f32 to vector<8x128xf32>
    %1583 = arith.mulf %1575, %1582 : vector<8x128xf32>
    %1584 = arith.addf %1563, %1583 : vector<8x128xf32>
    %cst_203 = arith.constant 0.000000e+00 : f32
    %1585 = vector.broadcast %cst_203 : f32 to vector<8x128xf32>
    %1586 = arith.select %2, %1578, %1585 : vector<8x128xi1>, vector<8x128xf32>
    %1587 = vector.broadcast %227 : f32 to vector<8x128xf32>
    %1588 = arith.addf %1586, %1587 : vector<8x128xf32>
    %cst_204 = arith.constant 0.000000e+00 : f32
    %1589 = vector.broadcast %cst_204 : f32 to vector<8x128xf32>
    %1590 = arith.select %2, %1581, %1589 : vector<8x128xi1>, vector<8x128xf32>
    %c1_i32_205 = arith.constant 1 : i32
    %1591 = tpu.dynamic_rotate %1590 by %c1_i32_205 dim 1 : vector<8x128xf32>, i32 -> vector<8x128xf32>
    %1592 = arith.addf %1588, %1591 : vector<8x128xf32>
    %cst_206 = arith.constant 0.000000e+00 : f32
    %1593 = vector.broadcast %cst_206 : f32 to vector<8x128xf32>
    %1594 = arith.select %2, %1584, %1593 : vector<8x128xi1>, vector<8x128xf32>
    %c2_i32_207 = arith.constant 2 : i32
    %1595 = tpu.dynamic_rotate %1594 by %c2_i32_207 dim 1 : vector<8x128xf32>, i32 -> vector<8x128xf32>
    %1596 = arith.addf %1592, %1595 : vector<8x128xf32>
    %c8_208 = arith.constant 8 : index
    %c0_209 = arith.constant 0 : index
    %1597 = vector.load %arg6[%c8_208, %c0_209] : memref<16x128xf32, #tpu.memory_space<vmem>>, vector<8x128xf32>
    tpu.vector_store %arg6[%c8_208, %c0_209], %1596 {strides = array<i32>} : memref<16x128xf32, #tpu.memory_space<vmem>>, vector<8x128xf32>,
    return
  }
  func.func @transform_0(%arg0: i32) -> (i32, i32) {
    %c0_i32 = arith.constant 0 : i32
    %c0_i32_0 = arith.constant 0 : i32
    return %arg0, %c0_i32 : i32, i32
  }
  func.func @transform_1(%arg0: i32) -> i32 {
    %c0_i32 = arith.constant 0 : i32
    %c0_i32_0 = arith.constant 0 : i32
    return %c0_i32 : i32
  }
  func.func @transform_2(%arg0: i32) -> i32 {
    %c0_i32 = arith.constant 0 : i32
    %c0_i32_0 = arith.constant 0 : i32
    return %c0_i32 : i32
  }
  func.func @transform_3(%arg0: i32) -> i32 {
    %c0_i32 = arith.constant 0 : i32
    %c0_i32_0 = arith.constant 0 : i32
    return %c0_i32 : i32
  }
  func.func @transform_4(%arg0: i32) -> i32 {
    %c0_i32 = arith.constant 0 : i32
    %c0_i32_0 = arith.constant 0 : i32
    return %c0_i32 : i32
  }
  func.func @transform_5(%arg0: i32) -> (i32, i32) {
    %c0_i32 = arith.constant 0 : i32
    %c0_i32_0 = arith.constant 0 : i32
    return %arg0, %c0_i32 : i32, i32
  }
}

module attributes {stable_mosaic.version = 11 : i64} {
  func.func @convnet_kernel(%arg0: i32, %arg1: memref<16x128xf32, #tpu.memory_space<vmem>>, %arg2: memref<96xf32, #tpu.memory_space<smem>>, %arg3: memref<32xf32, #tpu.memory_space<smem>>, %arg4: memref<96xf32, #tpu.memory_space<smem>>, %arg5: memref<1xf32, #tpu.memory_space<smem>>, %arg6: memref<16x128xf32, #tpu.memory_space<vmem>>) attributes {dimension_semantics = [#tpu.dimension_semantics<parallel>], iteration_bounds = array<i64: 1>, scalar_prefetch = 0 : i64, scratch_operands = 0 : i64, tpu.core_type = #tpu.core_type<tc>, window_params = [{transform_indices = @transform_0, window_bounds = array<i64: 16, 128>}, {transform_indices = @transform_1, window_bounds = array<i64: 96>}, {transform_indices = @transform_2, window_bounds = array<i64: 32>}, {transform_indices = @transform_3, window_bounds = array<i64: 96>}, {transform_indices = @transform_4, window_bounds = array<i64: 1>}, {transform_indices = @transform_5, window_bounds = array<i64: 16, 128>}]} {
    %0 = tpu.iota {dimensions = array<i32: 1>} : vector<8x128xi32>
    %c8_i32 = arith.constant 8 : i32
    %1 = vector.broadcast %c8_i32 : i32 to vector<8x128xi32>
    %2 = arith.cmpi slt, %0, %1 : vector<8x128xi32>
    %c0 = arith.constant 0 : index
    %3 = memref.load %arg2[%c0] : memref<96xf32, #tpu.memory_space<smem>>
    %c1 = arith.constant 1 : index
    %4 = memref.load %arg2[%c1] : memref<96xf32, #tpu.memory_space<smem>>
    %c2 = arith.constant 2 : index
    %5 = memref.load %arg2[%c2] : memref<96xf32, #tpu.memory_space<smem>>
    %c3 = arith.constant 3 : index
    %6 = memref.load %arg2[%c3] : memref<96xf32, #tpu.memory_space<smem>>
    %c4 = arith.constant 4 : index
    %7 = memref.load %arg2[%c4] : memref<96xf32, #tpu.memory_space<smem>>
    %c5 = arith.constant 5 : index
    %8 = memref.load %arg2[%c5] : memref<96xf32, #tpu.memory_space<smem>>
    %c6 = arith.constant 6 : index
    %9 = memref.load %arg2[%c6] : memref<96xf32, #tpu.memory_space<smem>>
    %c7 = arith.constant 7 : index
    %10 = memref.load %arg2[%c7] : memref<96xf32, #tpu.memory_space<smem>>
    %c8 = arith.constant 8 : index
    %11 = memref.load %arg2[%c8] : memref<96xf32, #tpu.memory_space<smem>>
    %c9 = arith.constant 9 : index
    %12 = memref.load %arg2[%c9] : memref<96xf32, #tpu.memory_space<smem>>
    %c10 = arith.constant 10 : index
    %13 = memref.load %arg2[%c10] : memref<96xf32, #tpu.memory_space<smem>>
    %c11 = arith.constant 11 : index
    %14 = memref.load %arg2[%c11] : memref<96xf32, #tpu.memory_space<smem>>
    %c12 = arith.constant 12 : index
    %15 = memref.load %arg2[%c12] : memref<96xf32, #tpu.memory_space<smem>>
    %c13 = arith.constant 13 : index
    %16 = memref.load %arg2[%c13] : memref<96xf32, #tpu.memory_space<smem>>
    %c14 = arith.constant 14 : index
    %17 = memref.load %arg2[%c14] : memref<96xf32, #tpu.memory_space<smem>>
    %c15 = arith.constant 15 : index
    %18 = memref.load %arg2[%c15] : memref<96xf32, #tpu.memory_space<smem>>
    %c16 = arith.constant 16 : index
    %19 = memref.load %arg2[%c16] : memref<96xf32, #tpu.memory_space<smem>>
    %c17 = arith.constant 17 : index
    %20 = memref.load %arg2[%c17] : memref<96xf32, #tpu.memory_space<smem>>
    %c18 = arith.constant 18 : index
    %21 = memref.load %arg2[%c18] : memref<96xf32, #tpu.memory_space<smem>>
    %c19 = arith.constant 19 : index
    %22 = memref.load %arg2[%c19] : memref<96xf32, #tpu.memory_space<smem>>
    %c20 = arith.constant 20 : index
    %23 = memref.load %arg2[%c20] : memref<96xf32, #tpu.memory_space<smem>>
    %c21 = arith.constant 21 : index
    %24 = memref.load %arg2[%c21] : memref<96xf32, #tpu.memory_space<smem>>
    %c22 = arith.constant 22 : index
    %25 = memref.load %arg2[%c22] : memref<96xf32, #tpu.memory_space<smem>>
    %c23 = arith.constant 23 : index
    %26 = memref.load %arg2[%c23] : memref<96xf32, #tpu.memory_space<smem>>
    %c24 = arith.constant 24 : index
    %27 = memref.load %arg2[%c24] : memref<96xf32, #tpu.memory_space<smem>>
    %c25 = arith.constant 25 : index
    %28 = memref.load %arg2[%c25] : memref<96xf32, #tpu.memory_space<smem>>
    %c26 = arith.constant 26 : index
    %29 = memref.load %arg2[%c26] : memref<96xf32, #tpu.memory_space<smem>>
    %c27 = arith.constant 27 : index
    %30 = memref.load %arg2[%c27] : memref<96xf32, #tpu.memory_space<smem>>
    %c28 = arith.constant 28 : index
    %31 = memref.load %arg2[%c28] : memref<96xf32, #tpu.memory_space<smem>>
    %c29 = arith.constant 29 : index
    %32 = memref.load %arg2[%c29] : memref<96xf32, #tpu.memory_space<smem>>
    %c30 = arith.constant 30 : index
    %33 = memref.load %arg2[%c30] : memref<96xf32, #tpu.memory_space<smem>>
    %c31 = arith.constant 31 : index
    %34 = memref.load %arg2[%c31] : memref<96xf32, #tpu.memory_space<smem>>
    %c32 = arith.constant 32 : index
    %35 = memref.load %arg2[%c32] : memref<96xf32, #tpu.memory_space<smem>>
    %c33 = arith.constant 33 : index
    %36 = memref.load %arg2[%c33] : memref<96xf32, #tpu.memory_space<smem>>
    %c34 = arith.constant 34 : index
    %37 = memref.load %arg2[%c34] : memref<96xf32, #tpu.memory_space<smem>>
    %c35 = arith.constant 35 : index
    %38 = memref.load %arg2[%c35] : memref<96xf32, #tpu.memory_space<smem>>
    %c36 = arith.constant 36 : index
    %39 = memref.load %arg2[%c36] : memref<96xf32, #tpu.memory_space<smem>>
    %c37 = arith.constant 37 : index
    %40 = memref.load %arg2[%c37] : memref<96xf32, #tpu.memory_space<smem>>
    %c38 = arith.constant 38 : index
    %41 = memref.load %arg2[%c38] : memref<96xf32, #tpu.memory_space<smem>>
    %c39 = arith.constant 39 : index
    %42 = memref.load %arg2[%c39] : memref<96xf32, #tpu.memory_space<smem>>
    %c40 = arith.constant 40 : index
    %43 = memref.load %arg2[%c40] : memref<96xf32, #tpu.memory_space<smem>>
    %c41 = arith.constant 41 : index
    %44 = memref.load %arg2[%c41] : memref<96xf32, #tpu.memory_space<smem>>
    %c42 = arith.constant 42 : index
    %45 = memref.load %arg2[%c42] : memref<96xf32, #tpu.memory_space<smem>>
    %c43 = arith.constant 43 : index
    %46 = memref.load %arg2[%c43] : memref<96xf32, #tpu.memory_space<smem>>
    %c44 = arith.constant 44 : index
    %47 = memref.load %arg2[%c44] : memref<96xf32, #tpu.memory_space<smem>>
    %c45 = arith.constant 45 : index
    %48 = memref.load %arg2[%c45] : memref<96xf32, #tpu.memory_space<smem>>
    %c46 = arith.constant 46 : index
    %49 = memref.load %arg2[%c46] : memref<96xf32, #tpu.memory_space<smem>>
    %c47 = arith.constant 47 : index
    %50 = memref.load %arg2[%c47] : memref<96xf32, #tpu.memory_space<smem>>
    %c48 = arith.constant 48 : index
    %51 = memref.load %arg2[%c48] : memref<96xf32, #tpu.memory_space<smem>>
    %c49 = arith.constant 49 : index
    %52 = memref.load %arg2[%c49] : memref<96xf32, #tpu.memory_space<smem>>
    %c50 = arith.constant 50 : index
    %53 = memref.load %arg2[%c50] : memref<96xf32, #tpu.memory_space<smem>>
    %c51 = arith.constant 51 : index
    %54 = memref.load %arg2[%c51] : memref<96xf32, #tpu.memory_space<smem>>
    %c52 = arith.constant 52 : index
    %55 = memref.load %arg2[%c52] : memref<96xf32, #tpu.memory_space<smem>>
    %c53 = arith.constant 53 : index
    %56 = memref.load %arg2[%c53] : memref<96xf32, #tpu.memory_space<smem>>
    %c54 = arith.constant 54 : index
    %57 = memref.load %arg2[%c54] : memref<96xf32, #tpu.memory_space<smem>>
    %c55 = arith.constant 55 : index
    %58 = memref.load %arg2[%c55] : memref<96xf32, #tpu.memory_space<smem>>
    %c56 = arith.constant 56 : index
    %59 = memref.load %arg2[%c56] : memref<96xf32, #tpu.memory_space<smem>>
    %c57 = arith.constant 57 : index
    %60 = memref.load %arg2[%c57] : memref<96xf32, #tpu.memory_space<smem>>
    %c58 = arith.constant 58 : index
    %61 = memref.load %arg2[%c58] : memref<96xf32, #tpu.memory_space<smem>>
    %c59 = arith.constant 59 : index
    %62 = memref.load %arg2[%c59] : memref<96xf32, #tpu.memory_space<smem>>
    %c60 = arith.constant 60 : index
    %63 = memref.load %arg2[%c60] : memref<96xf32, #tpu.memory_space<smem>>
    %c61 = arith.constant 61 : index
    %64 = memref.load %arg2[%c61] : memref<96xf32, #tpu.memory_space<smem>>
    %c62 = arith.constant 62 : index
    %65 = memref.load %arg2[%c62] : memref<96xf32, #tpu.memory_space<smem>>
    %c63 = arith.constant 63 : index
    %66 = memref.load %arg2[%c63] : memref<96xf32, #tpu.memory_space<smem>>
    %c64 = arith.constant 64 : index
    %67 = memref.load %arg2[%c64] : memref<96xf32, #tpu.memory_space<smem>>
    %c65 = arith.constant 65 : index
    %68 = memref.load %arg2[%c65] : memref<96xf32, #tpu.memory_space<smem>>
    %c66 = arith.constant 66 : index
    %69 = memref.load %arg2[%c66] : memref<96xf32, #tpu.memory_space<smem>>
    %c67 = arith.constant 67 : index
    %70 = memref.load %arg2[%c67] : memref<96xf32, #tpu.memory_space<smem>>
    %c68 = arith.constant 68 : index
    %71 = memref.load %arg2[%c68] : memref<96xf32, #tpu.memory_space<smem>>
    %c69 = arith.constant 69 : index
    %72 = memref.load %arg2[%c69] : memref<96xf32, #tpu.memory_space<smem>>
    %c70 = arith.constant 70 : index
    %73 = memref.load %arg2[%c70] : memref<96xf32, #tpu.memory_space<smem>>
    %c71 = arith.constant 71 : index
    %74 = memref.load %arg2[%c71] : memref<96xf32, #tpu.memory_space<smem>>
    %c72 = arith.constant 72 : index
    %75 = memref.load %arg2[%c72] : memref<96xf32, #tpu.memory_space<smem>>
    %c73 = arith.constant 73 : index
    %76 = memref.load %arg2[%c73] : memref<96xf32, #tpu.memory_space<smem>>
    %c74 = arith.constant 74 : index
    %77 = memref.load %arg2[%c74] : memref<96xf32, #tpu.memory_space<smem>>
    %c75 = arith.constant 75 : index
    %78 = memref.load %arg2[%c75] : memref<96xf32, #tpu.memory_space<smem>>
    %c76 = arith.constant 76 : index
    %79 = memref.load %arg2[%c76] : memref<96xf32, #tpu.memory_space<smem>>
    %c77 = arith.constant 77 : index
    %80 = memref.load %arg2[%c77] : memref<96xf32, #tpu.memory_space<smem>>
    %c78 = arith.constant 78 : index
    %81 = memref.load %arg2[%c78] : memref<96xf32, #tpu.memory_space<smem>>
    %c79 = arith.constant 79 : index
    %82 = memref.load %arg2[%c79] : memref<96xf32, #tpu.memory_space<smem>>
    %c80 = arith.constant 80 : index
    %83 = memref.load %arg2[%c80] : memref<96xf32, #tpu.memory_space<smem>>
    %c81 = arith.constant 81 : index
    %84 = memref.load %arg2[%c81] : memref<96xf32, #tpu.memory_space<smem>>
    %c82 = arith.constant 82 : index
    %85 = memref.load %arg2[%c82] : memref<96xf32, #tpu.memory_space<smem>>
    %c83 = arith.constant 83 : index
    %86 = memref.load %arg2[%c83] : memref<96xf32, #tpu.memory_space<smem>>
    %c84 = arith.constant 84 : index
    %87 = memref.load %arg2[%c84] : memref<96xf32, #tpu.memory_space<smem>>
    %c85 = arith.constant 85 : index
    %88 = memref.load %arg2[%c85] : memref<96xf32, #tpu.memory_space<smem>>
    %c86 = arith.constant 86 : index
    %89 = memref.load %arg2[%c86] : memref<96xf32, #tpu.memory_space<smem>>
    %c87 = arith.constant 87 : index
    %90 = memref.load %arg2[%c87] : memref<96xf32, #tpu.memory_space<smem>>
    %c88 = arith.constant 88 : index
    %91 = memref.load %arg2[%c88] : memref<96xf32, #tpu.memory_space<smem>>
    %c89 = arith.constant 89 : index
    %92 = memref.load %arg2[%c89] : memref<96xf32, #tpu.memory_space<smem>>
    %c90 = arith.constant 90 : index
    %93 = memref.load %arg2[%c90] : memref<96xf32, #tpu.memory_space<smem>>
    %c91 = arith.constant 91 : index
    %94 = memref.load %arg2[%c91] : memref<96xf32, #tpu.memory_space<smem>>
    %c92 = arith.constant 92 : index
    %95 = memref.load %arg2[%c92] : memref<96xf32, #tpu.memory_space<smem>>
    %c93 = arith.constant 93 : index
    %96 = memref.load %arg2[%c93] : memref<96xf32, #tpu.memory_space<smem>>
    %c94 = arith.constant 94 : index
    %97 = memref.load %arg2[%c94] : memref<96xf32, #tpu.memory_space<smem>>
    %c95 = arith.constant 95 : index
    %98 = memref.load %arg2[%c95] : memref<96xf32, #tpu.memory_space<smem>>
    %c0_0 = arith.constant 0 : index
    %99 = memref.load %arg3[%c0_0] : memref<32xf32, #tpu.memory_space<smem>>
    %c1_1 = arith.constant 1 : index
    %100 = memref.load %arg3[%c1_1] : memref<32xf32, #tpu.memory_space<smem>>
    %c2_2 = arith.constant 2 : index
    %101 = memref.load %arg3[%c2_2] : memref<32xf32, #tpu.memory_space<smem>>
    %c3_3 = arith.constant 3 : index
    %102 = memref.load %arg3[%c3_3] : memref<32xf32, #tpu.memory_space<smem>>
    %c4_4 = arith.constant 4 : index
    %103 = memref.load %arg3[%c4_4] : memref<32xf32, #tpu.memory_space<smem>>
    %c5_5 = arith.constant 5 : index
    %104 = memref.load %arg3[%c5_5] : memref<32xf32, #tpu.memory_space<smem>>
    %c6_6 = arith.constant 6 : index
    %105 = memref.load %arg3[%c6_6] : memref<32xf32, #tpu.memory_space<smem>>
    %c7_7 = arith.constant 7 : index
    %106 = memref.load %arg3[%c7_7] : memref<32xf32, #tpu.memory_space<smem>>
    %c8_8 = arith.constant 8 : index
    %107 = memref.load %arg3[%c8_8] : memref<32xf32, #tpu.memory_space<smem>>
    %c9_9 = arith.constant 9 : index
    %108 = memref.load %arg3[%c9_9] : memref<32xf32, #tpu.memory_space<smem>>
    %c10_10 = arith.constant 10 : index
    %109 = memref.load %arg3[%c10_10] : memref<32xf32, #tpu.memory_space<smem>>
    %c11_11 = arith.constant 11 : index
    %110 = memref.load %arg3[%c11_11] : memref<32xf32, #tpu.memory_space<smem>>
    %c12_12 = arith.constant 12 : index
    %111 = memref.load %arg3[%c12_12] : memref<32xf32, #tpu.memory_space<smem>>
    %c13_13 = arith.constant 13 : index
    %112 = memref.load %arg3[%c13_13] : memref<32xf32, #tpu.memory_space<smem>>
    %c14_14 = arith.constant 14 : index
    %113 = memref.load %arg3[%c14_14] : memref<32xf32, #tpu.memory_space<smem>>
    %c15_15 = arith.constant 15 : index
    %114 = memref.load %arg3[%c15_15] : memref<32xf32, #tpu.memory_space<smem>>
    %c16_16 = arith.constant 16 : index
    %115 = memref.load %arg3[%c16_16] : memref<32xf32, #tpu.memory_space<smem>>
    %c17_17 = arith.constant 17 : index
    %116 = memref.load %arg3[%c17_17] : memref<32xf32, #tpu.memory_space<smem>>
    %c18_18 = arith.constant 18 : index
    %117 = memref.load %arg3[%c18_18] : memref<32xf32, #tpu.memory_space<smem>>
    %c19_19 = arith.constant 19 : index
    %118 = memref.load %arg3[%c19_19] : memref<32xf32, #tpu.memory_space<smem>>
    %c20_20 = arith.constant 20 : index
    %119 = memref.load %arg3[%c20_20] : memref<32xf32, #tpu.memory_space<smem>>
    %c21_21 = arith.constant 21 : index
    %120 = memref.load %arg3[%c21_21] : memref<32xf32, #tpu.memory_space<smem>>
    %c22_22 = arith.constant 22 : index
    %121 = memref.load %arg3[%c22_22] : memref<32xf32, #tpu.memory_space<smem>>
    %c23_23 = arith.constant 23 : index
    %122 = memref.load %arg3[%c23_23] : memref<32xf32, #tpu.memory_space<smem>>
    %c24_24 = arith.constant 24 : index
    %123 = memref.load %arg3[%c24_24] : memref<32xf32, #tpu.memory_space<smem>>
    %c25_25 = arith.constant 25 : index
    %124 = memref.load %arg3[%c25_25] : memref<32xf32, #tpu.memory_space<smem>>
    %c26_26 = arith.constant 26 : index
    %125 = memref.load %arg3[%c26_26] : memref<32xf32, #tpu.memory_space<smem>>
    %c27_27 = arith.constant 27 : index
    %126 = memref.load %arg3[%c27_27] : memref<32xf32, #tpu.memory_space<smem>>
    %c28_28 = arith.constant 28 : index
    %127 = memref.load %arg3[%c28_28] : memref<32xf32, #tpu.memory_space<smem>>
    %c29_29 = arith.constant 29 : index
    %128 = memref.load %arg3[%c29_29] : memref<32xf32, #tpu.memory_space<smem>>
    %c30_30 = arith.constant 30 : index
    %129 = memref.load %arg3[%c30_30] : memref<32xf32, #tpu.memory_space<smem>>
    %c31_31 = arith.constant 31 : index
    %130 = memref.load %arg3[%c31_31] : memref<32xf32, #tpu.memory_space<smem>>
    %c0_32 = arith.constant 0 : index
    %131 = memref.load %arg4[%c0_32] : memref<96xf32, #tpu.memory_space<smem>>
    %c1_33 = arith.constant 1 : index
    %132 = memref.load %arg4[%c1_33] : memref<96xf32, #tpu.memory_space<smem>>
    %c2_34 = arith.constant 2 : index
    %133 = memref.load %arg4[%c2_34] : memref<96xf32, #tpu.memory_space<smem>>
    %c3_35 = arith.constant 3 : index
    %134 = memref.load %arg4[%c3_35] : memref<96xf32, #tpu.memory_space<smem>>
    %c4_36 = arith.constant 4 : index
    %135 = memref.load %arg4[%c4_36] : memref<96xf32, #tpu.memory_space<smem>>
    %c5_37 = arith.constant 5 : index
    %136 = memref.load %arg4[%c5_37] : memref<96xf32, #tpu.memory_space<smem>>
    %c6_38 = arith.constant 6 : index
    %137 = memref.load %arg4[%c6_38] : memref<96xf32, #tpu.memory_space<smem>>
    %c7_39 = arith.constant 7 : index
    %138 = memref.load %arg4[%c7_39] : memref<96xf32, #tpu.memory_space<smem>>
    %c8_40 = arith.constant 8 : index
    %139 = memref.load %arg4[%c8_40] : memref<96xf32, #tpu.memory_space<smem>>
    %c9_41 = arith.constant 9 : index
    %140 = memref.load %arg4[%c9_41] : memref<96xf32, #tpu.memory_space<smem>>
    %c10_42 = arith.constant 10 : index
    %141 = memref.load %arg4[%c10_42] : memref<96xf32, #tpu.memory_space<smem>>
    %c11_43 = arith.constant 11 : index
    %142 = memref.load %arg4[%c11_43] : memref<96xf32, #tpu.memory_space<smem>>
    %c12_44 = arith.constant 12 : index
    %143 = memref.load %arg4[%c12_44] : memref<96xf32, #tpu.memory_space<smem>>
    %c13_45 = arith.constant 13 : index
    %144 = memref.load %arg4[%c13_45] : memref<96xf32, #tpu.memory_space<smem>>
    %c14_46 = arith.constant 14 : index
    %145 = memref.load %arg4[%c14_46] : memref<96xf32, #tpu.memory_space<smem>>
    %c15_47 = arith.constant 15 : index
    %146 = memref.load %arg4[%c15_47] : memref<96xf32, #tpu.memory_space<smem>>
    %c16_48 = arith.constant 16 : index
    %147 = memref.load %arg4[%c16_48] : memref<96xf32, #tpu.memory_space<smem>>
    %c17_49 = arith.constant 17 : index
    %148 = memref.load %arg4[%c17_49] : memref<96xf32, #tpu.memory_space<smem>>
    %c18_50 = arith.constant 18 : index
    %149 = memref.load %arg4[%c18_50] : memref<96xf32, #tpu.memory_space<smem>>
    %c19_51 = arith.constant 19 : index
    %150 = memref.load %arg4[%c19_51] : memref<96xf32, #tpu.memory_space<smem>>
    %c20_52 = arith.constant 20 : index
    %151 = memref.load %arg4[%c20_52] : memref<96xf32, #tpu.memory_space<smem>>
    %c21_53 = arith.constant 21 : index
    %152 = memref.load %arg4[%c21_53] : memref<96xf32, #tpu.memory_space<smem>>
    %c22_54 = arith.constant 22 : index
    %153 = memref.load %arg4[%c22_54] : memref<96xf32, #tpu.memory_space<smem>>
    %c23_55 = arith.constant 23 : index
    %154 = memref.load %arg4[%c23_55] : memref<96xf32, #tpu.memory_space<smem>>
    %c24_56 = arith.constant 24 : index
    %155 = memref.load %arg4[%c24_56] : memref<96xf32, #tpu.memory_space<smem>>
    %c25_57 = arith.constant 25 : index
    %156 = memref.load %arg4[%c25_57] : memref<96xf32, #tpu.memory_space<smem>>
    %c26_58 = arith.constant 26 : index
    %157 = memref.load %arg4[%c26_58] : memref<96xf32, #tpu.memory_space<smem>>
    %c27_59 = arith.constant 27 : index
    %158 = memref.load %arg4[%c27_59] : memref<96xf32, #tpu.memory_space<smem>>
    %c28_60 = arith.constant 28 : index
    %159 = memref.load %arg4[%c28_60] : memref<96xf32, #tpu.memory_space<smem>>
    %c29_61 = arith.constant 29 : index
    %160 = memref.load %arg4[%c29_61] : memref<96xf32, #tpu.memory_space<smem>>
    %c30_62 = arith.constant 30 : index
    %161 = memref.load %arg4[%c30_62] : memref<96xf32, #tpu.memory_space<smem>>
    %c31_63 = arith.constant 31 : index
    %162 = memref.load %arg4[%c31_63] : memref<96xf32, #tpu.memory_space<smem>>
    %c32_64 = arith.constant 32 : index
    %163 = memref.load %arg4[%c32_64] : memref<96xf32, #tpu.memory_space<smem>>
    %c33_65 = arith.constant 33 : index
    %164 = memref.load %arg4[%c33_65] : memref<96xf32, #tpu.memory_space<smem>>
    %c34_66 = arith.constant 34 : index
    %165 = memref.load %arg4[%c34_66] : memref<96xf32, #tpu.memory_space<smem>>
    %c35_67 = arith.constant 35 : index
    %166 = memref.load %arg4[%c35_67] : memref<96xf32, #tpu.memory_space<smem>>
    %c36_68 = arith.constant 36 : index
    %167 = memref.load %arg4[%c36_68] : memref<96xf32, #tpu.memory_space<smem>>
    %c37_69 = arith.constant 37 : index
    %168 = memref.load %arg4[%c37_69] : memref<96xf32, #tpu.memory_space<smem>>
    %c38_70 = arith.constant 38 : index
    %169 = memref.load %arg4[%c38_70] : memref<96xf32, #tpu.memory_space<smem>>
    %c39_71 = arith.constant 39 : index
    %170 = memref.load %arg4[%c39_71] : memref<96xf32, #tpu.memory_space<smem>>
    %c40_72 = arith.constant 40 : index
    %171 = memref.load %arg4[%c40_72] : memref<96xf32, #tpu.memory_space<smem>>
    %c41_73 = arith.constant 41 : index
    %172 = memref.load %arg4[%c41_73] : memref<96xf32, #tpu.memory_space<smem>>
    %c42_74 = arith.constant 42 : index
    %173 = memref.load %arg4[%c42_74] : memref<96xf32, #tpu.memory_space<smem>>
    %c43_75 = arith.constant 43 : index
    %174 = memref.load %arg4[%c43_75] : memref<96xf32, #tpu.memory_space<smem>>
    %c44_76 = arith.constant 44 : index
    %175 = memref.load %arg4[%c44_76] : memref<96xf32, #tpu.memory_space<smem>>
    %c45_77 = arith.constant 45 : index
    %176 = memref.load %arg4[%c45_77] : memref<96xf32, #tpu.memory_space<smem>>
    %c46_78 = arith.constant 46 : index
    %177 = memref.load %arg4[%c46_78] : memref<96xf32, #tpu.memory_space<smem>>
    %c47_79 = arith.constant 47 : index
    %178 = memref.load %arg4[%c47_79] : memref<96xf32, #tpu.memory_space<smem>>
    %c48_80 = arith.constant 48 : index
    %179 = memref.load %arg4[%c48_80] : memref<96xf32, #tpu.memory_space<smem>>
    %c49_81 = arith.constant 49 : index
    %180 = memref.load %arg4[%c49_81] : memref<96xf32, #tpu.memory_space<smem>>
    %c50_82 = arith.constant 50 : index
    %181 = memref.load %arg4[%c50_82] : memref<96xf32, #tpu.memory_space<smem>>
    %c51_83 = arith.constant 51 : index
    %182 = memref.load %arg4[%c51_83] : memref<96xf32, #tpu.memory_space<smem>>
    %c52_84 = arith.constant 52 : index
    %183 = memref.load %arg4[%c52_84] : memref<96xf32, #tpu.memory_space<smem>>
    %c53_85 = arith.constant 53 : index
    %184 = memref.load %arg4[%c53_85] : memref<96xf32, #tpu.memory_space<smem>>
    %c54_86 = arith.constant 54 : index
    %185 = memref.load %arg4[%c54_86] : memref<96xf32, #tpu.memory_space<smem>>
    %c55_87 = arith.constant 55 : index
    %186 = memref.load %arg4[%c55_87] : memref<96xf32, #tpu.memory_space<smem>>
    %c56_88 = arith.constant 56 : index
    %187 = memref.load %arg4[%c56_88] : memref<96xf32, #tpu.memory_space<smem>>
    %c57_89 = arith.constant 57 : index
    %188 = memref.load %arg4[%c57_89] : memref<96xf32, #tpu.memory_space<smem>>
    %c58_90 = arith.constant 58 : index
    %189 = memref.load %arg4[%c58_90] : memref<96xf32, #tpu.memory_space<smem>>
    %c59_91 = arith.constant 59 : index
    %190 = memref.load %arg4[%c59_91] : memref<96xf32, #tpu.memory_space<smem>>
    %c60_92 = arith.constant 60 : index
    %191 = memref.load %arg4[%c60_92] : memref<96xf32, #tpu.memory_space<smem>>
    %c61_93 = arith.constant 61 : index
    %192 = memref.load %arg4[%c61_93] : memref<96xf32, #tpu.memory_space<smem>>
    %c62_94 = arith.constant 62 : index
    %193 = memref.load %arg4[%c62_94] : memref<96xf32, #tpu.memory_space<smem>>
    %c63_95 = arith.constant 63 : index
    %194 = memref.load %arg4[%c63_95] : memref<96xf32, #tpu.memory_space<smem>>
    %c64_96 = arith.constant 64 : index
    %195 = memref.load %arg4[%c64_96] : memref<96xf32, #tpu.memory_space<smem>>
    %c65_97 = arith.constant 65 : index
    %196 = memref.load %arg4[%c65_97] : memref<96xf32, #tpu.memory_space<smem>>
    %c66_98 = arith.constant 66 : index
    %197 = memref.load %arg4[%c66_98] : memref<96xf32, #tpu.memory_space<smem>>
    %c67_99 = arith.constant 67 : index
    %198 = memref.load %arg4[%c67_99] : memref<96xf32, #tpu.memory_space<smem>>
    %c68_100 = arith.constant 68 : index
    %199 = memref.load %arg4[%c68_100] : memref<96xf32, #tpu.memory_space<smem>>
    %c69_101 = arith.constant 69 : index
    %200 = memref.load %arg4[%c69_101] : memref<96xf32, #tpu.memory_space<smem>>
    %c70_102 = arith.constant 70 : index
    %201 = memref.load %arg4[%c70_102] : memref<96xf32, #tpu.memory_space<smem>>
    %c71_103 = arith.constant 71 : index
    %202 = memref.load %arg4[%c71_103] : memref<96xf32, #tpu.memory_space<smem>>
    %c72_104 = arith.constant 72 : index
    %203 = memref.load %arg4[%c72_104] : memref<96xf32, #tpu.memory_space<smem>>
    %c73_105 = arith.constant 73 : index
    %204 = memref.load %arg4[%c73_105] : memref<96xf32, #tpu.memory_space<smem>>
    %c74_106 = arith.constant 74 : index
    %205 = memref.load %arg4[%c74_106] : memref<96xf32, #tpu.memory_space<smem>>
    %c75_107 = arith.constant 75 : index
    %206 = memref.load %arg4[%c75_107] : memref<96xf32, #tpu.memory_space<smem>>
    %c76_108 = arith.constant 76 : index
    %207 = memref.load %arg4[%c76_108] : memref<96xf32, #tpu.memory_space<smem>>
    %c77_109 = arith.constant 77 : index
    %208 = memref.load %arg4[%c77_109] : memref<96xf32, #tpu.memory_space<smem>>
    %c78_110 = arith.constant 78 : index
    %209 = memref.load %arg4[%c78_110] : memref<96xf32, #tpu.memory_space<smem>>
    %c79_111 = arith.constant 79 : index
    %210 = memref.load %arg4[%c79_111] : memref<96xf32, #tpu.memory_space<smem>>
    %c80_112 = arith.constant 80 : index
    %211 = memref.load %arg4[%c80_112] : memref<96xf32, #tpu.memory_space<smem>>
    %c81_113 = arith.constant 81 : index
    %212 = memref.load %arg4[%c81_113] : memref<96xf32, #tpu.memory_space<smem>>
    %c82_114 = arith.constant 82 : index
    %213 = memref.load %arg4[%c82_114] : memref<96xf32, #tpu.memory_space<smem>>
    %c83_115 = arith.constant 83 : index
    %214 = memref.load %arg4[%c83_115] : memref<96xf32, #tpu.memory_space<smem>>
    %c84_116 = arith.constant 84 : index
    %215 = memref.load %arg4[%c84_116] : memref<96xf32, #tpu.memory_space<smem>>
    %c85_117 = arith.constant 85 : index
    %216 = memref.load %arg4[%c85_117] : memref<96xf32, #tpu.memory_space<smem>>
    %c86_118 = arith.constant 86 : index
    %217 = memref.load %arg4[%c86_118] : memref<96xf32, #tpu.memory_space<smem>>
    %c87_119 = arith.constant 87 : index
    %218 = memref.load %arg4[%c87_119] : memref<96xf32, #tpu.memory_space<smem>>
    %c88_120 = arith.constant 88 : index
    %219 = memref.load %arg4[%c88_120] : memref<96xf32, #tpu.memory_space<smem>>
    %c89_121 = arith.constant 89 : index
    %220 = memref.load %arg4[%c89_121] : memref<96xf32, #tpu.memory_space<smem>>
    %c90_122 = arith.constant 90 : index
    %221 = memref.load %arg4[%c90_122] : memref<96xf32, #tpu.memory_space<smem>>
    %c91_123 = arith.constant 91 : index
    %222 = memref.load %arg4[%c91_123] : memref<96xf32, #tpu.memory_space<smem>>
    %c92_124 = arith.constant 92 : index
    %223 = memref.load %arg4[%c92_124] : memref<96xf32, #tpu.memory_space<smem>>
    %c93_125 = arith.constant 93 : index
    %224 = memref.load %arg4[%c93_125] : memref<96xf32, #tpu.memory_space<smem>>
    %c94_126 = arith.constant 94 : index
    %225 = memref.load %arg4[%c94_126] : memref<96xf32, #tpu.memory_space<smem>>
    %c95_127 = arith.constant 95 : index
    %226 = memref.load %arg4[%c95_127] : memref<96xf32, #tpu.memory_space<smem>>
    %c0_128 = arith.constant 0 : index
    %227 = memref.load %arg5[%c0_128] : memref<1xf32, #tpu.memory_space<smem>>
    %c0_129 = arith.constant 0 : index
    %c0_130 = arith.constant 0 : index
    %228 = vector.load %arg1[%c0_129, %c0_130] : memref<16x128xf32, #tpu.memory_space<vmem>>, vector<8x128xf32>
    %c127_i32 = arith.constant 127 : i32
    %229 = tpu.dynamic_rotate %228 by %c127_i32 dim 1 : vector<8x128xf32>, i32 -> vector<8x128xf32>
    %c126_i32 = arith.constant 126 : i32
    %230 = tpu.dynamic_rotate %228 by %c126_i32 dim 1 : vector<8x128xf32>, i32 -> vector<8x128xf32>
    %231 = vector.broadcast %3 : f32 to vector<8x128xf32>
    %232 = arith.mulf %228, %231 : vector<8x128xf32>
    %233 = vector.broadcast %4 : f32 to vector<8x128xf32>
    %234 = arith.mulf %229, %233 : vector<8x128xf32>
    %235 = arith.addf %232, %234 : vector<8x128xf32>
    %236 = vector.broadcast %5 : f32 to vector<8x128xf32>
    %237 = arith.mulf %230, %236 : vector<8x128xf32>
    %238 = arith.addf %235, %237 : vector<8x128xf32>
    %239 = vector.broadcast %99 : f32 to vector<8x128xf32>
    %240 = arith.addf %238, %239 : vector<8x128xf32>
    %cst = arith.constant 0.000000e+00 : f32
    %241 = vector.broadcast %cst : f32 to vector<8x128xf32>
    %242 = arith.maximumf %240, %241 : vector<8x128xf32>
    %243 = vector.broadcast %131 : f32 to vector<8x128xf32>
    %244 = arith.mulf %242, %243 : vector<8x128xf32>
    %245 = vector.broadcast %132 : f32 to vector<8x128xf32>
    %246 = arith.mulf %242, %245 : vector<8x128xf32>
    %247 = vector.broadcast %133 : f32 to vector<8x128xf32>
    %248 = arith.mulf %242, %247 : vector<8x128xf32>
    %249 = vector.broadcast %6 : f32 to vector<8x128xf32>
    %250 = arith.mulf %228, %249 : vector<8x128xf32>
    %251 = vector.broadcast %7 : f32 to vector<8x128xf32>
    %252 = arith.mulf %229, %251 : vector<8x128xf32>
    %253 = arith.addf %250, %252 : vector<8x128xf32>
    %254 = vector.broadcast %8 : f32 to vector<8x128xf32>
    %255 = arith.mulf %230, %254 : vector<8x128xf32>
    %256 = arith.addf %253, %255 : vector<8x128xf32>
    %257 = vector.broadcast %100 : f32 to vector<8x128xf32>
    %258 = arith.addf %256, %257 : vector<8x128xf32>
    %cst_131 = arith.constant 0.000000e+00 : f32
    %259 = vector.broadcast %cst_131 : f32 to vector<8x128xf32>
    %260 = arith.maximumf %258, %259 : vector<8x128xf32>
    %261 = vector.broadcast %134 : f32 to vector<8x128xf32>
    %262 = arith.mulf %260, %261 : vector<8x128xf32>
    %263 = arith.addf %244, %262 : vector<8x128xf32>
    %264 = vector.broadcast %135 : f32 to vector<8x128xf32>
    %265 = arith.mulf %260, %264 : vector<8x128xf32>
    %266 = arith.addf %246, %265 : vector<8x128xf32>
    %267 = vector.broadcast %136 : f32 to vector<8x128xf32>
    %268 = arith.mulf %260, %267 : vector<8x128xf32>
    %269 = arith.addf %248, %268 : vector<8x128xf32>
    %270 = vector.broadcast %9 : f32 to vector<8x128xf32>
    %271 = arith.mulf %228, %270 : vector<8x128xf32>
    %272 = vector.broadcast %10 : f32 to vector<8x128xf32>
    %273 = arith.mulf %229, %272 : vector<8x128xf32>
    %274 = arith.addf %271, %273 : vector<8x128xf32>
    %275 = vector.broadcast %11 : f32 to vector<8x128xf32>
    %276 = arith.mulf %230, %275 : vector<8x128xf32>
    %277 = arith.addf %274, %276 : vector<8x128xf32>
    %278 = vector.broadcast %101 : f32 to vector<8x128xf32>
    %279 = arith.addf %277, %278 : vector<8x128xf32>
    %cst_132 = arith.constant 0.000000e+00 : f32
    %280 = vector.broadcast %cst_132 : f32 to vector<8x128xf32>
    %281 = arith.maximumf %279, %280 : vector<8x128xf32>
    %282 = vector.broadcast %137 : f32 to vector<8x128xf32>
    %283 = arith.mulf %281, %282 : vector<8x128xf32>
    %284 = arith.addf %263, %283 : vector<8x128xf32>
    %285 = vector.broadcast %138 : f32 to vector<8x128xf32>
    %286 = arith.mulf %281, %285 : vector<8x128xf32>
    %287 = arith.addf %266, %286 : vector<8x128xf32>
    %288 = vector.broadcast %139 : f32 to vector<8x128xf32>
    %289 = arith.mulf %281, %288 : vector<8x128xf32>
    %290 = arith.addf %269, %289 : vector<8x128xf32>
    %291 = vector.broadcast %12 : f32 to vector<8x128xf32>
    %292 = arith.mulf %228, %291 : vector<8x128xf32>
    %293 = vector.broadcast %13 : f32 to vector<8x128xf32>
    %294 = arith.mulf %229, %293 : vector<8x128xf32>
    %295 = arith.addf %292, %294 : vector<8x128xf32>
    %296 = vector.broadcast %14 : f32 to vector<8x128xf32>
    %297 = arith.mulf %230, %296 : vector<8x128xf32>
    %298 = arith.addf %295, %297 : vector<8x128xf32>
    %299 = vector.broadcast %102 : f32 to vector<8x128xf32>
    %300 = arith.addf %298, %299 : vector<8x128xf32>
    %cst_133 = arith.constant 0.000000e+00 : f32
    %301 = vector.broadcast %cst_133 : f32 to vector<8x128xf32>
    %302 = arith.maximumf %300, %301 : vector<8x128xf32>
    %303 = vector.broadcast %140 : f32 to vector<8x128xf32>
    %304 = arith.mulf %302, %303 : vector<8x128xf32>
    %305 = arith.addf %284, %304 : vector<8x128xf32>
    %306 = vector.broadcast %141 : f32 to vector<8x128xf32>
    %307 = arith.mulf %302, %306 : vector<8x128xf32>
    %308 = arith.addf %287, %307 : vector<8x128xf32>
    %309 = vector.broadcast %142 : f32 to vector<8x128xf32>
    %310 = arith.mulf %302, %309 : vector<8x128xf32>
    %311 = arith.addf %290, %310 : vector<8x128xf32>
    %312 = vector.broadcast %15 : f32 to vector<8x128xf32>
    %313 = arith.mulf %228, %312 : vector<8x128xf32>
    %314 = vector.broadcast %16 : f32 to vector<8x128xf32>
    %315 = arith.mulf %229, %314 : vector<8x128xf32>
    %316 = arith.addf %313, %315 : vector<8x128xf32>
    %317 = vector.broadcast %17 : f32 to vector<8x128xf32>
    %318 = arith.mulf %230, %317 : vector<8x128xf32>
    %319 = arith.addf %316, %318 : vector<8x128xf32>
    %320 = vector.broadcast %103 : f32 to vector<8x128xf32>
    %321 = arith.addf %319, %320 : vector<8x128xf32>
    %cst_134 = arith.constant 0.000000e+00 : f32
    %322 = vector.broadcast %cst_134 : f32 to vector<8x128xf32>
    %323 = arith.maximumf %321, %322 : vector<8x128xf32>
    %324 = vector.broadcast %143 : f32 to vector<8x128xf32>
    %325 = arith.mulf %323, %324 : vector<8x128xf32>
    %326 = arith.addf %305, %325 : vector<8x128xf32>
    %327 = vector.broadcast %144 : f32 to vector<8x128xf32>
    %328 = arith.mulf %323, %327 : vector<8x128xf32>
    %329 = arith.addf %308, %328 : vector<8x128xf32>
    %330 = vector.broadcast %145 : f32 to vector<8x128xf32>
    %331 = arith.mulf %323, %330 : vector<8x128xf32>
    %332 = arith.addf %311, %331 : vector<8x128xf32>
    %333 = vector.broadcast %18 : f32 to vector<8x128xf32>
    %334 = arith.mulf %228, %333 : vector<8x128xf32>
    %335 = vector.broadcast %19 : f32 to vector<8x128xf32>
    %336 = arith.mulf %229, %335 : vector<8x128xf32>
    %337 = arith.addf %334, %336 : vector<8x128xf32>
    %338 = vector.broadcast %20 : f32 to vector<8x128xf32>
    %339 = arith.mulf %230, %338 : vector<8x128xf32>
    %340 = arith.addf %337, %339 : vector<8x128xf32>
    %341 = vector.broadcast %104 : f32 to vector<8x128xf32>
    %342 = arith.addf %340, %341 : vector<8x128xf32>
    %cst_135 = arith.constant 0.000000e+00 : f32
    %343 = vector.broadcast %cst_135 : f32 to vector<8x128xf32>
    %344 = arith.maximumf %342, %343 : vector<8x128xf32>
    %345 = vector.broadcast %146 : f32 to vector<8x128xf32>
    %346 = arith.mulf %344, %345 : vector<8x128xf32>
    %347 = arith.addf %326, %346 : vector<8x128xf32>
    %348 = vector.broadcast %147 : f32 to vector<8x128xf32>
    %349 = arith.mulf %344, %348 : vector<8x128xf32>
    %350 = arith.addf %329, %349 : vector<8x128xf32>
    %351 = vector.broadcast %148 : f32 to vector<8x128xf32>
    %352 = arith.mulf %344, %351 : vector<8x128xf32>
    %353 = arith.addf %332, %352 : vector<8x128xf32>
    %354 = vector.broadcast %21 : f32 to vector<8x128xf32>
    %355 = arith.mulf %228, %354 : vector<8x128xf32>
    %356 = vector.broadcast %22 : f32 to vector<8x128xf32>
    %357 = arith.mulf %229, %356 : vector<8x128xf32>
    %358 = arith.addf %355, %357 : vector<8x128xf32>
    %359 = vector.broadcast %23 : f32 to vector<8x128xf32>
    %360 = arith.mulf %230, %359 : vector<8x128xf32>
    %361 = arith.addf %358, %360 : vector<8x128xf32>
    %362 = vector.broadcast %105 : f32 to vector<8x128xf32>
    %363 = arith.addf %361, %362 : vector<8x128xf32>
    %cst_136 = arith.constant 0.000000e+00 : f32
    %364 = vector.broadcast %cst_136 : f32 to vector<8x128xf32>
    %365 = arith.maximumf %363, %364 : vector<8x128xf32>
    %366 = vector.broadcast %149 : f32 to vector<8x128xf32>
    %367 = arith.mulf %365, %366 : vector<8x128xf32>
    %368 = arith.addf %347, %367 : vector<8x128xf32>
    %369 = vector.broadcast %150 : f32 to vector<8x128xf32>
    %370 = arith.mulf %365, %369 : vector<8x128xf32>
    %371 = arith.addf %350, %370 : vector<8x128xf32>
    %372 = vector.broadcast %151 : f32 to vector<8x128xf32>
    %373 = arith.mulf %365, %372 : vector<8x128xf32>
    %374 = arith.addf %353, %373 : vector<8x128xf32>
    %375 = vector.broadcast %24 : f32 to vector<8x128xf32>
    %376 = arith.mulf %228, %375 : vector<8x128xf32>
    %377 = vector.broadcast %25 : f32 to vector<8x128xf32>
    %378 = arith.mulf %229, %377 : vector<8x128xf32>
    %379 = arith.addf %376, %378 : vector<8x128xf32>
    %380 = vector.broadcast %26 : f32 to vector<8x128xf32>
    %381 = arith.mulf %230, %380 : vector<8x128xf32>
    %382 = arith.addf %379, %381 : vector<8x128xf32>
    %383 = vector.broadcast %106 : f32 to vector<8x128xf32>
    %384 = arith.addf %382, %383 : vector<8x128xf32>
    %cst_137 = arith.constant 0.000000e+00 : f32
    %385 = vector.broadcast %cst_137 : f32 to vector<8x128xf32>
    %386 = arith.maximumf %384, %385 : vector<8x128xf32>
    %387 = vector.broadcast %152 : f32 to vector<8x128xf32>
    %388 = arith.mulf %386, %387 : vector<8x128xf32>
    %389 = arith.addf %368, %388 : vector<8x128xf32>
    %390 = vector.broadcast %153 : f32 to vector<8x128xf32>
    %391 = arith.mulf %386, %390 : vector<8x128xf32>
    %392 = arith.addf %371, %391 : vector<8x128xf32>
    %393 = vector.broadcast %154 : f32 to vector<8x128xf32>
    %394 = arith.mulf %386, %393 : vector<8x128xf32>
    %395 = arith.addf %374, %394 : vector<8x128xf32>
    %396 = vector.broadcast %27 : f32 to vector<8x128xf32>
    %397 = arith.mulf %228, %396 : vector<8x128xf32>
    %398 = vector.broadcast %28 : f32 to vector<8x128xf32>
    %399 = arith.mulf %229, %398 : vector<8x128xf32>
    %400 = arith.addf %397, %399 : vector<8x128xf32>
    %401 = vector.broadcast %29 : f32 to vector<8x128xf32>
    %402 = arith.mulf %230, %401 : vector<8x128xf32>
    %403 = arith.addf %400, %402 : vector<8x128xf32>
    %404 = vector.broadcast %107 : f32 to vector<8x128xf32>
    %405 = arith.addf %403, %404 : vector<8x128xf32>
    %cst_138 = arith.constant 0.000000e+00 : f32
    %406 = vector.broadcast %cst_138 : f32 to vector<8x128xf32>
    %407 = arith.maximumf %405, %406 : vector<8x128xf32>
    %408 = vector.broadcast %155 : f32 to vector<8x128xf32>
    %409 = arith.mulf %407, %408 : vector<8x128xf32>
    %410 = arith.addf %389, %409 : vector<8x128xf32>
    %411 = vector.broadcast %156 : f32 to vector<8x128xf32>
    %412 = arith.mulf %407, %411 : vector<8x128xf32>
    %413 = arith.addf %392, %412 : vector<8x128xf32>
    %414 = vector.broadcast %157 : f32 to vector<8x128xf32>
    %415 = arith.mulf %407, %414 : vector<8x128xf32>
    %416 = arith.addf %395, %415 : vector<8x128xf32>
    %417 = vector.broadcast %30 : f32 to vector<8x128xf32>
    %418 = arith.mulf %228, %417 : vector<8x128xf32>
    %419 = vector.broadcast %31 : f32 to vector<8x128xf32>
    %420 = arith.mulf %229, %419 : vector<8x128xf32>
    %421 = arith.addf %418, %420 : vector<8x128xf32>
    %422 = vector.broadcast %32 : f32 to vector<8x128xf32>
    %423 = arith.mulf %230, %422 : vector<8x128xf32>
    %424 = arith.addf %421, %423 : vector<8x128xf32>
    %425 = vector.broadcast %108 : f32 to vector<8x128xf32>
    %426 = arith.addf %424, %425 : vector<8x128xf32>
    %cst_139 = arith.constant 0.000000e+00 : f32
    %427 = vector.broadcast %cst_139 : f32 to vector<8x128xf32>
    %428 = arith.maximumf %426, %427 : vector<8x128xf32>
    %429 = vector.broadcast %158 : f32 to vector<8x128xf32>
    %430 = arith.mulf %428, %429 : vector<8x128xf32>
    %431 = arith.addf %410, %430 : vector<8x128xf32>
    %432 = vector.broadcast %159 : f32 to vector<8x128xf32>
    %433 = arith.mulf %428, %432 : vector<8x128xf32>
    %434 = arith.addf %413, %433 : vector<8x128xf32>
    %435 = vector.broadcast %160 : f32 to vector<8x128xf32>
    %436 = arith.mulf %428, %435 : vector<8x128xf32>
    %437 = arith.addf %416, %436 : vector<8x128xf32>
    %438 = vector.broadcast %33 : f32 to vector<8x128xf32>
    %439 = arith.mulf %228, %438 : vector<8x128xf32>
    %440 = vector.broadcast %34 : f32 to vector<8x128xf32>
    %441 = arith.mulf %229, %440 : vector<8x128xf32>
    %442 = arith.addf %439, %441 : vector<8x128xf32>
    %443 = vector.broadcast %35 : f32 to vector<8x128xf32>
    %444 = arith.mulf %230, %443 : vector<8x128xf32>
    %445 = arith.addf %442, %444 : vector<8x128xf32>
    %446 = vector.broadcast %109 : f32 to vector<8x128xf32>
    %447 = arith.addf %445, %446 : vector<8x128xf32>
    %cst_140 = arith.constant 0.000000e+00 : f32
    %448 = vector.broadcast %cst_140 : f32 to vector<8x128xf32>
    %449 = arith.maximumf %447, %448 : vector<8x128xf32>
    %450 = vector.broadcast %161 : f32 to vector<8x128xf32>
    %451 = arith.mulf %449, %450 : vector<8x128xf32>
    %452 = arith.addf %431, %451 : vector<8x128xf32>
    %453 = vector.broadcast %162 : f32 to vector<8x128xf32>
    %454 = arith.mulf %449, %453 : vector<8x128xf32>
    %455 = arith.addf %434, %454 : vector<8x128xf32>
    %456 = vector.broadcast %163 : f32 to vector<8x128xf32>
    %457 = arith.mulf %449, %456 : vector<8x128xf32>
    %458 = arith.addf %437, %457 : vector<8x128xf32>
    %459 = vector.broadcast %36 : f32 to vector<8x128xf32>
    %460 = arith.mulf %228, %459 : vector<8x128xf32>
    %461 = vector.broadcast %37 : f32 to vector<8x128xf32>
    %462 = arith.mulf %229, %461 : vector<8x128xf32>
    %463 = arith.addf %460, %462 : vector<8x128xf32>
    %464 = vector.broadcast %38 : f32 to vector<8x128xf32>
    %465 = arith.mulf %230, %464 : vector<8x128xf32>
    %466 = arith.addf %463, %465 : vector<8x128xf32>
    %467 = vector.broadcast %110 : f32 to vector<8x128xf32>
    %468 = arith.addf %466, %467 : vector<8x128xf32>
    %cst_141 = arith.constant 0.000000e+00 : f32
    %469 = vector.broadcast %cst_141 : f32 to vector<8x128xf32>
    %470 = arith.maximumf %468, %469 : vector<8x128xf32>
    %471 = vector.broadcast %164 : f32 to vector<8x128xf32>
    %472 = arith.mulf %470, %471 : vector<8x128xf32>
    %473 = arith.addf %452, %472 : vector<8x128xf32>
    %474 = vector.broadcast %165 : f32 to vector<8x128xf32>
    %475 = arith.mulf %470, %474 : vector<8x128xf32>
    %476 = arith.addf %455, %475 : vector<8x128xf32>
    %477 = vector.broadcast %166 : f32 to vector<8x128xf32>
    %478 = arith.mulf %470, %477 : vector<8x128xf32>
    %479 = arith.addf %458, %478 : vector<8x128xf32>
    %480 = vector.broadcast %39 : f32 to vector<8x128xf32>
    %481 = arith.mulf %228, %480 : vector<8x128xf32>
    %482 = vector.broadcast %40 : f32 to vector<8x128xf32>
    %483 = arith.mulf %229, %482 : vector<8x128xf32>
    %484 = arith.addf %481, %483 : vector<8x128xf32>
    %485 = vector.broadcast %41 : f32 to vector<8x128xf32>
    %486 = arith.mulf %230, %485 : vector<8x128xf32>
    %487 = arith.addf %484, %486 : vector<8x128xf32>
    %488 = vector.broadcast %111 : f32 to vector<8x128xf32>
    %489 = arith.addf %487, %488 : vector<8x128xf32>
    %cst_142 = arith.constant 0.000000e+00 : f32
    %490 = vector.broadcast %cst_142 : f32 to vector<8x128xf32>
    %491 = arith.maximumf %489, %490 : vector<8x128xf32>
    %492 = vector.broadcast %167 : f32 to vector<8x128xf32>
    %493 = arith.mulf %491, %492 : vector<8x128xf32>
    %494 = arith.addf %473, %493 : vector<8x128xf32>
    %495 = vector.broadcast %168 : f32 to vector<8x128xf32>
    %496 = arith.mulf %491, %495 : vector<8x128xf32>
    %497 = arith.addf %476, %496 : vector<8x128xf32>
    %498 = vector.broadcast %169 : f32 to vector<8x128xf32>
    %499 = arith.mulf %491, %498 : vector<8x128xf32>
    %500 = arith.addf %479, %499 : vector<8x128xf32>
    %501 = vector.broadcast %42 : f32 to vector<8x128xf32>
    %502 = arith.mulf %228, %501 : vector<8x128xf32>
    %503 = vector.broadcast %43 : f32 to vector<8x128xf32>
    %504 = arith.mulf %229, %503 : vector<8x128xf32>
    %505 = arith.addf %502, %504 : vector<8x128xf32>
    %506 = vector.broadcast %44 : f32 to vector<8x128xf32>
    %507 = arith.mulf %230, %506 : vector<8x128xf32>
    %508 = arith.addf %505, %507 : vector<8x128xf32>
    %509 = vector.broadcast %112 : f32 to vector<8x128xf32>
    %510 = arith.addf %508, %509 : vector<8x128xf32>
    %cst_143 = arith.constant 0.000000e+00 : f32
    %511 = vector.broadcast %cst_143 : f32 to vector<8x128xf32>
    %512 = arith.maximumf %510, %511 : vector<8x128xf32>
    %513 = vector.broadcast %170 : f32 to vector<8x128xf32>
    %514 = arith.mulf %512, %513 : vector<8x128xf32>
    %515 = arith.addf %494, %514 : vector<8x128xf32>
    %516 = vector.broadcast %171 : f32 to vector<8x128xf32>
    %517 = arith.mulf %512, %516 : vector<8x128xf32>
    %518 = arith.addf %497, %517 : vector<8x128xf32>
    %519 = vector.broadcast %172 : f32 to vector<8x128xf32>
    %520 = arith.mulf %512, %519 : vector<8x128xf32>
    %521 = arith.addf %500, %520 : vector<8x128xf32>
    %522 = vector.broadcast %45 : f32 to vector<8x128xf32>
    %523 = arith.mulf %228, %522 : vector<8x128xf32>
    %524 = vector.broadcast %46 : f32 to vector<8x128xf32>
    %525 = arith.mulf %229, %524 : vector<8x128xf32>
    %526 = arith.addf %523, %525 : vector<8x128xf32>
    %527 = vector.broadcast %47 : f32 to vector<8x128xf32>
    %528 = arith.mulf %230, %527 : vector<8x128xf32>
    %529 = arith.addf %526, %528 : vector<8x128xf32>
    %530 = vector.broadcast %113 : f32 to vector<8x128xf32>
    %531 = arith.addf %529, %530 : vector<8x128xf32>
    %cst_144 = arith.constant 0.000000e+00 : f32
    %532 = vector.broadcast %cst_144 : f32 to vector<8x128xf32>
    %533 = arith.maximumf %531, %532 : vector<8x128xf32>
    %534 = vector.broadcast %173 : f32 to vector<8x128xf32>
    %535 = arith.mulf %533, %534 : vector<8x128xf32>
    %536 = arith.addf %515, %535 : vector<8x128xf32>
    %537 = vector.broadcast %174 : f32 to vector<8x128xf32>
    %538 = arith.mulf %533, %537 : vector<8x128xf32>
    %539 = arith.addf %518, %538 : vector<8x128xf32>
    %540 = vector.broadcast %175 : f32 to vector<8x128xf32>
    %541 = arith.mulf %533, %540 : vector<8x128xf32>
    %542 = arith.addf %521, %541 : vector<8x128xf32>
    %543 = vector.broadcast %48 : f32 to vector<8x128xf32>
    %544 = arith.mulf %228, %543 : vector<8x128xf32>
    %545 = vector.broadcast %49 : f32 to vector<8x128xf32>
    %546 = arith.mulf %229, %545 : vector<8x128xf32>
    %547 = arith.addf %544, %546 : vector<8x128xf32>
    %548 = vector.broadcast %50 : f32 to vector<8x128xf32>
    %549 = arith.mulf %230, %548 : vector<8x128xf32>
    %550 = arith.addf %547, %549 : vector<8x128xf32>
    %551 = vector.broadcast %114 : f32 to vector<8x128xf32>
    %552 = arith.addf %550, %551 : vector<8x128xf32>
    %cst_145 = arith.constant 0.000000e+00 : f32
    %553 = vector.broadcast %cst_145 : f32 to vector<8x128xf32>
    %554 = arith.maximumf %552, %553 : vector<8x128xf32>
    %555 = vector.broadcast %176 : f32 to vector<8x128xf32>
    %556 = arith.mulf %554, %555 : vector<8x128xf32>
    %557 = arith.addf %536, %556 : vector<8x128xf32>
    %558 = vector.broadcast %177 : f32 to vector<8x128xf32>
    %559 = arith.mulf %554, %558 : vector<8x128xf32>
    %560 = arith.addf %539, %559 : vector<8x128xf32>
    %561 = vector.broadcast %178 : f32 to vector<8x128xf32>
    %562 = arith.mulf %554, %561 : vector<8x128xf32>
    %563 = arith.addf %542, %562 : vector<8x128xf32>
    %564 = vector.broadcast %51 : f32 to vector<8x128xf32>
    %565 = arith.mulf %228, %564 : vector<8x128xf32>
    %566 = vector.broadcast %52 : f32 to vector<8x128xf32>
    %567 = arith.mulf %229, %566 : vector<8x128xf32>
    %568 = arith.addf %565, %567 : vector<8x128xf32>
    %569 = vector.broadcast %53 : f32 to vector<8x128xf32>
    %570 = arith.mulf %230, %569 : vector<8x128xf32>
    %571 = arith.addf %568, %570 : vector<8x128xf32>
    %572 = vector.broadcast %115 : f32 to vector<8x128xf32>
    %573 = arith.addf %571, %572 : vector<8x128xf32>
    %cst_146 = arith.constant 0.000000e+00 : f32
    %574 = vector.broadcast %cst_146 : f32 to vector<8x128xf32>
    %575 = arith.maximumf %573, %574 : vector<8x128xf32>
    %576 = vector.broadcast %179 : f32 to vector<8x128xf32>
    %577 = arith.mulf %575, %576 : vector<8x128xf32>
    %578 = arith.addf %557, %577 : vector<8x128xf32>
    %579 = vector.broadcast %180 : f32 to vector<8x128xf32>
    %580 = arith.mulf %575, %579 : vector<8x128xf32>
    %581 = arith.addf %560, %580 : vector<8x128xf32>
    %582 = vector.broadcast %181 : f32 to vector<8x128xf32>
    %583 = arith.mulf %575, %582 : vector<8x128xf32>
    %584 = arith.addf %563, %583 : vector<8x128xf32>
    %585 = vector.broadcast %54 : f32 to vector<8x128xf32>
    %586 = arith.mulf %228, %585 : vector<8x128xf32>
    %587 = vector.broadcast %55 : f32 to vector<8x128xf32>
    %588 = arith.mulf %229, %587 : vector<8x128xf32>
    %589 = arith.addf %586, %588 : vector<8x128xf32>
    %590 = vector.broadcast %56 : f32 to vector<8x128xf32>
    %591 = arith.mulf %230, %590 : vector<8x128xf32>
    %592 = arith.addf %589, %591 : vector<8x128xf32>
    %593 = vector.broadcast %116 : f32 to vector<8x128xf32>
    %594 = arith.addf %592, %593 : vector<8x128xf32>
    %cst_147 = arith.constant 0.000000e+00 : f32
    %595 = vector.broadcast %cst_147 : f32 to vector<8x128xf32>
    %596 = arith.maximumf %594, %595 : vector<8x128xf32>
    %597 = vector.broadcast %182 : f32 to vector<8x128xf32>
    %598 = arith.mulf %596, %597 : vector<8x128xf32>
    %599 = arith.addf %578, %598 : vector<8x128xf32>
    %600 = vector.broadcast %183 : f32 to vector<8x128xf32>
    %601 = arith.mulf %596, %600 : vector<8x128xf32>
    %602 = arith.addf %581, %601 : vector<8x128xf32>
    %603 = vector.broadcast %184 : f32 to vector<8x128xf32>
    %604 = arith.mulf %596, %603 : vector<8x128xf32>
    %605 = arith.addf %584, %604 : vector<8x128xf32>
    %606 = vector.broadcast %57 : f32 to vector<8x128xf32>
    %607 = arith.mulf %228, %606 : vector<8x128xf32>
    %608 = vector.broadcast %58 : f32 to vector<8x128xf32>
    %609 = arith.mulf %229, %608 : vector<8x128xf32>
    %610 = arith.addf %607, %609 : vector<8x128xf32>
    %611 = vector.broadcast %59 : f32 to vector<8x128xf32>
    %612 = arith.mulf %230, %611 : vector<8x128xf32>
    %613 = arith.addf %610, %612 : vector<8x128xf32>
    %614 = vector.broadcast %117 : f32 to vector<8x128xf32>
    %615 = arith.addf %613, %614 : vector<8x128xf32>
    %cst_148 = arith.constant 0.000000e+00 : f32
    %616 = vector.broadcast %cst_148 : f32 to vector<8x128xf32>
    %617 = arith.maximumf %615, %616 : vector<8x128xf32>
    %618 = vector.broadcast %185 : f32 to vector<8x128xf32>
    %619 = arith.mulf %617, %618 : vector<8x128xf32>
    %620 = arith.addf %599, %619 : vector<8x128xf32>
    %621 = vector.broadcast %186 : f32 to vector<8x128xf32>
    %622 = arith.mulf %617, %621 : vector<8x128xf32>
    %623 = arith.addf %602, %622 : vector<8x128xf32>
    %624 = vector.broadcast %187 : f32 to vector<8x128xf32>
    %625 = arith.mulf %617, %624 : vector<8x128xf32>
    %626 = arith.addf %605, %625 : vector<8x128xf32>
    %627 = vector.broadcast %60 : f32 to vector<8x128xf32>
    %628 = arith.mulf %228, %627 : vector<8x128xf32>
    %629 = vector.broadcast %61 : f32 to vector<8x128xf32>
    %630 = arith.mulf %229, %629 : vector<8x128xf32>
    %631 = arith.addf %628, %630 : vector<8x128xf32>
    %632 = vector.broadcast %62 : f32 to vector<8x128xf32>
    %633 = arith.mulf %230, %632 : vector<8x128xf32>
    %634 = arith.addf %631, %633 : vector<8x128xf32>
    %635 = vector.broadcast %118 : f32 to vector<8x128xf32>
    %636 = arith.addf %634, %635 : vector<8x128xf32>
    %cst_149 = arith.constant 0.000000e+00 : f32
    %637 = vector.broadcast %cst_149 : f32 to vector<8x128xf32>
    %638 = arith.maximumf %636, %637 : vector<8x128xf32>
    %639 = vector.broadcast %188 : f32 to vector<8x128xf32>
    %640 = arith.mulf %638, %639 : vector<8x128xf32>
    %641 = arith.addf %620, %640 : vector<8x128xf32>
    %642 = vector.broadcast %189 : f32 to vector<8x128xf32>
    %643 = arith.mulf %638, %642 : vector<8x128xf32>
    %644 = arith.addf %623, %643 : vector<8x128xf32>
    %645 = vector.broadcast %190 : f32 to vector<8x128xf32>
    %646 = arith.mulf %638, %645 : vector<8x128xf32>
    %647 = arith.addf %626, %646 : vector<8x128xf32>
    %648 = vector.broadcast %63 : f32 to vector<8x128xf32>
    %649 = arith.mulf %228, %648 : vector<8x128xf32>
    %650 = vector.broadcast %64 : f32 to vector<8x128xf32>
    %651 = arith.mulf %229, %650 : vector<8x128xf32>
    %652 = arith.addf %649, %651 : vector<8x128xf32>
    %653 = vector.broadcast %65 : f32 to vector<8x128xf32>
    %654 = arith.mulf %230, %653 : vector<8x128xf32>
    %655 = arith.addf %652, %654 : vector<8x128xf32>
    %656 = vector.broadcast %119 : f32 to vector<8x128xf32>
    %657 = arith.addf %655, %656 : vector<8x128xf32>
    %cst_150 = arith.constant 0.000000e+00 : f32
    %658 = vector.broadcast %cst_150 : f32 to vector<8x128xf32>
    %659 = arith.maximumf %657, %658 : vector<8x128xf32>
    %660 = vector.broadcast %191 : f32 to vector<8x128xf32>
    %661 = arith.mulf %659, %660 : vector<8x128xf32>
    %662 = arith.addf %641, %661 : vector<8x128xf32>
    %663 = vector.broadcast %192 : f32 to vector<8x128xf32>
    %664 = arith.mulf %659, %663 : vector<8x128xf32>
    %665 = arith.addf %644, %664 : vector<8x128xf32>
    %666 = vector.broadcast %193 : f32 to vector<8x128xf32>
    %667 = arith.mulf %659, %666 : vector<8x128xf32>
    %668 = arith.addf %647, %667 : vector<8x128xf32>
    %669 = vector.broadcast %66 : f32 to vector<8x128xf32>
    %670 = arith.mulf %228, %669 : vector<8x128xf32>
    %671 = vector.broadcast %67 : f32 to vector<8x128xf32>
    %672 = arith.mulf %229, %671 : vector<8x128xf32>
    %673 = arith.addf %670, %672 : vector<8x128xf32>
    %674 = vector.broadcast %68 : f32 to vector<8x128xf32>
    %675 = arith.mulf %230, %674 : vector<8x128xf32>
    %676 = arith.addf %673, %675 : vector<8x128xf32>
    %677 = vector.broadcast %120 : f32 to vector<8x128xf32>
    %678 = arith.addf %676, %677 : vector<8x128xf32>
    %cst_151 = arith.constant 0.000000e+00 : f32
    %679 = vector.broadcast %cst_151 : f32 to vector<8x128xf32>
    %680 = arith.maximumf %678, %679 : vector<8x128xf32>
    %681 = vector.broadcast %194 : f32 to vector<8x128xf32>
    %682 = arith.mulf %680, %681 : vector<8x128xf32>
    %683 = arith.addf %662, %682 : vector<8x128xf32>
    %684 = vector.broadcast %195 : f32 to vector<8x128xf32>
    %685 = arith.mulf %680, %684 : vector<8x128xf32>
    %686 = arith.addf %665, %685 : vector<8x128xf32>
    %687 = vector.broadcast %196 : f32 to vector<8x128xf32>
    %688 = arith.mulf %680, %687 : vector<8x128xf32>
    %689 = arith.addf %668, %688 : vector<8x128xf32>
    %690 = vector.broadcast %69 : f32 to vector<8x128xf32>
    %691 = arith.mulf %228, %690 : vector<8x128xf32>
    %692 = vector.broadcast %70 : f32 to vector<8x128xf32>
    %693 = arith.mulf %229, %692 : vector<8x128xf32>
    %694 = arith.addf %691, %693 : vector<8x128xf32>
    %695 = vector.broadcast %71 : f32 to vector<8x128xf32>
    %696 = arith.mulf %230, %695 : vector<8x128xf32>
    %697 = arith.addf %694, %696 : vector<8x128xf32>
    %698 = vector.broadcast %121 : f32 to vector<8x128xf32>
    %699 = arith.addf %697, %698 : vector<8x128xf32>
    %cst_152 = arith.constant 0.000000e+00 : f32
    %700 = vector.broadcast %cst_152 : f32 to vector<8x128xf32>
    %701 = arith.maximumf %699, %700 : vector<8x128xf32>
    %702 = vector.broadcast %197 : f32 to vector<8x128xf32>
    %703 = arith.mulf %701, %702 : vector<8x128xf32>
    %704 = arith.addf %683, %703 : vector<8x128xf32>
    %705 = vector.broadcast %198 : f32 to vector<8x128xf32>
    %706 = arith.mulf %701, %705 : vector<8x128xf32>
    %707 = arith.addf %686, %706 : vector<8x128xf32>
    %708 = vector.broadcast %199 : f32 to vector<8x128xf32>
    %709 = arith.mulf %701, %708 : vector<8x128xf32>
    %710 = arith.addf %689, %709 : vector<8x128xf32>
    %711 = vector.broadcast %72 : f32 to vector<8x128xf32>
    %712 = arith.mulf %228, %711 : vector<8x128xf32>
    %713 = vector.broadcast %73 : f32 to vector<8x128xf32>
    %714 = arith.mulf %229, %713 : vector<8x128xf32>
    %715 = arith.addf %712, %714 : vector<8x128xf32>
    %716 = vector.broadcast %74 : f32 to vector<8x128xf32>
    %717 = arith.mulf %230, %716 : vector<8x128xf32>
    %718 = arith.addf %715, %717 : vector<8x128xf32>
    %719 = vector.broadcast %122 : f32 to vector<8x128xf32>
    %720 = arith.addf %718, %719 : vector<8x128xf32>
    %cst_153 = arith.constant 0.000000e+00 : f32
    %721 = vector.broadcast %cst_153 : f32 to vector<8x128xf32>
    %722 = arith.maximumf %720, %721 : vector<8x128xf32>
    %723 = vector.broadcast %200 : f32 to vector<8x128xf32>
    %724 = arith.mulf %722, %723 : vector<8x128xf32>
    %725 = arith.addf %704, %724 : vector<8x128xf32>
    %726 = vector.broadcast %201 : f32 to vector<8x128xf32>
    %727 = arith.mulf %722, %726 : vector<8x128xf32>
    %728 = arith.addf %707, %727 : vector<8x128xf32>
    %729 = vector.broadcast %202 : f32 to vector<8x128xf32>
    %730 = arith.mulf %722, %729 : vector<8x128xf32>
    %731 = arith.addf %710, %730 : vector<8x128xf32>
    %732 = vector.broadcast %75 : f32 to vector<8x128xf32>
    %733 = arith.mulf %228, %732 : vector<8x128xf32>
    %734 = vector.broadcast %76 : f32 to vector<8x128xf32>
    %735 = arith.mulf %229, %734 : vector<8x128xf32>
    %736 = arith.addf %733, %735 : vector<8x128xf32>
    %737 = vector.broadcast %77 : f32 to vector<8x128xf32>
    %738 = arith.mulf %230, %737 : vector<8x128xf32>
    %739 = arith.addf %736, %738 : vector<8x128xf32>
    %740 = vector.broadcast %123 : f32 to vector<8x128xf32>
    %741 = arith.addf %739, %740 : vector<8x128xf32>
    %cst_154 = arith.constant 0.000000e+00 : f32
    %742 = vector.broadcast %cst_154 : f32 to vector<8x128xf32>
    %743 = arith.maximumf %741, %742 : vector<8x128xf32>
    %744 = vector.broadcast %203 : f32 to vector<8x128xf32>
    %745 = arith.mulf %743, %744 : vector<8x128xf32>
    %746 = arith.addf %725, %745 : vector<8x128xf32>
    %747 = vector.broadcast %204 : f32 to vector<8x128xf32>
    %748 = arith.mulf %743, %747 : vector<8x128xf32>
    %749 = arith.addf %728, %748 : vector<8x128xf32>
    %750 = vector.broadcast %205 : f32 to vector<8x128xf32>
    %751 = arith.mulf %743, %750 : vector<8x128xf32>
    %752 = arith.addf %731, %751 : vector<8x128xf32>
    %753 = vector.broadcast %78 : f32 to vector<8x128xf32>
    %754 = arith.mulf %228, %753 : vector<8x128xf32>
    %755 = vector.broadcast %79 : f32 to vector<8x128xf32>
    %756 = arith.mulf %229, %755 : vector<8x128xf32>
    %757 = arith.addf %754, %756 : vector<8x128xf32>
    %758 = vector.broadcast %80 : f32 to vector<8x128xf32>
    %759 = arith.mulf %230, %758 : vector<8x128xf32>
    %760 = arith.addf %757, %759 : vector<8x128xf32>
    %761 = vector.broadcast %124 : f32 to vector<8x128xf32>
    %762 = arith.addf %760, %761 : vector<8x128xf32>
    %cst_155 = arith.constant 0.000000e+00 : f32
    %763 = vector.broadcast %cst_155 : f32 to vector<8x128xf32>
    %764 = arith.maximumf %762, %763 : vector<8x128xf32>
    %765 = vector.broadcast %206 : f32 to vector<8x128xf32>
    %766 = arith.mulf %764, %765 : vector<8x128xf32>
    %767 = arith.addf %746, %766 : vector<8x128xf32>
    %768 = vector.broadcast %207 : f32 to vector<8x128xf32>
    %769 = arith.mulf %764, %768 : vector<8x128xf32>
    %770 = arith.addf %749, %769 : vector<8x128xf32>
    %771 = vector.broadcast %208 : f32 to vector<8x128xf32>
    %772 = arith.mulf %764, %771 : vector<8x128xf32>
    %773 = arith.addf %752, %772 : vector<8x128xf32>
    %774 = vector.broadcast %81 : f32 to vector<8x128xf32>
    %775 = arith.mulf %228, %774 : vector<8x128xf32>
    %776 = vector.broadcast %82 : f32 to vector<8x128xf32>
    %777 = arith.mulf %229, %776 : vector<8x128xf32>
    %778 = arith.addf %775, %777 : vector<8x128xf32>
    %779 = vector.broadcast %83 : f32 to vector<8x128xf32>
    %780 = arith.mulf %230, %779 : vector<8x128xf32>
    %781 = arith.addf %778, %780 : vector<8x128xf32>
    %782 = vector.broadcast %125 : f32 to vector<8x128xf32>
    %783 = arith.addf %781, %782 : vector<8x128xf32>
    %cst_156 = arith.constant 0.000000e+00 : f32
    %784 = vector.broadcast %cst_156 : f32 to vector<8x128xf32>
    %785 = arith.maximumf %783, %784 : vector<8x128xf32>
    %786 = vector.broadcast %209 : f32 to vector<8x128xf32>
    %787 = arith.mulf %785, %786 : vector<8x128xf32>
    %788 = arith.addf %767, %787 : vector<8x128xf32>
    %789 = vector.broadcast %210 : f32 to vector<8x128xf32>
    %790 = arith.mulf %785, %789 : vector<8x128xf32>
    %791 = arith.addf %770, %790 : vector<8x128xf32>
    %792 = vector.broadcast %211 : f32 to vector<8x128xf32>
    %793 = arith.mulf %785, %792 : vector<8x128xf32>
    %794 = arith.addf %773, %793 : vector<8x128xf32>
    %795 = vector.broadcast %84 : f32 to vector<8x128xf32>
    %796 = arith.mulf %228, %795 : vector<8x128xf32>
    %797 = vector.broadcast %85 : f32 to vector<8x128xf32>
    %798 = arith.mulf %229, %797 : vector<8x128xf32>
    %799 = arith.addf %796, %798 : vector<8x128xf32>
    %800 = vector.broadcast %86 : f32 to vector<8x128xf32>
    %801 = arith.mulf %230, %800 : vector<8x128xf32>
    %802 = arith.addf %799, %801 : vector<8x128xf32>
    %803 = vector.broadcast %126 : f32 to vector<8x128xf32>
    %804 = arith.addf %802, %803 : vector<8x128xf32>
    %cst_157 = arith.constant 0.000000e+00 : f32
    %805 = vector.broadcast %cst_157 : f32 to vector<8x128xf32>
    %806 = arith.maximumf %804, %805 : vector<8x128xf32>
    %807 = vector.broadcast %212 : f32 to vector<8x128xf32>
    %808 = arith.mulf %806, %807 : vector<8x128xf32>
    %809 = arith.addf %788, %808 : vector<8x128xf32>
    %810 = vector.broadcast %213 : f32 to vector<8x128xf32>
    %811 = arith.mulf %806, %810 : vector<8x128xf32>
    %812 = arith.addf %791, %811 : vector<8x128xf32>
    %813 = vector.broadcast %214 : f32 to vector<8x128xf32>
    %814 = arith.mulf %806, %813 : vector<8x128xf32>
    %815 = arith.addf %794, %814 : vector<8x128xf32>
    %816 = vector.broadcast %87 : f32 to vector<8x128xf32>
    %817 = arith.mulf %228, %816 : vector<8x128xf32>
    %818 = vector.broadcast %88 : f32 to vector<8x128xf32>
    %819 = arith.mulf %229, %818 : vector<8x128xf32>
    %820 = arith.addf %817, %819 : vector<8x128xf32>
    %821 = vector.broadcast %89 : f32 to vector<8x128xf32>
    %822 = arith.mulf %230, %821 : vector<8x128xf32>
    %823 = arith.addf %820, %822 : vector<8x128xf32>
    %824 = vector.broadcast %127 : f32 to vector<8x128xf32>
    %825 = arith.addf %823, %824 : vector<8x128xf32>
    %cst_158 = arith.constant 0.000000e+00 : f32
    %826 = vector.broadcast %cst_158 : f32 to vector<8x128xf32>
    %827 = arith.maximumf %825, %826 : vector<8x128xf32>
    %828 = vector.broadcast %215 : f32 to vector<8x128xf32>
    %829 = arith.mulf %827, %828 : vector<8x128xf32>
    %830 = arith.addf %809, %829 : vector<8x128xf32>
    %831 = vector.broadcast %216 : f32 to vector<8x128xf32>
    %832 = arith.mulf %827, %831 : vector<8x128xf32>
    %833 = arith.addf %812, %832 : vector<8x128xf32>
    %834 = vector.broadcast %217 : f32 to vector<8x128xf32>
    %835 = arith.mulf %827, %834 : vector<8x128xf32>
    %836 = arith.addf %815, %835 : vector<8x128xf32>
    %837 = vector.broadcast %90 : f32 to vector<8x128xf32>
    %838 = arith.mulf %228, %837 : vector<8x128xf32>
    %839 = vector.broadcast %91 : f32 to vector<8x128xf32>
    %840 = arith.mulf %229, %839 : vector<8x128xf32>
    %841 = arith.addf %838, %840 : vector<8x128xf32>
    %842 = vector.broadcast %92 : f32 to vector<8x128xf32>
    %843 = arith.mulf %230, %842 : vector<8x128xf32>
    %844 = arith.addf %841, %843 : vector<8x128xf32>
    %845 = vector.broadcast %128 : f32 to vector<8x128xf32>
    %846 = arith.addf %844, %845 : vector<8x128xf32>
    %cst_159 = arith.constant 0.000000e+00 : f32
    %847 = vector.broadcast %cst_159 : f32 to vector<8x128xf32>
    %848 = arith.maximumf %846, %847 : vector<8x128xf32>
    %849 = vector.broadcast %218 : f32 to vector<8x128xf32>
    %850 = arith.mulf %848, %849 : vector<8x128xf32>
    %851 = arith.addf %830, %850 : vector<8x128xf32>
    %852 = vector.broadcast %219 : f32 to vector<8x128xf32>
    %853 = arith.mulf %848, %852 : vector<8x128xf32>
    %854 = arith.addf %833, %853 : vector<8x128xf32>
    %855 = vector.broadcast %220 : f32 to vector<8x128xf32>
    %856 = arith.mulf %848, %855 : vector<8x128xf32>
    %857 = arith.addf %836, %856 : vector<8x128xf32>
    %858 = vector.broadcast %93 : f32 to vector<8x128xf32>
    %859 = arith.mulf %228, %858 : vector<8x128xf32>
    %860 = vector.broadcast %94 : f32 to vector<8x128xf32>
    %861 = arith.mulf %229, %860 : vector<8x128xf32>
    %862 = arith.addf %859, %861 : vector<8x128xf32>
    %863 = vector.broadcast %95 : f32 to vector<8x128xf32>
    %864 = arith.mulf %230, %863 : vector<8x128xf32>
    %865 = arith.addf %862, %864 : vector<8x128xf32>
    %866 = vector.broadcast %129 : f32 to vector<8x128xf32>
    %867 = arith.addf %865, %866 : vector<8x128xf32>
    %cst_160 = arith.constant 0.000000e+00 : f32
    %868 = vector.broadcast %cst_160 : f32 to vector<8x128xf32>
    %869 = arith.maximumf %867, %868 : vector<8x128xf32>
    %870 = vector.broadcast %221 : f32 to vector<8x128xf32>
    %871 = arith.mulf %869, %870 : vector<8x128xf32>
    %872 = arith.addf %851, %871 : vector<8x128xf32>
    %873 = vector.broadcast %222 : f32 to vector<8x128xf32>
    %874 = arith.mulf %869, %873 : vector<8x128xf32>
    %875 = arith.addf %854, %874 : vector<8x128xf32>
    %876 = vector.broadcast %223 : f32 to vector<8x128xf32>
    %877 = arith.mulf %869, %876 : vector<8x128xf32>
    %878 = arith.addf %857, %877 : vector<8x128xf32>
    %879 = vector.broadcast %96 : f32 to vector<8x128xf32>
    %880 = arith.mulf %228, %879 : vector<8x128xf32>
    %881 = vector.broadcast %97 : f32 to vector<8x128xf32>
    %882 = arith.mulf %229, %881 : vector<8x128xf32>
    %883 = arith.addf %880, %882 : vector<8x128xf32>
    %884 = vector.broadcast %98 : f32 to vector<8x128xf32>
    %885 = arith.mulf %230, %884 : vector<8x128xf32>
    %886 = arith.addf %883, %885 : vector<8x128xf32>
    %887 = vector.broadcast %130 : f32 to vector<8x128xf32>
    %888 = arith.addf %886, %887 : vector<8x128xf32>
    %cst_161 = arith.constant 0.000000e+00 : f32
    %889 = vector.broadcast %cst_161 : f32 to vector<8x128xf32>
    %890 = arith.maximumf %888, %889 : vector<8x128xf32>
    %891 = vector.broadcast %224 : f32 to vector<8x128xf32>
    %892 = arith.mulf %890, %891 : vector<8x128xf32>
    %893 = arith.addf %872, %892 : vector<8x128xf32>
    %894 = vector.broadcast %225 : f32 to vector<8x128xf32>
    %895 = arith.mulf %890, %894 : vector<8x128xf32>
    %896 = arith.addf %875, %895 : vector<8x128xf32>
    %897 = vector.broadcast %226 : f32 to vector<8x128xf32>
    %898 = arith.mulf %890, %897 : vector<8x128xf32>
    %899 = arith.addf %878, %898 : vector<8x128xf32>
    %cst_162 = arith.constant 0.000000e+00 : f32
    %900 = vector.broadcast %cst_162 : f32 to vector<8x128xf32>
    %901 = arith.select %2, %893, %900 : vector<8x128xi1>, vector<8x128xf32>
    %902 = vector.broadcast %227 : f32 to vector<8x128xf32>
    %903 = arith.addf %901, %902 : vector<8x128xf32>
    %cst_163 = arith.constant 0.000000e+00 : f32
    %904 = vector.broadcast %cst_163 : f32 to vector<8x128xf32>
    %905 = arith.select %2, %896, %904 : vector<8x128xi1>, vector<8x128xf32>
    %c1_i32 = arith.constant 1 : i32
    %906 = tpu.dynamic_rotate %905 by %c1_i32 dim 1 : vector<8x128xf32>, i32 -> vector<8x128xf32>
    %907 = arith.addf %903, %906 : vector<8x128xf32>
    %cst_164 = arith.constant 0.000000e+00 : f32
    %908 = vector.broadcast %cst_164 : f32 to vector<8x128xf32>
    %909 = arith.select %2, %899, %908 : vector<8x128xi1>, vector<8x128xf32>
    %c2_i32 = arith.constant 2 : i32
    %910 = tpu.dynamic_rotate %909 by %c2_i32 dim 1 : vector<8x128xf32>, i32 -> vector<8x128xf32>
    %911 = arith.addf %907, %910 : vector<8x128xf32>
    %c0_165 = arith.constant 0 : index
    %c0_166 = arith.constant 0 : index
    %912 = vector.load %arg6[%c0_165, %c0_166] : memref<16x128xf32, #tpu.memory_space<vmem>>, vector<8x128xf32>
    tpu.vector_store %arg6[%c0_165, %c0_166], %911 {strides = array<i32>} : memref<16x128xf32, #tpu.memory_space<vmem>>, vector<8x128xf32>,
    %c8_167 = arith.constant 8 : index
    %c0_168 = arith.constant 0 : index
    %913 = vector.load %arg1[%c8_167, %c0_168] : memref<16x128xf32, #tpu.memory_space<vmem>>, vector<8x128xf32>
    %c127_i32_169 = arith.constant 127 : i32
    %914 = tpu.dynamic_rotate %913 by %c127_i32_169 dim 1 : vector<8x128xf32>, i32 -> vector<8x128xf32>
    %c126_i32_170 = arith.constant 126 : i32
    %915 = tpu.dynamic_rotate %913 by %c126_i32_170 dim 1 : vector<8x128xf32>, i32 -> vector<8x128xf32>
    %916 = vector.broadcast %3 : f32 to vector<8x128xf32>
    %917 = arith.mulf %913, %916 : vector<8x128xf32>
    %918 = vector.broadcast %4 : f32 to vector<8x128xf32>
    %919 = arith.mulf %914, %918 : vector<8x128xf32>
    %920 = arith.addf %917, %919 : vector<8x128xf32>
    %921 = vector.broadcast %5 : f32 to vector<8x128xf32>
    %922 = arith.mulf %915, %921 : vector<8x128xf32>
    %923 = arith.addf %920, %922 : vector<8x128xf32>
    %924 = vector.broadcast %99 : f32 to vector<8x128xf32>
    %925 = arith.addf %923, %924 : vector<8x128xf32>
    %cst_171 = arith.constant 0.000000e+00 : f32
    %926 = vector.broadcast %cst_171 : f32 to vector<8x128xf32>
    %927 = arith.maximumf %925, %926 : vector<8x128xf32>
    %928 = vector.broadcast %131 : f32 to vector<8x128xf32>
    %929 = arith.mulf %927, %928 : vector<8x128xf32>
    %930 = vector.broadcast %132 : f32 to vector<8x128xf32>
    %931 = arith.mulf %927, %930 : vector<8x128xf32>
    %932 = vector.broadcast %133 : f32 to vector<8x128xf32>
    %933 = arith.mulf %927, %932 : vector<8x128xf32>
    %934 = vector.broadcast %6 : f32 to vector<8x128xf32>
    %935 = arith.mulf %913, %934 : vector<8x128xf32>
    %936 = vector.broadcast %7 : f32 to vector<8x128xf32>
    %937 = arith.mulf %914, %936 : vector<8x128xf32>
    %938 = arith.addf %935, %937 : vector<8x128xf32>
    %939 = vector.broadcast %8 : f32 to vector<8x128xf32>
    %940 = arith.mulf %915, %939 : vector<8x128xf32>
    %941 = arith.addf %938, %940 : vector<8x128xf32>
    %942 = vector.broadcast %100 : f32 to vector<8x128xf32>
    %943 = arith.addf %941, %942 : vector<8x128xf32>
    %cst_172 = arith.constant 0.000000e+00 : f32
    %944 = vector.broadcast %cst_172 : f32 to vector<8x128xf32>
    %945 = arith.maximumf %943, %944 : vector<8x128xf32>
    %946 = vector.broadcast %134 : f32 to vector<8x128xf32>
    %947 = arith.mulf %945, %946 : vector<8x128xf32>
    %948 = arith.addf %929, %947 : vector<8x128xf32>
    %949 = vector.broadcast %135 : f32 to vector<8x128xf32>
    %950 = arith.mulf %945, %949 : vector<8x128xf32>
    %951 = arith.addf %931, %950 : vector<8x128xf32>
    %952 = vector.broadcast %136 : f32 to vector<8x128xf32>
    %953 = arith.mulf %945, %952 : vector<8x128xf32>
    %954 = arith.addf %933, %953 : vector<8x128xf32>
    %955 = vector.broadcast %9 : f32 to vector<8x128xf32>
    %956 = arith.mulf %913, %955 : vector<8x128xf32>
    %957 = vector.broadcast %10 : f32 to vector<8x128xf32>
    %958 = arith.mulf %914, %957 : vector<8x128xf32>
    %959 = arith.addf %956, %958 : vector<8x128xf32>
    %960 = vector.broadcast %11 : f32 to vector<8x128xf32>
    %961 = arith.mulf %915, %960 : vector<8x128xf32>
    %962 = arith.addf %959, %961 : vector<8x128xf32>
    %963 = vector.broadcast %101 : f32 to vector<8x128xf32>
    %964 = arith.addf %962, %963 : vector<8x128xf32>
    %cst_173 = arith.constant 0.000000e+00 : f32
    %965 = vector.broadcast %cst_173 : f32 to vector<8x128xf32>
    %966 = arith.maximumf %964, %965 : vector<8x128xf32>
    %967 = vector.broadcast %137 : f32 to vector<8x128xf32>
    %968 = arith.mulf %966, %967 : vector<8x128xf32>
    %969 = arith.addf %948, %968 : vector<8x128xf32>
    %970 = vector.broadcast %138 : f32 to vector<8x128xf32>
    %971 = arith.mulf %966, %970 : vector<8x128xf32>
    %972 = arith.addf %951, %971 : vector<8x128xf32>
    %973 = vector.broadcast %139 : f32 to vector<8x128xf32>
    %974 = arith.mulf %966, %973 : vector<8x128xf32>
    %975 = arith.addf %954, %974 : vector<8x128xf32>
    %976 = vector.broadcast %12 : f32 to vector<8x128xf32>
    %977 = arith.mulf %913, %976 : vector<8x128xf32>
    %978 = vector.broadcast %13 : f32 to vector<8x128xf32>
    %979 = arith.mulf %914, %978 : vector<8x128xf32>
    %980 = arith.addf %977, %979 : vector<8x128xf32>
    %981 = vector.broadcast %14 : f32 to vector<8x128xf32>
    %982 = arith.mulf %915, %981 : vector<8x128xf32>
    %983 = arith.addf %980, %982 : vector<8x128xf32>
    %984 = vector.broadcast %102 : f32 to vector<8x128xf32>
    %985 = arith.addf %983, %984 : vector<8x128xf32>
    %cst_174 = arith.constant 0.000000e+00 : f32
    %986 = vector.broadcast %cst_174 : f32 to vector<8x128xf32>
    %987 = arith.maximumf %985, %986 : vector<8x128xf32>
    %988 = vector.broadcast %140 : f32 to vector<8x128xf32>
    %989 = arith.mulf %987, %988 : vector<8x128xf32>
    %990 = arith.addf %969, %989 : vector<8x128xf32>
    %991 = vector.broadcast %141 : f32 to vector<8x128xf32>
    %992 = arith.mulf %987, %991 : vector<8x128xf32>
    %993 = arith.addf %972, %992 : vector<8x128xf32>
    %994 = vector.broadcast %142 : f32 to vector<8x128xf32>
    %995 = arith.mulf %987, %994 : vector<8x128xf32>
    %996 = arith.addf %975, %995 : vector<8x128xf32>
    %997 = vector.broadcast %15 : f32 to vector<8x128xf32>
    %998 = arith.mulf %913, %997 : vector<8x128xf32>
    %999 = vector.broadcast %16 : f32 to vector<8x128xf32>
    %1000 = arith.mulf %914, %999 : vector<8x128xf32>
    %1001 = arith.addf %998, %1000 : vector<8x128xf32>
    %1002 = vector.broadcast %17 : f32 to vector<8x128xf32>
    %1003 = arith.mulf %915, %1002 : vector<8x128xf32>
    %1004 = arith.addf %1001, %1003 : vector<8x128xf32>
    %1005 = vector.broadcast %103 : f32 to vector<8x128xf32>
    %1006 = arith.addf %1004, %1005 : vector<8x128xf32>
    %cst_175 = arith.constant 0.000000e+00 : f32
    %1007 = vector.broadcast %cst_175 : f32 to vector<8x128xf32>
    %1008 = arith.maximumf %1006, %1007 : vector<8x128xf32>
    %1009 = vector.broadcast %143 : f32 to vector<8x128xf32>
    %1010 = arith.mulf %1008, %1009 : vector<8x128xf32>
    %1011 = arith.addf %990, %1010 : vector<8x128xf32>
    %1012 = vector.broadcast %144 : f32 to vector<8x128xf32>
    %1013 = arith.mulf %1008, %1012 : vector<8x128xf32>
    %1014 = arith.addf %993, %1013 : vector<8x128xf32>
    %1015 = vector.broadcast %145 : f32 to vector<8x128xf32>
    %1016 = arith.mulf %1008, %1015 : vector<8x128xf32>
    %1017 = arith.addf %996, %1016 : vector<8x128xf32>
    %1018 = vector.broadcast %18 : f32 to vector<8x128xf32>
    %1019 = arith.mulf %913, %1018 : vector<8x128xf32>
    %1020 = vector.broadcast %19 : f32 to vector<8x128xf32>
    %1021 = arith.mulf %914, %1020 : vector<8x128xf32>
    %1022 = arith.addf %1019, %1021 : vector<8x128xf32>
    %1023 = vector.broadcast %20 : f32 to vector<8x128xf32>
    %1024 = arith.mulf %915, %1023 : vector<8x128xf32>
    %1025 = arith.addf %1022, %1024 : vector<8x128xf32>
    %1026 = vector.broadcast %104 : f32 to vector<8x128xf32>
    %1027 = arith.addf %1025, %1026 : vector<8x128xf32>
    %cst_176 = arith.constant 0.000000e+00 : f32
    %1028 = vector.broadcast %cst_176 : f32 to vector<8x128xf32>
    %1029 = arith.maximumf %1027, %1028 : vector<8x128xf32>
    %1030 = vector.broadcast %146 : f32 to vector<8x128xf32>
    %1031 = arith.mulf %1029, %1030 : vector<8x128xf32>
    %1032 = arith.addf %1011, %1031 : vector<8x128xf32>
    %1033 = vector.broadcast %147 : f32 to vector<8x128xf32>
    %1034 = arith.mulf %1029, %1033 : vector<8x128xf32>
    %1035 = arith.addf %1014, %1034 : vector<8x128xf32>
    %1036 = vector.broadcast %148 : f32 to vector<8x128xf32>
    %1037 = arith.mulf %1029, %1036 : vector<8x128xf32>
    %1038 = arith.addf %1017, %1037 : vector<8x128xf32>
    %1039 = vector.broadcast %21 : f32 to vector<8x128xf32>
    %1040 = arith.mulf %913, %1039 : vector<8x128xf32>
    %1041 = vector.broadcast %22 : f32 to vector<8x128xf32>
    %1042 = arith.mulf %914, %1041 : vector<8x128xf32>
    %1043 = arith.addf %1040, %1042 : vector<8x128xf32>
    %1044 = vector.broadcast %23 : f32 to vector<8x128xf32>
    %1045 = arith.mulf %915, %1044 : vector<8x128xf32>
    %1046 = arith.addf %1043, %1045 : vector<8x128xf32>
    %1047 = vector.broadcast %105 : f32 to vector<8x128xf32>
    %1048 = arith.addf %1046, %1047 : vector<8x128xf32>
    %cst_177 = arith.constant 0.000000e+00 : f32
    %1049 = vector.broadcast %cst_177 : f32 to vector<8x128xf32>
    %1050 = arith.maximumf %1048, %1049 : vector<8x128xf32>
    %1051 = vector.broadcast %149 : f32 to vector<8x128xf32>
    %1052 = arith.mulf %1050, %1051 : vector<8x128xf32>
    %1053 = arith.addf %1032, %1052 : vector<8x128xf32>
    %1054 = vector.broadcast %150 : f32 to vector<8x128xf32>
    %1055 = arith.mulf %1050, %1054 : vector<8x128xf32>
    %1056 = arith.addf %1035, %1055 : vector<8x128xf32>
    %1057 = vector.broadcast %151 : f32 to vector<8x128xf32>
    %1058 = arith.mulf %1050, %1057 : vector<8x128xf32>
    %1059 = arith.addf %1038, %1058 : vector<8x128xf32>
    %1060 = vector.broadcast %24 : f32 to vector<8x128xf32>
    %1061 = arith.mulf %913, %1060 : vector<8x128xf32>
    %1062 = vector.broadcast %25 : f32 to vector<8x128xf32>
    %1063 = arith.mulf %914, %1062 : vector<8x128xf32>
    %1064 = arith.addf %1061, %1063 : vector<8x128xf32>
    %1065 = vector.broadcast %26 : f32 to vector<8x128xf32>
    %1066 = arith.mulf %915, %1065 : vector<8x128xf32>
    %1067 = arith.addf %1064, %1066 : vector<8x128xf32>
    %1068 = vector.broadcast %106 : f32 to vector<8x128xf32>
    %1069 = arith.addf %1067, %1068 : vector<8x128xf32>
    %cst_178 = arith.constant 0.000000e+00 : f32
    %1070 = vector.broadcast %cst_178 : f32 to vector<8x128xf32>
    %1071 = arith.maximumf %1069, %1070 : vector<8x128xf32>
    %1072 = vector.broadcast %152 : f32 to vector<8x128xf32>
    %1073 = arith.mulf %1071, %1072 : vector<8x128xf32>
    %1074 = arith.addf %1053, %1073 : vector<8x128xf32>
    %1075 = vector.broadcast %153 : f32 to vector<8x128xf32>
    %1076 = arith.mulf %1071, %1075 : vector<8x128xf32>
    %1077 = arith.addf %1056, %1076 : vector<8x128xf32>
    %1078 = vector.broadcast %154 : f32 to vector<8x128xf32>
    %1079 = arith.mulf %1071, %1078 : vector<8x128xf32>
    %1080 = arith.addf %1059, %1079 : vector<8x128xf32>
    %1081 = vector.broadcast %27 : f32 to vector<8x128xf32>
    %1082 = arith.mulf %913, %1081 : vector<8x128xf32>
    %1083 = vector.broadcast %28 : f32 to vector<8x128xf32>
    %1084 = arith.mulf %914, %1083 : vector<8x128xf32>
    %1085 = arith.addf %1082, %1084 : vector<8x128xf32>
    %1086 = vector.broadcast %29 : f32 to vector<8x128xf32>
    %1087 = arith.mulf %915, %1086 : vector<8x128xf32>
    %1088 = arith.addf %1085, %1087 : vector<8x128xf32>
    %1089 = vector.broadcast %107 : f32 to vector<8x128xf32>
    %1090 = arith.addf %1088, %1089 : vector<8x128xf32>
    %cst_179 = arith.constant 0.000000e+00 : f32
    %1091 = vector.broadcast %cst_179 : f32 to vector<8x128xf32>
    %1092 = arith.maximumf %1090, %1091 : vector<8x128xf32>
    %1093 = vector.broadcast %155 : f32 to vector<8x128xf32>
    %1094 = arith.mulf %1092, %1093 : vector<8x128xf32>
    %1095 = arith.addf %1074, %1094 : vector<8x128xf32>
    %1096 = vector.broadcast %156 : f32 to vector<8x128xf32>
    %1097 = arith.mulf %1092, %1096 : vector<8x128xf32>
    %1098 = arith.addf %1077, %1097 : vector<8x128xf32>
    %1099 = vector.broadcast %157 : f32 to vector<8x128xf32>
    %1100 = arith.mulf %1092, %1099 : vector<8x128xf32>
    %1101 = arith.addf %1080, %1100 : vector<8x128xf32>
    %1102 = vector.broadcast %30 : f32 to vector<8x128xf32>
    %1103 = arith.mulf %913, %1102 : vector<8x128xf32>
    %1104 = vector.broadcast %31 : f32 to vector<8x128xf32>
    %1105 = arith.mulf %914, %1104 : vector<8x128xf32>
    %1106 = arith.addf %1103, %1105 : vector<8x128xf32>
    %1107 = vector.broadcast %32 : f32 to vector<8x128xf32>
    %1108 = arith.mulf %915, %1107 : vector<8x128xf32>
    %1109 = arith.addf %1106, %1108 : vector<8x128xf32>
    %1110 = vector.broadcast %108 : f32 to vector<8x128xf32>
    %1111 = arith.addf %1109, %1110 : vector<8x128xf32>
    %cst_180 = arith.constant 0.000000e+00 : f32
    %1112 = vector.broadcast %cst_180 : f32 to vector<8x128xf32>
    %1113 = arith.maximumf %1111, %1112 : vector<8x128xf32>
    %1114 = vector.broadcast %158 : f32 to vector<8x128xf32>
    %1115 = arith.mulf %1113, %1114 : vector<8x128xf32>
    %1116 = arith.addf %1095, %1115 : vector<8x128xf32>
    %1117 = vector.broadcast %159 : f32 to vector<8x128xf32>
    %1118 = arith.mulf %1113, %1117 : vector<8x128xf32>
    %1119 = arith.addf %1098, %1118 : vector<8x128xf32>
    %1120 = vector.broadcast %160 : f32 to vector<8x128xf32>
    %1121 = arith.mulf %1113, %1120 : vector<8x128xf32>
    %1122 = arith.addf %1101, %1121 : vector<8x128xf32>
    %1123 = vector.broadcast %33 : f32 to vector<8x128xf32>
    %1124 = arith.mulf %913, %1123 : vector<8x128xf32>
    %1125 = vector.broadcast %34 : f32 to vector<8x128xf32>
    %1126 = arith.mulf %914, %1125 : vector<8x128xf32>
    %1127 = arith.addf %1124, %1126 : vector<8x128xf32>
    %1128 = vector.broadcast %35 : f32 to vector<8x128xf32>
    %1129 = arith.mulf %915, %1128 : vector<8x128xf32>
    %1130 = arith.addf %1127, %1129 : vector<8x128xf32>
    %1131 = vector.broadcast %109 : f32 to vector<8x128xf32>
    %1132 = arith.addf %1130, %1131 : vector<8x128xf32>
    %cst_181 = arith.constant 0.000000e+00 : f32
    %1133 = vector.broadcast %cst_181 : f32 to vector<8x128xf32>
    %1134 = arith.maximumf %1132, %1133 : vector<8x128xf32>
    %1135 = vector.broadcast %161 : f32 to vector<8x128xf32>
    %1136 = arith.mulf %1134, %1135 : vector<8x128xf32>
    %1137 = arith.addf %1116, %1136 : vector<8x128xf32>
    %1138 = vector.broadcast %162 : f32 to vector<8x128xf32>
    %1139 = arith.mulf %1134, %1138 : vector<8x128xf32>
    %1140 = arith.addf %1119, %1139 : vector<8x128xf32>
    %1141 = vector.broadcast %163 : f32 to vector<8x128xf32>
    %1142 = arith.mulf %1134, %1141 : vector<8x128xf32>
    %1143 = arith.addf %1122, %1142 : vector<8x128xf32>
    %1144 = vector.broadcast %36 : f32 to vector<8x128xf32>
    %1145 = arith.mulf %913, %1144 : vector<8x128xf32>
    %1146 = vector.broadcast %37 : f32 to vector<8x128xf32>
    %1147 = arith.mulf %914, %1146 : vector<8x128xf32>
    %1148 = arith.addf %1145, %1147 : vector<8x128xf32>
    %1149 = vector.broadcast %38 : f32 to vector<8x128xf32>
    %1150 = arith.mulf %915, %1149 : vector<8x128xf32>
    %1151 = arith.addf %1148, %1150 : vector<8x128xf32>
    %1152 = vector.broadcast %110 : f32 to vector<8x128xf32>
    %1153 = arith.addf %1151, %1152 : vector<8x128xf32>
    %cst_182 = arith.constant 0.000000e+00 : f32
    %1154 = vector.broadcast %cst_182 : f32 to vector<8x128xf32>
    %1155 = arith.maximumf %1153, %1154 : vector<8x128xf32>
    %1156 = vector.broadcast %164 : f32 to vector<8x128xf32>
    %1157 = arith.mulf %1155, %1156 : vector<8x128xf32>
    %1158 = arith.addf %1137, %1157 : vector<8x128xf32>
    %1159 = vector.broadcast %165 : f32 to vector<8x128xf32>
    %1160 = arith.mulf %1155, %1159 : vector<8x128xf32>
    %1161 = arith.addf %1140, %1160 : vector<8x128xf32>
    %1162 = vector.broadcast %166 : f32 to vector<8x128xf32>
    %1163 = arith.mulf %1155, %1162 : vector<8x128xf32>
    %1164 = arith.addf %1143, %1163 : vector<8x128xf32>
    %1165 = vector.broadcast %39 : f32 to vector<8x128xf32>
    %1166 = arith.mulf %913, %1165 : vector<8x128xf32>
    %1167 = vector.broadcast %40 : f32 to vector<8x128xf32>
    %1168 = arith.mulf %914, %1167 : vector<8x128xf32>
    %1169 = arith.addf %1166, %1168 : vector<8x128xf32>
    %1170 = vector.broadcast %41 : f32 to vector<8x128xf32>
    %1171 = arith.mulf %915, %1170 : vector<8x128xf32>
    %1172 = arith.addf %1169, %1171 : vector<8x128xf32>
    %1173 = vector.broadcast %111 : f32 to vector<8x128xf32>
    %1174 = arith.addf %1172, %1173 : vector<8x128xf32>
    %cst_183 = arith.constant 0.000000e+00 : f32
    %1175 = vector.broadcast %cst_183 : f32 to vector<8x128xf32>
    %1176 = arith.maximumf %1174, %1175 : vector<8x128xf32>
    %1177 = vector.broadcast %167 : f32 to vector<8x128xf32>
    %1178 = arith.mulf %1176, %1177 : vector<8x128xf32>
    %1179 = arith.addf %1158, %1178 : vector<8x128xf32>
    %1180 = vector.broadcast %168 : f32 to vector<8x128xf32>
    %1181 = arith.mulf %1176, %1180 : vector<8x128xf32>
    %1182 = arith.addf %1161, %1181 : vector<8x128xf32>
    %1183 = vector.broadcast %169 : f32 to vector<8x128xf32>
    %1184 = arith.mulf %1176, %1183 : vector<8x128xf32>
    %1185 = arith.addf %1164, %1184 : vector<8x128xf32>
    %1186 = vector.broadcast %42 : f32 to vector<8x128xf32>
    %1187 = arith.mulf %913, %1186 : vector<8x128xf32>
    %1188 = vector.broadcast %43 : f32 to vector<8x128xf32>
    %1189 = arith.mulf %914, %1188 : vector<8x128xf32>
    %1190 = arith.addf %1187, %1189 : vector<8x128xf32>
    %1191 = vector.broadcast %44 : f32 to vector<8x128xf32>
    %1192 = arith.mulf %915, %1191 : vector<8x128xf32>
    %1193 = arith.addf %1190, %1192 : vector<8x128xf32>
    %1194 = vector.broadcast %112 : f32 to vector<8x128xf32>
    %1195 = arith.addf %1193, %1194 : vector<8x128xf32>
    %cst_184 = arith.constant 0.000000e+00 : f32
    %1196 = vector.broadcast %cst_184 : f32 to vector<8x128xf32>
    %1197 = arith.maximumf %1195, %1196 : vector<8x128xf32>
    %1198 = vector.broadcast %170 : f32 to vector<8x128xf32>
    %1199 = arith.mulf %1197, %1198 : vector<8x128xf32>
    %1200 = arith.addf %1179, %1199 : vector<8x128xf32>
    %1201 = vector.broadcast %171 : f32 to vector<8x128xf32>
    %1202 = arith.mulf %1197, %1201 : vector<8x128xf32>
    %1203 = arith.addf %1182, %1202 : vector<8x128xf32>
    %1204 = vector.broadcast %172 : f32 to vector<8x128xf32>
    %1205 = arith.mulf %1197, %1204 : vector<8x128xf32>
    %1206 = arith.addf %1185, %1205 : vector<8x128xf32>
    %1207 = vector.broadcast %45 : f32 to vector<8x128xf32>
    %1208 = arith.mulf %913, %1207 : vector<8x128xf32>
    %1209 = vector.broadcast %46 : f32 to vector<8x128xf32>
    %1210 = arith.mulf %914, %1209 : vector<8x128xf32>
    %1211 = arith.addf %1208, %1210 : vector<8x128xf32>
    %1212 = vector.broadcast %47 : f32 to vector<8x128xf32>
    %1213 = arith.mulf %915, %1212 : vector<8x128xf32>
    %1214 = arith.addf %1211, %1213 : vector<8x128xf32>
    %1215 = vector.broadcast %113 : f32 to vector<8x128xf32>
    %1216 = arith.addf %1214, %1215 : vector<8x128xf32>
    %cst_185 = arith.constant 0.000000e+00 : f32
    %1217 = vector.broadcast %cst_185 : f32 to vector<8x128xf32>
    %1218 = arith.maximumf %1216, %1217 : vector<8x128xf32>
    %1219 = vector.broadcast %173 : f32 to vector<8x128xf32>
    %1220 = arith.mulf %1218, %1219 : vector<8x128xf32>
    %1221 = arith.addf %1200, %1220 : vector<8x128xf32>
    %1222 = vector.broadcast %174 : f32 to vector<8x128xf32>
    %1223 = arith.mulf %1218, %1222 : vector<8x128xf32>
    %1224 = arith.addf %1203, %1223 : vector<8x128xf32>
    %1225 = vector.broadcast %175 : f32 to vector<8x128xf32>
    %1226 = arith.mulf %1218, %1225 : vector<8x128xf32>
    %1227 = arith.addf %1206, %1226 : vector<8x128xf32>
    %1228 = vector.broadcast %48 : f32 to vector<8x128xf32>
    %1229 = arith.mulf %913, %1228 : vector<8x128xf32>
    %1230 = vector.broadcast %49 : f32 to vector<8x128xf32>
    %1231 = arith.mulf %914, %1230 : vector<8x128xf32>
    %1232 = arith.addf %1229, %1231 : vector<8x128xf32>
    %1233 = vector.broadcast %50 : f32 to vector<8x128xf32>
    %1234 = arith.mulf %915, %1233 : vector<8x128xf32>
    %1235 = arith.addf %1232, %1234 : vector<8x128xf32>
    %1236 = vector.broadcast %114 : f32 to vector<8x128xf32>
    %1237 = arith.addf %1235, %1236 : vector<8x128xf32>
    %cst_186 = arith.constant 0.000000e+00 : f32
    %1238 = vector.broadcast %cst_186 : f32 to vector<8x128xf32>
    %1239 = arith.maximumf %1237, %1238 : vector<8x128xf32>
    %1240 = vector.broadcast %176 : f32 to vector<8x128xf32>
    %1241 = arith.mulf %1239, %1240 : vector<8x128xf32>
    %1242 = arith.addf %1221, %1241 : vector<8x128xf32>
    %1243 = vector.broadcast %177 : f32 to vector<8x128xf32>
    %1244 = arith.mulf %1239, %1243 : vector<8x128xf32>
    %1245 = arith.addf %1224, %1244 : vector<8x128xf32>
    %1246 = vector.broadcast %178 : f32 to vector<8x128xf32>
    %1247 = arith.mulf %1239, %1246 : vector<8x128xf32>
    %1248 = arith.addf %1227, %1247 : vector<8x128xf32>
    %1249 = vector.broadcast %51 : f32 to vector<8x128xf32>
    %1250 = arith.mulf %913, %1249 : vector<8x128xf32>
    %1251 = vector.broadcast %52 : f32 to vector<8x128xf32>
    %1252 = arith.mulf %914, %1251 : vector<8x128xf32>
    %1253 = arith.addf %1250, %1252 : vector<8x128xf32>
    %1254 = vector.broadcast %53 : f32 to vector<8x128xf32>
    %1255 = arith.mulf %915, %1254 : vector<8x128xf32>
    %1256 = arith.addf %1253, %1255 : vector<8x128xf32>
    %1257 = vector.broadcast %115 : f32 to vector<8x128xf32>
    %1258 = arith.addf %1256, %1257 : vector<8x128xf32>
    %cst_187 = arith.constant 0.000000e+00 : f32
    %1259 = vector.broadcast %cst_187 : f32 to vector<8x128xf32>
    %1260 = arith.maximumf %1258, %1259 : vector<8x128xf32>
    %1261 = vector.broadcast %179 : f32 to vector<8x128xf32>
    %1262 = arith.mulf %1260, %1261 : vector<8x128xf32>
    %1263 = arith.addf %1242, %1262 : vector<8x128xf32>
    %1264 = vector.broadcast %180 : f32 to vector<8x128xf32>
    %1265 = arith.mulf %1260, %1264 : vector<8x128xf32>
    %1266 = arith.addf %1245, %1265 : vector<8x128xf32>
    %1267 = vector.broadcast %181 : f32 to vector<8x128xf32>
    %1268 = arith.mulf %1260, %1267 : vector<8x128xf32>
    %1269 = arith.addf %1248, %1268 : vector<8x128xf32>
    %1270 = vector.broadcast %54 : f32 to vector<8x128xf32>
    %1271 = arith.mulf %913, %1270 : vector<8x128xf32>
    %1272 = vector.broadcast %55 : f32 to vector<8x128xf32>
    %1273 = arith.mulf %914, %1272 : vector<8x128xf32>
    %1274 = arith.addf %1271, %1273 : vector<8x128xf32>
    %1275 = vector.broadcast %56 : f32 to vector<8x128xf32>
    %1276 = arith.mulf %915, %1275 : vector<8x128xf32>
    %1277 = arith.addf %1274, %1276 : vector<8x128xf32>
    %1278 = vector.broadcast %116 : f32 to vector<8x128xf32>
    %1279 = arith.addf %1277, %1278 : vector<8x128xf32>
    %cst_188 = arith.constant 0.000000e+00 : f32
    %1280 = vector.broadcast %cst_188 : f32 to vector<8x128xf32>
    %1281 = arith.maximumf %1279, %1280 : vector<8x128xf32>
    %1282 = vector.broadcast %182 : f32 to vector<8x128xf32>
    %1283 = arith.mulf %1281, %1282 : vector<8x128xf32>
    %1284 = arith.addf %1263, %1283 : vector<8x128xf32>
    %1285 = vector.broadcast %183 : f32 to vector<8x128xf32>
    %1286 = arith.mulf %1281, %1285 : vector<8x128xf32>
    %1287 = arith.addf %1266, %1286 : vector<8x128xf32>
    %1288 = vector.broadcast %184 : f32 to vector<8x128xf32>
    %1289 = arith.mulf %1281, %1288 : vector<8x128xf32>
    %1290 = arith.addf %1269, %1289 : vector<8x128xf32>
    %1291 = vector.broadcast %57 : f32 to vector<8x128xf32>
    %1292 = arith.mulf %913, %1291 : vector<8x128xf32>
    %1293 = vector.broadcast %58 : f32 to vector<8x128xf32>
    %1294 = arith.mulf %914, %1293 : vector<8x128xf32>
    %1295 = arith.addf %1292, %1294 : vector<8x128xf32>
    %1296 = vector.broadcast %59 : f32 to vector<8x128xf32>
    %1297 = arith.mulf %915, %1296 : vector<8x128xf32>
    %1298 = arith.addf %1295, %1297 : vector<8x128xf32>
    %1299 = vector.broadcast %117 : f32 to vector<8x128xf32>
    %1300 = arith.addf %1298, %1299 : vector<8x128xf32>
    %cst_189 = arith.constant 0.000000e+00 : f32
    %1301 = vector.broadcast %cst_189 : f32 to vector<8x128xf32>
    %1302 = arith.maximumf %1300, %1301 : vector<8x128xf32>
    %1303 = vector.broadcast %185 : f32 to vector<8x128xf32>
    %1304 = arith.mulf %1302, %1303 : vector<8x128xf32>
    %1305 = arith.addf %1284, %1304 : vector<8x128xf32>
    %1306 = vector.broadcast %186 : f32 to vector<8x128xf32>
    %1307 = arith.mulf %1302, %1306 : vector<8x128xf32>
    %1308 = arith.addf %1287, %1307 : vector<8x128xf32>
    %1309 = vector.broadcast %187 : f32 to vector<8x128xf32>
    %1310 = arith.mulf %1302, %1309 : vector<8x128xf32>
    %1311 = arith.addf %1290, %1310 : vector<8x128xf32>
    %1312 = vector.broadcast %60 : f32 to vector<8x128xf32>
    %1313 = arith.mulf %913, %1312 : vector<8x128xf32>
    %1314 = vector.broadcast %61 : f32 to vector<8x128xf32>
    %1315 = arith.mulf %914, %1314 : vector<8x128xf32>
    %1316 = arith.addf %1313, %1315 : vector<8x128xf32>
    %1317 = vector.broadcast %62 : f32 to vector<8x128xf32>
    %1318 = arith.mulf %915, %1317 : vector<8x128xf32>
    %1319 = arith.addf %1316, %1318 : vector<8x128xf32>
    %1320 = vector.broadcast %118 : f32 to vector<8x128xf32>
    %1321 = arith.addf %1319, %1320 : vector<8x128xf32>
    %cst_190 = arith.constant 0.000000e+00 : f32
    %1322 = vector.broadcast %cst_190 : f32 to vector<8x128xf32>
    %1323 = arith.maximumf %1321, %1322 : vector<8x128xf32>
    %1324 = vector.broadcast %188 : f32 to vector<8x128xf32>
    %1325 = arith.mulf %1323, %1324 : vector<8x128xf32>
    %1326 = arith.addf %1305, %1325 : vector<8x128xf32>
    %1327 = vector.broadcast %189 : f32 to vector<8x128xf32>
    %1328 = arith.mulf %1323, %1327 : vector<8x128xf32>
    %1329 = arith.addf %1308, %1328 : vector<8x128xf32>
    %1330 = vector.broadcast %190 : f32 to vector<8x128xf32>
    %1331 = arith.mulf %1323, %1330 : vector<8x128xf32>
    %1332 = arith.addf %1311, %1331 : vector<8x128xf32>
    %1333 = vector.broadcast %63 : f32 to vector<8x128xf32>
    %1334 = arith.mulf %913, %1333 : vector<8x128xf32>
    %1335 = vector.broadcast %64 : f32 to vector<8x128xf32>
    %1336 = arith.mulf %914, %1335 : vector<8x128xf32>
    %1337 = arith.addf %1334, %1336 : vector<8x128xf32>
    %1338 = vector.broadcast %65 : f32 to vector<8x128xf32>
    %1339 = arith.mulf %915, %1338 : vector<8x128xf32>
    %1340 = arith.addf %1337, %1339 : vector<8x128xf32>
    %1341 = vector.broadcast %119 : f32 to vector<8x128xf32>
    %1342 = arith.addf %1340, %1341 : vector<8x128xf32>
    %cst_191 = arith.constant 0.000000e+00 : f32
    %1343 = vector.broadcast %cst_191 : f32 to vector<8x128xf32>
    %1344 = arith.maximumf %1342, %1343 : vector<8x128xf32>
    %1345 = vector.broadcast %191 : f32 to vector<8x128xf32>
    %1346 = arith.mulf %1344, %1345 : vector<8x128xf32>
    %1347 = arith.addf %1326, %1346 : vector<8x128xf32>
    %1348 = vector.broadcast %192 : f32 to vector<8x128xf32>
    %1349 = arith.mulf %1344, %1348 : vector<8x128xf32>
    %1350 = arith.addf %1329, %1349 : vector<8x128xf32>
    %1351 = vector.broadcast %193 : f32 to vector<8x128xf32>
    %1352 = arith.mulf %1344, %1351 : vector<8x128xf32>
    %1353 = arith.addf %1332, %1352 : vector<8x128xf32>
    %1354 = vector.broadcast %66 : f32 to vector<8x128xf32>
    %1355 = arith.mulf %913, %1354 : vector<8x128xf32>
    %1356 = vector.broadcast %67 : f32 to vector<8x128xf32>
    %1357 = arith.mulf %914, %1356 : vector<8x128xf32>
    %1358 = arith.addf %1355, %1357 : vector<8x128xf32>
    %1359 = vector.broadcast %68 : f32 to vector<8x128xf32>
    %1360 = arith.mulf %915, %1359 : vector<8x128xf32>
    %1361 = arith.addf %1358, %1360 : vector<8x128xf32>
    %1362 = vector.broadcast %120 : f32 to vector<8x128xf32>
    %1363 = arith.addf %1361, %1362 : vector<8x128xf32>
    %cst_192 = arith.constant 0.000000e+00 : f32
    %1364 = vector.broadcast %cst_192 : f32 to vector<8x128xf32>
    %1365 = arith.maximumf %1363, %1364 : vector<8x128xf32>
    %1366 = vector.broadcast %194 : f32 to vector<8x128xf32>
    %1367 = arith.mulf %1365, %1366 : vector<8x128xf32>
    %1368 = arith.addf %1347, %1367 : vector<8x128xf32>
    %1369 = vector.broadcast %195 : f32 to vector<8x128xf32>
    %1370 = arith.mulf %1365, %1369 : vector<8x128xf32>
    %1371 = arith.addf %1350, %1370 : vector<8x128xf32>
    %1372 = vector.broadcast %196 : f32 to vector<8x128xf32>
    %1373 = arith.mulf %1365, %1372 : vector<8x128xf32>
    %1374 = arith.addf %1353, %1373 : vector<8x128xf32>
    %1375 = vector.broadcast %69 : f32 to vector<8x128xf32>
    %1376 = arith.mulf %913, %1375 : vector<8x128xf32>
    %1377 = vector.broadcast %70 : f32 to vector<8x128xf32>
    %1378 = arith.mulf %914, %1377 : vector<8x128xf32>
    %1379 = arith.addf %1376, %1378 : vector<8x128xf32>
    %1380 = vector.broadcast %71 : f32 to vector<8x128xf32>
    %1381 = arith.mulf %915, %1380 : vector<8x128xf32>
    %1382 = arith.addf %1379, %1381 : vector<8x128xf32>
    %1383 = vector.broadcast %121 : f32 to vector<8x128xf32>
    %1384 = arith.addf %1382, %1383 : vector<8x128xf32>
    %cst_193 = arith.constant 0.000000e+00 : f32
    %1385 = vector.broadcast %cst_193 : f32 to vector<8x128xf32>
    %1386 = arith.maximumf %1384, %1385 : vector<8x128xf32>
    %1387 = vector.broadcast %197 : f32 to vector<8x128xf32>
    %1388 = arith.mulf %1386, %1387 : vector<8x128xf32>
    %1389 = arith.addf %1368, %1388 : vector<8x128xf32>
    %1390 = vector.broadcast %198 : f32 to vector<8x128xf32>
    %1391 = arith.mulf %1386, %1390 : vector<8x128xf32>
    %1392 = arith.addf %1371, %1391 : vector<8x128xf32>
    %1393 = vector.broadcast %199 : f32 to vector<8x128xf32>
    %1394 = arith.mulf %1386, %1393 : vector<8x128xf32>
    %1395 = arith.addf %1374, %1394 : vector<8x128xf32>
    %1396 = vector.broadcast %72 : f32 to vector<8x128xf32>
    %1397 = arith.mulf %913, %1396 : vector<8x128xf32>
    %1398 = vector.broadcast %73 : f32 to vector<8x128xf32>
    %1399 = arith.mulf %914, %1398 : vector<8x128xf32>
    %1400 = arith.addf %1397, %1399 : vector<8x128xf32>
    %1401 = vector.broadcast %74 : f32 to vector<8x128xf32>
    %1402 = arith.mulf %915, %1401 : vector<8x128xf32>
    %1403 = arith.addf %1400, %1402 : vector<8x128xf32>
    %1404 = vector.broadcast %122 : f32 to vector<8x128xf32>
    %1405 = arith.addf %1403, %1404 : vector<8x128xf32>
    %cst_194 = arith.constant 0.000000e+00 : f32
    %1406 = vector.broadcast %cst_194 : f32 to vector<8x128xf32>
    %1407 = arith.maximumf %1405, %1406 : vector<8x128xf32>
    %1408 = vector.broadcast %200 : f32 to vector<8x128xf32>
    %1409 = arith.mulf %1407, %1408 : vector<8x128xf32>
    %1410 = arith.addf %1389, %1409 : vector<8x128xf32>
    %1411 = vector.broadcast %201 : f32 to vector<8x128xf32>
    %1412 = arith.mulf %1407, %1411 : vector<8x128xf32>
    %1413 = arith.addf %1392, %1412 : vector<8x128xf32>
    %1414 = vector.broadcast %202 : f32 to vector<8x128xf32>
    %1415 = arith.mulf %1407, %1414 : vector<8x128xf32>
    %1416 = arith.addf %1395, %1415 : vector<8x128xf32>
    %1417 = vector.broadcast %75 : f32 to vector<8x128xf32>
    %1418 = arith.mulf %913, %1417 : vector<8x128xf32>
    %1419 = vector.broadcast %76 : f32 to vector<8x128xf32>
    %1420 = arith.mulf %914, %1419 : vector<8x128xf32>
    %1421 = arith.addf %1418, %1420 : vector<8x128xf32>
    %1422 = vector.broadcast %77 : f32 to vector<8x128xf32>
    %1423 = arith.mulf %915, %1422 : vector<8x128xf32>
    %1424 = arith.addf %1421, %1423 : vector<8x128xf32>
    %1425 = vector.broadcast %123 : f32 to vector<8x128xf32>
    %1426 = arith.addf %1424, %1425 : vector<8x128xf32>
    %cst_195 = arith.constant 0.000000e+00 : f32
    %1427 = vector.broadcast %cst_195 : f32 to vector<8x128xf32>
    %1428 = arith.maximumf %1426, %1427 : vector<8x128xf32>
    %1429 = vector.broadcast %203 : f32 to vector<8x128xf32>
    %1430 = arith.mulf %1428, %1429 : vector<8x128xf32>
    %1431 = arith.addf %1410, %1430 : vector<8x128xf32>
    %1432 = vector.broadcast %204 : f32 to vector<8x128xf32>
    %1433 = arith.mulf %1428, %1432 : vector<8x128xf32>
    %1434 = arith.addf %1413, %1433 : vector<8x128xf32>
    %1435 = vector.broadcast %205 : f32 to vector<8x128xf32>
    %1436 = arith.mulf %1428, %1435 : vector<8x128xf32>
    %1437 = arith.addf %1416, %1436 : vector<8x128xf32>
    %1438 = vector.broadcast %78 : f32 to vector<8x128xf32>
    %1439 = arith.mulf %913, %1438 : vector<8x128xf32>
    %1440 = vector.broadcast %79 : f32 to vector<8x128xf32>
    %1441 = arith.mulf %914, %1440 : vector<8x128xf32>
    %1442 = arith.addf %1439, %1441 : vector<8x128xf32>
    %1443 = vector.broadcast %80 : f32 to vector<8x128xf32>
    %1444 = arith.mulf %915, %1443 : vector<8x128xf32>
    %1445 = arith.addf %1442, %1444 : vector<8x128xf32>
    %1446 = vector.broadcast %124 : f32 to vector<8x128xf32>
    %1447 = arith.addf %1445, %1446 : vector<8x128xf32>
    %cst_196 = arith.constant 0.000000e+00 : f32
    %1448 = vector.broadcast %cst_196 : f32 to vector<8x128xf32>
    %1449 = arith.maximumf %1447, %1448 : vector<8x128xf32>
    %1450 = vector.broadcast %206 : f32 to vector<8x128xf32>
    %1451 = arith.mulf %1449, %1450 : vector<8x128xf32>
    %1452 = arith.addf %1431, %1451 : vector<8x128xf32>
    %1453 = vector.broadcast %207 : f32 to vector<8x128xf32>
    %1454 = arith.mulf %1449, %1453 : vector<8x128xf32>
    %1455 = arith.addf %1434, %1454 : vector<8x128xf32>
    %1456 = vector.broadcast %208 : f32 to vector<8x128xf32>
    %1457 = arith.mulf %1449, %1456 : vector<8x128xf32>
    %1458 = arith.addf %1437, %1457 : vector<8x128xf32>
    %1459 = vector.broadcast %81 : f32 to vector<8x128xf32>
    %1460 = arith.mulf %913, %1459 : vector<8x128xf32>
    %1461 = vector.broadcast %82 : f32 to vector<8x128xf32>
    %1462 = arith.mulf %914, %1461 : vector<8x128xf32>
    %1463 = arith.addf %1460, %1462 : vector<8x128xf32>
    %1464 = vector.broadcast %83 : f32 to vector<8x128xf32>
    %1465 = arith.mulf %915, %1464 : vector<8x128xf32>
    %1466 = arith.addf %1463, %1465 : vector<8x128xf32>
    %1467 = vector.broadcast %125 : f32 to vector<8x128xf32>
    %1468 = arith.addf %1466, %1467 : vector<8x128xf32>
    %cst_197 = arith.constant 0.000000e+00 : f32
    %1469 = vector.broadcast %cst_197 : f32 to vector<8x128xf32>
    %1470 = arith.maximumf %1468, %1469 : vector<8x128xf32>
    %1471 = vector.broadcast %209 : f32 to vector<8x128xf32>
    %1472 = arith.mulf %1470, %1471 : vector<8x128xf32>
    %1473 = arith.addf %1452, %1472 : vector<8x128xf32>
    %1474 = vector.broadcast %210 : f32 to vector<8x128xf32>
    %1475 = arith.mulf %1470, %1474 : vector<8x128xf32>
    %1476 = arith.addf %1455, %1475 : vector<8x128xf32>
    %1477 = vector.broadcast %211 : f32 to vector<8x128xf32>
    %1478 = arith.mulf %1470, %1477 : vector<8x128xf32>
    %1479 = arith.addf %1458, %1478 : vector<8x128xf32>
    %1480 = vector.broadcast %84 : f32 to vector<8x128xf32>
    %1481 = arith.mulf %913, %1480 : vector<8x128xf32>
    %1482 = vector.broadcast %85 : f32 to vector<8x128xf32>
    %1483 = arith.mulf %914, %1482 : vector<8x128xf32>
    %1484 = arith.addf %1481, %1483 : vector<8x128xf32>
    %1485 = vector.broadcast %86 : f32 to vector<8x128xf32>
    %1486 = arith.mulf %915, %1485 : vector<8x128xf32>
    %1487 = arith.addf %1484, %1486 : vector<8x128xf32>
    %1488 = vector.broadcast %126 : f32 to vector<8x128xf32>
    %1489 = arith.addf %1487, %1488 : vector<8x128xf32>
    %cst_198 = arith.constant 0.000000e+00 : f32
    %1490 = vector.broadcast %cst_198 : f32 to vector<8x128xf32>
    %1491 = arith.maximumf %1489, %1490 : vector<8x128xf32>
    %1492 = vector.broadcast %212 : f32 to vector<8x128xf32>
    %1493 = arith.mulf %1491, %1492 : vector<8x128xf32>
    %1494 = arith.addf %1473, %1493 : vector<8x128xf32>
    %1495 = vector.broadcast %213 : f32 to vector<8x128xf32>
    %1496 = arith.mulf %1491, %1495 : vector<8x128xf32>
    %1497 = arith.addf %1476, %1496 : vector<8x128xf32>
    %1498 = vector.broadcast %214 : f32 to vector<8x128xf32>
    %1499 = arith.mulf %1491, %1498 : vector<8x128xf32>
    %1500 = arith.addf %1479, %1499 : vector<8x128xf32>
    %1501 = vector.broadcast %87 : f32 to vector<8x128xf32>
    %1502 = arith.mulf %913, %1501 : vector<8x128xf32>
    %1503 = vector.broadcast %88 : f32 to vector<8x128xf32>
    %1504 = arith.mulf %914, %1503 : vector<8x128xf32>
    %1505 = arith.addf %1502, %1504 : vector<8x128xf32>
    %1506 = vector.broadcast %89 : f32 to vector<8x128xf32>
    %1507 = arith.mulf %915, %1506 : vector<8x128xf32>
    %1508 = arith.addf %1505, %1507 : vector<8x128xf32>
    %1509 = vector.broadcast %127 : f32 to vector<8x128xf32>
    %1510 = arith.addf %1508, %1509 : vector<8x128xf32>
    %cst_199 = arith.constant 0.000000e+00 : f32
    %1511 = vector.broadcast %cst_199 : f32 to vector<8x128xf32>
    %1512 = arith.maximumf %1510, %1511 : vector<8x128xf32>
    %1513 = vector.broadcast %215 : f32 to vector<8x128xf32>
    %1514 = arith.mulf %1512, %1513 : vector<8x128xf32>
    %1515 = arith.addf %1494, %1514 : vector<8x128xf32>
    %1516 = vector.broadcast %216 : f32 to vector<8x128xf32>
    %1517 = arith.mulf %1512, %1516 : vector<8x128xf32>
    %1518 = arith.addf %1497, %1517 : vector<8x128xf32>
    %1519 = vector.broadcast %217 : f32 to vector<8x128xf32>
    %1520 = arith.mulf %1512, %1519 : vector<8x128xf32>
    %1521 = arith.addf %1500, %1520 : vector<8x128xf32>
    %1522 = vector.broadcast %90 : f32 to vector<8x128xf32>
    %1523 = arith.mulf %913, %1522 : vector<8x128xf32>
    %1524 = vector.broadcast %91 : f32 to vector<8x128xf32>
    %1525 = arith.mulf %914, %1524 : vector<8x128xf32>
    %1526 = arith.addf %1523, %1525 : vector<8x128xf32>
    %1527 = vector.broadcast %92 : f32 to vector<8x128xf32>
    %1528 = arith.mulf %915, %1527 : vector<8x128xf32>
    %1529 = arith.addf %1526, %1528 : vector<8x128xf32>
    %1530 = vector.broadcast %128 : f32 to vector<8x128xf32>
    %1531 = arith.addf %1529, %1530 : vector<8x128xf32>
    %cst_200 = arith.constant 0.000000e+00 : f32
    %1532 = vector.broadcast %cst_200 : f32 to vector<8x128xf32>
    %1533 = arith.maximumf %1531, %1532 : vector<8x128xf32>
    %1534 = vector.broadcast %218 : f32 to vector<8x128xf32>
    %1535 = arith.mulf %1533, %1534 : vector<8x128xf32>
    %1536 = arith.addf %1515, %1535 : vector<8x128xf32>
    %1537 = vector.broadcast %219 : f32 to vector<8x128xf32>
    %1538 = arith.mulf %1533, %1537 : vector<8x128xf32>
    %1539 = arith.addf %1518, %1538 : vector<8x128xf32>
    %1540 = vector.broadcast %220 : f32 to vector<8x128xf32>
    %1541 = arith.mulf %1533, %1540 : vector<8x128xf32>
    %1542 = arith.addf %1521, %1541 : vector<8x128xf32>
    %1543 = vector.broadcast %93 : f32 to vector<8x128xf32>
    %1544 = arith.mulf %913, %1543 : vector<8x128xf32>
    %1545 = vector.broadcast %94 : f32 to vector<8x128xf32>
    %1546 = arith.mulf %914, %1545 : vector<8x128xf32>
    %1547 = arith.addf %1544, %1546 : vector<8x128xf32>
    %1548 = vector.broadcast %95 : f32 to vector<8x128xf32>
    %1549 = arith.mulf %915, %1548 : vector<8x128xf32>
    %1550 = arith.addf %1547, %1549 : vector<8x128xf32>
    %1551 = vector.broadcast %129 : f32 to vector<8x128xf32>
    %1552 = arith.addf %1550, %1551 : vector<8x128xf32>
    %cst_201 = arith.constant 0.000000e+00 : f32
    %1553 = vector.broadcast %cst_201 : f32 to vector<8x128xf32>
    %1554 = arith.maximumf %1552, %1553 : vector<8x128xf32>
    %1555 = vector.broadcast %221 : f32 to vector<8x128xf32>
    %1556 = arith.mulf %1554, %1555 : vector<8x128xf32>
    %1557 = arith.addf %1536, %1556 : vector<8x128xf32>
    %1558 = vector.broadcast %222 : f32 to vector<8x128xf32>
    %1559 = arith.mulf %1554, %1558 : vector<8x128xf32>
    %1560 = arith.addf %1539, %1559 : vector<8x128xf32>
    %1561 = vector.broadcast %223 : f32 to vector<8x128xf32>
    %1562 = arith.mulf %1554, %1561 : vector<8x128xf32>
    %1563 = arith.addf %1542, %1562 : vector<8x128xf32>
    %1564 = vector.broadcast %96 : f32 to vector<8x128xf32>
    %1565 = arith.mulf %913, %1564 : vector<8x128xf32>
    %1566 = vector.broadcast %97 : f32 to vector<8x128xf32>
    %1567 = arith.mulf %914, %1566 : vector<8x128xf32>
    %1568 = arith.addf %1565, %1567 : vector<8x128xf32>
    %1569 = vector.broadcast %98 : f32 to vector<8x128xf32>
    %1570 = arith.mulf %915, %1569 : vector<8x128xf32>
    %1571 = arith.addf %1568, %1570 : vector<8x128xf32>
    %1572 = vector.broadcast %130 : f32 to vector<8x128xf32>
    %1573 = arith.addf %1571, %1572 : vector<8x128xf32>
    %cst_202 = arith.constant 0.000000e+00 : f32
    %1574 = vector.broadcast %cst_202 : f32 to vector<8x128xf32>
    %1575 = arith.maximumf %1573, %1574 : vector<8x128xf32>
    %1576 = vector.broadcast %224 : f32 to vector<8x128xf32>
    %1577 = arith.mulf %1575, %1576 : vector<8x128xf32>
    %1578 = arith.addf %1557, %1577 : vector<8x128xf32>
    %1579 = vector.broadcast %225 : f32 to vector<8x128xf32>
    %1580 = arith.mulf %1575, %1579 : vector<8x128xf32>
    %1581 = arith.addf %1560, %1580 : vector<8x128xf32>
    %1582 = vector.broadcast %226 : f32 to vector<8x128xf32>
    %1583 = arith.mulf %1575, %1582 : vector<8x128xf32>
    %1584 = arith.addf %1563, %1583 : vector<8x128xf32>
    %cst_203 = arith.constant 0.000000e+00 : f32
    %1585 = vector.broadcast %cst_203 : f32 to vector<8x128xf32>
    %1586 = arith.select %2, %1578, %1585 : vector<8x128xi1>, vector<8x128xf32>
    %1587 = vector.broadcast %227 : f32 to vector<8x128xf32>
    %1588 = arith.addf %1586, %1587 : vector<8x128xf32>
    %cst_204 = arith.constant 0.000000e+00 : f32
    %1589 = vector.broadcast %cst_204 : f32 to vector<8x128xf32>
    %1590 = arith.select %2, %1581, %1589 : vector<8x128xi1>, vector<8x128xf32>
    %c1_i32_205 = arith.constant 1 : i32
    %1591 = tpu.dynamic_rotate %1590 by %c1_i32_205 dim 1 : vector<8x128xf32>, i32 -> vector<8x128xf32>
    %1592 = arith.addf %1588, %1591 : vector<8x128xf32>
    %cst_206 = arith.constant 0.000000e+00 : f32
    %1593 = vector.broadcast %cst_206 : f32 to vector<8x128xf32>
    %1594 = arith.select %2, %1584, %1593 : vector<8x128xi1>, vector<8x128xf32>
    %c2_i32_207 = arith.constant 2 : i32
    %1595 = tpu.dynamic_rotate %1594 by %c2_i32_207 dim 1 : vector<8x128xf32>, i32 -> vector<8x128xf32>
    %1596 = arith.addf %1592, %1595 : vector<8x128xf32>
    %c8_208 = arith.constant 8 : index
    %c0_209 = arith.constant 0 : index
    %1597 = vector.load %arg6[%c8_208, %c0_209] : memref<16x128xf32, #tpu.memory_space<vmem>>, vector<8x128xf32>
    tpu.vector_store %arg6[%c8_208, %c0_209], %1596 {strides = array<i32>} : memref<16x128xf32, #tpu.memory_space<vmem>>, vector<8x128xf32>,
    return
  }
  func.func @transform_0(%arg0: i32) -> (i32, i32) {
    %c0_i32 = arith.constant 0 : i32
    %c0_i32_0 = arith.constant 0 : i32
    return %arg0, %c0_i32 : i32, i32
  }
  func.func @transform_1(%arg0: i32) -> i32 {
    %c0_i32 = arith.constant 0 : i32
    %c0_i32_0 = arith.constant 0 : i32
    return %c0_i32 : i32
  }
  func.func @transform_2(%arg0: i32) -> i32 {
    %c0_i32 = arith.constant 0 : i32
    %c0_i32_0 = arith.constant 0 : i32
    return %c0_i32 : i32
  }
  func.func @transform_3(%arg0: i32) -> i32 {
    %c0_i32 = arith.constant 0 : i32
    %c0_i32_0 = arith.constant 0 : i32
    return %c0_i32 : i32
  }
  func.func @transform_4(%arg0: i32) -> i32 {
    %c0_i32 = arith.constant 0 : i32
    %c0_i32_0 = arith.constant 0 : i32
    return %c0_i32 : i32
  }
  func.func @transform_5(%arg0: i32) -> (i32, i32) {
    %c0_i32 = arith.constant 0 : i32
    %c0_i32_0 = arith.constant 0 : i32
    return %arg0, %c0_i32 : i32, i32
  }
}

</mosaic_0001>

<bundles_post_ra>
// kernel: tpu_custom_call.1
= control target key start
LH: loop header
LB: loop body
LE: loop exit
PB: predicated region body
PF: predicated region fallthrough
CT: control target
= control target key end

     0   :  { %s4004_s0 = inlined_call_operand.hbm [shape: f32[16,128], index: 0, kind: input, shape index: {}]   ;;  %s4005_s1 = inlined_call_operand.vmem [shape: f32[96], index: 1, kind: input, shape index: {}]   ;;  %s4006_s2 = inlined_call_operand.vmem [shape: f32[32], index: 2, kind: input, shape index: {}]   ;;  %s4007_s3 = inlined_call_operand.vmem [shape: f32[96], index: 3, kind: input, shape index: {}]   ;;  %s4008_s4 = inlined_call_operand.<no memory space> [shape: f32[1], index: 4, kind: input, shape index: {}]   ;;  %s4009_s5 = inlined_call_operand.hbm [shape: f32[16,128], index: 5, kind: output, shape index: {}]  }
   0x1   :  { %4303 = sst [smem:[#allocation191_spill]] %s4008_s4 }
   0x2   :  { %4304 = sst [smem:[#allocation192_spill]] %s4009_s5 }
   0x3   :  { %11 = vsyncpa [#allocation4], 0 }
   0x4   :  { %12 = vsyncpa [#allocation6], 0 }
   0x5   :  { %13 = vsyncpa [#allocation9], 0  ;;  %s43_s20 = sshll.u32 %s4006_s2, 4  ;;  %s44_s20 = int_to_ptr.vmem [resolvable:$true] %s43_s20 }
   0x6   :  { %14 = vsyncpa [#allocation5], 0  ;;  %s1634_s21 = scalar_lea.vmem %s44_s20, 16  ;;  %p1639_p1 = scmp.lt.s32.totalorder %s44_s20, %s44_s20 }
   0x7   :  { %p1635_p0 = scmp.ne.s32.totalorder %s44_s20, %s1634_s21  ;;  %p1640_p2 = scmp.lt.s32.totalorder %s1634_s21, %s1634_s21 }
   0x9   :  { %p1641_p3 = por %p1640_p2, %p1639_p1 }
   0xb   :  { %p1642_p4 = pnand %p1641_p3, %p1635_p0 }
   0xd   :  { %1645 = shalt.err (!%p1642_p4)
}
   0xe   :  { %s1722_s22 = smov [#allocation8]   ;;  %s1723_s23 = smov [#allocation3]  }
   0xf   :  { %46 = dma.vmem_to_smem %s44_s20, 16, %s1722_s22, [#allocation9]  }
  0x10   :  { %s20_s24 = sshll.u32 %s1723_s23, 4  ;;  %s1646_s27 = scalar_lea.hbm %s4004_s0, 256  ;;  %s21_s24 = int_to_ptr.vmem [resolvable:$true] %s20_s24 }
  0x11   :  { %p1647_p5 = scmp.ne.s32.totalorder %s4004_s0, %s1646_s27  ;;  %p1650_p6 = scmp.lt.u32.totalorder %s1646_s27, %s4004_s0 }
  0x13   :  { %p1652_p7 = pnand %p1650_p6, %p1647_p5 }
  0x15   :  { %1655 = shalt.err (!%p1652_p7)
}
  0x16   :  { %s1656_s6 = scalar_lea.vmem %s21_s24, 256  ;;  %p1661_p9 = scmp.lt.s32.totalorder %s21_s24, %s21_s24 }
  0x17   :  { %p1657_p8 = scmp.ne.s32.totalorder %s21_s24, %s1656_s6  ;;  %p1662_p10 = scmp.lt.s32.totalorder %s1656_s6, %s1656_s6 }
  0x19   :  { %p1663_p11 = por %p1662_p10, %p1661_p9 }
  0x1b   :  { %p1664_p12 = pnand %p1663_p11, %p1657_p8 }
  0x1d   :  { %1667 = shalt.err (!%p1664_p12)
}
  0x1e   :  { %s4010_s7 = smov 128   ;;  %s4011_s8 = smov 8  }
  0x1f   :  { %26 = dma.hbm_to_vmem [thread:$0]  %s4004_s0, 256, %s21_s24, [#allocation4], %s4010_s7, %s4010_s7, %s4011_s8  }
  0x20   :  { %s33_s13 = sshll.u32 %s4005_s1, 4  ;;  %s53_s16 = sshll.u32 %s4007_s3, 4  ;;  %s34_s13 = int_to_ptr.vmem [resolvable:$true] %s33_s13  ;;  %s54_s16 = int_to_ptr.vmem [resolvable:$true] %s53_s16 }
  0x21   :  { %s1668_s17 = scalar_lea.vmem %s34_s13, 16  ;;  %p1673_p0 = scmp.lt.s32.totalorder %s34_s13, %s34_s13 }
  0x22   :  { %p1669_p13 = scmp.ne.s32.totalorder %s34_s13, %s1668_s17  ;;  %p1674_p1 = scmp.lt.s32.totalorder %s1668_s17, %s1668_s17 }
  0x24   :  { %p1675_p2 = por %p1674_p1, %p1673_p0 }
  0x26   :  { %p1676_p3 = pnand %p1675_p2, %p1669_p13 }
  0x28   :  { %1679 = shalt.err (!%p1676_p3)
}
  0x29   :  { %s1726_s18 = smov [#allocation7]   ;;  %s1680_s0 = scalar_lea.vmem %s54_s16, 16 }
  0x2a   :  { %36 = dma.vmem_to_smem %s34_s13, 16, %s1726_s18, [#allocation6]  }
  0x2b   :  { %p1681_p4 = scmp.ne.s32.totalorder %s54_s16, %s1680_s0  ;;  %p1685_p5 = scmp.lt.s32.totalorder %s54_s16, %s54_s16 }
  0x2c   :  { %p1686_p6 = scmp.lt.s32.totalorder %s1680_s0, %s1680_s0 }
  0x2e   :  { %p1687_p7 = por %p1686_p6, %p1685_p5 }
  0x30   :  { %p1688_p8 = pnand %p1687_p7, %p1681_p4 }
  0x32   :  { %1691 = shalt.err (!%p1688_p8)
}
  0x33   :  { %s1727_s1 = smov [#allocation10]  }
  0x34   :  { %56 = dma.vmem_to_smem %s54_s16, 16, %s1727_s1, [#allocation9]  }
  0x35   :  { %1714 = dma.done.wait [#allocation4], 256  }
  0x36   :  { %1715 = vsyncadd [#allocation4], 4294967040 }
  0x37   :  { %1716 = dma.done.wait [#allocation6], 16  }
  0x38   :  { %1717 = vsyncadd [#allocation6], 4294967280 }
  0x39   :  { %1718 = dma.done.wait [#allocation9], 32  }
  0x3a   :  { %1719 = vsyncadd [#allocation9], 4294967264 }
  0x3b   :  { %71 = sfence }
  0x3c   :  { %v1787_v0 = vld [vmem:[#allocation3] sm:$0xff]  ;;  %s1728_s3 = smov 127   ;;  %s1729_s19 = smov 126   ;;  %v1791_v1 = vld [vmem:[#allocation3 + $0x8] sm:$0xff]  ;;  %v72_v2 = vlaneseq }
  0x3d   :  { %301 = vrot.lane.b32.xlu0 %v1787_v0, %s1728_s3  ;;  %303 = vrot.lane.b32.xlu1 %v1787_v0, %s1729_s19  ;;  %s1795_s20 = sld [smem:[#allocation7]]  ;;  %s1797_s21 = sld [smem:[#allocation7 + $0x1]] }
  0x3e   :  { %s1799_s22 = sld [smem:[#allocation7 + $0x2]]  ;;  %s1801_s23 = sld [smem:[#allocation7 + $0x3]]  ;;  %v1938_v6 = vand.u32 127, %v72_v2 }
  0x3f   :  { %s1803_s24 = sld [smem:[#allocation7 + $0x4]]  ;;  %s1805_s25 = sld [smem:[#allocation7 + $0x5]] }
  0x40   :  { %s1807_s26 = sld [smem:[#allocation7 + $0x6]]  ;;  %s1809_s27 = sld [smem:[#allocation7 + $0x7]]  ;;  %vm74_vm0 = vcmp.lt.s32.totalorder %v1938_v6, 8 }
  0x41   :  { %955 = vrot.lane.b32.xlu0 %v1791_v1, %s1728_s3  ;;  %957 = vrot.lane.b32.xlu1 %v1791_v1, %s1729_s19  ;;  %s1811_s28 = sld [smem:[#allocation7 + $0x8]]  ;;  %s1813_s2 = sld [smem:[#allocation7 + $0x9]] }
  0x42   :  { %s1815_s29 = sld [smem:[#allocation7 + $0xa]]  ;;  %s1817_s30 = sld [smem:[#allocation7 + $0xb]] }
  0x43   :  { %4305 = sst [smem:[#allocation16_spill]] %s1795_s20  ;;  %s1819_s6 = sld [smem:[#allocation7 + $0xc]]  ;;  %v305_v3 = vstv %s1795_s20 }
  0x44   :  { %4306 = sst [smem:[#allocation17_spill]] %s1797_s21  ;;  %s1821_s9 = sld [smem:[#allocation7 + $0xd]]  ;;  %v322_v4 = vstv %s1801_s23  ;;  %v1947_v7 = vmul.f32 %v305_v3, %v1787_v0 }
  0x45   :  { %4307 = sst [smem:[#allocation18_spill]] %s1799_s22  ;;  %s1823_s10 = sld [smem:[#allocation7 + $0xe]]  ;;  %v1959_v11 = vmul.f32 %v322_v4, %v1787_v0  ;;  %v2289_v60 = vmul.f32 %v1791_v1, %v322_v4 }
  0x46   :  { %4308 = sst [smem:[#allocation19_spill]] %s1801_s23  ;;  %s1825_s11 = sld [smem:[#allocation7 + $0xf]]  ;;  %v342_v5 = vstv %s1807_s26 }
  0x47   :  { %4309 = sst [smem:[#allocation20_spill]] %s1803_s24  ;;  %s1827_s12 = sld [smem:[#allocation7 + $0x10]]  ;;  %v362_v9 = vstv %s1813_s2  ;;  %v1971_v15 = vmul.f32 %v342_v5, %v1787_v0 }
  0x48   :  { %4310 = sst [smem:[#allocation21_spill]] %s1805_s25  ;;  %s1829_s13 = sld [smem:[#allocation7 + $0x11]]  ;;  %v1983_v19 = vmul.f32 %v362_v9, %v1787_v0  ;;  %v2321_v8 = vmul.f32 %v1791_v1, %v362_v9 }
  0x49   :  { %4311 = sst [smem:[#allocation22_spill]] %s1807_s26  ;;  %s1831_s14 = sld [smem:[#allocation7 + $0x12]]  ;;  %v382_v13 = vstv %s1819_s6 }
  0x4a   :  { %4312 = sst [smem:[#allocation23_spill]] %s1809_s27  ;;  %s1833_s15 = sld [smem:[#allocation7 + $0x13]]  ;;  %v1995_v23 = vmul.f32 %v382_v13, %v1787_v0 }
  0x4b   :  { %4313 = sst [smem:[#allocation24_spill]] %s1811_s28  ;;  %s1835_s16 = sld [smem:[#allocation7 + $0x14]] }
  0x4c   :  { %4314 = sst [smem:[#allocation25_spill]] %s1813_s2  ;;  %s1837_s17 = sld [smem:[#allocation7 + $0x15]]  ;;  %v402_v17 = vstv %s1825_s11 }
  0x4d   :  { %4315 = sst [smem:[#allocation26_spill]] %s1815_s29  ;;  %s1839_s18 = sld [smem:[#allocation7 + $0x16]]  ;;  %v2007_v27 = vmul.f32 %v402_v17, %v1787_v0 }
  0x4e   :  { %4316 = sst [smem:[#allocation27_spill]] %s1817_s30  ;;  %s1841_s0 = sld [smem:[#allocation7 + $0x17]] }
  0x4f   :  { %4317 = sst [smem:[#allocation28_spill]] %s1819_s6  ;;  %s1843_s1 = sld [smem:[#allocation7 + $0x18]]  ;;  %v422_v21 = vstv %s1831_s14 }
  0x50   :  { %4318 = sst [smem:[#allocation29_spill]] %s1821_s9  ;;  %s1845_s3 = sld [smem:[#allocation7 + $0x19]]  ;;  %v2019_v31 = vmul.f32 %v422_v21, %v1787_v0 }
  0x51   :  { %4319 = sst [smem:[#allocation30_spill]] %s1823_s10  ;;  %s1847_s19 = sld [smem:[#allocation7 + $0x1a]] }
  0x52   :  { %4320 = sst [smem:[#allocation31_spill]] %s1825_s11  ;;  %s1849_s7 = sld [smem:[#allocation7 + $0x1b]]  ;;  %v442_v25 = vstv %s1837_s17 }
  0x53   :  { %4321 = sst [smem:[#allocation32_spill]] %s1827_s12  ;;  %s1851_s8 = sld [smem:[#allocation7 + $0x1c]]  ;;  %v2031_v35 = vmul.f32 %v442_v25, %v1787_v0 }
  0x54   :  { %4322 = sst [smem:[#allocation33_spill]] %s1829_s13  ;;  %s1853_s5 = sld [smem:[#allocation7 + $0x1d]] }
  0x55   :  { %4323 = sst [smem:[#allocation34_spill]] %s1831_s14  ;;  %s1855_s4 = sld [smem:[#allocation7 + $0x1e]]  ;;  %v462_v29 = vstv %s1843_s1 }
  0x56   :  { %4324 = sst [smem:[#allocation35_spill]] %s1833_s15  ;;  %s1859_s15 = sld [smem:[#allocation7 + $0x20]]  ;;  %v2043_v39 = vmul.f32 %v462_v29, %v1787_v0 }
  0x57   :  { %4325 = sst [smem:[#allocation36_spill]] %s1835_s16  ;;  %s1857_s16 = sld [smem:[#allocation7 + $0x1f]] }
  0x58   :  { %4326 = sst [smem:[#allocation37_spill]] %s1837_s17  ;;  %s1865_s13 = sld [smem:[#allocation7 + $0x23]] }
  0x59   :  { %4327 = sst [smem:[#allocation38_spill]] %s1839_s18  ;;  %s1861_s18 = sld [smem:[#allocation7 + $0x21]] }
  0x5a   :  { %4328 = sst [smem:[#allocation39_spill]] %s1841_s0  ;;  %s1863_s0 = sld [smem:[#allocation7 + $0x22]] }
  0x5b   :  { %4329 = sst [smem:[#allocation40_spill]] %s1843_s1  ;;  %s1963_s20 = sld [smem:[#allocation7 + $0x4a]] }
  0x5c   :  { %4330 = sst [smem:[#allocation41_spill]] %s1845_s3  ;;  %s1867_s3 = sld [smem:[#allocation7 + $0x24]] }
  0x5d   :  { %4331 = sst [smem:[#allocation42_spill]] %s1847_s19  ;;  %s1869_s19 = sld [smem:[#allocation7 + $0x25]] }
  0x5e   :  { %4332 = sst [smem:[#allocation43_spill]] %s1849_s7  ;;  %s1871_s7 = sld [smem:[#allocation7 + $0x26]] }
  0x5f   :  { %4333 = sst [smem:[#allocation44_spill]] %s1851_s8  ;;  %s1873_s8 = sld [smem:[#allocation7 + $0x27]] }
  0x60   :  { %4334 = sst [smem:[#allocation45_spill]] %s1853_s5  ;;  %s1875_s5 = sld [smem:[#allocation7 + $0x28]] }
  0x61   :  { %4335 = sst [smem:[#allocation46_spill]] %s1855_s4  ;;  %s1877_s4 = sld [smem:[#allocation7 + $0x29]] }
  0x62   :  { %4336 = sst [smem:[#allocation47_spill]] %s1857_s16  ;;  %s1879_s16 = sld [smem:[#allocation7 + $0x2a]] }
  0x63   :  { %4337 = sst [smem:[#allocation48_spill]] %s1859_s15  ;;  %s1881_s15 = sld [smem:[#allocation7 + $0x2b]] }
  0x64   :  { %4338 = sst [smem:[#allocation49_spill]] %s1861_s18  ;;  %s1883_s18 = sld [smem:[#allocation7 + $0x2c]] }
  0x65   :  { %4339 = sst [smem:[#allocation50_spill]] %s1863_s0  ;;  %s1885_s0 = sld [smem:[#allocation7 + $0x2d]] }
  0x66   :  { %4340 = sst [smem:[#allocation51_spill]] %s1865_s13  ;;  %s1887_s13 = sld [smem:[#allocation7 + $0x2e]] }
  0x67   :  { %4341 = sst [smem:[#allocation52_spill]] %s1867_s3  ;;  %s1889_s3 = sld [smem:[#allocation7 + $0x2f]] }
  0x68   :  { %4342 = sst [smem:[#allocation53_spill]] %s1869_s19  ;;  %s1891_s19 = sld [smem:[#allocation7 + $0x30]]  ;;  %v582_v53 = vstv %s1879_s16 }
  0x69   :  { %4343 = sst [smem:[#allocation54_spill]] %s1871_s7  ;;  %s1893_s7 = sld [smem:[#allocation7 + $0x31]]  ;;  %v2115_v63 = vmul.f32 %v582_v53, %v1787_v0 }
  0x6a   :  { %4344 = sst [smem:[#allocation55_spill]] %s1873_s8  ;;  %s1895_s8 = sld [smem:[#allocation7 + $0x32]] }
  0x6b   :  { %4345 = sst [smem:[#allocation56_spill]] %s1875_s5  ;;  %s1897_s5 = sld [smem:[#allocation7 + $0x33]] }
  0x6c   :  { %4346 = sst [smem:[#allocation57_spill]] %s1877_s4  ;;  %s1899_s4 = sld [smem:[#allocation7 + $0x34]] }
  0x6d   :  { %4347 = sst [smem:[#allocation58_spill]] %s1879_s16  ;;  %s1965_s21 = sld [smem:[#allocation7 + $0x4b]] }
  0x6e   :  { %4348 = sst [smem:[#allocation59_spill]] %s1881_s15  ;;  %s1901_s15 = sld [smem:[#allocation7 + $0x35]] }
  0x6f   :  { %4349 = sst [smem:[#allocation60_spill]] %s1883_s18  ;;  %s1903_s18 = sld [smem:[#allocation7 + $0x36]] }
  0x70   :  { %4350 = sst [smem:[#allocation61_spill]] %s1885_s0  ;;  %s1905_s0 = sld [smem:[#allocation7 + $0x37]] }
  0x71   :  { %4351 = sst [smem:[#allocation62_spill]] %s1887_s13  ;;  %s1907_s13 = sld [smem:[#allocation7 + $0x38]] }
  0x72   :  { %4352 = sst [smem:[#allocation63_spill]] %s1889_s3  ;;  %s1909_s3 = sld [smem:[#allocation7 + $0x39]] }
  0x73   :  { %4353 = sst [smem:[#allocation64_spill]] %s1891_s19  ;;  %s1917_s19 = sld [smem:[#allocation7 + $0x3d]]  ;;  %v4145_v26 = vstv %s1965_s21 }
  0x74   :  { %4354 = sst [smem:[#allocation65_spill]] %s1893_s7  ;;  %s1911_s7 = sld [smem:[#allocation7 + $0x3a]]  ;;  %v2247_v16 = vmul.f32 %v4145_v26, %v1787_v0  ;;  %v2284_v26 = vmul.f32 %v1791_v1, %v305_v3  ;;  %v2305_v3 = vmul.f32 %v1791_v1, %v342_v5 }
  0x75   :  { %4355 = sst [smem:[#allocation66_spill]] %s1895_s8  ;;  %s1913_s8 = sld [smem:[#allocation7 + $0x3b]]  ;;  %v662_v54 = vstv %s1903_s18 }
  0x76   :  { %4356 = sst [smem:[#allocation67_spill]] %s1897_s5  ;;  %s1915_s5 = sld [smem:[#allocation7 + $0x3c]]  ;;  %v2163_v44 = vmul.f32 %v662_v54, %v1787_v0 }
  0x77   :  { %4357 = sst [smem:[#allocation68_spill]] %s1899_s4  ;;  %s1925_s4 = sld [smem:[#allocation7 + $0x41]] }
  0x78   :  { %4358 = sst [smem:[#allocation69_spill]] %s1901_s15  ;;  %s1919_s15 = sld [smem:[#allocation7 + $0x3e]]  ;;  %v682_v50 = vstv %s1909_s3 }
  0x79   :  { %4359 = sst [smem:[#allocation70_spill]] %s1903_s18  ;;  %s1975_s22 = sld [smem:[#allocation7 + $0x4c]]  ;;  %v2175_v40 = vmul.f32 %v682_v50, %v1787_v0 }
  0x7a   :  { %4360 = sst [smem:[#allocation71_spill]] %s1905_s0  ;;  %s1977_s24 = sld [smem:[#allocation7 + $0x4d]] }
  0x7b   :  { %4361 = sst [smem:[#allocation72_spill]] %s1907_s13  ;;  %s1921_s0 = sld [smem:[#allocation7 + $0x3f]] }
  0x7c   :  { %4362 = sst [smem:[#allocation73_spill]] %s1909_s3  ;;  %s1923_s13 = sld [smem:[#allocation7 + $0x40]]  ;;  %v4206_v46 = vstv %s1915_s5 }
  0x7d   :  { %4363 = sst [smem:[#allocation74_spill]] %s1911_s7  ;;  %s1930_s7 = sld [smem:[#allocation7 + $0x43]]  ;;  %v2187_v36 = vmul.f32 %v4206_v46, %v1787_v0 }
  0x7e   :  { %4364 = sst [smem:[#allocation75_spill]] %s1913_s8  ;;  %s1928_s8 = sld [smem:[#allocation7 + $0x42]] }
  0x7f   :  { %4365 = sst [smem:[#allocation76_spill]] %s1915_s5  ;;  %s1987_s26 = sld [smem:[#allocation7 + $0x4e]] }
  0x80   :  { %4366 = sst [smem:[#allocation77_spill]] %s1917_s19  ;;  %s1933_s19 = sld [smem:[#allocation7 + $0x44]] }
  0x81   :  { %4367 = sst [smem:[#allocation78_spill]] %s1919_s15  ;;  %s1935_s15 = sld [smem:[#allocation7 + $0x45]]  ;;  %v4205_v42 = vstv %s1921_s0 }
  0x82   :  { %4368 = sst [smem:[#allocation79_spill]] %s1921_s0  ;;  %s1999_s2 = sld [smem:[#allocation7 + $0x50]]  ;;  %v2199_v32 = vmul.f32 %v4205_v42, %v1787_v0 }
  0x83   :  { %4369 = sst [smem:[#allocation80_spill]] %s1923_s13  ;;  %s1942_s13 = sld [smem:[#allocation7 + $0x47]] }
  0x84   :  { %4370 = sst [smem:[#allocation81_spill]] %s1925_s4  ;;  %s1940_s4 = sld [smem:[#allocation7 + $0x46]]  ;;  %v4161_v38 = vstv %s1928_s8 }
  0x85   :  { %4371 = sst [smem:[#allocation82_spill]] %s1928_s8  ;;  %s1989_s23 = sld [smem:[#allocation7 + $0x4f]]  ;;  %v2211_v28 = vmul.f32 %v4161_v38, %v1787_v0  ;;  %v4141_v22 = vstv %s1987_s26 }
  0x86   :  { %4372 = sst [smem:[#allocation83_spill]] %s1930_s7  ;;  %s1953_s7 = sld [smem:[#allocation7 + $0x49]]  ;;  %v2258_v62 = vmul.f32 %v4141_v22, %v1787_v0 }
  0x87   :  { %4373 = sst [smem:[#allocation84_spill]] %s1933_s19  ;;  %s1951_s19 = sld [smem:[#allocation7 + $0x48]]  ;;  %v4156_v34 = vstv %s1935_s15 }
  0x88   :  { %4374 = sst [smem:[#allocation85_spill]] %s1935_s15  ;;  %s2011_s6 = sld [smem:[#allocation7 + $0x52]]  ;;  %v2223_v24 = vmul.f32 %v4156_v34, %v1787_v0  ;;  %v2353_v34 = vmul.f32 %v1791_v1, %v402_v17 }
  0x89   :  { %4376 = sst [smem:[#allocation87_spill]] %s1942_s13  ;;  %s2023_s11 = sld [smem:[#allocation7 + $0x54]] }
  0x8a   :  { %4375 = sst [smem:[#allocation86_spill]] %s1940_s4  ;;  %s2047_s17 = sld [smem:[#allocation7 + $0x58]] }
  0x8b   :  { %4379 = sst [smem:[#allocation90_spill]] %s1963_s20  ;;  %s4387_s20 = sld [smem:[#allocation43_spill]] }
  0x8c   :  { %4378 = sst [smem:[#allocation89_spill]] %s1953_s7  ;;  %s2035_s14 = sld [smem:[#allocation7 + $0x56]] }
  0x8d   :  { %4377 = sst [smem:[#allocation88_spill]] %s1951_s19  ;;  %s4397_s7 = sld [smem:[#allocation49_spill]]  ;;  %v4152_v30 = vstv %s1951_s19 }
  0x8e   :  { %4380 = sst [smem:[#allocation91_spill]] %s1965_s21  ;;  %s2059_s1 = sld [smem:[#allocation7 + $0x5a]]  ;;  %v2235_v20 = vmul.f32 %v4152_v30, %v1787_v0  ;;  %v2337_v30 = vmul.f32 %v1791_v1, %v382_v13 }
  0x8f   :  { %4381 = sst [smem:[#allocation92_spill]] %s1975_s22  ;;  %s4392_s22 = sld [smem:[#allocation46_spill]]  ;;  %v4151_v10 = vstv %s2023_s11 }
  0x90   :  { %4382 = sst [smem:[#allocation93_spill]] %s1977_s24  ;;  %s2001_s24 = sld [smem:[#allocation7 + $0x51]]  ;;  %v2298_v2 = vmul.f32 %v4151_v10, %v1787_v0 }
  0x91   :  { %4384 = sst [smem:[#allocation94_spill]] %s1987_s26  ;;  %v482_v33 = vstv %s4387_s20  ;;  %s2071_s20 = sld [smem:[#allocation7 + $0x5c]] }
  0x92   :  { %4386 = sst [smem:[#allocation95_spill]] %s1989_s23  ;;  %s2013_s23 = sld [smem:[#allocation7 + $0x53]]  ;;  %v2055_v43 = vmul.f32 %v482_v33, %v1787_v0 }
  0x93   :  { %4389 = sst [smem:[#allocation96_spill]] %s1999_s2  ;;  %s2025_s2 = sld [smem:[#allocation7 + $0x55]]  ;;  %v522_v41 = vstv %s4397_s7 }
  0x94   :  { %4394 = sst [smem:[#allocation98_spill]] %s2011_s6  ;;  %s4407_s6 = sld [smem:[#allocation55_spill]]  ;;  %v2079_v51 = vmul.f32 %v522_v41, %v1787_v0  ;;  %v2441_v38 = vmul.f32 %v1791_v1, %v522_v41 }
  0x95   :  { %4399 = sst [smem:[#allocation100_spill]] %s2023_s11  ;;  %v502_v37 = vstv %s4392_s22  ;;  %s2083_s22 = sld [smem:[#allocation7 + $0x5e]] }
  0x96   :  { %4391 = sst [smem:[#allocation97_spill]] %s2001_s24  ;;  %s4402_s24 = sld [smem:[#allocation52_spill]]  ;;  %v2067_v47 = vmul.f32 %v502_v37, %v1787_v0  ;;  %v2429_v17 = vmul.f32 %v1791_v1, %v502_v37  ;;  %4551 = vst [vmem:[#allocation155_spill] sm:$0xff] %v2441_v38  ;;  %v2485_v37 = vmul.f32 %v1791_v1, %v582_v53 }
  0x97   :  { %4404 = sst [smem:[#allocation102_spill]] %s2035_s14  ;;  %s2061_s14 = sld [smem:[#allocation7 + $0x5b]] }
  0x98   :  { %4396 = sst [smem:[#allocation99_spill]] %s2013_s23  ;;  %s2037_s23 = sld [smem:[#allocation7 + $0x57]]  ;;  %4546 = vst [vmem:[#allocation154_spill] sm:$0xff] %v2429_v17  ;;  %4574 = vst [vmem:[#allocation162_spill] sm:$0xff] %v2485_v37 }
  0x99   :  { %4401 = sst [smem:[#allocation101_spill]] %s2025_s2  ;;  %s2049_s2 = sld [smem:[#allocation7 + $0x59]] }
  0x9a   :  { %4409 = sst [smem:[#allocation104_spill]] %s2047_s17  ;;  %v562_v49 = vstv %s4407_s6  ;;  %s2119_s6 = sld [smem:[#allocation8 + $0x4]] }
  0x9b   :  { %4413 = sst [smem:[#allocation106_spill]] %s2059_s1  ;;  %s4421_s17 = sld [smem:[#allocation64_spill]]  ;;  %v2103_v59 = vmul.f32 %v562_v49, %v1787_v0  ;;  %v2473_v13 = vmul.f32 %v1791_v1, %v562_v49 }
  0x9c   :  { %v542_v45 = vstv %s4402_s24  ;;  %4418 = sst [smem:[#allocation108_spill]] %s2071_s20  ;;  %s4426_s1 = sld [smem:[#allocation67_spill]] }
  0x9d   :  { %4415 = sst [smem:[#allocation107_spill]] %s2061_s14  ;;  %s2085_s14 = sld [smem:[#allocation7 + $0x5f]]  ;;  %v2091_v55 = vmul.f32 %v542_v45, %v1787_v0  ;;  %v2453_v10 = vmul.f32 %v1791_v1, %v542_v45  ;;  %4568 = vst [vmem:[#allocation160_spill] sm:$0xff] %v2473_v13 }
  0x9e   :  { %4406 = sst [smem:[#allocation103_spill]] %s2037_s23  ;;  %s4416_s23 = sld [smem:[#allocation61_spill]] }
  0x9f   :  { %4411 = sst [smem:[#allocation105_spill]] %s2049_s2  ;;  %s2073_s2 = sld [smem:[#allocation7 + $0x5d]]  ;;  %4556 = vst [vmem:[#allocation158_spill] sm:$0xff] %v2453_v10 }
  0xa0   :  { %4423 = sst [smem:[#allocation110_spill]] %s2083_s22  ;;  %s2095_s7 = sld [smem:[#allocation8]] }
  0xa1   :  { %s2097_s20 = sld [smem:[#allocation8 + $0x1]]  ;;  %v622_v61 = vstv %s4421_s17  ;;  %s2107_s24 = sld [smem:[#allocation8 + $0x2]] }
  0xa2   :  { %v642_v58 = vstv %s4426_s1  ;;  %4436 = sst [smem:[#allocation116_spill]] %s2119_s6  ;;  %s2131_s16 = sld [smem:[#allocation8 + $0x6]]  ;;  %v2139_v52 = vmul.f32 %v622_v61, %v1787_v0  ;;  %v2504_v45 = vmul.f32 %v1791_v1, %v622_v61 }
  0xa3   :  { %4425 = sst [smem:[#allocation111_spill]] %s2085_s14  ;;  %s2109_s14 = sld [smem:[#allocation8 + $0x3]]  ;;  %v2151_v48 = vmul.f32 %v642_v58, %v1787_v0 }
  0xa4   :  { %v602_v57 = vstv %s4416_s23  ;;  %s2143_s23 = sld [smem:[#allocation8 + $0x8]]  ;;  %s2155_s17 = sld [smem:[#allocation8 + $0xa]]  ;;  %4580 = vst [vmem:[#allocation164_spill] sm:$0xff] %v2504_v45 }
  0xa5   :  { %4420 = sst [smem:[#allocation109_spill]] %s2073_s2  ;;  %v2127_v56 = vmul.f32 %v602_v57, %v1787_v0  ;;  %s2167_s1 = sld [smem:[#allocation8 + $0xc]]  ;;  %v2493_v41 = vmul.f32 %v1791_v1, %v602_v57  ;;  %v2509_v57 = vmul.f32 %v1791_v1, %v642_v58 }
  0xa6   :  { %4428 = sst [smem:[#allocation112_spill]] %s2095_s7  ;;  %s2179_s18 = sld [smem:[#allocation8 + $0xe]] }
  0xa7   :  { %4430 = sst [smem:[#allocation113_spill]] %s2097_s20  ;;  %s2121_s20 = sld [smem:[#allocation8 + $0x5]]  ;;  %4575 = vst [vmem:[#allocation163_spill] sm:$0xff] %v2493_v41  ;;  %4582 = vst [vmem:[#allocation165_spill] sm:$0xff] %v2509_v57 }
  0xa8   :  { %4432 = sst [smem:[#allocation114_spill]] %s2107_s24  ;;  %s2191_s3 = sld [smem:[#allocation8 + $0x10]] }
  0xa9   :  { %4434 = sst [smem:[#allocation115_spill]] %s2109_s14  ;;  %s2133_s14 = sld [smem:[#allocation8 + $0x7]] }
  0xaa   :  { %4440 = sst [smem:[#allocation118_spill]] %s2131_s16  ;;  %s2193_s29 = sld [smem:[#allocation8 + $0x11]] }
  0xab   :  { %4444 = sst [smem:[#allocation120_spill]] %s2143_s23  ;;  %s2203_s30 = sld [smem:[#allocation8 + $0x12]] }
  0xac   :  { %4448 = sst [smem:[#allocation122_spill]] %s2155_s17  ;;  %s2205_s5 = sld [smem:[#allocation8 + $0x13]] }
  0xad   :  { %4438 = sst [smem:[#allocation117_spill]] %s2121_s20  ;;  %s2145_s20 = sld [smem:[#allocation8 + $0x9]] }
  0xae   :  { %4452 = sst [smem:[#allocation124_spill]] %s2167_s1  ;;  %s2227_s8 = sld [smem:[#allocation8 + $0x16]] }
  0xaf   :  { %4442 = sst [smem:[#allocation119_spill]] %s2133_s14  ;;  %s2157_s14 = sld [smem:[#allocation8 + $0xb]] }
  0xb0   :  { %4456 = sst [smem:[#allocation126_spill]] %s2179_s18  ;;  %s2215_s0 = sld [smem:[#allocation8 + $0x14]] }
  0xb1   :  { %4460 = sst [smem:[#allocation128_spill]] %s2191_s3  ;;  %s4481_s19 = sld [smem:[#allocation106_spill]] }
  0xb2   :  { %4461 = sst [smem:[#allocation129_spill]] %s2193_s29  ;;  %s2217_s29 = sld [smem:[#allocation8 + $0x15]] }
  0xb3   :  { %4446 = sst [smem:[#allocation121_spill]] %s2145_s20  ;;  %s2169_s20 = sld [smem:[#allocation8 + $0xd]] }
  0xb4   :  { %4462 = sst [smem:[#allocation130_spill]] %s2203_s30  ;;  %s2239_s15 = sld [smem:[#allocation8 + $0x18]] }
  0xb5   :  { %4450 = sst [smem:[#allocation123_spill]] %s2157_s14  ;;  %s2181_s14 = sld [smem:[#allocation8 + $0xf]] }
  0xb6   :  { %4464 = sst [smem:[#allocation131_spill]] %s2205_s5  ;;  %s2229_s5 = sld [smem:[#allocation8 + $0x17]] }
  0xb7   :  { %4467 = sst [smem:[#allocation132_spill]] %s2215_s0  ;;  %s4479_s0 = sld [smem:[#allocation103_spill]]  ;;  %v4158_v12 = vstv %s4481_s19 }
  0xb8   :  { %4469 = sst [smem:[#allocation133_spill]] %s2217_s29  ;;  %s2241_s29 = sld [smem:[#allocation8 + $0x19]]  ;;  %v2330_v5 = vmul.f32 %v4158_v12, %v1787_v0  ;;  %v2385_v12 = vmul.f32 %v1791_v1, %v442_v25  ;;  %v2533_v25 = vmul.f32 %v1791_v1, %v682_v50 }
  0xb9   :  { %4454 = sst [smem:[#allocation125_spill]] %s2169_s20  ;;  %s2263_s21 = sld [smem:[#allocation8 + $0x1c]] }
  0xba   :  { %4472 = sst [smem:[#allocation134_spill]] %s2227_s8  ;;  %s2253_s8 = sld [smem:[#allocation8 + $0x1b]]  ;;  %4596 = vst [vmem:[#allocation167_spill] sm:$0xff] %v2533_v25 }
  0xbb   :  { %4458 = sst [smem:[#allocation127_spill]] %s2181_s14  ;;  %s4465_s14 = sld [smem:[#allocation97_spill]] }
  0xbc   :  { %4474 = sst [smem:[#allocation135_spill]] %s2229_s5  ;;  %s2251_s5 = sld [smem:[#allocation8 + $0x1a]] }
  0xbd   :  { %4476 = sst [smem:[#allocation136_spill]] %s2239_s15  ;;  %s2265_s3 = sld [smem:[#allocation8 + $0x1d]]  ;;  %v4155_v22 = vstv %s4479_s0 }
  0xbe   :  { %4478 = sst [smem:[#allocation137_spill]] %s2241_s29  ;;  %s2275_s25 = sld [smem:[#allocation8 + $0x1e]]  ;;  %v2314_v4 = vmul.f32 %v4155_v22, %v1787_v0  ;;  %v2417_v22 = vmul.f32 %v1791_v1, %v482_v33 }
  0xbf   :  { %4487 = sst [smem:[#allocation19_spill]] %s2263_s21  ;;  %s2291_s28 = sld [smem:[#allocation10 + $0x1]] }
  0xc0   :  { %4484 = sst [smem:[#allocation16_spill]] %s2253_s8  ;;  %s2277_s8 = sld [smem:[#allocation8 + $0x1f]]  ;;  %4541 = vst [vmem:[#allocation152_spill] sm:$0xff] %v2417_v22 }
  0xc1   :  { %v4149_v18 = vstv %s4465_s14  ;;  %s2307_s9 = sld [smem:[#allocation10 + $0x7]]  ;;  %s2309_s13 = sld [smem:[#allocation10 + $0xa]] }
  0xc2   :  { %4482 = sst [smem:[#allocation138_spill]] %s2251_s5  ;;  %v2270_v14 = vmul.f32 %v4149_v18, %v1787_v0  ;;  %v4165_v18 = vstv %s2073_s2  ;;  %s2323_s10 = sld [smem:[#allocation10 + $0xd]] }
  0xc3   :  { %4488 = sst [smem:[#allocation139_spill]] %s2265_s3  ;;  %s2325_s11 = sld [smem:[#allocation10 + $0x10]]  ;;  %v2346_v9 = vmul.f32 %v4165_v18, %v1787_v0  ;;  %v2373_v18 = vmul.f32 %v1791_v1, %v422_v21  ;;  %v2405_v0 = vmul.f32 %v1791_v1, %v462_v29  ;;  %v2525_v21 = vmul.f32 %v1791_v1, %v662_v54 }
  0xc4   :  { %4491 = sst [smem:[#allocation22_spill]] %s2275_s25  ;;  %s2293_s25 = sld [smem:[#allocation10 + $0x4]] }
  0xc5   :  { %4496 = sst [smem:[#allocation25_spill]] %s2291_s28  ;;  %s2339_s27 = sld [smem:[#allocation10 + $0x13]]  ;;  %4535 = vst [vmem:[#allocation150_spill] sm:$0xff] %v2405_v0  ;;  %4591 = vst [vmem:[#allocation166_spill] sm:$0xff] %v2525_v21 }
  0xc6   :  { %4493 = sst [smem:[#allocation140_spill]] %s2277_s8  ;;  %s2341_s26 = sld [smem:[#allocation10 + $0x16]] }
  0xc7   :  { %4501 = sst [smem:[#allocation28_spill]] %s2309_s13  ;;  %s2355_s14 = sld [smem:[#allocation10 + $0x19]] }
  0xc8   :  { %s2357_s19 = sld [smem:[#allocation10 + $0x1c]]  ;;  %s2363_s22 = sld [smem:[#allocation10 + $0x1f]] }
  0xc9   :  { %4504 = sst [smem:[#allocation31_spill]] %s2325_s11  ;;  %s2375_s12 = sld [smem:[#allocation10 + $0x25]] }
  0xca   :  { %4498 = sst [smem:[#allocation141_spill]] %s2293_s25  ;;  %s2365_s25 = sld [smem:[#allocation10 + $0x22]] }
  0xcb   :  { %4507 = sst [smem:[#allocation142_spill]] %s2339_s27  ;;  %s2377_s13 = sld [smem:[#allocation10 + $0x28]] }
  0xcc   :  { %4508 = sst [smem:[#allocation143_spill]] %s2341_s26  ;;  %s2387_s0 = sld [smem:[#allocation10 + $0x2b]] }
  0xcd   :  { %4511 = sst [smem:[#allocation34_spill]] %s2355_s14  ;;  %s2389_s5 = sld [smem:[#allocation10 + $0x2e]] }
  0xce   :  { %4513 = sst [smem:[#allocation144_spill]] %s2357_s19  ;;  %s2395_s23 = sld [smem:[#allocation10 + $0x31]] }
  0xcf   :  { %4516 = sst [smem:[#allocation37_spill]] %s2363_s22  ;;  %s2397_s4 = sld [smem:[#allocation10 + $0x34]] }
  0xd0   :  { %4517 = sst [smem:[#allocation145_spill]] %s2365_s25  ;;  %s2407_s2 = sld [smem:[#allocation10 + $0x37]] }
  0xd1   :  { %4519 = sst [smem:[#allocation146_spill]] %s2375_s12  ;;  %s2419_s24 = sld [smem:[#allocation10 + $0x3d]] }
  0xd2   :  { %4521 = sst [smem:[#allocation147_spill]] %s2377_s13  ;;  %s2409_s20 = sld [smem:[#allocation10 + $0x3a]] }
  0xd3   :  { %4524 = sst [smem:[#allocation40_spill]] %s2387_s0  ;;  %s2431_s25 = sld [smem:[#allocation10 + $0x43]] }
  0xd4   :  { %4526 = sst [smem:[#allocation148_spill]] %s2389_s5  ;;  %s2421_s15 = sld [smem:[#allocation10 + $0x40]] }
  0xd5   :  { %4530 = sst [smem:[#allocation43_spill]] %s2395_s23  ;;  %s2433_s30 = sld [smem:[#allocation10 + $0x46]] }
  0xd6   :  { %4532 = sst [smem:[#allocation149_spill]] %s2397_s4  ;;  %s2443_s12 = sld [smem:[#allocation10 + $0x49]] }
  0xd7   :  { %4537 = sst [smem:[#allocation46_spill]] %s2407_s2  ;;  %s4553_s27 = sld [smem:[#allocation28_spill]] }
  0xd8   :  { %4538 = sst [smem:[#allocation151_spill]] %s2409_s20  ;;  %s2445_s8 = sld [smem:[#allocation10 + $0x4c]] }
  0xd9   :  { %4543 = sst [smem:[#allocation49_spill]] %s2419_s24  ;;  %s2455_s1 = sld [smem:[#allocation10 + $0x4f]] }
  0xda   :  { %4544 = sst [smem:[#allocation153_spill]] %s2421_s15  ;;  %s4558_s29 = sld [smem:[#allocation142_spill]] }
  0xdb   :  { %4547 = sst [smem:[#allocation52_spill]] %s2431_s25  ;;  %s2457_s17 = sld [smem:[#allocation10 + $0x52]] }
  0xdc   :  { %4552 = sst [smem:[#allocation156_spill]] %s2443_s12  ;;  %s2463_s4 = sld [smem:[#allocation10 + $0x55]] }
  0xdd   :  { %s2465_s7 = sld [smem:[#allocation10 + $0x58]]  ;;  %s2475_s16 = sld [smem:[#allocation10 + $0x5b]] }
  0xde   :  { %4554 = sst [smem:[#allocation157_spill]] %s2445_s8  ;;  %s2477_s3 = sld [smem:[#allocation10 + $0x5e]] }
  0xdf   :  { %4557 = sst [smem:[#allocation55_spill]] %s2455_s1  ;;  %s4578_s0 = sld [smem:[#allocation157_spill]] }
  0xe0   :  { %s4576_s15 = sld [smem:[#allocation153_spill]]  ;;  %s2515_s5 = sld [smem:[#allocation10 + $0x2]] }
  0xe1   :  { %4559 = sst [smem:[#allocation159_spill]] %s2457_s17  ;;  %s4581_s21 = sld [smem:[#allocation55_spill]] }
  0xe2   :  { %4562 = sst [smem:[#allocation58_spill]] %s2463_s4  ;;  %s4585_s6 = sld [smem:[#allocation76_spill]] }
  0xe3   :  { %4563 = sst [smem:[#allocation61_spill]] %s2465_s7  ;;  %s4583_s18 = sld [smem:[#allocation58_spill]] }
  0xe4   :  { %4569 = sst [smem:[#allocation161_spill]] %s2475_s16  ;;  %s2517_s28 = sld [smem:[#allocation10 + $0x5]] }
  0xe5   :  { %4571 = sst [smem:[#allocation64_spill]] %s2477_s3  ;;  %s4587_s8 = sld [smem:[#allocation79_spill]] }
  0xe6   :  { %4584 = sst [smem:[#allocation67_spill]] %s2515_s5  ;;  %s4588_s4 = sld [smem:[#allocation82_spill]] }
  0xe7   :  { %s4589_s1 = sld [smem:[#allocation85_spill]]  ;;  %s4590_s23 = sld [smem:[#allocation88_spill]] }
  0xe8   :  { %s4592_s2 = sld [smem:[#allocation91_spill]]  ;;  %s4593_s20 = sld [smem:[#allocation94_spill]]  ;;  %v4600_v42 = vstv %s4585_s6 }
  0xe9   :  { %s4594_s13 = sld [smem:[#allocation97_spill]]  ;;  %s4595_s22 = sld [smem:[#allocation100_spill]]  ;;  %v2544_v53 = vmul.f32 %v1791_v1, %v4600_v42 }
  0xea   :  { %4586 = sst [smem:[#allocation70_spill]] %s2517_s28  ;;  %s4597_s24 = sld [smem:[#allocation103_spill]] }
  0xeb   :  { %s4598_s11 = sld [smem:[#allocation106_spill]]  ;;  %s4599_s25 = sld [smem:[#allocation109_spill]]  ;;  %4601 = vst [vmem:[#allocation168_spill] sm:$0xff] %v2544_v53  ;;  %v4602_v33 = vstv %s4587_s8 }
  0xec   :  { %s4603_s19 = sld [smem:[#allocation17_spill]]  ;;  %v2549_v50 = vmul.f32 %v1791_v1, %v4602_v33  ;;  %v4605_v25 = vstv %s4588_s4  ;;  %s4606_s17 = sld [smem:[#allocation18_spill]] }
  0xed   :  { %v2554_v58 = vmul.f32 %v1791_v1, %v4605_v25  ;;  %v4608_v29 = vstv %s4589_s1  ;;  %s4609_s16 = sld [smem:[#allocation20_spill]]  ;;  %v4611_v49 = vstv %s4590_s23  ;;  %s4612_s6 = sld [smem:[#allocation21_spill]] }
  0xee   :  { %4604 = vst [vmem:[#allocation169_spill] sm:$0xff] %v2549_v50  ;;  %v2559_v54 = vmul.f32 %v1791_v1, %v4608_v29  ;;  %v2564_v42 = vmul.f32 %v1791_v1, %v4611_v49  ;;  %v4614_v61 = vstv %s4592_s2  ;;  %s4615_s8 = sld [smem:[#allocation23_spill]]  ;;  %v4617_v46 = vstv %s4593_s20  ;;  %s4618_s4 = sld [smem:[#allocation24_spill]] }
  0xef   :  { %4607 = vst [vmem:[#allocation170_spill] sm:$0xff] %v2554_v58  ;;  %v2569_v33 = vmul.f32 %v1791_v1, %v4614_v61  ;;  %v2574_v25 = vmul.f32 %v1791_v1, %v4617_v46  ;;  %v4620_v58 = vstv %s4594_s13  ;;  %s4621_s1 = sld [smem:[#allocation26_spill]]  ;;  %s4624_s23 = sld [smem:[#allocation27_spill]]  ;;  %v2591_v61 = vpop.permute.xlu0 %301 }
  0xf0   :  { %4610 = vst [vmem:[#allocation171_spill] sm:$0xff] %v2559_v54  ;;  %4613 = vst [vmem:[#allocation172_spill] sm:$0xff] %v2564_v42  ;;  %v2579_v29 = vmul.f32 %v1791_v1, %v4620_v58  ;;  %v4623_v54 = vstv %s4595_s22  ;;  %v4626_v42 = vstv %s4597_s24  ;;  %s4628_s20 = sld [smem:[#allocation29_spill]]  ;;  %s4630_s2 = sld [smem:[#allocation30_spill]] }
  0xf1   :  { %4616 = vst [vmem:[#allocation173_spill] sm:$0xff] %v2569_v33  ;;  %4619 = vst [vmem:[#allocation174_spill] sm:$0xff] %v2574_v25  ;;  %v2584_v49 = vmul.f32 %v1791_v1, %v4623_v54  ;;  %v2589_v50 = vmul.f32 %v1791_v1, %v4626_v42  ;;  %v2593_v33 = vpop.permute.xlu1 %303  ;;  %v4629_v46 = vstv %s4598_s11  ;;  %v4632_v58 = vstv %s4599_s25  ;;  %s4634_s22 = sld [smem:[#allocation32_spill]]  ;;  %s4636_s24 = sld [smem:[#allocation33_spill]] }
  0xf2   :  { %4622 = vst [vmem:[#allocation175_spill] sm:$0xff] %v2579_v29  ;;  %v2598_v25 = vmul.f32 %v1791_v1, %v4629_v46  ;;  %v2603_v29 = vmul.f32 %v1791_v1, %v4632_v58  ;;  %v4635_v42 = vstv %s4603_s19  ;;  %v4637_v53 = vstv %s4606_s17  ;;  %s4641_s13 = sld [smem:[#allocation35_spill]]  ;;  %s4645_s25 = sld [smem:[#allocation36_spill]] }
  0xf3   :  { %4625 = vst [vmem:[#allocation176_spill] sm:$0xff] %v2584_v49  ;;  %4627 = vst [vmem:[#allocation177_spill] sm:$0xff] %v2589_v50  ;;  %v308_v50 = vmul.f32 %v4635_v42, %v2591_v61  ;;  %v311_v21 = vmul.f32 %v4637_v53, %v2593_v33  ;;  %v4638_v57 = vstv %s4609_s16  ;;  %v4639_v46 = vstv %s4612_s6  ;;  %s4646_s11 = sld [smem:[#allocation112_spill]]  ;;  %s4648_s28 = sld [smem:[#allocation113_spill]] }
  0xf4   :  { %4631 = vst [vmem:[#allocation178_spill] sm:$0xff] %v2598_v25  ;;  %4633 = vst [vmem:[#allocation179_spill] sm:$0xff] %v2603_v29  ;;  %v325_v45 = vmul.f32 %v4638_v57, %v2591_v61  ;;  %v328_v25 = vmul.f32 %v4639_v46, %v2593_v33  ;;  %v4640_v41 = vstv %s4615_s8  ;;  %v4642_v58 = vstv %s4618_s4  ;;  %s4650_s5 = sld [smem:[#allocation114_spill]]  ;;  %s4652_s3 = sld [smem:[#allocation115_spill]] }
  0xf5   :  { %v345_v1 = vmul.f32 %v4640_v41, %v2591_v61  ;;  %v348_v49 = vmul.f32 %v4642_v58, %v2593_v33  ;;  %v4643_v54 = vstv %s4621_s1  ;;  %v4644_v42 = vstv %s4624_s23  ;;  %s4654_s23 = sld [smem:[#allocation38_spill]] }
  0xf6   :  { %v365_v29 = vmul.f32 %v4643_v54, %v2591_v61  ;;  %v368_v37 = vmul.f32 %v4644_v42, %v2593_v33  ;;  %v309_v53 = vadd.f32 %v308_v50, %v1947_v7  ;;  %v326_v57 = vadd.f32 %v325_v45, %v1959_v11 }
  0xf7   :  { %v4647_v46 = vstv %s4628_s20  ;;  %v4649_v41 = vstv %s4630_s2  ;;  %v346_v58 = vadd.f32 %v345_v1, %v1971_v15  ;;  %v4651_v42 = vstv %s4634_s22  ;;  %s4656_s2 = sld [smem:[#allocation116_spill]]  ;;  %s4658_s22 = sld [smem:[#allocation117_spill]] }
  0xf8   :  { %v385_v13 = vmul.f32 %v4647_v46, %v2591_v61  ;;  %v388_v10 = vmul.f32 %v4649_v41, %v2593_v33  ;;  %v366_v54 = vadd.f32 %v365_v29, %v1983_v19  ;;  %v405_v38 = vmul.f32 %v4651_v42, %v2591_v61  ;;  %s4662_s20 = sld [smem:[#allocation141_spill]] }
  0xf9   :  { %v4653_v7 = vstv %s4636_s24  ;;  %v312_v11 = vadd.f32 %v311_v21, %v309_v53  ;;  %v329_v45 = vadd.f32 %v328_v25, %v326_v57  ;;  %v4655_v17 = vstv %s4641_s13  ;;  %s4661_s24 = sld [smem:[#allocation25_spill]]  ;;  %s4664_s13 = sld [smem:[#allocation118_spill]] }
  0xfa   :  { %v408_v50 = vmul.f32 %v4653_v7, %v2593_v33  ;;  %v386_v46 = vadd.f32 %v385_v13, %v1995_v23  ;;  %v425_v41 = vmul.f32 %v4655_v17, %v2591_v61  ;;  %v349_v15 = vadd.f32 %v348_v49, %v346_v58 }
  0xfb   :  { %v369_v1 = vadd.f32 %v368_v37, %v366_v54  ;;  %v406_v19 = vadd.f32 %v405_v38, %v2007_v27  ;;  %v4657_v29 = vstv %s4645_s25  ;;  %v4659_v22 = vstv %s4646_s11  ;;  %s4667_s25 = sld [smem:[#allocation39_spill]] }
  0xfc   :  { %v428_v42 = vmul.f32 %v4657_v29, %v2593_v33  ;;  %v314_v0 = vadd.f32 %v4659_v22, %v312_v11  ;;  %v4660_v7 = vstv %s4648_s28  ;;  %v389_v25 = vadd.f32 %v388_v10, %v386_v46  ;;  %s4674_s28 = sld [smem:[#allocation44_spill]] }
  0xfd   :  { %v331_v21 = vadd.f32 %v4660_v7, %v329_v45  ;;  %v426_v23 = vadd.f32 %v425_v41, %v2019_v31  ;;  %v4663_v13 = vstv %s4650_s5  ;;  %v4665_v49 = vstv %s4652_s3  ;;  %s4669_s5 = sld [smem:[#allocation41_spill]]  ;;  %s4670_s3 = sld [smem:[#allocation31_spill]] }
  0xfe   :  { %v351_v17 = vadd.f32 %v4663_v13, %v349_v15  ;;  %v371_v37 = vadd.f32 %v4665_v49, %v369_v1  ;;  %v409_v27 = vadd.f32 %v408_v50, %v406_v19  ;;  %v4666_v38 = vstv %s4654_s23  ;;  %s4672_s23 = sld [smem:[#allocation42_spill]] }
  0xff   :  { %v445_v53 = vmul.f32 %v4666_v38, %v2591_v61  ;;  %v2667_v22 = vmax.f32 %v314_v0, 0.0  ;;  %v2669_v57 = vmax.f32 %v331_v21, 0.0  ;;  %v4668_v58 = vstv %s4656_s2  ;;  %s4678_s2 = sld [smem:[#allocation45_spill]] }
 0x100   :  { %v391_v10 = vadd.f32 %v4668_v58, %v389_v25  ;;  %v429_v31 = vadd.f32 %v428_v42, %v426_v23  ;;  %v2673_v54 = vmax.f32 %v351_v17, 0.0  ;;  %v2675_v11 = vmax.f32 %v371_v37, 0.0 }
 0x101   :  { %v4671_v45 = vstv %s4658_s22  ;;  %v446_v46 = vadd.f32 %v445_v53, %v2031_v35  ;;  %v4673_v0 = vstv %s4661_s24  ;;  %v4675_v15 = vstv %s4662_s20  ;;  %s4680_s22 = sld [smem:[#allocation119_spill]]  ;;  %s4683_s20 = sld [smem:[#allocation48_spill]] }
 0x102   :  { %v411_v50 = vadd.f32 %v4671_v45, %v409_v27  ;;  %v319_v41 = vmul.f32 %v4673_v0, %v2667_v22  ;;  %v337_v1 = vmul.f32 %v4675_v15, %v2669_v57  ;;  %v2686_v19 = vmax.f32 %v391_v10, 0.0  ;;  %s4682_s24 = sld [smem:[#allocation47_spill]] }
 0x103   :  { %v4676_v29 = vstv %s4664_s13  ;;  %v4677_v7 = vstv %s2307_s9  ;;  %v4679_v25 = vstv %s4553_s27  ;;  %v4681_v13 = vstv %s4667_s25  ;;  %s4686_s13 = sld [smem:[#allocation50_spill]]  ;;  %s4688_s27 = sld [smem:[#allocation51_spill]] }
 0x104   :  { %v431_v42 = vadd.f32 %v4676_v29, %v429_v31  ;;  %v357_v21 = vmul.f32 %v4677_v7, %v2673_v54  ;;  %v377_v35 = vmul.f32 %v4679_v25, %v2675_v11  ;;  %v2696_v23 = vmax.f32 %v411_v50, 0.0  ;;  %s4691_s25 = sld [smem:[#allocation53_spill]] }
 0x105   :  { %v448_v17 = vmul.f32 %v4681_v13, %v2593_v33  ;;  %v338_v49 = vadd.f32 %v337_v1, %v319_v41  ;;  %v4684_v37 = vstv %s2323_s10  ;;  %v4685_v53 = vstv %s4669_s5  ;;  %s4693_s5 = sld [smem:[#allocation120_spill]] }
 0x106   :  { %v397_v27 = vmul.f32 %v4684_v37, %v2686_v19  ;;  %v2704_v38 = vmax.f32 %v431_v42, 0.0  ;;  %v465_v58 = vmul.f32 %v4685_v53, %v2591_v61  ;;  %v4687_v10 = vstv %s4670_s3  ;;  %s4696_s3 = sld [smem:[#allocation54_spill]] }
 0x107   :  { %v417_v31 = vmul.f32 %v4687_v10, %v2696_v23  ;;  %v449_v45 = vadd.f32 %v448_v17, %v446_v46  ;;  %v4689_v50 = vstv %s4672_s23  ;;  %v4690_v15 = vstv %s4674_s28  ;;  %s4698_s28 = sld [smem:[#allocation121_spill]] }
 0x108   :  { %v468_v0 = vmul.f32 %v4689_v50, %v2593_v33  ;;  %v485_v41 = vmul.f32 %v4690_v15, %v2591_v61  ;;  %v358_v1 = vadd.f32 %v357_v21, %v338_v49  ;;  %v4692_v29 = vstv %s4558_s29  ;;  %s4702_s29 = sld [smem:[#allocation56_spill]] }
 0x109   :  { %v437_v42 = vmul.f32 %v4692_v29, %v2704_v38  ;;  %v466_v7 = vadd.f32 %v465_v58, %v2043_v39  ;;  %v4694_v25 = vstv %s4678_s2  ;;  %v4695_v37 = vstv %s4680_s22  ;;  %s4703_s22 = sld [smem:[#allocation122_spill]] }
 0x10a   :  { %v488_v13 = vmul.f32 %v4694_v25, %v2593_v33  ;;  %v451_v46 = vadd.f32 %v4695_v37, %v449_v45  ;;  %v486_v17 = vadd.f32 %v485_v41, %v2055_v43  ;;  %v4697_v53 = vstv %s4682_s24  ;;  %s4713_s24 = sld [smem:[#allocation59_spill]]  ;;  %s4726_s2 = sld [smem:[#allocation146_spill]] }
 0x10b   :  { %v505_v10 = vmul.f32 %v4697_v53, %v2591_v61  ;;  %v4699_v21 = vstv %s4683_s20  ;;  %v378_v50 = vadd.f32 %v377_v35, %v358_v1  ;;  %v469_v15 = vadd.f32 %v468_v0, %v466_v7  ;;  %s4705_s20 = sld [smem:[#allocation57_spill]] }
 0x10c   :  { %v508_v49 = vmul.f32 %v4699_v21, %v2593_v33  ;;  %v4700_v39 = vstv %s4686_s13  ;;  %v4701_v29 = vstv %s4688_s27  ;;  %v2740_v45 = vmax.f32 %v451_v46, 0.0  ;;  %s4708_s27 = sld [smem:[#allocation123_spill]]  ;;  %s4711_s13 = sld [smem:[#allocation144_spill]] }
 0x10d   :  { %v525_v58 = vmul.f32 %v4700_v39, %v2591_v61  ;;  %v528_v25 = vmul.f32 %v4701_v29, %v2593_v33  ;;  %v489_v37 = vadd.f32 %v488_v13, %v486_v17  ;;  %v506_v43 = vadd.f32 %v505_v10, %v2067_v47 }
 0x10e   :  { %v4704_v41 = vstv %s4691_s25  ;;  %v398_v21 = vadd.f32 %v397_v27, %v378_v50  ;;  %v4706_v35 = vstv %s4693_s5  ;;  %v4707_v7 = vstv %s4696_s3  ;;  %s4712_s25 = sld [smem:[#allocation124_spill]]  ;;  %s4722_s5 = sld [smem:[#allocation145_spill]] }
 0x10f   :  { %v545_v53 = vmul.f32 %v4704_v41, %v2591_v61  ;;  %v471_v0 = vadd.f32 %v4706_v35, %v469_v15  ;;  %v526_v1 = vadd.f32 %v525_v58, %v2079_v51  ;;  %v548_v39 = vmul.f32 %v4707_v7, %v2593_v33  ;;  %s4715_s3 = sld [smem:[#allocation60_spill]] }
 0x110   :  { %v4709_v46 = vstv %s2341_s26  ;;  %v4710_v17 = vstv %s4698_s28  ;;  %v509_v10 = vadd.f32 %v508_v49, %v506_v43  ;;  %v418_v27 = vadd.f32 %v417_v31, %v398_v21  ;;  %s4717_s26 = sld [smem:[#allocation37_spill]]  ;;  %s4719_s28 = sld [smem:[#allocation62_spill]] }
 0x111   :  { %v457_v13 = vmul.f32 %v4709_v46, %v2740_v45  ;;  %v491_v47 = vadd.f32 %v4710_v17, %v489_v37  ;;  %v546_v29 = vadd.f32 %v545_v53, %v2091_v55  ;;  %v2758_v50 = vmax.f32 %v471_v0, 0.0 }
 0x112   :  { %v529_v15 = vadd.f32 %v528_v25, %v526_v1  ;;  %v4714_v51 = vstv %s4702_s29  ;;  %v4716_v35 = vstv %s4703_s22  ;;  %v4718_v49 = vstv %s4705_s20  ;;  %s4723_s29 = sld [smem:[#allocation125_spill]]  ;;  %s4725_s22 = sld [smem:[#allocation63_spill]] }
 0x113   :  { %v565_v58 = vmul.f32 %v4714_v51, %v2591_v61  ;;  %v2763_v41 = vmax.f32 %v491_v47, 0.0  ;;  %v511_v7 = vadd.f32 %v4716_v35, %v509_v10  ;;  %v549_v46 = vadd.f32 %v548_v39, %v546_v29  ;;  %s4729_s20 = sld [smem:[#allocation65_spill]] }
 0x114   :  { %v568_v37 = vmul.f32 %v4718_v49, %v2593_v33  ;;  %v438_v55 = vadd.f32 %v437_v42, %v418_v27  ;;  %v4720_v31 = vstv %s2355_s14  ;;  %v4721_v53 = vstv %s4708_s27  ;;  %s4731_s27 = sld [smem:[#allocation66_spill]]  ;;  %s4734_s14 = sld [smem:[#allocation126_spill]] }
 0x115   :  { %v477_v43 = vmul.f32 %v4720_v31, %v2758_v50  ;;  %v531_v25 = vadd.f32 %v4721_v53, %v529_v15  ;;  %v566_v21 = vadd.f32 %v565_v58, %v2103_v59  ;;  %v4724_v0 = vstv %s4711_s13  ;;  %s4733_s13 = sld [smem:[#allocation68_spill]] }
 0x116   :  { %v497_v1 = vmul.f32 %v4724_v0, %v2763_v41  ;;  %v2779_v39 = vmax.f32 %v511_v7, 0.0  ;;  %v4727_v17 = vstv %s4712_s25  ;;  %v4728_v42 = vstv %s4713_s24  ;;  %s4736_s25 = sld [smem:[#allocation69_spill]]  ;;  %s4743_s24 = sld [smem:[#allocation127_spill]] }
 0x117   :  { %v551_v47 = vadd.f32 %v4727_v17, %v549_v46  ;;  %v585_v10 = vmul.f32 %v4728_v42, %v2591_v61  ;;  %v458_v29 = vadd.f32 %v457_v13, %v438_v55  ;;  %v2786_v27 = vmax.f32 %v531_v25, 0.0 }
 0x118   :  { %v569_v15 = vadd.f32 %v568_v37, %v566_v21  ;;  %v4730_v51 = vstv %s4715_s3  ;;  %v4732_v58 = vstv %s4717_s26  ;;  %v4735_v49 = vstv %s4719_s28  ;;  %s4739_s3 = sld [smem:[#allocation147_spill]]  ;;  %s4742_s26 = sld [smem:[#allocation71_spill]] }
 0x119   :  { %v588_v59 = vmul.f32 %v4730_v51, %v2593_v33  ;;  %v517_v35 = vmul.f32 %v4732_v58, %v2779_v39  ;;  %v2794_v7 = vmax.f32 %v551_v47, 0.0  ;;  %v586_v46 = vadd.f32 %v585_v10, %v2115_v63  ;;  %s4745_s28 = sld [smem:[#allocation72_spill]] }
 0x11a   :  { %v605_v31 = vmul.f32 %v4735_v49, %v2591_v61  ;;  %v478_v13 = vadd.f32 %v477_v43, %v458_v29  ;;  %v4737_v37 = vstv %s4722_s5  ;;  %v4738_v53 = vstv %s4723_s29  ;;  %s4750_s29 = sld [smem:[#allocation40_spill]]  ;;  %s4771_s5 = sld [smem:[#allocation149_spill]] }
 0x11b   :  { %v537_v55 = vmul.f32 %v4737_v37, %v2786_v27  ;;  %v571_v25 = vadd.f32 %v4738_v53, %v569_v15  ;;  %v4740_v21 = vstv %s4725_s22  ;;  %v4741_v17 = vstv %s4726_s2  ;;  %s4749_s2 = sld [smem:[#allocation74_spill]]  ;;  %s4753_s22 = sld [smem:[#allocation75_spill]] }
 0x11c   :  { %v608_v0 = vmul.f32 %v4740_v21, %v2593_v33  ;;  %v557_v47 = vmul.f32 %v4741_v17, %v2794_v7  ;;  %v589_v42 = vadd.f32 %v588_v59, %v586_v46  ;;  %v606_v63 = vadd.f32 %v605_v31, %v2127_v56 }
 0x11d   :  { %v4744_v10 = vstv %s4729_s20  ;;  %v498_v29 = vadd.f32 %v497_v1, %v478_v13  ;;  %v2815_v51 = vmax.f32 %v571_v25, 0.0  ;;  %v4746_v15 = vstv %s4731_s27  ;;  %s4752_s20 = sld [smem:[#allocation128_spill]]  ;;  %s4755_s27 = sld [smem:[#allocation129_spill]] }
 0x11e   :  { %v625_v43 = vmul.f32 %v4744_v10, %v2591_v61  ;;  %v628_v58 = vmul.f32 %v4746_v15, %v2593_v33  ;;  %v4747_v49 = vstv %s4733_s13  ;;  %v4748_v53 = vstv %s4734_s14  ;;  %s4758_s14 = sld [smem:[#allocation148_spill]]  ;;  %s4761_s13 = sld [smem:[#allocation78_spill]] }
 0x11f   :  { %v645_v37 = vmul.f32 %v4747_v49, %v2591_v61  ;;  %v591_v21 = vadd.f32 %v4748_v53, %v589_v42  ;;  %v609_v59 = vadd.f32 %v608_v0, %v606_v63  ;;  %v4751_v46 = vstv %s4736_s25  ;;  %s4760_s25 = sld [smem:[#allocation77_spill]] }
 0x120   :  { %v626_v56 = vadd.f32 %v625_v43, %v2139_v52  ;;  %v648_v31 = vmul.f32 %v4751_v46, %v2593_v33  ;;  %v518_v1 = vadd.f32 %v517_v35, %v498_v29  ;;  %v4754_v13 = vstv %s4739_s3  ;;  %s4763_s3 = sld [smem:[#allocation130_spill]] }
 0x121   :  { %v577_v25 = vmul.f32 %v4754_v13, %v2815_v51  ;;  %v646_v17 = vadd.f32 %v645_v37, %v2151_v48  ;;  %v4756_v10 = vstv %s4742_s26  ;;  %v2836_v42 = vmax.f32 %v591_v21, 0.0  ;;  %s4765_s26 = sld [smem:[#allocation43_spill]] }
 0x122   :  { %v665_v15 = vmul.f32 %v4756_v10, %v2591_v61  ;;  %v4757_v0 = vstv %s4743_s24  ;;  %v629_v63 = vadd.f32 %v628_v58, %v626_v56  ;;  %v4759_v43 = vstv %s4745_s28  ;;  %s4768_s28 = sld [smem:[#allocation80_spill]]  ;;  %s4769_s24 = sld [smem:[#allocation81_spill]] }
 0x123   :  { %v611_v52 = vadd.f32 %v4757_v0, %v609_v59  ;;  %v668_v49 = vmul.f32 %v4759_v43, %v2593_v33  ;;  %v538_v35 = vadd.f32 %v537_v55, %v518_v1  ;;  %v649_v29 = vadd.f32 %v648_v31, %v646_v17 }
 0x124   :  { %v666_v53 = vadd.f32 %v665_v15, %v2163_v44  ;;  %v4762_v48 = vstv %s4749_s2  ;;  %v4764_v21 = vstv %s4750_s29  ;;  %v4766_v58 = vstv %s4752_s20  ;;  %s4773_s2 = sld [smem:[#allocation131_spill]]  ;;  %s4777_s29 = sld [smem:[#allocation84_spill]] }
 0x125   :  { %v685_v37 = vmul.f32 %v4762_v48, %v2591_v61  ;;  %v597_v46 = vmul.f32 %v4764_v21, %v2836_v42  ;;  %v2850_v13 = vmax.f32 %v611_v52, 0.0  ;;  %v631_v59 = vadd.f32 %v4766_v58, %v629_v63  ;;  %s4782_s20 = sld [smem:[#allocation132_spill]] }
 0x126   :  { %v4767_v56 = vstv %s4753_s22  ;;  %v558_v55 = vadd.f32 %v557_v47, %v538_v35  ;;  %v4770_v31 = vstv %s4755_s27  ;;  %v669_v1 = vadd.f32 %v668_v49, %v666_v53  ;;  %s4776_s22 = sld [smem:[#allocation83_spill]]  ;;  %s4779_s27 = sld [smem:[#allocation46_spill]] }
 0x127   :  { %v688_v10 = vmul.f32 %v4767_v56, %v2593_v33  ;;  %v651_v44 = vadd.f32 %v4770_v31, %v649_v29  ;;  %v686_v17 = vadd.f32 %v685_v37, %v2175_v40  ;;  %v4772_v15 = vstv %s4758_s14  ;;  %s4781_s14 = sld [smem:[#allocation86_spill]] }
 0x128   :  { %v617_v0 = vmul.f32 %v4772_v15, %v2850_v13  ;;  %v2863_v52 = vmax.f32 %v631_v59, 0.0  ;;  %v4774_v63 = vstv %s4760_s25  ;;  %v4775_v48 = vstv %s4761_s13  ;;  %s4785_s13 = sld [smem:[#allocation87_spill]] }
 0x129   :  { %v705_v43 = vmul.f32 %v4774_v63, %v2591_v61  ;;  %v708_v21 = vmul.f32 %v4775_v48, %v2593_v33  ;;  %v578_v47 = vadd.f32 %v577_v25, %v558_v55  ;;  %v2871_v35 = vmax.f32 %v651_v44, 0.0 }
 0x12a   :  { %v4778_v49 = vstv %s4763_s3  ;;  %v689_v29 = vadd.f32 %v688_v10, %v686_v17  ;;  %v4780_v53 = vstv %s4765_s26  ;;  %v4783_v59 = vstv %s4768_s28  ;;  %s4787_s3 = sld [smem:[#allocation151_spill]]  ;;  %s4789_s26 = sld [smem:[#allocation89_spill]] }
 0x12b   :  { %v671_v40 = vadd.f32 %v4778_v49, %v669_v1  ;;  %v637_v37 = vmul.f32 %v4780_v53, %v2863_v52  ;;  %v706_v58 = vadd.f32 %v705_v43, %v2187_v36  ;;  %v725_v56 = vmul.f32 %v4783_v59, %v2591_v61  ;;  %s4791_s28 = sld [smem:[#allocation133_spill]] }
 0x12c   :  { %v4784_v31 = vstv %s4769_s24  ;;  %v598_v25 = vadd.f32 %v597_v46, %v578_v47  ;;  %v4786_v55 = vstv %s4771_s5  ;;  %v4788_v1 = vstv %s4773_s2  ;;  %s4793_s24 = sld [smem:[#allocation90_spill]]  ;;  %s4797_s2 = sld [smem:[#allocation92_spill]] }
 0x12d   :  { %v728_v15 = vmul.f32 %v4784_v31, %v2593_v33  ;;  %v657_v44 = vmul.f32 %v4786_v55, %v2871_v35  ;;  %v2888_v10 = vmax.f32 %v671_v40, 0.0  ;;  %v691_v17 = vadd.f32 %v4788_v1, %v689_v29  ;;  %s4798_s5 = sld [smem:[#allocation49_spill]] }
 0x12e   :  { %v709_v63 = vadd.f32 %v708_v21, %v706_v58  ;;  %v726_v36 = vadd.f32 %v725_v56, %v2199_v32  ;;  %v4790_v43 = vstv %s4776_s22  ;;  %v4792_v49 = vstv %s4777_s29  ;;  %s4800_s29 = sld [smem:[#allocation134_spill]]  ;;  %s4801_s22 = sld [smem:[#allocation93_spill]] }
 0x12f   :  { %v745_v48 = vmul.f32 %v4790_v43, %v2591_v61  ;;  %v748_v53 = vmul.f32 %v4792_v49, %v2593_v33  ;;  %v618_v46 = vadd.f32 %v617_v0, %v598_v25  ;;  %v4794_v47 = vstv %s4779_s27  ;;  %s4803_s27 = sld [smem:[#allocation135_spill]] }
 0x130   :  { %v677_v59 = vmul.f32 %v4794_v47, %v2888_v10  ;;  %v2902_v40 = vmax.f32 %v691_v17, 0.0  ;;  %v4795_v29 = vstv %s4781_s14  ;;  %v4796_v21 = vstv %s4782_s20  ;;  %s4808_s20 = sld [smem:[#allocation96_spill]] }
 0x131   :  { %v765_v31 = vmul.f32 %v4795_v29, %v2591_v61  ;;  %v711_v32 = vadd.f32 %v4796_v21, %v709_v63  ;;  %v729_v58 = vadd.f32 %v728_v15, %v726_v36  ;;  %v746_v56 = vadd.f32 %v745_v48, %v2211_v28 }
 0x132   :  { %v4799_v55 = vstv %s4785_s13  ;;  %v638_v0 = vadd.f32 %v637_v37, %v618_v46  ;;  %v4802_v25 = vstv %s4787_s3  ;;  %v4804_v49 = vstv %s4789_s26  ;;  %s4807_s13 = sld [smem:[#allocation95_spill]]  ;;  %s4810_s3 = sld [smem:[#allocation136_spill]] }
 0x133   :  { %v768_v1 = vmul.f32 %v4799_v55, %v2593_v33  ;;  %v697_v17 = vmul.f32 %v4802_v25, %v2902_v40  ;;  %v766_v43 = vadd.f32 %v765_v31, %v2223_v24  ;;  %v785_v47 = vmul.f32 %v4804_v49, %v2591_v61  ;;  %s4812_s26 = sld [smem:[#allocation52_spill]] }
 0x134   :  { %v2920_v63 = vmax.f32 %v711_v32, 0.0  ;;  %v4805_v15 = vstv %s4791_s28  ;;  %v749_v36 = vadd.f32 %v748_v53, %v746_v56  ;;  %v4806_v48 = vstv %s4793_s24  ;;  %s4816_s24 = sld [smem:[#allocation98_spill]]  ;;  %s4817_s28 = sld [smem:[#allocation99_spill]] }
 0x135   :  { %v731_v28 = vadd.f32 %v4805_v15, %v729_v58  ;;  %v788_v29 = vmul.f32 %v4806_v48, %v2593_v33  ;;  %v658_v37 = vadd.f32 %v657_v44, %v638_v0  ;;  %v769_v46 = vadd.f32 %v768_v1, %v766_v43 }
 0x136   :  { %v786_v21 = vadd.f32 %v785_v47, %v2235_v20  ;;  %v4809_v24 = vstv %s4797_s2  ;;  %v4811_v32 = vstv %s4798_s5  ;;  %v4814_v53 = vstv %s4800_s29  ;;  %s4820_s2 = sld [smem:[#allocation137_spill]]  ;;  %s4825_s5 = sld [smem:[#allocation102_spill]] }
 0x137   :  { %v805_v31 = vmul.f32 %v4809_v24, %v2591_v61  ;;  %v717_v55 = vmul.f32 %v4811_v32, %v2920_v63  ;;  %v2934_v25 = vmax.f32 %v731_v28, 0.0  ;;  %v751_v58 = vadd.f32 %v4814_v53, %v749_v36 }
 0x138   :  { %v4815_v56 = vstv %s4801_s22  ;;  %v678_v44 = vadd.f32 %v677_v59, %v658_v37  ;;  %v4818_v1 = vstv %s4803_s27  ;;  %v789_v0 = vadd.f32 %v788_v29, %v786_v21  ;;  %s4824_s22 = sld [smem:[#allocation101_spill]]  ;;  %s4830_s27 = sld [smem:[#allocation138_spill]] }
 0x139   :  { %4813 = vst [vmem:[#allocation180_spill] sm:$0xff] %v2934_v25  ;;  %v808_v49 = vmul.f32 %v4815_v56, %v2593_v33  ;;  %v771_v20 = vadd.f32 %v4818_v1, %v769_v46  ;;  %v806_v43 = vadd.f32 %v805_v31, %v2247_v16  ;;  %v4819_v47 = vstv %s4576_s15  ;;  %s4829_s15 = sld [smem:[#allocation104_spill]] }
 0x13a   :  { %v737_v15 = vmul.f32 %v4819_v47, %v2934_v25  ;;  %v2947_v28 = vmax.f32 %v751_v58, 0.0  ;;  %v4822_v36 = vstv %s4807_s13  ;;  %v4823_v24 = vstv %s4808_s20  ;;  %s4833_s20 = sld [smem:[#allocation105_spill]] }
 0x13b   :  { %v825_v48 = vmul.f32 %v4822_v36, %v2591_v61  ;;  %v828_v32 = vmul.f32 %v4823_v24, %v2593_v33  ;;  %v698_v59 = vadd.f32 %v697_v17, %v678_v44  ;;  %v2955_v37 = vmax.f32 %v771_v20, 0.0 }
 0x13c   :  { %4821 = vst [vmem:[#allocation181_spill] sm:$0xff] %v2947_v28  ;;  %v4827_v29 = vstv %s4810_s3  ;;  %v809_v46 = vadd.f32 %v808_v49, %v806_v43  ;;  %v4828_v21 = vstv %s4812_s26  ;;  %v4831_v58 = vstv %s4816_s24  ;;  %s4837_s3 = sld [smem:[#allocation107_spill]]  ;;  %s4839_s24 = sld [smem:[#allocation16_spill]] }
 0x13d   :  { %4826 = vst [vmem:[#allocation182_spill] sm:$0xff] %v2955_v37  ;;  %v791_v16 = vadd.f32 %v4827_v29, %v789_v0  ;;  %v757_v31 = vmul.f32 %v4828_v21, %v2947_v28  ;;  %v826_v53 = vadd.f32 %v825_v48, %v2258_v62  ;;  %v845_v56 = vmul.f32 %v4831_v58, %v2591_v61 }
 0x13e   :  { %v4832_v1 = vstv %s4817_s28  ;;  %v718_v17 = vadd.f32 %v717_v55, %v698_v59  ;;  %v4834_v44 = vstv %s2433_s30  ;;  %v4836_v0 = vstv %s4820_s2  ;;  %s4841_s28 = sld [smem:[#allocation108_spill]]  ;;  %s4846_s2 = sld [smem:[#allocation110_spill]] }
 0x13f   :  { %v848_v47 = vmul.f32 %v4832_v1, %v2593_v33  ;;  %v777_v20 = vmul.f32 %v4834_v44, %v2955_v37  ;;  %v2972_v49 = vmax.f32 %v791_v16, 0.0  ;;  %v811_v43 = vadd.f32 %v4836_v0, %v809_v46 }
 0x140   :  { %v829_v36 = vadd.f32 %v828_v32, %v826_v53  ;;  %v846_v62 = vadd.f32 %v845_v56, %v2270_v14  ;;  %v4838_v48 = vstv %s4824_s22  ;;  %v4840_v29 = vstv %s4825_s5  ;;  %s4850_s5 = sld [smem:[#allocation111_spill]] }
 0x141   :  { %4835 = vst [vmem:[#allocation183_spill] sm:$0xff] %v2972_v49  ;;  %v865_v24 = vmul.f32 %v4838_v48, %v2591_v61  ;;  %v868_v21 = vmul.f32 %v4840_v29, %v2593_v33  ;;  %v738_v55 = vadd.f32 %v737_v15, %v718_v17  ;;  %v4842_v59 = vstv %s2443_s12  ;;  %s4849_s12 = sld [smem:[#allocation19_spill]] }
 0x142   :  { %v797_v58 = vmul.f32 %v4842_v59, %v2972_v49  ;;  %v2986_v16 = vmax.f32 %v811_v43, 0.0  ;;  %v4844_v46 = vstv %s4829_s15  ;;  %v4845_v32 = vstv %s4830_s27  ;;  %s4852_s27 = sld [smem:[#allocation139_spill]] }
 0x143   :  { %v885_v1 = vmul.f32 %v4844_v46, %v2591_v61  ;;  %v831_v53 = vadd.f32 %v4845_v32, %v829_v36  ;;  %v849_v14 = vadd.f32 %v848_v47, %v846_v62  ;;  %v866_v56 = vadd.f32 %v865_v24, %v2298_v2  ;;  %v3013_v46 = vpop.permute.xlu1 %957 }
 0x144   :  { %4843 = vst [vmem:[#allocation184_spill] sm:$0xff] %v2986_v16  ;;  %v4847_v44 = vstv %s4833_s20  ;;  %v758_v48 = vadd.f32 %v757_v31, %v738_v55  ;;  %v4848_v15 = vstv %s4578_s0  ;;  %v4851_v29 = vstv %s4837_s3  ;;  %s4856_s20 = sld [smem:[#allocation159_spill]]  ;;  %v3011_v55 = vpop.permute.xlu0 %955  ;;  %s4858_s3 = sld [smem:[#allocation22_spill]] }
 0x145   :  { %v888_v0 = vmul.f32 %v4847_v44, %v2593_v33  ;;  %v817_v17 = vmul.f32 %v4848_v15, %v2986_v16  ;;  %v886_v43 = vadd.f32 %v885_v1, %v2314_v4  ;;  %v905_v59 = vmul.f32 %v4851_v29, %v2591_v61 }
 0x146   :  { %v3004_v47 = vmax.f32 %v831_v53, 0.0  ;;  %v4854_v36 = vstv %s4839_s24  ;;  %v869_v62 = vadd.f32 %v868_v21, %v866_v56  ;;  %v4855_v24 = vstv %s4841_s28 }
 0x147   :  { %v851_v2 = vadd.f32 %v4854_v36, %v849_v14  ;;  %v908_v31 = vmul.f32 %v4855_v24, %v2593_v33  ;;  %v778_v4 = vadd.f32 %v777_v20, %v758_v48  ;;  %v889_v1 = vadd.f32 %v888_v0, %v886_v43 }
 0x148   :  { %4853 = vst [vmem:[#allocation185_spill] sm:$0xff] %v3004_v47  ;;  %v906_v32 = vadd.f32 %v905_v59, %v2330_v5  ;;  %v4857_v53 = vstv %s4846_s2  ;;  %v4859_v21 = vstv %s4581_s21  ;;  %v4861_v15 = vstv %s4849_s12  ;;  %s4865_s2 = sld [smem:[#allocation140_spill]] }
 0x149   :  { %v925_v44 = vmul.f32 %v4857_v53, %v2591_v61  ;;  %v837_v14 = vmul.f32 %v4859_v21, %v3004_v47  ;;  %v3022_v56 = vmax.f32 %v851_v2, 0.0  ;;  %v871_v29 = vadd.f32 %v4861_v15, %v869_v62 }
 0x14a   :  { %v4862_v36 = vstv %s4850_s5  ;;  %v798_v20 = vadd.f32 %v797_v58, %v778_v4  ;;  %v4863_v0 = vstv %s4852_s27  ;;  %v909_v48 = vadd.f32 %v908_v31, %v906_v32  ;;  %s4871_s5 = sld [smem:[#allocation161_spill]] }
 0x14b   :  { %4860 = vst [vmem:[#allocation186_spill] sm:$0xff] %v3022_v56  ;;  %v928_v24 = vmul.f32 %v4862_v36, %v2593_v33  ;;  %v891_v5 = vadd.f32 %v4863_v0, %v889_v1  ;;  %v926_v61 = vadd.f32 %v925_v44, %v2346_v9  ;;  %v4864_v43 = vstv %s4856_s20 }
 0x14c   :  { %v857_v59 = vmul.f32 %v4864_v43, %v3022_v56  ;;  %v3035_v2 = vmax.f32 %v871_v29, 0.0  ;;  %v4867_v53 = vstv %s4603_s19  ;;  %v4868_v21 = vstv %s4606_s17  ;;  %s4876_s17 = sld [smem:[#allocation27_spill]]  ;;  %s4879_s19 = sld [smem:[#allocation64_spill]] }
 0x14d   :  { %v960_v62 = vmul.f32 %v3011_v55, %v4867_v53  ;;  %v962_v33 = vmul.f32 %v3013_v46, %v4868_v21  ;;  %v818_v58 = vadd.f32 %v817_v17, %v798_v20  ;;  %v3043_v4 = vmax.f32 %v891_v5, 0.0 }
 0x14e   :  { %4866 = vst [vmem:[#allocation187_spill] sm:$0xff] %v3035_v2  ;;  %v4870_v31 = vstv %s4858_s3  ;;  %v929_v9 = vadd.f32 %v928_v24, %v926_v61  ;;  %v4872_v32 = vstv %s4583_s18  ;;  %v4873_v29 = vstv %s4609_s16  ;;  %s4880_s18 = sld [smem:[#allocation29_spill]]  ;;  %s4882_s16 = sld [smem:[#allocation113_spill]] }
 0x14f   :  { %4869 = vst [vmem:[#allocation188_spill] sm:$0xff] %v3043_v4  ;;  %v911_v1 = vadd.f32 %v4870_v31, %v909_v48  ;;  %v877_v44 = vmul.f32 %v4872_v32, %v3035_v2  ;;  %v961_v15 = vadd.f32 %v960_v62, %v2284_v26  ;;  %v970_v36 = vmul.f32 %v3011_v55, %v4873_v29 }
 0x150   :  { %v4874_v0 = vstv %s4612_s6  ;;  %v838_v20 = vadd.f32 %v837_v14, %v818_v58  ;;  %v4875_v5 = vstv %s2465_s7  ;;  %v4878_v24 = vstv %s4865_s2  ;;  %s4884_s6 = sld [smem:[#allocation30_spill]]  ;;  %s4889_s7 = sld [smem:[#allocation32_spill]] }
 0x151   :  { %v972_v17 = vmul.f32 %v3013_v46, %v4874_v0  ;;  %v897_v48 = vmul.f32 %v4875_v5, %v3043_v4  ;;  %v3060_v43 = vmax.f32 %v911_v1, 0.0  ;;  %v931_v61 = vadd.f32 %v4878_v24, %v929_v9  ;;  %s4893_s2 = sld [smem:[#allocation33_spill]] }
 0x152   :  { %v963_v26 = vadd.f32 %v962_v33, %v961_v15  ;;  %v971_v53 = vadd.f32 %v970_v36, %v2289_v60  ;;  %v4881_v62 = vstv %s4615_s8  ;;  %v4883_v14 = vstv %s4618_s4  ;;  %s4890_s8 = sld [smem:[#allocation25_spill]]  ;;  %s4892_s4 = sld [smem:[#allocation114_spill]] }
 0x153   :  { %4877 = vst [vmem:[#allocation189_spill] sm:$0xff] %v3060_v43  ;;  %v983_v21 = vmul.f32 %v3011_v55, %v4881_v62  ;;  %v985_v58 = vmul.f32 %v3013_v46, %v4883_v14  ;;  %v858_v31 = vadd.f32 %v857_v59, %v838_v20  ;;  %v4885_v1 = vstv %s4871_s5  ;;  %s4901_s5 = sld [smem:[#allocation36_spill]] }
 0x154   :  { %v917_v32 = vmul.f32 %v4885_v1, %v3060_v43  ;;  %v3075_v29 = vmax.f32 %v931_v61, 0.0  ;;  %v4887_v9 = vstv %s4621_s1  ;;  %v4888_v33 = vstv %s4646_s11  ;;  %s4895_s1 = sld [smem:[#allocation115_spill]]  ;;  %s4898_s11 = sld [smem:[#allocation141_spill]] }
 0x155   :  { %v996_v0 = vmul.f32 %v3011_v55, %v4887_v9  ;;  %v964_v60 = vadd.f32 %v963_v26, %v4888_v33  ;;  %v973_v15 = vadd.f32 %v972_v17, %v971_v53  ;;  %v984_v36 = vadd.f32 %v983_v21, %v2305_v3 }
 0x156   :  { %4886 = vst [vmem:[#allocation190_spill] sm:$0xff] %v3075_v29  ;;  %v4891_v5 = vstv %s4876_s17  ;;  %v878_v59 = vadd.f32 %v877_v44, %v858_v31  ;;  %v4894_v20 = vstv %s4879_s19  ;;  %v4896_v14 = vstv %s4880_s18  ;;  %s4900_s17 = sld [smem:[#allocation35_spill]]  ;;  %s4903_s18 = sld [smem:[#allocation116_spill]] }
 0x157   :  { %v998_v24 = vmul.f32 %v3013_v46, %v4891_v5  ;;  %v937_v61 = vmul.f32 %v4894_v20, %v3075_v29  ;;  %v997_v62 = vadd.f32 %v996_v0, %v2321_v8  ;;  %v1009_v1 = vmul.f32 %v3011_v55, %v4896_v14 }
 0x158   :  { %v3093_v26 = vmax.f32 %v964_v60, 0.0  ;;  %v4897_v17 = vstv %s4882_s16  ;;  %v986_v53 = vadd.f32 %v985_v58, %v984_v36  ;;  %v4899_v21 = vstv %s4884_s6  ;;  %s4907_s16 = sld [smem:[#allocation38_spill]]  ;;  %s4909_s6 = sld [smem:[#allocation28_spill]] }
 0x159   :  { %v974_v3 = vadd.f32 %v973_v15, %v4897_v17  ;;  %v1011_v9 = vmul.f32 %v3013_v46, %v4899_v21  ;;  %v898_v44 = vadd.f32 %v897_v48, %v878_v59  ;;  %v999_v31 = vadd.f32 %v998_v24, %v997_v62 }
 0x15a   :  { %v1010_v33 = vadd.f32 %v1009_v1, %v2337_v30  ;;  %v4902_v5 = vstv %s4889_s7  ;;  %v4904_v0 = vstv %s4890_s8  ;;  %v4905_v15 = vstv %s4892_s4  ;;  %s4911_s7 = sld [smem:[#allocation117_spill]]  ;;  %s4917_s8 = sld [smem:[#allocation41_spill]] }
 0x15b   :  { %v1022_v8 = vmul.f32 %v3011_v55, %v4902_v5  ;;  %v967_v60 = vmul.f32 %v3093_v26, %v4904_v0  ;;  %v3107_v20 = vmax.f32 %v974_v3, 0.0  ;;  %v987_v58 = vadd.f32 %v986_v53, %v4905_v15  ;;  %s4921_s4 = sld [smem:[#allocation44_spill]] }
 0x15c   :  { %v4906_v36 = vstv %s4893_s2  ;;  %v918_v48 = vadd.f32 %v917_v32, %v898_v44  ;;  %v4908_v24 = vstv %s4895_s1  ;;  %v1012_v30 = vadd.f32 %v1011_v9, %v1010_v33  ;;  %s4915_s2 = sld [smem:[#allocation39_spill]]  ;;  %s1730_s1 = smov 1  }
 0x15d   :  { %v1024_v14 = vmul.f32 %v3013_v46, %v4906_v36  ;;  %v1000_v59 = vadd.f32 %v999_v31, %v4908_v24  ;;  %v1023_v62 = vadd.f32 %v1022_v8, %v2353_v34  ;;  %v4910_v1 = vstv %s4898_s11  ;;  %s4924_s11 = sld [smem:[#allocation45_spill]] }
 0x15e   :  { %v978_v17 = vmul.f32 %v3107_v20, %v4910_v1  ;;  %v3120_v3 = vmax.f32 %v987_v58, 0.0  ;;  %v4912_v21 = vstv %s4900_s17  ;;  %v4913_v5 = vstv %s4901_s5  ;;  %s4919_s5 = sld [smem:[#allocation118_spill]]  ;;  %s4925_s17 = sld [smem:[#allocation47_spill]] }
 0x15f   :  { %v1035_v53 = vmul.f32 %v3011_v55, %v4912_v21  ;;  %v1037_v0 = vmul.f32 %v3013_v46, %v4913_v5  ;;  %v938_v15 = vadd.f32 %v937_v61, %v918_v48  ;;  %v3128_v32 = vmax.f32 %v1000_v59, 0.0 }
 0x160   :  { %v4914_v44 = vstv %s4903_s18  ;;  %v1025_v34 = vadd.f32 %v1024_v14, %v1023_v62  ;;  %v979_v31 = vadd.f32 %v978_v17, %v967_v60  ;;  %v4916_v33 = vstv %s2307_s9  ;;  %s4923_s9 = sld [smem:[#allocation31_spill]] }
 0x161   :  { %v1013_v9 = vadd.f32 %v1012_v30, %v4914_v44  ;;  %v991_v8 = vmul.f32 %v3120_v3, %v4916_v33  ;;  %v1036_v58 = vadd.f32 %v1035_v53, %v2373_v18  ;;  %v4918_v36 = vstv %s4907_s16  ;;  %s4927_s18 = sld [smem:[#allocation119_spill]]  ;;  %s4931_s16 = sld [smem:[#allocation48_spill]] }
 0x162   :  { %v1048_v24 = vmul.f32 %v3011_v55, %v4918_v36  ;;  %v945_v61 = vsel %vm74_vm0, %v938_v15, 0.0  ;;  %v4920_v48 = vstv %s4909_s6  ;;  %v4922_v60 = vstv %s4911_s7  ;;  %s4932_s6 = sld [smem:[#allocation50_spill]]  ;;  %s4934_s7 = sld [smem:[#allocation142_spill]] }
 0x163   :  { %v1004_v59 = vmul.f32 %v3128_v32, %v4920_v48  ;;  %v3144_v14 = vmax.f32 %v1013_v9, 0.0  ;;  %v1026_v30 = vadd.f32 %v1025_v34, %v4922_v60  ;;  %946 = vrot.lane.b32.xlu0 %v945_v61, %s1730_s1  ;;  %v992_v18 = vadd.f32 %v991_v8, %v979_v31  ;;  %v4937_v48 = vld [vmem:[#allocation150_spill] sm:$0xff] }
 0x164   :  { %v1038_v62 = vadd.f32 %v1037_v0, %v1036_v58  ;;  %v1049_v1 = vadd.f32 %v1048_v24, %v2385_v12  ;;  %v4926_v17 = vstv %s4915_s2  ;;  %v4928_v53 = vstv %s2323_s10  ;;  %s4938_s10 = sld [smem:[#allocation120_spill]]  ;;  %s4943_s2 = sld [smem:[#allocation143_spill]] }
 0x165   :  { %v1050_v21 = vmul.f32 %v3013_v46, %v4926_v17  ;;  %v1017_v5 = vmul.f32 %v3144_v14, %v4928_v53  ;;  %v3156_v15 = vmax.f32 %v1026_v30, 0.0  ;;  %v4929_v44 = vstv %s4917_s8  ;;  %s4945_s8 = sld [smem:[#allocation121_spill]] }
 0x166   :  { %v1061_v9 = vmul.f32 %v3011_v55, %v4929_v44  ;;  %v4930_v34 = vstv %s4672_s23  ;;  %v1005_v0 = vadd.f32 %v1004_v59, %v992_v18  ;;  %v4933_v31 = vstv %s4919_s5  ;;  %s4941_s23 = sld [smem:[#allocation51_spill]]  ;;  %s4946_s5 = sld [smem:[#allocation53_spill]] }
 0x167   :  { %v1063_v33 = vmul.f32 %v3013_v46, %v4930_v34  ;;  %v1039_v12 = vadd.f32 %v1038_v62, %v4933_v31  ;;  %v1051_v8 = vadd.f32 %v1050_v21, %v1049_v1  ;;  %v4935_v58 = vstv %s4921_s4  ;;  %v4944_v21 = vld [vmem:[#allocation152_spill] sm:$0xff]  ;;  %s4949_s4 = sld [smem:[#allocation122_spill]] }
 0x168   :  { %v1074_v36 = vmul.f32 %v3011_v55, %v4935_v58  ;;  %v4936_v24 = vstv %s4923_s9  ;;  %v1062_v60 = vadd.f32 %v1061_v9, %v4937_v48  ;;  %v4939_v30 = vstv %s4924_s11  ;;  %v4947_v58 = vld [vmem:[#allocation154_spill] sm:$0xff]  ;;  %s4951_s9 = sld [smem:[#allocation54_spill]]  ;;  %s4954_s11 = sld [smem:[#allocation56_spill]] }
 0x169   :  { %v1030_v61 = vmul.f32 %v3156_v15, %v4936_v24  ;;  %v1076_v17 = vmul.f32 %v3013_v46, %v4939_v30  ;;  %v4940_v53 = vstv %s4925_s17  ;;  %v1018_v59 = vadd.f32 %v1017_v5, %v1005_v0  ;;  %s4955_s17 = sld [smem:[#allocation34_spill]] }
 0x16a   :  { %v1087_v44 = vmul.f32 %v3011_v55, %v4940_v53  ;;  %v3179_v18 = vmax.f32 %v1039_v12, 0.0  ;;  %v4942_v62 = vstv %s4927_s18  ;;  %v1075_v34 = vadd.f32 %v1074_v36, %v4944_v21  ;;  %s4958_s18 = sld [smem:[#allocation123_spill]] }
 0x16b   :  { %v1052_v1 = vadd.f32 %v1051_v8, %v4942_v62  ;;  %v1064_v31 = vadd.f32 %v1063_v33, %v1062_v60  ;;  %v4948_v24 = vstv %s4931_s16  ;;  %v4950_v30 = vstv %s4932_s6  ;;  %s4959_s16 = sld [smem:[#allocation57_spill]]  ;;  %s4961_s6 = sld [smem:[#allocation144_spill]] }
 0x16c   :  { %v1088_v9 = vadd.f32 %v1087_v44, %v4947_v58  ;;  %v1089_v48 = vmul.f32 %v3013_v46, %v4948_v24  ;;  %v1100_v53 = vmul.f32 %v3011_v55, %v4950_v30  ;;  %v1031_v5 = vadd.f32 %v1030_v61, %v1018_v59  ;;  %v4956_v44 = vld [vmem:[#allocation155_spill] sm:$0xff] }
 0x16d   :  { %v4952_v0 = vstv %s4934_s7  ;;  %v3194_v8 = vmax.f32 %v1052_v1, 0.0  ;;  %v1077_v62 = vadd.f32 %v1076_v17, %v1075_v34  ;;  %v4953_v36 = vstv %s4938_s10  ;;  %s4964_s7 = sld [smem:[#allocation59_spill]]  ;;  %s4966_s10 = sld [smem:[#allocation37_spill]] }
 0x16e   :  { %v1043_v12 = vmul.f32 %v3179_v18, %v4952_v0  ;;  %v1065_v33 = vadd.f32 %v1064_v31, %v4953_v36  ;;  %v1090_v60 = vadd.f32 %v1089_v48, %v1088_v9  ;;  %v1101_v21 = vadd.f32 %v1100_v53, %v4956_v44 }
 0x16f   :  { %v4957_v58 = vstv %s4941_s23  ;;  %v4960_v61 = vstv %s4943_s2  ;;  %v4962_v1 = vstv %s4945_s8  ;;  %v4963_v17 = vstv %s4946_s5  ;;  %s4968_s23 = sld [smem:[#allocation60_spill]]  ;;  %s4973_s8 = sld [smem:[#allocation62_spill]] }
 0x170   :  { %v1102_v24 = vmul.f32 %v3013_v46, %v4957_v58  ;;  %v1044_v30 = vadd.f32 %v1043_v12, %v1031_v5  ;;  %v1056_v59 = vmul.f32 %v3194_v8, %v4960_v61  ;;  %v1078_v0 = vadd.f32 %v1077_v62, %v4962_v1  ;;  %s4969_s2 = sld [smem:[#allocation124_spill]]  ;;  %v4970_v58 = vld [vmem:[#allocation158_spill] sm:$0xff]  ;;  %s4975_s5 = sld [smem:[#allocation145_spill]] }
 0x171   :  { %v1113_v34 = vmul.f32 %v3011_v55, %v4963_v17  ;;  %v3210_v31 = vmax.f32 %v1065_v33, 0.0  ;;  %v4965_v9 = vstv %s4949_s4  ;;  %v4967_v36 = vstv %s4951_s9  ;;  %s4977_s4 = sld [smem:[#allocation63_spill]]  ;;  %s4979_s9 = sld [smem:[#allocation65_spill]] }
 0x172   :  { %v1091_v48 = vadd.f32 %v1090_v60, %v4965_v9  ;;  %v1103_v53 = vadd.f32 %v1102_v24, %v1101_v21  ;;  %v1115_v44 = vmul.f32 %v3013_v46, %v4967_v36  ;;  %v1057_v5 = vadd.f32 %v1056_v59, %v1044_v30  ;;  %v4980_v36 = vld [vmem:[#allocation160_spill] sm:$0xff] }
 0x173   :  { %v3217_v12 = vmax.f32 %v1078_v0, 0.0  ;;  %v1114_v62 = vadd.f32 %v1113_v34, %v4970_v58  ;;  %v4971_v61 = vstv %s4954_s11  ;;  %v4972_v17 = vstv %s4955_s17  ;;  %s4981_s11 = sld [smem:[#allocation125_spill]]  ;;  %s4985_s17 = sld [smem:[#allocation66_spill]] }
 0x174   :  { %v1126_v1 = vmul.f32 %v3011_v55, %v4971_v61  ;;  %v1069_v33 = vmul.f32 %v3210_v31, %v4972_v17  ;;  %v3226_v60 = vmax.f32 %v1091_v48, 0.0  ;;  %v4974_v21 = vstv %s4958_s18  ;;  %s4987_s18 = sld [smem:[#allocation68_spill]] }
 0x175   :  { %v1104_v24 = vadd.f32 %v1103_v53, %v4974_v21  ;;  %v4976_v9 = vstv %s4959_s16  ;;  %v4978_v59 = vstv %s4961_s6  ;;  %v1116_v34 = vadd.f32 %v1115_v44, %v1114_v62  ;;  %s4988_s16 = sld [smem:[#allocation146_spill]]  ;;  %v4989_v62 = vld [vmem:[#allocation162_spill] sm:$0xff]  ;;  %s4991_s6 = sld [smem:[#allocation126_spill]] }
 0x176   :  { %v1128_v30 = vmul.f32 %v3013_v46, %v4976_v9  ;;  %v1082_v0 = vmul.f32 %v3217_v12, %v4978_v59  ;;  %v1127_v58 = vadd.f32 %v1126_v1, %v4980_v36  ;;  %v4982_v61 = vstv %s4964_s7  ;;  %s4995_s7 = sld [smem:[#allocation69_spill]] }
 0x177   :  { %v1139_v17 = vmul.f32 %v3011_v55, %v4982_v61  ;;  %v1070_v48 = vadd.f32 %v1069_v33, %v1057_v5  ;;  %v4983_v29 = vstv %s4966_s10  ;;  %v3243_v53 = vmax.f32 %v1104_v24, 0.0  ;;  %s4997_s10 = sld [smem:[#allocation147_spill]] }
 0x178   :  { %v1095_v43 = vmul.f32 %v3226_v60, %v4983_v29  ;;  %v4984_v21 = vstv %s4968_s23  ;;  %v4986_v4 = vstv %s4969_s2  ;;  %v1129_v44 = vadd.f32 %v1128_v30, %v1127_v58  ;;  %s4999_s23 = sld [smem:[#allocation127_spill]] }
 0x179   :  { %v1141_v9 = vmul.f32 %v3013_v46, %v4984_v21  ;;  %v1117_v59 = vadd.f32 %v1116_v34, %v4986_v4  ;;  %v1140_v1 = vadd.f32 %v1139_v17, %v4989_v62  ;;  %v4990_v36 = vstv %s4973_s8  ;;  %v4998_v17 = vld [vmem:[#allocation163_spill] sm:$0xff]  ;;  %s5000_s2 = sld [smem:[#allocation71_spill]]  ;;  %s5003_s8 = sld [smem:[#allocation128_spill]] }
 0x17a   :  { %v1152_v5 = vmul.f32 %v3011_v55, %v4990_v36  ;;  %v1083_v33 = vadd.f32 %v1082_v0, %v1070_v48  ;;  %v4992_v61 = vstv %s4975_s5  ;;  %v4993_v24 = vstv %s4977_s4  ;;  %v5001_v48 = vld [vmem:[#allocation164_spill] sm:$0xff]  ;;  %s5006_s5 = sld [smem:[#allocation72_spill]] }
 0x17b   :  { %v1108_v29 = vmul.f32 %v3243_v53, %v4992_v61  ;;  %v1154_v2 = vmul.f32 %v3013_v46, %v4993_v24  ;;  %v4994_v56 = vstv %s4979_s9  ;;  %v3263_v4 = vmax.f32 %v1117_v59, 0.0  ;;  %s5007_s4 = sld [smem:[#allocation40_spill]]  ;;  %s5010_s9 = sld [smem:[#allocation74_spill]] }
 0x17c   :  { %v1165_v21 = vmul.f32 %v3011_v55, %v4994_v56  ;;  %v4996_v30 = vstv %s4981_s11  ;;  %v1142_v58 = vadd.f32 %v1141_v9, %v1140_v1  ;;  %v1153_v62 = vadd.f32 %v1152_v5, %v4998_v17  ;;  %s5013_s11 = sld [smem:[#allocation129_spill]] }
 0x17d   :  { %v1130_v34 = vadd.f32 %v1129_v44, %v4996_v30  ;;  %v1096_v0 = vadd.f32 %v1095_v43, %v1083_v33  ;;  %v5002_v61 = vstv %s4985_s17  ;;  %v5004_v47 = vstv %s4987_s18  ;;  %s5015_s17 = sld [smem:[#allocation75_spill]]  ;;  %s5016_s18 = sld [smem:[#allocation148_spill]] }
 0x17e   :  { %v1166_v36 = vadd.f32 %v1165_v21, %v5001_v48  ;;  %v1167_v24 = vmul.f32 %v3013_v46, %v5002_v61  ;;  %v1178_v56 = vmul.f32 %v3011_v55, %v5004_v47  ;;  %v5005_v59 = vstv %s4988_s16  ;;  %v5011_v21 = vld [vmem:[#allocation165_spill] sm:$0xff]  ;;  %s5021_s16 = sld [smem:[#allocation43_spill]] }
 0x17f   :  { %v1121_v16 = vmul.f32 %v3263_v4, %v5005_v59  ;;  %v3278_v9 = vmax.f32 %v1130_v34, 0.0  ;;  %v5009_v44 = vstv %s4991_s6  ;;  %v1155_v5 = vadd.f32 %v1154_v2, %v1153_v62  ;;  %s5024_s6 = sld [smem:[#allocation78_spill]] }
 0x180   :  { %v1143_v1 = vadd.f32 %v1142_v58, %v5009_v44  ;;  %v1109_v43 = vadd.f32 %v1108_v29, %v1096_v0  ;;  %v1168_v33 = vadd.f32 %v1167_v24, %v1166_v36  ;;  %v1179_v30 = vadd.f32 %v1178_v56, %v5011_v21 }
 0x181   :  { %5008 = vst [vmem:[#allocation150_spill] sm:$0xff] %v3278_v9  ;;  %v5012_v17 = vstv %s4995_s7  ;;  %v5014_v47 = vstv %s4997_s10  ;;  %v5018_v34 = vstv %s4999_s23  ;;  %v5019_v58 = vstv %s5000_s2  ;;  %s5025_s7 = sld [smem:[#allocation130_spill]]  ;;  %s5029_s10 = sld [smem:[#allocation80_spill]] }
 0x182   :  { %v1180_v48 = vmul.f32 %v3013_v46, %v5012_v17  ;;  %v1134_v61 = vmul.f32 %v3278_v9, %v5014_v47  ;;  %v3289_v59 = vmax.f32 %v1143_v1, 0.0  ;;  %v1156_v49 = vadd.f32 %v1155_v5, %v5018_v34  ;;  %v5027_v5 = vld [vmem:[#allocation166_spill] sm:$0xff]  ;;  %s5032_s23 = sld [smem:[#allocation149_spill]]  ;;  %s5034_s2 = sld [smem:[#allocation81_spill]] }
 0x183   :  { %v1191_v2 = vmul.f32 %v3011_v55, %v5019_v58  ;;  %v1122_v29 = vadd.f32 %v1121_v16, %v1109_v43  ;;  %v5020_v62 = vstv %s5003_s8  ;;  %v5022_v24 = vstv %s5006_s5  ;;  %s5036_s8 = sld [smem:[#allocation83_spill]] }
 0x184   :  { %5017 = vst [vmem:[#allocation152_spill] sm:$0xff] %v3289_v59  ;;  %v1169_v0 = vadd.f32 %v1168_v33, %v5020_v62  ;;  %v1181_v36 = vadd.f32 %v1180_v48, %v1179_v30  ;;  %v1193_v56 = vmul.f32 %v3013_v46, %v5022_v24  ;;  %v5023_v44 = vstv %s5007_s4  ;;  %s5038_s5 = sld [smem:[#allocation131_spill]]  ;;  %s5043_s4 = sld [smem:[#allocation84_spill]] }
 0x185   :  { %v1147_v21 = vmul.f32 %v3289_v59, %v5023_v44  ;;  %v3304_v1 = vmax.f32 %v1156_v49, 0.0  ;;  %v1192_v17 = vadd.f32 %v1191_v2, %v5027_v5  ;;  %v5028_v47 = vstv %s5010_s9  ;;  %v5037_v2 = vld [vmem:[#allocation167_spill] sm:$0xff]  ;;  %s5045_s9 = sld [smem:[#allocation46_spill]] }
 0x186   :  { %v1204_v34 = vmul.f32 %v3011_v55, %v5028_v47  ;;  %v1135_v16 = vadd.f32 %v1134_v61, %v1122_v29  ;;  %v3310_v43 = vmax.f32 %v1169_v0, 0.0  ;;  %v5031_v33 = vstv %s5013_s11  ;;  %s5052_s11 = sld [smem:[#allocation87_spill]] }
 0x187   :  { %5026 = vst [vmem:[#allocation154_spill] sm:$0xff] %v3304_v1  ;;  %v1182_v30 = vadd.f32 %v1181_v36, %v5031_v33  ;;  %v5033_v48 = vstv %s5015_s17  ;;  %v5035_v62 = vstv %s5016_s18  ;;  %v1194_v24 = vadd.f32 %v1193_v56, %v1192_v17  ;;  %v5046_v17 = vld [vmem:[#allocation168_spill] sm:$0xff]  ;;  %s5055_s17 = sld [smem:[#allocation151_spill]]  ;;  %s5057_s18 = sld [smem:[#allocation133_spill]] }
 0x188   :  { %5030 = vst [vmem:[#allocation155_spill] sm:$0xff] %v3310_v43  ;;  %v1206_v58 = vmul.f32 %v3013_v46, %v5033_v48  ;;  %v1160_v49 = vmul.f32 %v3304_v1, %v5035_v62  ;;  %v1205_v44 = vadd.f32 %v1204_v34, %v5037_v2  ;;  %v5039_v5 = vstv %s4760_s25  ;;  %s5048_s25 = sld [smem:[#allocation132_spill]] }
 0x189   :  { %v1217_v61 = vmul.f32 %v3011_v55, %v5039_v5  ;;  %v1148_v29 = vadd.f32 %v1147_v21, %v1135_v16  ;;  %v5040_v0 = vstv %s5021_s16  ;;  %v3327_v36 = vmax.f32 %v1182_v30, 0.0  ;;  %s5058_s16 = sld [smem:[#allocation89_spill]] }
 0x18a   :  { %v1173_v47 = vmul.f32 %v3310_v43, %v5040_v0  ;;  %v5042_v33 = vstv %s5024_s6  ;;  %v5044_v59 = vstv %s5025_s7  ;;  %v1207_v56 = vadd.f32 %v1206_v58, %v1205_v44  ;;  %s5063_s6 = sld [smem:[#allocation90_spill]]  ;;  %s5064_s7 = sld [smem:[#allocation49_spill]] }
 0x18b   :  { %5041 = vst [vmem:[#allocation158_spill] sm:$0xff] %v3327_v36  ;;  %v1219_v48 = vmul.f32 %v3013_v46, %v5042_v33  ;;  %v1195_v62 = vadd.f32 %v1194_v24, %v5044_v59  ;;  %v1218_v34 = vadd.f32 %v1217_v61, %v5046_v17  ;;  %v5047_v2 = vstv %s5029_s10  ;;  %v5056_v61 = vld [vmem:[#allocation169_spill] sm:$0xff]  ;;  %s5067_s10 = sld [smem:[#allocation92_spill]] }
 0x18c   :  { %v1230_v21 = vmul.f32 %v3011_v55, %v5047_v2  ;;  %v1161_v16 = vadd.f32 %v1160_v49, %v1148_v29  ;;  %v5049_v5 = vstv %s5032_s23  ;;  %v5050_v0 = vstv %s5034_s2  ;;  %v5059_v29 = vld [vmem:[#allocation170_spill] sm:$0xff]  ;;  %s5072_s23 = sld [smem:[#allocation93_spill]]  ;;  %s5073_s2 = sld [smem:[#allocation153_spill]] }
 0x18d   :  { %v1186_v30 = vmul.f32 %v3327_v36, %v5049_v5  ;;  %v1232_v43 = vmul.f32 %v3013_v46, %v5050_v0  ;;  %v5051_v1 = vstv %s5036_s8  ;;  %v3347_v59 = vmax.f32 %v1195_v62, 0.0  ;;  %s5080_s8 = sld [smem:[#allocation96_spill]] }
 0x18e   :  { %v1243_v33 = vmul.f32 %v3011_v55, %v5051_v1  ;;  %v5054_v58 = vstv %s5038_s5  ;;  %v1220_v44 = vadd.f32 %v1219_v48, %v1218_v34  ;;  %v1231_v17 = vadd.f32 %v1230_v21, %v5056_v61  ;;  %s5081_s5 = sld [smem:[#allocation136_spill]] }
 0x18f   :  { %5053 = vst [vmem:[#allocation160_spill] sm:$0xff] %v3347_v59  ;;  %v1208_v24 = vadd.f32 %v1207_v56, %v5054_v58  ;;  %v1174_v49 = vadd.f32 %v1173_v47, %v1161_v16  ;;  %v5060_v5 = vstv %s5043_s4  ;;  %v5061_v36 = vstv %s4781_s14  ;;  %s5070_s14 = sld [smem:[#allocation135_spill]]  ;;  %s5084_s4 = sld [smem:[#allocation98_spill]] }
 0x190   :  { %v1244_v2 = vadd.f32 %v1243_v33, %v5059_v29  ;;  %v1245_v0 = vmul.f32 %v3013_v46, %v5060_v5  ;;  %v1256_v1 = vmul.f32 %v3011_v55, %v5061_v36  ;;  %v5062_v62 = vstv %s5045_s9  ;;  %v5068_v33 = vld [vmem:[#allocation171_spill] sm:$0xff]  ;;  %s5091_s9 = sld [smem:[#allocation137_spill]] }
 0x191   :  { %v1199_v9 = vmul.f32 %v3347_v59, %v5062_v62  ;;  %v3362_v48 = vmax.f32 %v1208_v24, 0.0  ;;  %v5066_v56 = vstv %s5048_s25  ;;  %v1233_v21 = vadd.f32 %v1232_v43, %v1231_v17  ;;  %s5097_s25 = sld [smem:[#allocation102_spill]] }
 0x192   :  { %v1221_v34 = vadd.f32 %v1220_v44, %v5066_v56  ;;  %v1187_v47 = vadd.f32 %v1186_v30, %v1174_v49  ;;  %v1246_v16 = vadd.f32 %v1245_v0, %v1244_v2  ;;  %v1257_v58 = vadd.f32 %v1256_v1, %v5068_v33 }
 0x193   :  { %5065 = vst [vmem:[#allocation162_spill] sm:$0xff] %v3362_v48  ;;  %v5069_v61 = vstv %s5052_s11  ;;  %v5071_v36 = vstv %s5055_s17  ;;  %v5075_v24 = vstv %s5057_s18  ;;  %v5076_v44 = vstv %s5058_s16  ;;  %s5099_s11 = sld [smem:[#allocation156_spill]]  ;;  %s5115_s18 = sld [smem:[#allocation110_spill]] }
 0x194   :  { %v1258_v29 = vmul.f32 %v3013_v46, %v5069_v61  ;;  %v1212_v5 = vmul.f32 %v3362_v48, %v5071_v36  ;;  %v3373_v62 = vmax.f32 %v1221_v34, 0.0  ;;  %v1234_v59 = vadd.f32 %v1233_v21, %v5075_v24  ;;  %v5082_v21 = vld [vmem:[#allocation172_spill] sm:$0xff]  ;;  %s3436_s17 = sld [smem:[#allocation10 + $0x8]]  ;;  %s3468_s16 = sld [smem:[#allocation10 + $0xe]] }
 0x195   :  { %v1269_v43 = vmul.f32 %v3011_v55, %v5076_v44  ;;  %v1200_v30 = vadd.f32 %v1199_v9, %v1187_v47  ;;  %v5077_v17 = vstv %s4800_s29  ;;  %v5078_v0 = vstv %s5063_s6  ;;  %s5088_s29 = sld [smem:[#allocation99_spill]] }
 0x196   :  { %5074 = vst [vmem:[#allocation163_spill] sm:$0xff] %v3373_v62  ;;  %v1247_v49 = vadd.f32 %v1246_v16, %v5077_v17  ;;  %v1259_v2 = vadd.f32 %v1258_v29, %v1257_v58  ;;  %v1271_v1 = vmul.f32 %v3013_v46, %v5078_v0  ;;  %v5079_v56 = vstv %s5064_s7  ;;  %s5123_s6 = sld [smem:[#allocation67_spill]]  ;;  %s3510_s7 = sld [smem:[#allocation10 + $0x17]] }
 0x197   :  { %v1225_v33 = vmul.f32 %v3373_v62, %v5079_v56  ;;  %v3388_v34 = vmax.f32 %v1234_v59, 0.0  ;;  %v1270_v61 = vadd.f32 %v1269_v43, %v5082_v21  ;;  %v5083_v36 = vstv %s5067_s10  ;;  %v5090_v43 = vld [vmem:[#allocation173_spill] sm:$0xff]  ;;  %s3534_s10 = sld [smem:[#allocation10 + $0x1d]] }
 0x198   :  { %v1282_v24 = vmul.f32 %v3011_v55, %v5083_v36  ;;  %v1213_v9 = vadd.f32 %v1212_v5, %v1200_v30  ;;  %v3394_v47 = vmax.f32 %v1247_v49, 0.0  ;;  %v5086_v16 = vstv %s5070_s14  ;;  %s3543_s14 = sld [smem:[#allocation10 + $0x20]] }
 0x199   :  { %v1260_v58 = vadd.f32 %v1259_v2, %v5086_v16  ;;  %v5087_v29 = vstv %s5072_s23  ;;  %v5089_v17 = vstv %s5073_s2  ;;  %v1272_v0 = vadd.f32 %v1271_v1, %v1270_v61  ;;  %v5098_v61 = vld [vmem:[#allocation174_spill] sm:$0xff]  ;;  %s3552_s23 = sld [smem:[#allocation10 + $0x23]]  ;;  %s3567_s2 = sld [smem:[#allocation10 + $0x29]] }
 0x19a   :  { %5085 = vst [vmem:[#allocation164_spill] sm:$0xff] %v3394_v47  ;;  %v1284_v44 = vmul.f32 %v3013_v46, %v5087_v29  ;;  %v1238_v59 = vmul.f32 %v3388_v34, %v5089_v17  ;;  %v1283_v56 = vadd.f32 %v1282_v24, %v5090_v43  ;;  %v5092_v21 = vstv %s4807_s13  ;;  %s5101_s13 = sld [smem:[#allocation138_spill]] }
 0x19b   :  { %v1295_v5 = vmul.f32 %v3011_v55, %v5092_v21  ;;  %v1226_v30 = vadd.f32 %v1225_v33, %v1213_v9  ;;  %v5093_v49 = vstv %s4812_s26  ;;  %v3411_v2 = vmax.f32 %v1260_v58, 0.0  ;;  %s5107_s26 = sld [smem:[#allocation105_spill]] }
 0x19c   :  { %v1251_v36 = vmul.f32 %v3394_v47, %v5093_v49  ;;  %v5095_v16 = vstv %s5080_s8  ;;  %v5096_v62 = vstv %s5081_s5  ;;  %v1285_v1 = vadd.f32 %v1284_v44, %v1283_v56  ;;  %s3573_s8 = sld [smem:[#allocation10 + $0x2c]]  ;;  %s3585_s5 = sld [smem:[#allocation10 + $0x32]] }
 0x19d   :  { %5094 = vst [vmem:[#allocation165_spill] sm:$0xff] %v3411_v2  ;;  %v1297_v29 = vmul.f32 %v3013_v46, %v5095_v16  ;;  %v1273_v48 = vadd.f32 %v1272_v0, %v5096_v62  ;;  %v1296_v24 = vadd.f32 %v1295_v5, %v5098_v61  ;;  %v5100_v17 = vstv %s5084_s4  ;;  %v5108_v5 = vld [vmem:[#allocation175_spill] sm:$0xff]  ;;  %s3594_s4 = sld [smem:[#allocation10 + $0x35]] }
 0x19e   :  { %v1308_v43 = vmul.f32 %v3011_v55, %v5100_v17  ;;  %v1239_v33 = vadd.f32 %v1238_v59, %v1226_v30  ;;  %v5102_v9 = vstv %s2433_s30  ;;  %v5103_v21 = vstv %s5088_s29  ;;  %v5109_v30 = vld [vmem:[#allocation176_spill] sm:$0xff]  ;;  %s5110_s30 = sld [smem:[#allocation107_spill]]  ;;  %s3603_s29 = sld [smem:[#allocation10 + $0x38]] }
 0x19f   :  { %v1264_v58 = vmul.f32 %v3411_v2, %v5102_v9  ;;  %v1310_v49 = vmul.f32 %v3013_v46, %v5103_v21  ;;  %v5104_v16 = vstv %s4824_s22  ;;  %v3431_v62 = vmax.f32 %v1273_v48, 0.0  ;;  %s3452_s22 = sld [smem:[#allocation10 + $0xb]] }
 0x1a0   :  { %v1321_v47 = vmul.f32 %v3011_v55, %v5104_v16  ;;  %v5106_v44 = vstv %s5091_s9  ;;  %v1298_v56 = vadd.f32 %v1297_v29, %v1296_v24  ;;  %v1309_v61 = vadd.f32 %v1308_v43, %v5108_v5  ;;  %s3612_s9 = sld [smem:[#allocation10 + $0x3b]] }
 0x1a1   :  { %5105 = vst [vmem:[#allocation166_spill] sm:$0xff] %v3431_v62  ;;  %v1286_v0 = vadd.f32 %v1285_v1, %v5106_v44  ;;  %v1252_v59 = vadd.f32 %v1251_v36, %v1239_v33  ;;  %v5111_v9 = vstv %s5097_s25  ;;  %v5112_v16 = vstv %s4829_s15  ;;  %v5116_v44 = vld [vmem:[#allocation177_spill] sm:$0xff]  ;;  %s5120_s15 = sld [smem:[#allocation111_spill]]  ;;  %s3621_s25 = sld [smem:[#allocation10 + $0x3e]] }
 0x1a2   :  { %v1322_v17 = vadd.f32 %v1321_v47, %v5109_v30  ;;  %v1323_v21 = vmul.f32 %v3013_v46, %v5111_v9  ;;  %v1334_v48 = vmul.f32 %v3011_v55, %v5112_v16  ;;  %v5113_v2 = vstv %s5099_s11  ;;  %s3630_s11 = sld [smem:[#allocation10 + $0x41]] }
 0x1a3   :  { %v1277_v29 = vmul.f32 %v3431_v62, %v5113_v2  ;;  %v3448_v1 = vmax.f32 %v1286_v0, 0.0  ;;  %v5114_v24 = vstv %s5101_s13  ;;  %v1311_v36 = vadd.f32 %v1310_v49, %v1309_v61  ;;  %s3639_s13 = sld [smem:[#allocation10 + $0x44]] }
 0x1a4   :  { %v1299_v43 = vadd.f32 %v1298_v56, %v5114_v24  ;;  %v1265_v47 = vadd.f32 %v1264_v58, %v1252_v59  ;;  %v1324_v33 = vadd.f32 %v1323_v21, %v1322_v17  ;;  %v1335_v5 = vadd.f32 %v1334_v48, %v5116_v44 }
 0x1a5   :  { %v5117_v30 = vstv %s5107_s26  ;;  %v5118_v16 = vstv %s4578_s0  ;;  %v5119_v62 = vstv %s4839_s24  ;;  %v5121_v49 = vstv %s5110_s30  ;;  %s5127_s0 = sld [smem:[#allocation70_spill]]  ;;  %s5134_s24 = sld [smem:[#allocation140_spill]] }
 0x1a6   :  { %v1336_v9 = vmul.f32 %v3013_v46, %v5117_v30  ;;  %v1290_v2 = vmul.f32 %v3448_v1, %v5118_v16  ;;  %v3461_v0 = vmax.f32 %v1299_v43, 0.0  ;;  %v1312_v56 = vadd.f32 %v1311_v36, %v5119_v62  ;;  %v5126_v62 = vld [vmem:[#allocation178_spill] sm:$0xff]  ;;  %s3648_s26 = sld [smem:[#allocation10 + $0x47]]  ;;  %s3659_s30 = sld [smem:[#allocation10 + $0x3]] }
 0x1a7   :  { %v1347_v61 = vmul.f32 %v3011_v55, %v5121_v49  ;;  %v1278_v58 = vadd.f32 %v1277_v29, %v1265_v47  ;;  %v5122_v59 = vstv %s4849_s12  ;;  %v5124_v48 = vstv %s4841_s28  ;;  %s3484_s12 = sld [smem:[#allocation10 + $0x11]]  ;;  %s5131_s28 = sld [smem:[#allocation58_spill]] }
 0x1a8   :  { %v1325_v17 = vadd.f32 %v1324_v33, %v5122_v59  ;;  %v1337_v21 = vadd.f32 %v1336_v9, %v1335_v5  ;;  %v1349_v24 = vmul.f32 %v3013_v46, %v5124_v48  ;;  %v5125_v44 = vstv %s4581_s21  ;;  %v5132_v48 = vld [vmem:[#allocation179_spill] sm:$0xff]  ;;  %s3494_s21 = sld [smem:[#allocation10 + $0x14]] }
 0x1a9   :  { %v1303_v43 = vmul.f32 %v3461_v0, %v5125_v44  ;;  %v3478_v30 = vmax.f32 %v1312_v56, 0.0  ;;  %v1348_v36 = vadd.f32 %v1347_v61, %v5126_v62  ;;  %v5128_v16 = vstv %s5115_s18  ;;  %s3667_s18 = sld [smem:[#allocation10 + $0x4d]] }
 0x1aa   :  { %v1360_v29 = vmul.f32 %v3011_v55, %v5128_v16  ;;  %v1291_v47 = vadd.f32 %v1290_v2, %v1278_v58  ;;  %v3486_v33 = vmax.f32 %v1325_v17, 0.0  ;;  %v5129_v5 = vstv %s4852_s27  ;;  %s5136_s27 = sld [smem:[#allocation61_spill]] }
 0x1ab   :  { %v1338_v9 = vadd.f32 %v1337_v21, %v5129_v5  ;;  %v5130_v49 = vstv %s5120_s15  ;;  %v1350_v59 = vadd.f32 %v1349_v24, %v1348_v36  ;;  %v5133_v55 = vstv %s5123_s6  ;;  %s3679_s15 = sld [smem:[#allocation10 + $0x50]] }
 0x1ac   :  { %v1362_v56 = vmul.f32 %v3013_v46, %v5130_v49  ;;  %v1361_v61 = vadd.f32 %v1360_v29, %v5132_v48  ;;  %v321_v44 = vmul.f32 %v5133_v55, %v2667_v22  ;;  %v359_v2 = vstv %s3436_s17  ;;  %s3657_s17 = sld [smem:[#allocation10]] }
 0x1ad   :  { %v1304_v58 = vadd.f32 %v1303_v43, %v1291_v47  ;;  %v5135_v17 = vstv %s4856_s20  ;;  %v3503_v62 = vmax.f32 %v1338_v9, 0.0  ;;  %v5137_v46 = vstv %s5127_s0  ;;  %s5140_s20 = sld [smem:[#allocation161_spill]] }
 0x1ae   :  { %v1316_v21 = vmul.f32 %v3478_v30, %v5135_v17  ;;  %v340_v24 = vmul.f32 %v5137_v46, %v2669_v57  ;;  %v5138_v36 = vstv %s4858_s3  ;;  %v1363_v29 = vadd.f32 %v1362_v56, %v1361_v61  ;;  %s3523_s3 = sld [smem:[#allocation10 + $0x1a]] }
 0x1af   :  { %v1351_v16 = vadd.f32 %v1350_v59, %v5138_v36  ;;  %v379_v5 = vstv %s3452_s22  ;;  %v5139_v48 = vstv %s5131_s28  ;;  %v360_v9 = vmul.f32 %v359_v2, %v2673_v54  ;;  %s3661_s22 = sld [smem:[#allocation10 + $0x4a]]  ;;  %s3713_s28 = sld [smem:[#allocation10 + $0x59]] }
 0x1b0   :  { %v1317_v49 = vadd.f32 %v1316_v21, %v1304_v58  ;;  %v1329_v43 = vmul.f32 %v3486_v33, %v5139_v48  ;;  %v341_v47 = vadd.f32 %v340_v24, %v321_v44  ;;  %v5141_v17 = vstv %s5134_s24  ;;  %s3736_s24 = sld [smem:[#allocation10 + $0xc]] }
 0x1b1   :  { %v3519_v55 = vmax.f32 %v1351_v16, 0.0  ;;  %v1364_v59 = vadd.f32 %v1363_v29, %v5141_v17  ;;  %v399_v56 = vstv %s3468_s16  ;;  %v5142_v58 = vstv %s5136_s27  ;;  %s3688_s16 = sld [smem:[#allocation10 + $0x6]]  ;;  %s3739_s27 = sld [smem:[#allocation10 + $0x5f]] }
 0x1b2   :  { %v1330_v61 = vadd.f32 %v1329_v43, %v1317_v49  ;;  %v1342_v21 = vmul.f32 %v3503_v62, %v5142_v58  ;;  %v361_v46 = vadd.f32 %v360_v9, %v341_v47  ;;  %v380_v44 = vmul.f32 %v379_v5, %v2675_v11 }
 0x1b3   :  { %v3532_v24 = vmax.f32 %v1364_v59, 0.0  ;;  %v419_v36 = vstv %s3484_s12  ;;  %v5143_v29 = vstv %s5140_s20  ;;  %v400_v43 = vmul.f32 %v399_v56, %v2686_v19  ;;  %s3711_s12 = sld [smem:[#allocation10 + $0x9]]  ;;  %s3778_s20 = sld [smem:[#allocation10 + $0x12]] }
 0x1b4   :  { %v1343_v16 = vadd.f32 %v1342_v21, %v1330_v61  ;;  %v1355_v49 = vmul.f32 %v3519_v55, %v5143_v29  ;;  %v381_v48 = vadd.f32 %v380_v44, %v361_v46  ;;  %v4284_v47 = vstv %s3494_s21 }
 0x1b5   :  { %v5144_v17 = vstv %s4879_s19  ;;  %v420_v61 = vmul.f32 %v419_v36, %v2696_v23  ;;  %v4282_v21 = vstv %s3510_s7  ;;  %v440_v29 = vmul.f32 %v4284_v47, %v2704_v38  ;;  %s3558_s19 = sld [smem:[#allocation10 + $0x26]] }
 0x1b6   :  { %v1356_v9 = vadd.f32 %v1355_v49, %v1343_v16  ;;  %v1368_v59 = vmul.f32 %v3532_v24, %v5144_v17  ;;  %v401_v58 = vadd.f32 %v400_v43, %v381_v48  ;;  %v4281_v16 = vstv %s3523_s3 }
 0x1b7   :  { %v460_v43 = vmul.f32 %v4282_v21, %v2740_v45 }
 0x1b8   :  { %v1369_v46 = vadd.f32 %v1368_v59, %v1356_v9  ;;  %v421_v44 = vadd.f32 %v420_v61, %v401_v58  ;;  %v4279_v9 = vstv %s3534_s10  ;;  %v480_v59 = vmul.f32 %v4281_v16, %v2758_v50 }
 0x1b9   :  { %v4280_v58 = vstv %s3543_s14 }
 0x1ba   :  { %v1374_v49 = vsel %vm74_vm0, %v1369_v46, 0.0  ;;  %v441_v48 = vadd.f32 %v440_v29, %v421_v44  ;;  %v500_v46 = vmul.f32 %v4279_v9, %v2763_v41  ;;  %v4283_v44 = vstv %s3552_s23 }
 0x1bb   :  { %1375 = vrot.lane.b32.xlu1 %v1374_v49, %s1730_s1  ;;  %s3579_s1 = sld [smem:[#allocation10 + $0x2f]]  ;;  %v520_v49 = vmul.f32 %v4280_v58, %v2779_v39  ;;  %v540_v9 = vmul.f32 %v4283_v44, %v2786_v27 }
 0x1bc   :  { %v461_v17 = vadd.f32 %v460_v43, %v441_v48  ;;  %v4285_v48 = vstv %s3558_s19  ;;  %v5145_v43 = vstv %s5123_s6  ;;  %s3690_s6 = sld [smem:[#allocation10 + $0x53]] }
 0x1bd   :  { %v560_v21 = vmul.f32 %v4285_v48, %v2794_v7 }
 0x1be   :  { %v481_v61 = vadd.f32 %v480_v59, %v461_v17  ;;  %v968_v17 = vmul.f32 %v3093_v26, %v5145_v43  ;;  %v993_v43 = vmul.f32 %v3120_v3, %v359_v2  ;;  %v4287_v2 = vstv %s3585_s5 }
 0x1c0   :  { %v501_v29 = vadd.f32 %v500_v46, %v481_v61  ;;  %v579_v61 = vstv %s3567_s2  ;;  %v5146_v46 = vstv %s5127_s0  ;;  %s3701_s0 = sld [smem:[#allocation10 + $0x56]]  ;;  %s3849_s2 = sld [smem:[#allocation10 + $0x21]] }
 0x1c1   :  { %v980_v58 = vmul.f32 %v3107_v20, %v5146_v46  ;;  %v580_v47 = vmul.f32 %v579_v61, %v2815_v51  ;;  %v1006_v46 = vmul.f32 %v3128_v32, %v379_v5  ;;  %v4289_v5 = vstv %s3594_s4 }
 0x1c2   :  { %v521_v59 = vadd.f32 %v520_v49, %v501_v29  ;;  %v599_v29 = vstv %s3573_s8  ;;  %s3862_s8 = sld [smem:[#allocation10 + $0x24]] }
 0x1c3   :  { %v981_v49 = vadd.f32 %v980_v58, %v968_v17  ;;  %v600_v58 = vmul.f32 %v599_v29, %v2836_v42 }
 0x1c4   :  { %v541_v16 = vadd.f32 %v540_v9, %v521_v59  ;;  %v4286_v9 = vstv %s3579_s1 }
 0x1c5   :  { %v994_v59 = vadd.f32 %v993_v43, %v981_v49  ;;  %v620_v49 = vmul.f32 %v4286_v9, %v2850_v13 }
 0x1c6   :  { %v561_v44 = vadd.f32 %v560_v21, %v541_v16  ;;  %v1019_v16 = vmul.f32 %v3144_v14, %v399_v56  ;;  %v4288_v56 = vstv %s3603_s29 }
 0x1c7   :  { %v1007_v21 = vadd.f32 %v1006_v46, %v994_v59  ;;  %v640_v59 = vmul.f32 %v4287_v2, %v2863_v52  ;;  %v5147_v46 = vstv %s3494_s21  ;;  %s3727_s21 = sld [smem:[#allocation10 + $0x5c]] }
 0x1c8   :  { %v581_v48 = vadd.f32 %v580_v47, %v561_v44  ;;  %v1032_v44 = vmul.f32 %v3156_v15, %v419_v36  ;;  %v4292_v36 = vstv %s3612_s9 }
 0x1c9   :  { %v1020_v47 = vadd.f32 %v1019_v16, %v1007_v21  ;;  %v660_v21 = vmul.f32 %v4289_v5, %v2871_v35 }
 0x1ca   :  { %v601_v17 = vadd.f32 %v600_v58, %v581_v48  ;;  %v1045_v58 = vmul.f32 %v3179_v18, %v5147_v46  ;;  %v700_v46 = vmul.f32 %v4292_v36, %v2902_v40  ;;  %v5153_v36 = vstv %s3558_s19  ;;  %s3836_s19 = sld [smem:[#allocation10 + $0x1e]] }
 0x1cb   :  { %v1033_v48 = vadd.f32 %v1032_v44, %v1020_v47  ;;  %v680_v47 = vmul.f32 %v4288_v56, %v2888_v10  ;;  %v4291_v44 = vstv %s3621_s25 }
 0x1cc   :  { %v621_v43 = vadd.f32 %v620_v49, %v601_v17  ;;  %v5148_v17 = vstv %s3510_s7  ;;  %s3758_s7 = sld [smem:[#allocation10 + $0xf]] }
 0x1cd   :  { %v1046_v16 = vadd.f32 %v1045_v58, %v1033_v48  ;;  %v1058_v49 = vmul.f32 %v3194_v8, %v5148_v17  ;;  %v4290_v58 = vstv %s3630_s11  ;;  %v5150_v17 = vstv %s3534_s10  ;;  %s3809_s10 = sld [smem:[#allocation10 + $0x18]] }
 0x1ce   :  { %v641_v9 = vadd.f32 %v640_v59, %v621_v43  ;;  %v5149_v59 = vstv %s3523_s3  ;;  %v1084_v56 = vmul.f32 %v3217_v12, %v5150_v17  ;;  %v5152_v17 = vstv %s3552_s23  ;;  %s3797_s3 = sld [smem:[#allocation10 + $0x15]]  ;;  %s3826_s23 = sld [smem:[#allocation10 + $0x1b]] }
 0x1cf   :  { %v1059_v43 = vadd.f32 %v1058_v49, %v1046_v16  ;;  %v1071_v48 = vmul.f32 %v3210_v31, %v5149_v59  ;;  %v720_v16 = vmul.f32 %v4291_v44, %v2920_v63 }
 0x1d0   :  { %v661_v2 = vadd.f32 %v660_v21, %v641_v9 }
 0x1d1   :  { %v1072_v21 = vadd.f32 %v1071_v48, %v1059_v43  ;;  %v740_v48 = vmul.f32 %v4290_v58, %v2934_v25  ;;  %v4297_v58 = vstv %s3661_s22 }
 0x1d2   :  { %v681_v9 = vadd.f32 %v680_v47, %v661_v2  ;;  %v4293_v2 = vstv %s3639_s13  ;;  %v5151_v47 = vstv %s3543_s14  ;;  %s1731_s14 = smov 2  }
 0x1d3   :  { %v1085_v49 = vadd.f32 %v1084_v56, %v1072_v21  ;;  %v1097_v59 = vmul.f32 %v3226_v60, %v5151_v47  ;;  %v1110_v56 = vmul.f32 %v3243_v53, %v5152_v17  ;;  %v4298_v47 = vstv %s3659_s30 }
 0x1d4   :  { %v701_v5 = vadd.f32 %v700_v46, %v681_v9  ;;  %v4294_v9 = vstv %s3648_s26 }
 0x1d5   :  { %v1098_v46 = vadd.f32 %v1097_v59, %v1085_v49  ;;  %v1123_v49 = vmul.f32 %v3263_v4, %v5153_v36 }
 0x1d6   :  { %v721_v43 = vadd.f32 %v720_v16, %v701_v5  ;;  %v760_v5 = vmul.f32 %v4293_v2, %v2947_v28  ;;  %v4296_v16 = vstv %s3657_s17  ;;  %v5154_v2 = vld [vmem:[#allocation150_spill] sm:$0xff]  ;;  %v5164_v28 = vld [vmem:[#allocation155_spill] sm:$0xff] }
 0x1d7   :  { %v1111_v44 = vadd.f32 %v1110_v56, %v1098_v46  ;;  %v1136_v46 = vmul.f32 %v5154_v2, %v579_v61  ;;  %v317_v36 = vmul.f32 %v4296_v16, %v2667_v22  ;;  %v334_v56 = vmul.f32 %v4298_v47, %v2669_v57  ;;  %v5156_v61 = vld [vmem:[#allocation152_spill] sm:$0xff]  ;;  %v5157_v22 = vld [vmem:[#allocation184_spill] sm:$0xff] }
 0x1d8   :  { %v741_v21 = vadd.f32 %v740_v48, %v721_v43  ;;  %v780_v43 = vmul.f32 %v4294_v9, %v2955_v37  ;;  %v5158_v16 = vstv %s3667_s18 }
 0x1d9   :  { %v1124_v17 = vadd.f32 %v1123_v49, %v1111_v44  ;;  %v1149_v49 = vmul.f32 %v5156_v61, %v599_v29  ;;  %v820_v57 = vmul.f32 %v5158_v16, %v5157_v22  ;;  %v335_v48 = vadd.f32 %v334_v56, %v317_v36 }
 0x1da   :  { %v761_v59 = vadd.f32 %v760_v5, %v741_v21  ;;  %v5155_v5 = vld [vmem:[#allocation183_spill] sm:$0xff]  ;;  %v5167_v36 = vstv %s3690_s6 }
 0x1db   :  { %v800_v9 = vmul.f32 %v4297_v58, %v5155_v5  ;;  %v1137_v44 = vadd.f32 %v1136_v46, %v1124_v17  ;;  %v5159_v17 = vstv %s3579_s1  ;;  %v5160_v46 = vld [vmem:[#allocation154_spill] sm:$0xff]  ;;  %s3872_s1 = sld [smem:[#allocation10 + $0x27]] }
 0x1dc   :  { %v781_v21 = vadd.f32 %v780_v43, %v761_v59  ;;  %v1162_v47 = vmul.f32 %v5160_v46, %v5159_v17  ;;  %v5163_v59 = vstv %s3585_s5  ;;  %v5165_v43 = vstv %s3688_s16  ;;  %v5166_v17 = vld [vmem:[#allocation186_spill] sm:$0xff]  ;;  %s3880_s5 = sld [smem:[#allocation10 + $0x2a]] }
 0x1dd   :  { %v1150_v58 = vadd.f32 %v1149_v49, %v1137_v44  ;;  %v1175_v25 = vmul.f32 %v5164_v28, %v5163_v59  ;;  %v354_v44 = vmul.f32 %v5165_v43, %v2673_v54  ;;  %v860_v56 = vmul.f32 %v5167_v36, %v5166_v17  ;;  %v5170_v54 = vld [vmem:[#allocation187_spill] sm:$0xff]  ;;  %v5173_v28 = vld [vmem:[#allocation160_spill] sm:$0xff] }
 0x1de   :  { %v801_v37 = vadd.f32 %v800_v9, %v781_v21  ;;  %v5161_v9 = vld [vmem:[#allocation185_spill] sm:$0xff]  ;;  %v5162_v21 = vstv %s3679_s15  ;;  %v5171_v43 = vstv %s3701_s0  ;;  %v5172_v17 = vstv %s3603_s29  ;;  %s3890_s29 = sld [smem:[#allocation10 + $0x30]] }
 0x1df   :  { %v840_v16 = vmul.f32 %v5162_v21, %v5161_v9  ;;  %v1163_v5 = vadd.f32 %v1162_v47, %v1150_v58  ;;  %v5168_v47 = vstv %s3594_s4  ;;  %v5169_v21 = vld [vmem:[#allocation158_spill] sm:$0xff]  ;;  %v355_v59 = vadd.f32 %v354_v44, %v335_v48  ;;  %s3885_s4 = sld [smem:[#allocation10 + $0x2d]] }
 0x1e0   :  { %v821_v29 = vadd.f32 %v820_v57, %v801_v37  ;;  %v4301_v37 = vstv %s3711_s12  ;;  %v1188_v22 = vmul.f32 %v5169_v21, %v5168_v47  ;;  %v1201_v46 = vmul.f32 %v5173_v28, %v5172_v17  ;;  %v5174_v57 = vld [vmem:[#allocation188_spill] sm:$0xff] }
 0x1e1   :  { %v1176_v58 = vadd.f32 %v1175_v25, %v1163_v5  ;;  %v374_v25 = vmul.f32 %v4301_v37, %v2675_v11  ;;  %v5175_v47 = vstv %s3713_s28  ;;  %v4302_v44 = vstv %s3736_s24  ;;  %v5181_v37 = vld [vmem:[#allocation163_spill] sm:$0xff] }
 0x1e2   :  { %v841_v49 = vadd.f32 %v840_v16, %v821_v29  ;;  %v880_v29 = vmul.f32 %v5171_v43, %v5170_v54  ;;  %v900_v48 = vmul.f32 %v5175_v47, %v5174_v57  ;;  %v5176_v43 = vstv %s3612_s9  ;;  %v5178_v54 = vld [vmem:[#allocation189_spill] sm:$0xff]  ;;  %s3895_s9 = sld [smem:[#allocation10 + $0x33]] }
 0x1e3   :  { %v1189_v36 = vadd.f32 %v1188_v22, %v1176_v58  ;;  %v5177_v22 = vld [vmem:[#allocation162_spill] sm:$0xff]  ;;  %v375_v17 = vadd.f32 %v374_v25, %v355_v59  ;;  %v5179_v28 = vstv %s3727_s21  ;;  %v394_v57 = vmul.f32 %v4302_v44, %v2686_v19  ;;  %v5186_v19 = vld [vmem:[#allocation164_spill] sm:$0xff] }
 0x1e4   :  { %v861_v9 = vadd.f32 %v860_v56, %v841_v49  ;;  %v1214_v58 = vmul.f32 %v5177_v22, %v5176_v43  ;;  %v920_v11 = vmul.f32 %v5179_v28, %v5178_v54  ;;  %v5182_v49 = vld [vmem:[#allocation190_spill] sm:$0xff]  ;;  %v413_v59 = vstv %s3758_s7  ;;  %s1732_s7 = smov [#allocation11]  }
 0x1e5   :  { %v1202_v56 = vadd.f32 %v1201_v46, %v1189_v36  ;;  %v5183_v46 = vstv %s3739_s27 }
 0x1e6   :  { %v881_v5 = vadd.f32 %v880_v29, %v861_v9  ;;  %v5180_v29 = vstv %s3621_s25  ;;  %v940_v36 = vmul.f32 %v5183_v46, %v5182_v49  ;;  %s3900_s25 = sld [smem:[#allocation10 + $0x36]] }
 0x1e7   :  { %v1215_v9 = vadd.f32 %v1214_v58, %v1202_v56  ;;  %v1227_v47 = vmul.f32 %v5181_v37, %v5180_v29  ;;  %v5185_v58 = vstv %s3639_s13  ;;  %s3910_s13 = sld [smem:[#allocation10 + $0x3c]] }
 0x1e8   :  { %v901_v16 = vadd.f32 %v900_v48, %v881_v5  ;;  %v5184_v5 = vstv %s3630_s11  ;;  %v395_v48 = vadd.f32 %v394_v57, %v375_v17  ;;  %v5188_v17 = vld [vmem:[#allocation165_spill] sm:$0xff]  ;;  %s3905_s11 = sld [smem:[#allocation10 + $0x39]] }
 0x1e9   :  { %v1228_v25 = vadd.f32 %v1227_v47, %v1215_v9  ;;  %v1240_v28 = vmul.f32 %v3388_v34, %v5184_v5  ;;  %v433_v9 = vstv %s3778_s20  ;;  %s1388_s20 = sshll.u32 %s1732_s7, 4  ;;  %s1389_s20 = int_to_ptr.vmem [resolvable:$true] %s1388_s20 }
 0x1ea   :  { %v921_v21 = vadd.f32 %v920_v11, %v901_v16  ;;  %v1253_v16 = vmul.f32 %v5186_v19, %v5185_v58  ;;  %v414_v11 = vmul.f32 %v413_v59, %v2696_v23  ;;  %v5192_v58 = vld [vmem:[#allocation166_spill] sm:$0xff]  ;;  %p1697_p10 = scmp.lt.s32.totalorder %s1389_s20, %s1389_s20 }
 0x1eb   :  { %v1241_v43 = vadd.f32 %v1240_v28, %v1228_v25  ;;  %v5190_v25 = vstv %s3659_s30  ;;  %s3925_s30 = sld [smem:[#allocation10 + $0x45]] }
 0x1ec   :  { %v941_v56 = vadd.f32 %v940_v36, %v921_v21  ;;  %v5187_v21 = vstv %s3648_s26  ;;  %v415_v46 = vadd.f32 %v414_v11, %v395_v48  ;;  %v5189_v36 = vstv %s3657_s17  ;;  %s3915_s26 = sld [smem:[#allocation10 + $0x3f]]  ;;  %s3920_s17 = sld [smem:[#allocation10 + $0x42]] }
 0x1ed   :  { %v1254_v57 = vadd.f32 %v1253_v16, %v1241_v43  ;;  %v1266_v47 = vmul.f32 %v5188_v17, %v5187_v21  ;;  %v966_v23 = vmul.f32 %v3093_v26, %v5189_v36  ;;  %v976_v5 = vmul.f32 %v3107_v20, %v5190_v25 }
 0x1ee   :  { %v949_v29 = vsel %vm74_vm0, %v941_v56, 0.0  ;;  %v5191_v56 = vstv %s3661_s22  ;;  %v453_v43 = vstv %s3797_s3  ;;  %v5193_v16 = vstv %s3667_s18  ;;  %s3930_s22 = sld [smem:[#allocation10 + $0x48]]  ;;  %s3935_s18 = sld [smem:[#allocation10 + $0x4b]] }
 0x1ef   :  { %950 = vrot.lane.b32.xlu0 %v949_v29, %s1731_s14  ;;  %v1267_v28 = vadd.f32 %v1266_v47, %v1254_v57  ;;  %v1279_v44 = vmul.f32 %v5192_v58, %v5191_v56  ;;  %v434_v29 = vmul.f32 %v433_v9, %v2704_v38  ;;  %v1292_v11 = vmul.f32 %v3448_v1, %v5193_v16  ;;  %s1692_s3 = scalar_lea.vmem %s1389_s20, 256 }
 0x1f0   :  { %v977_v21 = vadd.f32 %v976_v5, %v966_v23  ;;  %v5194_v57 = vstv %s3679_s15  ;;  %v454_v36 = vmul.f32 %v453_v43, %v2740_v45  ;;  %v473_v38 = vstv %s3809_s10  ;;  %s3940_s15 = sld [smem:[#allocation10 + $0x4e]]  ;;  %p1693_p9 = scmp.ne.s32.totalorder %s1389_s20, %s1692_s3 }
 0x1f1   :  { %v1280_v48 = vadd.f32 %v1279_v44, %v1267_v28  ;;  %v435_v26 = vadd.f32 %v434_v29, %v415_v46  ;;  %v1305_v47 = vmul.f32 %v3461_v0, %v5194_v57  ;;  %v5195_v25 = vstv %s3688_s16  ;;  %s3945_s16 = sld [smem:[#allocation10 + $0x51]]  ;;  %p1698_p11 = scmp.lt.s32.totalorder %s1692_s3, %s1692_s3 }
 0x1f2   :  { %v989_v44 = vmul.f32 %v3120_v3, %v5195_v25  ;;  %v5196_v56 = vstv %s3690_s6  ;;  %v474_v45 = vmul.f32 %v473_v38, %v2758_v50  ;;  %v5198_v3 = vstv %s3711_s12  ;;  %s3950_s6 = sld [smem:[#allocation10 + $0x54]]  ;;  %s3960_s12 = sld [smem:[#allocation10 + $0x5a]] }
 0x1f3   :  { %v1293_v20 = vadd.f32 %v1292_v11, %v1280_v48  ;;  %v1318_v46 = vmul.f32 %v3478_v30, %v5196_v56  ;;  %v455_v23 = vadd.f32 %v454_v36, %v435_v26  ;;  %v5197_v48 = vstv %s3701_s0  ;;  %s3955_s0 = sld [smem:[#allocation10 + $0x57]]  ;;  %p1699_p12 = por %p1698_p11, %p1697_p10 }
 0x1f4   :  { %v990_v5 = vadd.f32 %v989_v44, %v977_v21  ;;  %v1331_v16 = vmul.f32 %v3486_v33, %v5197_v48  ;;  %v493_v11 = vstv %s3826_s23  ;;  %v5200_v44 = vstv %s3727_s21 }
 0x1f5   :  { %v1306_v28 = vadd.f32 %v1305_v47, %v1293_v20  ;;  %v1002_v20 = vmul.f32 %v3128_v32, %v5198_v3  ;;  %v5199_v47 = vstv %s3713_s28  ;;  %v475_v21 = vadd.f32 %v474_v45, %v455_v23  ;;  %s3965_s28 = sld [smem:[#allocation10 + $0x5d]]  ;;  %p1700_p13 = pnand %p1699_p12, %p1693_p9 }
 0x1f6   :  { %v1344_v26 = vmul.f32 %v3503_v62, %v5199_v47  ;;  %v494_v56 = vmul.f32 %v493_v11, %v2763_v41  ;;  %v513_v50 = vstv %s3836_s19  ;;  %v533_v41 = vstv %s3849_s2 }
 0x1f7   :  { %v1319_v29 = vadd.f32 %v1318_v46, %v1306_v28  ;;  %v1003_v36 = vadd.f32 %v1002_v20, %v990_v5  ;;  %v1357_v28 = vmul.f32 %v3519_v55, %v5200_v44  ;;  %v5201_v46 = vstv %s3736_s24 }
 0x1f8   :  { %v1015_v48 = vmul.f32 %v3144_v14, %v5201_v46  ;;  %v495_v3 = vadd.f32 %v494_v56, %v475_v21  ;;  %v514_v45 = vmul.f32 %v513_v50, %v2779_v39  ;;  %v1028_v20 = vmul.f32 %v3156_v15, %v413_v59 }
 0x1f9   :  { %v1332_v57 = vadd.f32 %v1331_v16, %v1319_v29  ;;  %v5202_v29 = vstv %s3739_s27  ;;  %v553_v21 = vstv %s3862_s8  ;;  %v1041_v39 = vmul.f32 %v3179_v18, %v433_v9  ;;  %s5216_s27 = sld [smem:[#allocation191_spill]] }
 0x1fa   :  { %v1370_v16 = vmul.f32 %v3532_v24, %v5202_v29  ;;  %v1016_v23 = vadd.f32 %v1015_v48, %v1003_v36  ;;  %v515_v14 = vadd.f32 %v514_v45, %v495_v3  ;;  %v554_v44 = vmul.f32 %v553_v21, %v2794_v7 }
 0x1fb   :  { %v1345_v25 = vadd.f32 %v1344_v26, %v1332_v57  ;;  %v534_v26 = vmul.f32 %v533_v41, %v2786_v27  ;;  %v573_v15 = vstv %s3872_s1  ;;  %v1054_v59 = vmul.f32 %v3194_v8, %v453_v43 }
 0x1fc   :  { %v1029_v47 = vadd.f32 %v1028_v20, %v1016_v23  ;;  %v574_v27 = vmul.f32 %v573_v15, %v2815_v51  ;;  %v593_v46 = vstv %s3880_s5  ;;  %v1067_v18 = vmul.f32 %v3210_v31, %v473_v38 }
 0x1fd   :  { %v1358_v32 = vadd.f32 %v1357_v28, %v1345_v25  ;;  %v535_v36 = vadd.f32 %v534_v26, %v515_v14  ;;  %v594_v7 = vmul.f32 %v593_v46, %v2836_v42  ;;  %v1080_v8 = vmul.f32 %v3217_v12, %v493_v11 }
 0x1fe   :  { %v1042_v25 = vadd.f32 %v1041_v39, %v1029_v47  ;;  %v1093_v31 = vmul.f32 %v3226_v60, %v513_v50  ;;  %v653_v23 = vstv %s3895_s9  ;;  %v1106_v12 = vmul.f32 %v3243_v53, %v533_v41 }
 0x1ff   :  { %v1371_v5 = vadd.f32 %v1370_v16, %v1358_v32  ;;  %v555_v28 = vadd.f32 %v554_v44, %v535_v36  ;;  %v613_v32 = vstv %s3885_s4  ;;  %v633_v16 = vstv %s3890_s29  ;;  %v5203_v36 = vld [vmem:[#allocation154_spill] sm:$0xff] }
 0x200   :  { %v1055_v56 = vadd.f32 %v1054_v59, %v1042_v25  ;;  %v614_v51 = vmul.f32 %v613_v32, %v2850_v13  ;;  %v634_v42 = vmul.f32 %v633_v16, %v2863_v52  ;;  %v654_v13 = vmul.f32 %v653_v23, %v2871_v35 }
 0x201   :  { %v1378_v57 = vsel %vm74_vm0, %v1371_v5, 0.0  ;;  %v575_v9 = vadd.f32 %v574_v27, %v555_v28  ;;  %v673_v45 = vstv %s3900_s25  ;;  %v1119_v60 = vmul.f32 %v3263_v4, %v553_v21  ;;  %v5205_v28 = vld [vmem:[#allocation155_spill] sm:$0xff] }
 0x202   :  { %1379 = vrot.lane.b32.xlu1 %v1378_v57, %s1731_s14  ;;  %v1068_v48 = vadd.f32 %v1067_v18, %v1055_v56  ;;  %v674_v52 = vmul.f32 %v673_v45, %v2888_v10  ;;  %v693_v57 = vstv %s3905_s11  ;;  %v1132_v53 = vmul.f32 %v5154_v2, %v573_v15  ;;  %v5204_v15 = vld [vmem:[#allocation180_spill] sm:$0xff] }
 0x203   :  { %v595_v43 = vadd.f32 %v594_v7, %v575_v9  ;;  %v694_v35 = vmul.f32 %v693_v57, %v2902_v40  ;;  %v713_v47 = vstv %s3910_s13  ;;  %v1145_v4 = vmul.f32 %v5156_v61, %v593_v46  ;;  %v5206_v46 = vld [vmem:[#allocation181_spill] sm:$0xff]  ;;  %v5207_v9 = vld [vmem:[#allocation158_spill] sm:$0xff] }
 0x204   :  { %v1081_v29 = vadd.f32 %v1080_v8, %v1068_v48  ;;  %v714_v10 = vmul.f32 %v713_v47, %v2920_v63  ;;  %v733_v39 = vstv %s3915_s26  ;;  %v1158_v2 = vmul.f32 %v5203_v36, %v613_v32  ;;  %v5208_v8 = vld [vmem:[#allocation182_spill] sm:$0xff]  ;;  %v5214_v36 = vld [vmem:[#allocation187_spill] sm:$0xff] }
 0x205   :  { %v615_v38 = vadd.f32 %v614_v51, %v595_v43  ;;  %v734_v40 = vmul.f32 %v733_v39, %v5204_v15  ;;  %v753_v59 = vstv %s3920_s17  ;;  %v1171_v61 = vmul.f32 %v5205_v28, %v633_v16  ;;  %v5209_v51 = vld [vmem:[#allocation160_spill] sm:$0xff]  ;;  %v5215_v15 = vld [vmem:[#allocation188_spill] sm:$0xff] }
 0x206   :  { %v1094_v3 = vadd.f32 %v1093_v31, %v1081_v29  ;;  %v754_v63 = vmul.f32 %v753_v59, %v5206_v46  ;;  %v773_v18 = vstv %s3925_s30  ;;  %v1184_v48 = vmul.f32 %v5207_v9, %v653_v23 }
 0x207   :  { %v635_v11 = vadd.f32 %v634_v42, %v615_v38  ;;  %v774_v43 = vmul.f32 %v773_v18, %v5208_v8  ;;  %v793_v29 = vstv %s3930_s22  ;;  %v1197_v16 = vmul.f32 %v5209_v51, %v673_v45  ;;  %v947_v8 = vpop.permute.xlu0 %946 }
 0x208   :  { %v1107_v5 = vadd.f32 %v1106_v12, %v1094_v3  ;;  %v5210_v3 = vld [vmem:[#allocation183_spill] sm:$0xff]  ;;  %v813_v12 = vstv %s3935_s18  ;;  %v1210_v23 = vmul.f32 %v5177_v22, %v693_v57  ;;  %v1223_v45 = vmul.f32 %v5181_v37, %v713_v47 }
 0x209   :  { %v655_v50 = vadd.f32 %v654_v13, %v635_v11  ;;  %v794_v42 = vmul.f32 %v793_v29, %v5210_v3  ;;  %v5211_v13 = vld [vmem:[#allocation184_spill] sm:$0xff]  ;;  %v1236_v22 = vmul.f32 %v3388_v34, %v733_v39  ;;  %v1249_v37 = vmul.f32 %v5186_v19, %v753_v59 }
 0x20a   :  { %v1120_v20 = vadd.f32 %v1119_v60, %v1107_v5  ;;  %v814_v60 = vmul.f32 %v813_v12, %v5211_v13  ;;  %v1262_v34 = vmul.f32 %v5188_v17, %v773_v18  ;;  %v913_v28 = vstv %s3960_s12 }
 0x20b   :  { %v675_v41 = vadd.f32 %v674_v52, %v655_v50  ;;  %v833_v50 = vstv %s3940_s15  ;;  %v914_v19 = vmul.f32 %v913_v28, %v5178_v54  ;;  %v933_v59 = vstv %s3965_s28 }
 0x20c   :  { %v1133_v14 = vadd.f32 %v1132_v53, %v1120_v20  ;;  %v5212_v53 = vld [vmem:[#allocation185_spill] sm:$0xff]  ;;  %v1288_v46 = vmul.f32 %v3448_v1, %v813_v12  ;;  %v1301_v17 = vmul.f32 %v3461_v0, %v833_v50  ;;  %v943_v54 = vstv %s5216_s27 }
 0x20d   :  { %v695_v26 = vadd.f32 %v694_v35, %v675_v41  ;;  %v834_v41 = vmul.f32 %v833_v50, %v5212_v53 }
 0x20e   :  { %v1146_v21 = vadd.f32 %v1145_v4, %v1133_v14  ;;  %v853_v14 = vstv %s3945_s16  ;;  %v5213_v4 = vld [vmem:[#allocation186_spill] sm:$0xff] }
 0x20f   :  { %v715_v25 = vadd.f32 %v714_v10, %v695_v26  ;;  %v854_v26 = vmul.f32 %v853_v14, %v5213_v4 }
 0x210   :  { %v1159_v44 = vadd.f32 %v1158_v2, %v1146_v21  ;;  %v873_v21 = vstv %s3950_s6 }
 0x211   :  { %v735_v56 = vadd.f32 %v734_v40, %v715_v25  ;;  %v874_v2 = vmul.f32 %v873_v21, %v5214_v36  ;;  %v893_v25 = vstv %s3955_s0 }
 0x212   :  { %v1172_v27 = vadd.f32 %v1171_v61, %v1159_v44  ;;  %v894_v40 = vmul.f32 %v893_v25, %v5215_v15  ;;  %v1275_v61 = vmul.f32 %v5192_v58, %v793_v29  ;;  %v1327_v29 = vmul.f32 %v3486_v33, %v873_v21 }
 0x213   :  { %v755_v7 = vadd.f32 %v754_v63, %v735_v56 }
 0x214   :  { %v1185_v32 = vadd.f32 %v1184_v48, %v1172_v27  ;;  %v934_v48 = vmul.f32 %v933_v59, %v5182_v49 }
 0x215   :  { %v775_v31 = vadd.f32 %v774_v43, %v755_v7 }
 0x216   :  { %v1198_v38 = vadd.f32 %v1197_v16, %v1185_v32  ;;  %v1314_v32 = vmul.f32 %v3478_v30, %v853_v14 }
 0x217   :  { %v795_v11 = vadd.f32 %v794_v42, %v775_v31  ;;  %v1340_v31 = vmul.f32 %v3503_v62, %v893_v25  ;;  %v1366_v42 = vmul.f32 %v3532_v24, %v933_v59 }
 0x218   :  { %v1211_v5 = vadd.f32 %v1210_v23, %v1198_v38  ;;  %v1353_v38 = vmul.f32 %v3519_v55, %v913_v28 }
 0x219   :  { %v815_v20 = vadd.f32 %v814_v60, %v795_v11 }
 0x21a   :  { %v1224_v52 = vadd.f32 %v1223_v45, %v1211_v5 }
 0x21b   :  { %v835_v57 = vadd.f32 %v834_v41, %v815_v20 }
 0x21c   :  { %v1237_v35 = vadd.f32 %v1236_v22, %v1224_v52 }
 0x21d   :  { %v855_v47 = vadd.f32 %v854_v26, %v835_v57 }
 0x21e   :  { %v1250_v10 = vadd.f32 %v1249_v37, %v1237_v35 }
 0x21f   :  { %v875_v39 = vadd.f32 %v874_v2, %v855_v47 }
 0x220   :  { %v1263_v44 = vadd.f32 %v1262_v34, %v1250_v10 }
 0x221   :  { %v895_v56 = vadd.f32 %v894_v40, %v875_v39 }
 0x222   :  { %v1276_v27 = vadd.f32 %v1275_v61, %v1263_v44 }
 0x223   :  { %v915_v63 = vadd.f32 %v914_v19, %v895_v56 }
 0x224   :  { %v1289_v9 = vadd.f32 %v1288_v46, %v1276_v27 }
 0x225   :  { %v935_v18 = vadd.f32 %v934_v48, %v915_v63 }
 0x226   :  { %v1302_v7 = vadd.f32 %v1301_v17, %v1289_v9 }
 0x227   :  { %v942_v58 = vsel %vm74_vm0, %v935_v18, 0.0 }
 0x228   :  { %v1315_v43 = vadd.f32 %v1314_v32, %v1302_v7  ;;  %v944_v1 = vadd.f32 %v943_v54, %v942_v58 }
 0x22a   :  { %v948_v51 = vadd.f32 %v947_v8, %v944_v1  ;;  %v1328_v49 = vadd.f32 %v1327_v29, %v1315_v43 }
 0x22c   :  { %v1341_v30 = vadd.f32 %v1340_v31, %v1328_v49 }
 0x22d   :  { %v1376_v23 = vpop.permute.xlu1 %1375 }
 0x22e   :  { %v1354_v3 = vadd.f32 %v1353_v38, %v1341_v30 }
 0x230   :  { %v1367_v12 = vadd.f32 %v1366_v42, %v1354_v3 }
 0x232   :  { %v1372_v11 = vsel %vm74_vm0, %v1367_v12, 0.0 }
 0x233   :  { %v1373_v5 = vadd.f32 %v1372_v11, %v943_v54 }
 0x235   :  { %v1377_v33 = vadd.f32 %v1376_v23, %v1373_v5 }
 0x261   :  { %v951_v16 = vpop.permute.xlu0 %950 }
 0x262   :  { %v952_v0 = vadd.f32 %v951_v16, %v948_v51 }
 0x264   :  { %953 = vst [vmem:[#allocation11] sm:$0xff] %v952_v0 }
 0x274   :  { %v1380_v13 = vpop.permute.xlu1 %1379 }
 0x275   :  { %v1381_v60 = vadd.f32 %v1380_v13, %v1377_v33 }
 0x277   :  { %1382 = vst [vmem:[#allocation11 + $0x8] sm:$0xff] %v1381_v60 }
 0x278   :  { %1703 = shalt.err (!%p1700_p13)
}
 0x279   :  { %s5217_s23 = sld [smem:[#allocation192_spill]] }
 0x27f   :  { %s1704_s19 = scalar_lea.hbm %s5217_s23, 256 }
 0x280   :  { %p1705_p0 = scmp.ne.s32.totalorder %s5217_s23, %s1704_s19  ;;  %p1708_p1 = scmp.lt.u32.totalorder %s1704_s19, %s5217_s23 }
 0x282   :  { %p1710_p2 = pnand %p1708_p1, %p1705_p0 }
 0x284   :  { %1713 = shalt.err (!%p1710_p2)
}
 0x285   :  { %s5218_s4 = smov 8   ;;  %s5219_s29 = smov 128  }
 0x286   :  { %1394 = dma.vmem_to_hbm [thread:$0]  %s1389_s20, 256, %s5217_s23, [#allocation5], %s5219_s29, %s5219_s29, %s5218_s4  }
 0x287   :  { %1720 = dma.done.wait [#allocation5], 256  }
 0x288   :  { %1721 = vsyncadd [#allocation5], 4294967040 }
 0x289   :  { %1398 = vsyncpa [#allocation4], 1 }
 0x28a   :  { %1399 = vsyncpa [#allocation5], 1 }
 0x28b   :  { %1400 = vsyncpa [#allocation6], 1 }
 0x28c   :  { %1401 = vsyncpa [#allocation9], 1 }

// kernel: tpu_custom_call.1
= control target key start
LH: loop header
LB: loop body
LE: loop exit
PB: predicated region body
PF: predicated region fallthrough
CT: control target
= control target key end

     0   :  { %s4004_s0 = inlined_call_operand.hbm [shape: f32[16,128], index: 0, kind: input, shape index: {}]   ;;  %s4005_s1 = inlined_call_operand.vmem [shape: f32[96], index: 1, kind: input, shape index: {}]   ;;  %s4006_s2 = inlined_call_operand.vmem [shape: f32[32], index: 2, kind: input, shape index: {}]   ;;  %s4007_s3 = inlined_call_operand.vmem [shape: f32[96], index: 3, kind: input, shape index: {}]   ;;  %s4008_s4 = inlined_call_operand.<no memory space> [shape: f32[1], index: 4, kind: input, shape index: {}]   ;;  %s4009_s5 = inlined_call_operand.hbm [shape: f32[16,128], index: 5, kind: output, shape index: {}]  }
   0x1   :  { %4303 = sst [smem:[#allocation191_spill]] %s4008_s4 }
   0x2   :  { %4304 = sst [smem:[#allocation192_spill]] %s4009_s5 }
   0x3   :  { %11 = vsyncpa [#allocation4], 0 }
   0x4   :  { %12 = vsyncpa [#allocation6], 0 }
   0x5   :  { %13 = vsyncpa [#allocation9], 0  ;;  %s43_s20 = sshll.u32 %s4006_s2, 4  ;;  %s44_s20 = int_to_ptr.vmem [resolvable:$true] %s43_s20 }
   0x6   :  { %14 = vsyncpa [#allocation5], 0  ;;  %s1634_s21 = scalar_lea.vmem %s44_s20, 16  ;;  %p1639_p1 = scmp.lt.s32.totalorder %s44_s20, %s44_s20 }
   0x7   :  { %p1635_p0 = scmp.ne.s32.totalorder %s44_s20, %s1634_s21  ;;  %p1640_p2 = scmp.lt.s32.totalorder %s1634_s21, %s1634_s21 }
   0x9   :  { %p1641_p3 = por %p1640_p2, %p1639_p1 }
   0xb   :  { %p1642_p4 = pnand %p1641_p3, %p1635_p0 }
   0xd   :  { %1645 = shalt.err (!%p1642_p4)
}
   0xe   :  { %s1722_s22 = smov [#allocation8]   ;;  %s1723_s23 = smov [#allocation3]  }
   0xf   :  { %46 = dma.vmem_to_smem %s44_s20, 16, %s1722_s22, [#allocation9]  }
  0x10   :  { %s20_s24 = sshll.u32 %s1723_s23, 4  ;;  %s1646_s27 = scalar_lea.hbm %s4004_s0, 256  ;;  %s21_s24 = int_to_ptr.vmem [resolvable:$true] %s20_s24 }
  0x11   :  { %p1647_p5 = scmp.ne.s32.totalorder %s4004_s0, %s1646_s27  ;;  %p1650_p6 = scmp.lt.u32.totalorder %s1646_s27, %s4004_s0 }
  0x13   :  { %p1652_p7 = pnand %p1650_p6, %p1647_p5 }
  0x15   :  { %1655 = shalt.err (!%p1652_p7)
}
  0x16   :  { %s1656_s6 = scalar_lea.vmem %s21_s24, 256  ;;  %p1661_p9 = scmp.lt.s32.totalorder %s21_s24, %s21_s24 }
  0x17   :  { %p1657_p8 = scmp.ne.s32.totalorder %s21_s24, %s1656_s6  ;;  %p1662_p10 = scmp.lt.s32.totalorder %s1656_s6, %s1656_s6 }
  0x19   :  { %p1663_p11 = por %p1662_p10, %p1661_p9 }
  0x1b   :  { %p1664_p12 = pnand %p1663_p11, %p1657_p8 }
  0x1d   :  { %1667 = shalt.err (!%p1664_p12)
}
  0x1e   :  { %s4010_s7 = smov 128   ;;  %s4011_s8 = smov 8  }
  0x1f   :  { %26 = dma.hbm_to_vmem [thread:$0]  %s4004_s0, 256, %s21_s24, [#allocation4], %s4010_s7, %s4010_s7, %s4011_s8  }
  0x20   :  { %s33_s13 = sshll.u32 %s4005_s1, 4  ;;  %s53_s16 = sshll.u32 %s4007_s3, 4  ;;  %s34_s13 = int_to_ptr.vmem [resolvable:$true] %s33_s13  ;;  %s54_s16 = int_to_ptr.vmem [resolvable:$true] %s53_s16 }
  0x21   :  { %s1668_s17 = scalar_lea.vmem %s34_s13, 16  ;;  %p1673_p0 = scmp.lt.s32.totalorder %s34_s13, %s34_s13 }
  0x22   :  { %p1669_p13 = scmp.ne.s32.totalorder %s34_s13, %s1668_s17  ;;  %p1674_p1 = scmp.lt.s32.totalorder %s1668_s17, %s1668_s17 }
  0x24   :  { %p1675_p2 = por %p1674_p1, %p1673_p0 }
  0x26   :  { %p1676_p3 = pnand %p1675_p2, %p1669_p13 }
  0x28   :  { %1679 = shalt.err (!%p1676_p3)
}
  0x29   :  { %s1726_s18 = smov [#allocation7]   ;;  %s1680_s0 = scalar_lea.vmem %s54_s16, 16 }
  0x2a   :  { %36 = dma.vmem_to_smem %s34_s13, 16, %s1726_s18, [#allocation6]  }
  0x2b   :  { %p1681_p4 = scmp.ne.s32.totalorder %s54_s16, %s1680_s0  ;;  %p1685_p5 = scmp.lt.s32.totalorder %s54_s16, %s54_s16 }
  0x2c   :  { %p1686_p6 = scmp.lt.s32.totalorder %s1680_s0, %s1680_s0 }
  0x2e   :  { %p1687_p7 = por %p1686_p6, %p1685_p5 }
  0x30   :  { %p1688_p8 = pnand %p1687_p7, %p1681_p4 }
  0x32   :  { %1691 = shalt.err (!%p1688_p8)
}
  0x33   :  { %s1727_s1 = smov [#allocation10]  }
  0x34   :  { %56 = dma.vmem_to_smem %s54_s16, 16, %s1727_s1, [#allocation9]  }
  0x35   :  { %1714 = dma.done.wait [#allocation4], 256  }
  0x36   :  { %1715 = vsyncadd [#allocation4], 4294967040 }
  0x37   :  { %1716 = dma.done.wait [#allocation6], 16  }
  0x38   :  { %1717 = vsyncadd [#allocation6], 4294967280 }
  0x39   :  { %1718 = dma.done.wait [#allocation9], 32  }
  0x3a   :  { %1719 = vsyncadd [#allocation9], 4294967264 }
  0x3b   :  { %71 = sfence }
  0x3c   :  { %v1787_v0 = vld [vmem:[#allocation3] sm:$0xff]  ;;  %s1728_s3 = smov 127   ;;  %s1729_s19 = smov 126   ;;  %v1791_v1 = vld [vmem:[#allocation3 + $0x8] sm:$0xff]  ;;  %v72_v2 = vlaneseq }
  0x3d   :  { %301 = vrot.lane.b32.xlu0 %v1787_v0, %s1728_s3  ;;  %303 = vrot.lane.b32.xlu1 %v1787_v0, %s1729_s19  ;;  %s1795_s20 = sld [smem:[#allocation7]]  ;;  %s1797_s21 = sld [smem:[#allocation7 + $0x1]] }
  0x3e   :  { %s1799_s22 = sld [smem:[#allocation7 + $0x2]]  ;;  %s1801_s23 = sld [smem:[#allocation7 + $0x3]]  ;;  %v1938_v6 = vand.u32 127, %v72_v2 }
  0x3f   :  { %s1803_s24 = sld [smem:[#allocation7 + $0x4]]  ;;  %s1805_s25 = sld [smem:[#allocation7 + $0x5]] }
  0x40   :  { %s1807_s26 = sld [smem:[#allocation7 + $0x6]]  ;;  %s1809_s27 = sld [smem:[#allocation7 + $0x7]]  ;;  %vm74_vm0 = vcmp.lt.s32.totalorder %v1938_v6, 8 }
  0x41   :  { %955 = vrot.lane.b32.xlu0 %v1791_v1, %s1728_s3  ;;  %957 = vrot.lane.b32.xlu1 %v1791_v1, %s1729_s19  ;;  %s1811_s28 = sld [smem:[#allocation7 + $0x8]]  ;;  %s1813_s2 = sld [smem:[#allocation7 + $0x9]] }
  0x42   :  { %s1815_s29 = sld [smem:[#allocation7 + $0xa]]  ;;  %s1817_s30 = sld [smem:[#allocation7 + $0xb]] }
  0x43   :  { %4305 = sst [smem:[#allocation16_spill]] %s1795_s20  ;;  %s1819_s6 = sld [smem:[#allocation7 + $0xc]]  ;;  %v305_v3 = vstv %s1795_s20 }
  0x44   :  { %4306 = sst [smem:[#allocation17_spill]] %s1797_s21  ;;  %s1821_s9 = sld [smem:[#allocation7 + $0xd]]  ;;  %v322_v4 = vstv %s1801_s23  ;;  %v1947_v7 = vmul.f32 %v305_v3, %v1787_v0 }
  0x45   :  { %4307 = sst [smem:[#allocation18_spill]] %s1799_s22  ;;  %s1823_s10 = sld [smem:[#allocation7 + $0xe]]  ;;  %v1959_v11 = vmul.f32 %v322_v4, %v1787_v0  ;;  %v2289_v60 = vmul.f32 %v1791_v1, %v322_v4 }
  0x46   :  { %4308 = sst [smem:[#allocation19_spill]] %s1801_s23  ;;  %s1825_s11 = sld [smem:[#allocation7 + $0xf]]  ;;  %v342_v5 = vstv %s1807_s26 }
  0x47   :  { %4309 = sst [smem:[#allocation20_spill]] %s1803_s24  ;;  %s1827_s12 = sld [smem:[#allocation7 + $0x10]]  ;;  %v362_v9 = vstv %s1813_s2  ;;  %v1971_v15 = vmul.f32 %v342_v5, %v1787_v0 }
  0x48   :  { %4310 = sst [smem:[#allocation21_spill]] %s1805_s25  ;;  %s1829_s13 = sld [smem:[#allocation7 + $0x11]]  ;;  %v1983_v19 = vmul.f32 %v362_v9, %v1787_v0  ;;  %v2321_v8 = vmul.f32 %v1791_v1, %v362_v9 }
  0x49   :  { %4311 = sst [smem:[#allocation22_spill]] %s1807_s26  ;;  %s1831_s14 = sld [smem:[#allocation7 + $0x12]]  ;;  %v382_v13 = vstv %s1819_s6 }
  0x4a   :  { %4312 = sst [smem:[#allocation23_spill]] %s1809_s27  ;;  %s1833_s15 = sld [smem:[#allocation7 + $0x13]]  ;;  %v1995_v23 = vmul.f32 %v382_v13, %v1787_v0 }
  0x4b   :  { %4313 = sst [smem:[#allocation24_spill]] %s1811_s28  ;;  %s1835_s16 = sld [smem:[#allocation7 + $0x14]] }
  0x4c   :  { %4314 = sst [smem:[#allocation25_spill]] %s1813_s2  ;;  %s1837_s17 = sld [smem:[#allocation7 + $0x15]]  ;;  %v402_v17 = vstv %s1825_s11 }
  0x4d   :  { %4315 = sst [smem:[#allocation26_spill]] %s1815_s29  ;;  %s1839_s18 = sld [smem:[#allocation7 + $0x16]]  ;;  %v2007_v27 = vmul.f32 %v402_v17, %v1787_v0 }
  0x4e   :  { %4316 = sst [smem:[#allocation27_spill]] %s1817_s30  ;;  %s1841_s0 = sld [smem:[#allocation7 + $0x17]] }
  0x4f   :  { %4317 = sst [smem:[#allocation28_spill]] %s1819_s6  ;;  %s1843_s1 = sld [smem:[#allocation7 + $0x18]]  ;;  %v422_v21 = vstv %s1831_s14 }
  0x50   :  { %4318 = sst [smem:[#allocation29_spill]] %s1821_s9  ;;  %s1845_s3 = sld [smem:[#allocation7 + $0x19]]  ;;  %v2019_v31 = vmul.f32 %v422_v21, %v1787_v0 }
  0x51   :  { %4319 = sst [smem:[#allocation30_spill]] %s1823_s10  ;;  %s1847_s19 = sld [smem:[#allocation7 + $0x1a]] }
  0x52   :  { %4320 = sst [smem:[#allocation31_spill]] %s1825_s11  ;;  %s1849_s7 = sld [smem:[#allocation7 + $0x1b]]  ;;  %v442_v25 = vstv %s1837_s17 }
  0x53   :  { %4321 = sst [smem:[#allocation32_spill]] %s1827_s12  ;;  %s1851_s8 = sld [smem:[#allocation7 + $0x1c]]  ;;  %v2031_v35 = vmul.f32 %v442_v25, %v1787_v0 }
  0x54   :  { %4322 = sst [smem:[#allocation33_spill]] %s1829_s13  ;;  %s1853_s5 = sld [smem:[#allocation7 + $0x1d]] }
  0x55   :  { %4323 = sst [smem:[#allocation34_spill]] %s1831_s14  ;;  %s1855_s4 = sld [smem:[#allocation7 + $0x1e]]  ;;  %v462_v29 = vstv %s1843_s1 }
  0x56   :  { %4324 = sst [smem:[#allocation35_spill]] %s1833_s15  ;;  %s1859_s15 = sld [smem:[#allocation7 + $0x20]]  ;;  %v2043_v39 = vmul.f32 %v462_v29, %v1787_v0 }
  0x57   :  { %4325 = sst [smem:[#allocation36_spill]] %s1835_s16  ;;  %s1857_s16 = sld [smem:[#allocation7 + $0x1f]] }
  0x58   :  { %4326 = sst [smem:[#allocation37_spill]] %s1837_s17  ;;  %s1865_s13 = sld [smem:[#allocation7 + $0x23]] }
  0x59   :  { %4327 = sst [smem:[#allocation38_spill]] %s1839_s18  ;;  %s1861_s18 = sld [smem:[#allocation7 + $0x21]] }
  0x5a   :  { %4328 = sst [smem:[#allocation39_spill]] %s1841_s0  ;;  %s1863_s0 = sld [smem:[#allocation7 + $0x22]] }
  0x5b   :  { %4329 = sst [smem:[#allocation40_spill]] %s1843_s1  ;;  %s1963_s20 = sld [smem:[#allocation7 + $0x4a]] }
  0x5c   :  { %4330 = sst [smem:[#allocation41_spill]] %s1845_s3  ;;  %s1867_s3 = sld [smem:[#allocation7 + $0x24]] }
  0x5d   :  { %4331 = sst [smem:[#allocation42_spill]] %s1847_s19  ;;  %s1869_s19 = sld [smem:[#allocation7 + $0x25]] }
  0x5e   :  { %4332 = sst [smem:[#allocation43_spill]] %s1849_s7  ;;  %s1871_s7 = sld [smem:[#allocation7 + $0x26]] }
  0x5f   :  { %4333 = sst [smem:[#allocation44_spill]] %s1851_s8  ;;  %s1873_s8 = sld [smem:[#allocation7 + $0x27]] }
  0x60   :  { %4334 = sst [smem:[#allocation45_spill]] %s1853_s5  ;;  %s1875_s5 = sld [smem:[#allocation7 + $0x28]] }
  0x61   :  { %4335 = sst [smem:[#allocation46_spill]] %s1855_s4  ;;  %s1877_s4 = sld [smem:[#allocation7 + $0x29]] }
  0x62   :  { %4336 = sst [smem:[#allocation47_spill]] %s1857_s16  ;;  %s1879_s16 = sld [smem:[#allocation7 + $0x2a]] }
  0x63   :  { %4337 = sst [smem:[#allocation48_spill]] %s1859_s15  ;;  %s1881_s15 = sld [smem:[#allocation7 + $0x2b]] }
  0x64   :  { %4338 = sst [smem:[#allocation49_spill]] %s1861_s18  ;;  %s1883_s18 = sld [smem:[#allocation7 + $0x2c]] }
  0x65   :  { %4339 = sst [smem:[#allocation50_spill]] %s1863_s0  ;;  %s1885_s0 = sld [smem:[#allocation7 + $0x2d]] }
  0x66   :  { %4340 = sst [smem:[#allocation51_spill]] %s1865_s13  ;;  %s1887_s13 = sld [smem:[#allocation7 + $0x2e]] }
  0x67   :  { %4341 = sst [smem:[#allocation52_spill]] %s1867_s3  ;;  %s1889_s3 = sld [smem:[#allocation7 + $0x2f]] }
  0x68   :  { %4342 = sst [smem:[#allocation53_spill]] %s1869_s19  ;;  %s1891_s19 = sld [smem:[#allocation7 + $0x30]]  ;;  %v582_v53 = vstv %s1879_s16 }
  0x69   :  { %4343 = sst [smem:[#allocation54_spill]] %s1871_s7  ;;  %s1893_s7 = sld [smem:[#allocation7 + $0x31]]  ;;  %v2115_v63 = vmul.f32 %v582_v53, %v1787_v0 }
  0x6a   :  { %4344 = sst [smem:[#allocation55_spill]] %s1873_s8  ;;  %s1895_s8 = sld [smem:[#allocation7 + $0x32]] }
  0x6b   :  { %4345 = sst [smem:[#allocation56_spill]] %s1875_s5  ;;  %s1897_s5 = sld [smem:[#allocation7 + $0x33]] }
  0x6c   :  { %4346 = sst [smem:[#allocation57_spill]] %s1877_s4  ;;  %s1899_s4 = sld [smem:[#allocation7 + $0x34]] }
  0x6d   :  { %4347 = sst [smem:[#allocation58_spill]] %s1879_s16  ;;  %s1965_s21 = sld [smem:[#allocation7 + $0x4b]] }
  0x6e   :  { %4348 = sst [smem:[#allocation59_spill]] %s1881_s15  ;;  %s1901_s15 = sld [smem:[#allocation7 + $0x35]] }
  0x6f   :  { %4349 = sst [smem:[#allocation60_spill]] %s1883_s18  ;;  %s1903_s18 = sld [smem:[#allocation7 + $0x36]] }
  0x70   :  { %4350 = sst [smem:[#allocation61_spill]] %s1885_s0  ;;  %s1905_s0 = sld [smem:[#allocation7 + $0x37]] }
  0x71   :  { %4351 = sst [smem:[#allocation62_spill]] %s1887_s13  ;;  %s1907_s13 = sld [smem:[#allocation7 + $0x38]] }
  0x72   :  { %4352 = sst [smem:[#allocation63_spill]] %s1889_s3  ;;  %s1909_s3 = sld [smem:[#allocation7 + $0x39]] }
  0x73   :  { %4353 = sst [smem:[#allocation64_spill]] %s1891_s19  ;;  %s1917_s19 = sld [smem:[#allocation7 + $0x3d]]  ;;  %v4145_v26 = vstv %s1965_s21 }
  0x74   :  { %4354 = sst [smem:[#allocation65_spill]] %s1893_s7  ;;  %s1911_s7 = sld [smem:[#allocation7 + $0x3a]]  ;;  %v2247_v16 = vmul.f32 %v4145_v26, %v1787_v0  ;;  %v2284_v26 = vmul.f32 %v1791_v1, %v305_v3  ;;  %v2305_v3 = vmul.f32 %v1791_v1, %v342_v5 }
  0x75   :  { %4355 = sst [smem:[#allocation66_spill]] %s1895_s8  ;;  %s1913_s8 = sld [smem:[#allocation7 + $0x3b]]  ;;  %v662_v54 = vstv %s1903_s18 }
  0x76   :  { %4356 = sst [smem:[#allocation67_spill]] %s1897_s5  ;;  %s1915_s5 = sld [smem:[#allocation7 + $0x3c]]  ;;  %v2163_v44 = vmul.f32 %v662_v54, %v1787_v0 }
  0x77   :  { %4357 = sst [smem:[#allocation68_spill]] %s1899_s4  ;;  %s1925_s4 = sld [smem:[#allocation7 + $0x41]] }
  0x78   :  { %4358 = sst [smem:[#allocation69_spill]] %s1901_s15  ;;  %s1919_s15 = sld [smem:[#allocation7 + $0x3e]]  ;;  %v682_v50 = vstv %s1909_s3 }
  0x79   :  { %4359 = sst [smem:[#allocation70_spill]] %s1903_s18  ;;  %s1975_s22 = sld [smem:[#allocation7 + $0x4c]]  ;;  %v2175_v40 = vmul.f32 %v682_v50, %v1787_v0 }
  0x7a   :  { %4360 = sst [smem:[#allocation71_spill]] %s1905_s0  ;;  %s1977_s24 = sld [smem:[#allocation7 + $0x4d]] }
  0x7b   :  { %4361 = sst [smem:[#allocation72_spill]] %s1907_s13  ;;  %s1921_s0 = sld [smem:[#allocation7 + $0x3f]] }
  0x7c   :  { %4362 = sst [smem:[#allocation73_spill]] %s1909_s3  ;;  %s1923_s13 = sld [smem:[#allocation7 + $0x40]]  ;;  %v4206_v46 = vstv %s1915_s5 }
  0x7d   :  { %4363 = sst [smem:[#allocation74_spill]] %s1911_s7  ;;  %s1930_s7 = sld [smem:[#allocation7 + $0x43]]  ;;  %v2187_v36 = vmul.f32 %v4206_v46, %v1787_v0 }
  0x7e   :  { %4364 = sst [smem:[#allocation75_spill]] %s1913_s8  ;;  %s1928_s8 = sld [smem:[#allocation7 + $0x42]] }
  0x7f   :  { %4365 = sst [smem:[#allocation76_spill]] %s1915_s5  ;;  %s1987_s26 = sld [smem:[#allocation7 + $0x4e]] }
  0x80   :  { %4366 = sst [smem:[#allocation77_spill]] %s1917_s19  ;;  %s1933_s19 = sld [smem:[#allocation7 + $0x44]] }
  0x81   :  { %4367 = sst [smem:[#allocation78_spill]] %s1919_s15  ;;  %s1935_s15 = sld [smem:[#allocation7 + $0x45]]  ;;  %v4205_v42 = vstv %s1921_s0 }
  0x82   :  { %4368 = sst [smem:[#allocation79_spill]] %s1921_s0  ;;  %s1999_s2 = sld [smem:[#allocation7 + $0x50]]  ;;  %v2199_v32 = vmul.f32 %v4205_v42, %v1787_v0 }
  0x83   :  { %4369 = sst [smem:[#allocation80_spill]] %s1923_s13  ;;  %s1942_s13 = sld [smem:[#allocation7 + $0x47]] }
  0x84   :  { %4370 = sst [smem:[#allocation81_spill]] %s1925_s4  ;;  %s1940_s4 = sld [smem:[#allocation7 + $0x46]]  ;;  %v4161_v38 = vstv %s1928_s8 }
  0x85   :  { %4371 = sst [smem:[#allocation82_spill]] %s1928_s8  ;;  %s1989_s23 = sld [smem:[#allocation7 + $0x4f]]  ;;  %v2211_v28 = vmul.f32 %v4161_v38, %v1787_v0  ;;  %v4141_v22 = vstv %s1987_s26 }
  0x86   :  { %4372 = sst [smem:[#allocation83_spill]] %s1930_s7  ;;  %s1953_s7 = sld [smem:[#allocation7 + $0x49]]  ;;  %v2258_v62 = vmul.f32 %v4141_v22, %v1787_v0 }
  0x87   :  { %4373 = sst [smem:[#allocation84_spill]] %s1933_s19  ;;  %s1951_s19 = sld [smem:[#allocation7 + $0x48]]  ;;  %v4156_v34 = vstv %s1935_s15 }
  0x88   :  { %4374 = sst [smem:[#allocation85_spill]] %s1935_s15  ;;  %s2011_s6 = sld [smem:[#allocation7 + $0x52]]  ;;  %v2223_v24 = vmul.f32 %v4156_v34, %v1787_v0  ;;  %v2353_v34 = vmul.f32 %v1791_v1, %v402_v17 }
  0x89   :  { %4376 = sst [smem:[#allocation87_spill]] %s1942_s13  ;;  %s2023_s11 = sld [smem:[#allocation7 + $0x54]] }
  0x8a   :  { %4375 = sst [smem:[#allocation86_spill]] %s1940_s4  ;;  %s2047_s17 = sld [smem:[#allocation7 + $0x58]] }
  0x8b   :  { %4379 = sst [smem:[#allocation90_spill]] %s1963_s20  ;;  %s4387_s20 = sld [smem:[#allocation43_spill]] }
  0x8c   :  { %4378 = sst [smem:[#allocation89_spill]] %s1953_s7  ;;  %s2035_s14 = sld [smem:[#allocation7 + $0x56]] }
  0x8d   :  { %4377 = sst [smem:[#allocation88_spill]] %s1951_s19  ;;  %s4397_s7 = sld [smem:[#allocation49_spill]]  ;;  %v4152_v30 = vstv %s1951_s19 }
  0x8e   :  { %4380 = sst [smem:[#allocation91_spill]] %s1965_s21  ;;  %s2059_s1 = sld [smem:[#allocation7 + $0x5a]]  ;;  %v2235_v20 = vmul.f32 %v4152_v30, %v1787_v0  ;;  %v2337_v30 = vmul.f32 %v1791_v1, %v382_v13 }
  0x8f   :  { %4381 = sst [smem:[#allocation92_spill]] %s1975_s22  ;;  %s4392_s22 = sld [smem:[#allocation46_spill]]  ;;  %v4151_v10 = vstv %s2023_s11 }
  0x90   :  { %4382 = sst [smem:[#allocation93_spill]] %s1977_s24  ;;  %s2001_s24 = sld [smem:[#allocation7 + $0x51]]  ;;  %v2298_v2 = vmul.f32 %v4151_v10, %v1787_v0 }
  0x91   :  { %4384 = sst [smem:[#allocation94_spill]] %s1987_s26  ;;  %v482_v33 = vstv %s4387_s20  ;;  %s2071_s20 = sld [smem:[#allocation7 + $0x5c]] }
  0x92   :  { %4386 = sst [smem:[#allocation95_spill]] %s1989_s23  ;;  %s2013_s23 = sld [smem:[#allocation7 + $0x53]]  ;;  %v2055_v43 = vmul.f32 %v482_v33, %v1787_v0 }
  0x93   :  { %4389 = sst [smem:[#allocation96_spill]] %s1999_s2  ;;  %s2025_s2 = sld [smem:[#allocation7 + $0x55]]  ;;  %v522_v41 = vstv %s4397_s7 }
  0x94   :  { %4394 = sst [smem:[#allocation98_spill]] %s2011_s6  ;;  %s4407_s6 = sld [smem:[#allocation55_spill]]  ;;  %v2079_v51 = vmul.f32 %v522_v41, %v1787_v0  ;;  %v2441_v38 = vmul.f32 %v1791_v1, %v522_v41 }
  0x95   :  { %4399 = sst [smem:[#allocation100_spill]] %s2023_s11  ;;  %v502_v37 = vstv %s4392_s22  ;;  %s2083_s22 = sld [smem:[#allocation7 + $0x5e]] }
  0x96   :  { %4391 = sst [smem:[#allocation97_spill]] %s2001_s24  ;;  %s4402_s24 = sld [smem:[#allocation52_spill]]  ;;  %v2067_v47 = vmul.f32 %v502_v37, %v1787_v0  ;;  %v2429_v17 = vmul.f32 %v1791_v1, %v502_v37  ;;  %4551 = vst [vmem:[#allocation155_spill] sm:$0xff] %v2441_v38  ;;  %v2485_v37 = vmul.f32 %v1791_v1, %v582_v53 }
  0x97   :  { %4404 = sst [smem:[#allocation102_spill]] %s2035_s14  ;;  %s2061_s14 = sld [smem:[#allocation7 + $0x5b]] }
  0x98   :  { %4396 = sst [smem:[#allocation99_spill]] %s2013_s23  ;;  %s2037_s23 = sld [smem:[#allocation7 + $0x57]]  ;;  %4546 = vst [vmem:[#allocation154_spill] sm:$0xff] %v2429_v17  ;;  %4574 = vst [vmem:[#allocation162_spill] sm:$0xff] %v2485_v37 }
  0x99   :  { %4401 = sst [smem:[#allocation101_spill]] %s2025_s2  ;;  %s2049_s2 = sld [smem:[#allocation7 + $0x59]] }
  0x9a   :  { %4409 = sst [smem:[#allocation104_spill]] %s2047_s17  ;;  %v562_v49 = vstv %s4407_s6  ;;  %s2119_s6 = sld [smem:[#allocation8 + $0x4]] }
  0x9b   :  { %4413 = sst [smem:[#allocation106_spill]] %s2059_s1  ;;  %s4421_s17 = sld [smem:[#allocation64_spill]]  ;;  %v2103_v59 = vmul.f32 %v562_v49, %v1787_v0  ;;  %v2473_v13 = vmul.f32 %v1791_v1, %v562_v49 }
  0x9c   :  { %v542_v45 = vstv %s4402_s24  ;;  %4418 = sst [smem:[#allocation108_spill]] %s2071_s20  ;;  %s4426_s1 = sld [smem:[#allocation67_spill]] }
  0x9d   :  { %4415 = sst [smem:[#allocation107_spill]] %s2061_s14  ;;  %s2085_s14 = sld [smem:[#allocation7 + $0x5f]]  ;;  %v2091_v55 = vmul.f32 %v542_v45, %v1787_v0  ;;  %v2453_v10 = vmul.f32 %v1791_v1, %v542_v45  ;;  %4568 = vst [vmem:[#allocation160_spill] sm:$0xff] %v2473_v13 }
  0x9e   :  { %4406 = sst [smem:[#allocation103_spill]] %s2037_s23  ;;  %s4416_s23 = sld [smem:[#allocation61_spill]] }
  0x9f   :  { %4411 = sst [smem:[#allocation105_spill]] %s2049_s2  ;;  %s2073_s2 = sld [smem:[#allocation7 + $0x5d]]  ;;  %4556 = vst [vmem:[#allocation158_spill] sm:$0xff] %v2453_v10 }
  0xa0   :  { %4423 = sst [smem:[#allocation110_spill]] %s2083_s22  ;;  %s2095_s7 = sld [smem:[#allocation8]] }
  0xa1   :  { %s2097_s20 = sld [smem:[#allocation8 + $0x1]]  ;;  %v622_v61 = vstv %s4421_s17  ;;  %s2107_s24 = sld [smem:[#allocation8 + $0x2]] }
  0xa2   :  { %v642_v58 = vstv %s4426_s1  ;;  %4436 = sst [smem:[#allocation116_spill]] %s2119_s6  ;;  %s2131_s16 = sld [smem:[#allocation8 + $0x6]]  ;;  %v2139_v52 = vmul.f32 %v622_v61, %v1787_v0  ;;  %v2504_v45 = vmul.f32 %v1791_v1, %v622_v61 }
  0xa3   :  { %4425 = sst [smem:[#allocation111_spill]] %s2085_s14  ;;  %s2109_s14 = sld [smem:[#allocation8 + $0x3]]  ;;  %v2151_v48 = vmul.f32 %v642_v58, %v1787_v0 }
  0xa4   :  { %v602_v57 = vstv %s4416_s23  ;;  %s2143_s23 = sld [smem:[#allocation8 + $0x8]]  ;;  %s2155_s17 = sld [smem:[#allocation8 + $0xa]]  ;;  %4580 = vst [vmem:[#allocation164_spill] sm:$0xff] %v2504_v45 }
  0xa5   :  { %4420 = sst [smem:[#allocation109_spill]] %s2073_s2  ;;  %v2127_v56 = vmul.f32 %v602_v57, %v1787_v0  ;;  %s2167_s1 = sld [smem:[#allocation8 + $0xc]]  ;;  %v2493_v41 = vmul.f32 %v1791_v1, %v602_v57  ;;  %v2509_v57 = vmul.f32 %v1791_v1, %v642_v58 }
  0xa6   :  { %4428 = sst [smem:[#allocation112_spill]] %s2095_s7  ;;  %s2179_s18 = sld [smem:[#allocation8 + $0xe]] }
  0xa7   :  { %4430 = sst [smem:[#allocation113_spill]] %s2097_s20  ;;  %s2121_s20 = sld [smem:[#allocation8 + $0x5]]  ;;  %4575 = vst [vmem:[#allocation163_spill] sm:$0xff] %v2493_v41  ;;  %4582 = vst [vmem:[#allocation165_spill] sm:$0xff] %v2509_v57 }
  0xa8   :  { %4432 = sst [smem:[#allocation114_spill]] %s2107_s24  ;;  %s2191_s3 = sld [smem:[#allocation8 + $0x10]] }
  0xa9   :  { %4434 = sst [smem:[#allocation115_spill]] %s2109_s14  ;;  %s2133_s14 = sld [smem:[#allocation8 + $0x7]] }
  0xaa   :  { %4440 = sst [smem:[#allocation118_spill]] %s2131_s16  ;;  %s2193_s29 = sld [smem:[#allocation8 + $0x11]] }
  0xab   :  { %4444 = sst [smem:[#allocation120_spill]] %s2143_s23  ;;  %s2203_s30 = sld [smem:[#allocation8 + $0x12]] }
  0xac   :  { %4448 = sst [smem:[#allocation122_spill]] %s2155_s17  ;;  %s2205_s5 = sld [smem:[#allocation8 + $0x13]] }
  0xad   :  { %4438 = sst [smem:[#allocation117_spill]] %s2121_s20  ;;  %s2145_s20 = sld [smem:[#allocation8 + $0x9]] }
  0xae   :  { %4452 = sst [smem:[#allocation124_spill]] %s2167_s1  ;;  %s2227_s8 = sld [smem:[#allocation8 + $0x16]] }
  0xaf   :  { %4442 = sst [smem:[#allocation119_spill]] %s2133_s14  ;;  %s2157_s14 = sld [smem:[#allocation8 + $0xb]] }
  0xb0   :  { %4456 = sst [smem:[#allocation126_spill]] %s2179_s18  ;;  %s2215_s0 = sld [smem:[#allocation8 + $0x14]] }
  0xb1   :  { %4460 = sst [smem:[#allocation128_spill]] %s2191_s3  ;;  %s4481_s19 = sld [smem:[#allocation106_spill]] }
  0xb2   :  { %4461 = sst [smem:[#allocation129_spill]] %s2193_s29  ;;  %s2217_s29 = sld [smem:[#allocation8 + $0x15]] }
  0xb3   :  { %4446 = sst [smem:[#allocation121_spill]] %s2145_s20  ;;  %s2169_s20 = sld [smem:[#allocation8 + $0xd]] }
  0xb4   :  { %4462 = sst [smem:[#allocation130_spill]] %s2203_s30  ;;  %s2239_s15 = sld [smem:[#allocation8 + $0x18]] }
  0xb5   :  { %4450 = sst [smem:[#allocation123_spill]] %s2157_s14  ;;  %s2181_s14 = sld [smem:[#allocation8 + $0xf]] }
  0xb6   :  { %4464 = sst [smem:[#allocation131_spill]] %s2205_s5  ;;  %s2229_s5 = sld [smem:[#allocation8 + $0x17]] }
  0xb7   :  { %4467 = sst [smem:[#allocation132_spill]] %s2215_s0  ;;  %s4479_s0 = sld [smem:[#allocation103_spill]]  ;;  %v4158_v12 = vstv %s4481_s19 }
  0xb8   :  { %4469 = sst [smem:[#allocation133_spill]] %s2217_s29  ;;  %s2241_s29 = sld [smem:[#allocation8 + $0x19]]  ;;  %v2330_v5 = vmul.f32 %v4158_v12, %v1787_v0  ;;  %v2385_v12 = vmul.f32 %v1791_v1, %v442_v25  ;;  %v2533_v25 = vmul.f32 %v1791_v1, %v682_v50 }
  0xb9   :  { %4454 = sst [smem:[#allocation125_spill]] %s2169_s20  ;;  %s2263_s21 = sld [smem:[#allocation8 + $0x1c]] }
  0xba   :  { %4472 = sst [smem:[#allocation134_spill]] %s2227_s8  ;;  %s2253_s8 = sld [smem:[#allocation8 + $0x1b]]  ;;  %4596 = vst [vmem:[#allocation167_spill] sm:$0xff] %v2533_v25 }
  0xbb   :  { %4458 = sst [smem:[#allocation127_spill]] %s2181_s14  ;;  %s4465_s14 = sld [smem:[#allocation97_spill]] }
  0xbc   :  { %4474 = sst [smem:[#allocation135_spill]] %s2229_s5  ;;  %s2251_s5 = sld [smem:[#allocation8 + $0x1a]] }
  0xbd   :  { %4476 = sst [smem:[#allocation136_spill]] %s2239_s15  ;;  %s2265_s3 = sld [smem:[#allocation8 + $0x1d]]  ;;  %v4155_v22 = vstv %s4479_s0 }
  0xbe   :  { %4478 = sst [smem:[#allocation137_spill]] %s2241_s29  ;;  %s2275_s25 = sld [smem:[#allocation8 + $0x1e]]  ;;  %v2314_v4 = vmul.f32 %v4155_v22, %v1787_v0  ;;  %v2417_v22 = vmul.f32 %v1791_v1, %v482_v33 }
  0xbf   :  { %4487 = sst [smem:[#allocation19_spill]] %s2263_s21  ;;  %s2291_s28 = sld [smem:[#allocation10 + $0x1]] }
  0xc0   :  { %4484 = sst [smem:[#allocation16_spill]] %s2253_s8  ;;  %s2277_s8 = sld [smem:[#allocation8 + $0x1f]]  ;;  %4541 = vst [vmem:[#allocation152_spill] sm:$0xff] %v2417_v22 }
  0xc1   :  { %v4149_v18 = vstv %s4465_s14  ;;  %s2307_s9 = sld [smem:[#allocation10 + $0x7]]  ;;  %s2309_s13 = sld [smem:[#allocation10 + $0xa]] }
  0xc2   :  { %4482 = sst [smem:[#allocation138_spill]] %s2251_s5  ;;  %v2270_v14 = vmul.f32 %v4149_v18, %v1787_v0  ;;  %v4165_v18 = vstv %s2073_s2  ;;  %s2323_s10 = sld [smem:[#allocation10 + $0xd]] }
  0xc3   :  { %4488 = sst [smem:[#allocation139_spill]] %s2265_s3  ;;  %s2325_s11 = sld [smem:[#allocation10 + $0x10]]  ;;  %v2346_v9 = vmul.f32 %v4165_v18, %v1787_v0  ;;  %v2373_v18 = vmul.f32 %v1791_v1, %v422_v21  ;;  %v2405_v0 = vmul.f32 %v1791_v1, %v462_v29  ;;  %v2525_v21 = vmul.f32 %v1791_v1, %v662_v54 }
  0xc4   :  { %4491 = sst [smem:[#allocation22_spill]] %s2275_s25  ;;  %s2293_s25 = sld [smem:[#allocation10 + $0x4]] }
  0xc5   :  { %4496 = sst [smem:[#allocation25_spill]] %s2291_s28  ;;  %s2339_s27 = sld [smem:[#allocation10 + $0x13]]  ;;  %4535 = vst [vmem:[#allocation150_spill] sm:$0xff] %v2405_v0  ;;  %4591 = vst [vmem:[#allocation166_spill] sm:$0xff] %v2525_v21 }
  0xc6   :  { %4493 = sst [smem:[#allocation140_spill]] %s2277_s8  ;;  %s2341_s26 = sld [smem:[#allocation10 + $0x16]] }
  0xc7   :  { %4501 = sst [smem:[#allocation28_spill]] %s2309_s13  ;;  %s2355_s14 = sld [smem:[#allocation10 + $0x19]] }
  0xc8   :  { %s2357_s19 = sld [smem:[#allocation10 + $0x1c]]  ;;  %s2363_s22 = sld [smem:[#allocation10 + $0x1f]] }
  0xc9   :  { %4504 = sst [smem:[#allocation31_spill]] %s2325_s11  ;;  %s2375_s12 = sld [smem:[#allocation10 + $0x25]] }
  0xca   :  { %4498 = sst [smem:[#allocation141_spill]] %s2293_s25  ;;  %s2365_s25 = sld [smem:[#allocation10 + $0x22]] }
  0xcb   :  { %4507 = sst [smem:[#allocation142_spill]] %s2339_s27  ;;  %s2377_s13 = sld [smem:[#allocation10 + $0x28]] }
  0xcc   :  { %4508 = sst [smem:[#allocation143_spill]] %s2341_s26  ;;  %s2387_s0 = sld [smem:[#allocation10 + $0x2b]] }
  0xcd   :  { %4511 = sst [smem:[#allocation34_spill]] %s2355_s14  ;;  %s2389_s5 = sld [smem:[#allocation10 + $0x2e]] }
  0xce   :  { %4513 = sst [smem:[#allocation144_spill]] %s2357_s19  ;;  %s2395_s23 = sld [smem:[#allocation10 + $0x31]] }
  0xcf   :  { %4516 = sst [smem:[#allocation37_spill]] %s2363_s22  ;;  %s2397_s4 = sld [smem:[#allocation10 + $0x34]] }
  0xd0   :  { %4517 = sst [smem:[#allocation145_spill]] %s2365_s25  ;;  %s2407_s2 = sld [smem:[#allocation10 + $0x37]] }
  0xd1   :  { %4519 = sst [smem:[#allocation146_spill]] %s2375_s12  ;;  %s2419_s24 = sld [smem:[#allocation10 + $0x3d]] }
  0xd2   :  { %4521 = sst [smem:[#allocation147_spill]] %s2377_s13  ;;  %s2409_s20 = sld [smem:[#allocation10 + $0x3a]] }
  0xd3   :  { %4524 = sst [smem:[#allocation40_spill]] %s2387_s0  ;;  %s2431_s25 = sld [smem:[#allocation10 + $0x43]] }
  0xd4   :  { %4526 = sst [smem:[#allocation148_spill]] %s2389_s5  ;;  %s2421_s15 = sld [smem:[#allocation10 + $0x40]] }
  0xd5   :  { %4530 = sst [smem:[#allocation43_spill]] %s2395_s23  ;;  %s2433_s30 = sld [smem:[#allocation10 + $0x46]] }
  0xd6   :  { %4532 = sst [smem:[#allocation149_spill]] %s2397_s4  ;;  %s2443_s12 = sld [smem:[#allocation10 + $0x49]] }
  0xd7   :  { %4537 = sst [smem:[#allocation46_spill]] %s2407_s2  ;;  %s4553_s27 = sld [smem:[#allocation28_spill]] }
  0xd8   :  { %4538 = sst [smem:[#allocation151_spill]] %s2409_s20  ;;  %s2445_s8 = sld [smem:[#allocation10 + $0x4c]] }
  0xd9   :  { %4543 = sst [smem:[#allocation49_spill]] %s2419_s24  ;;  %s2455_s1 = sld [smem:[#allocation10 + $0x4f]] }
  0xda   :  { %4544 = sst [smem:[#allocation153_spill]] %s2421_s15  ;;  %s4558_s29 = sld [smem:[#allocation142_spill]] }
  0xdb   :  { %4547 = sst [smem:[#allocation52_spill]] %s2431_s25  ;;  %s2457_s17 = sld [smem:[#allocation10 + $0x52]] }
  0xdc   :  { %4552 = sst [smem:[#allocation156_spill]] %s2443_s12  ;;  %s2463_s4 = sld [smem:[#allocation10 + $0x55]] }
  0xdd   :  { %s2465_s7 = sld [smem:[#allocation10 + $0x58]]  ;;  %s2475_s16 = sld [smem:[#allocation10 + $0x5b]] }
  0xde   :  { %4554 = sst [smem:[#allocation157_spill]] %s2445_s8  ;;  %s2477_s3 = sld [smem:[#allocation10 + $0x5e]] }
  0xdf   :  { %4557 = sst [smem:[#allocation55_spill]] %s2455_s1  ;;  %s4578_s0 = sld [smem:[#allocation157_spill]] }
  0xe0   :  { %s4576_s15 = sld [smem:[#allocation153_spill]]  ;;  %s2515_s5 = sld [smem:[#allocation10 + $0x2]] }
  0xe1   :  { %4559 = sst [smem:[#allocation159_spill]] %s2457_s17  ;;  %s4581_s21 = sld [smem:[#allocation55_spill]] }
  0xe2   :  { %4562 = sst [smem:[#allocation58_spill]] %s2463_s4  ;;  %s4585_s6 = sld [smem:[#allocation76_spill]] }
  0xe3   :  { %4563 = sst [smem:[#allocation61_spill]] %s2465_s7  ;;  %s4583_s18 = sld [smem:[#allocation58_spill]] }
  0xe4   :  { %4569 = sst [smem:[#allocation161_spill]] %s2475_s16  ;;  %s2517_s28 = sld [smem:[#allocation10 + $0x5]] }
  0xe5   :  { %4571 = sst [smem:[#allocation64_spill]] %s2477_s3  ;;  %s4587_s8 = sld [smem:[#allocation79_spill]] }
  0xe6   :  { %4584 = sst [smem:[#allocation67_spill]] %s2515_s5  ;;  %s4588_s4 = sld [smem:[#allocation82_spill]] }
  0xe7   :  { %s4589_s1 = sld [smem:[#allocation85_spill]]  ;;  %s4590_s23 = sld [smem:[#allocation88_spill]] }
  0xe8   :  { %s4592_s2 = sld [smem:[#allocation91_spill]]  ;;  %s4593_s20 = sld [smem:[#allocation94_spill]]  ;;  %v4600_v42 = vstv %s4585_s6 }
  0xe9   :  { %s4594_s13 = sld [smem:[#allocation97_spill]]  ;;  %s4595_s22 = sld [smem:[#allocation100_spill]]  ;;  %v2544_v53 = vmul.f32 %v1791_v1, %v4600_v42 }
  0xea   :  { %4586 = sst [smem:[#allocation70_spill]] %s2517_s28  ;;  %s4597_s24 = sld [smem:[#allocation103_spill]] }
  0xeb   :  { %s4598_s11 = sld [smem:[#allocation106_spill]]  ;;  %s4599_s25 = sld [smem:[#allocation109_spill]]  ;;  %4601 = vst [vmem:[#allocation168_spill] sm:$0xff] %v2544_v53  ;;  %v4602_v33 = vstv %s4587_s8 }
  0xec   :  { %s4603_s19 = sld [smem:[#allocation17_spill]]  ;;  %v2549_v50 = vmul.f32 %v1791_v1, %v4602_v33  ;;  %v4605_v25 = vstv %s4588_s4  ;;  %s4606_s17 = sld [smem:[#allocation18_spill]] }
  0xed   :  { %v2554_v58 = vmul.f32 %v1791_v1, %v4605_v25  ;;  %v4608_v29 = vstv %s4589_s1  ;;  %s4609_s16 = sld [smem:[#allocation20_spill]]  ;;  %v4611_v49 = vstv %s4590_s23  ;;  %s4612_s6 = sld [smem:[#allocation21_spill]] }
  0xee   :  { %4604 = vst [vmem:[#allocation169_spill] sm:$0xff] %v2549_v50  ;;  %v2559_v54 = vmul.f32 %v1791_v1, %v4608_v29  ;;  %v2564_v42 = vmul.f32 %v1791_v1, %v4611_v49  ;;  %v4614_v61 = vstv %s4592_s2  ;;  %s4615_s8 = sld [smem:[#allocation23_spill]]  ;;  %v4617_v46 = vstv %s4593_s20  ;;  %s4618_s4 = sld [smem:[#allocation24_spill]] }
  0xef   :  { %4607 = vst [vmem:[#allocation170_spill] sm:$0xff] %v2554_v58  ;;  %v2569_v33 = vmul.f32 %v1791_v1, %v4614_v61  ;;  %v2574_v25 = vmul.f32 %v1791_v1, %v4617_v46  ;;  %v4620_v58 = vstv %s4594_s13  ;;  %s4621_s1 = sld [smem:[#allocation26_spill]]  ;;  %s4624_s23 = sld [smem:[#allocation27_spill]]  ;;  %v2591_v61 = vpop.permute.xlu0 %301 }
  0xf0   :  { %4610 = vst [vmem:[#allocation171_spill] sm:$0xff] %v2559_v54  ;;  %4613 = vst [vmem:[#allocation172_spill] sm:$0xff] %v2564_v42  ;;  %v2579_v29 = vmul.f32 %v1791_v1, %v4620_v58  ;;  %v4623_v54 = vstv %s4595_s22  ;;  %v4626_v42 = vstv %s4597_s24  ;;  %s4628_s20 = sld [smem:[#allocation29_spill]]  ;;  %s4630_s2 = sld [smem:[#allocation30_spill]] }
  0xf1   :  { %4616 = vst [vmem:[#allocation173_spill] sm:$0xff] %v2569_v33  ;;  %4619 = vst [vmem:[#allocation174_spill] sm:$0xff] %v2574_v25  ;;  %v2584_v49 = vmul.f32 %v1791_v1, %v4623_v54  ;;  %v2589_v50 = vmul.f32 %v1791_v1, %v4626_v42  ;;  %v2593_v33 = vpop.permute.xlu1 %303  ;;  %v4629_v46 = vstv %s4598_s11  ;;  %v4632_v58 = vstv %s4599_s25  ;;  %s4634_s22 = sld [smem:[#allocation32_spill]]  ;;  %s4636_s24 = sld [smem:[#allocation33_spill]] }
  0xf2   :  { %4622 = vst [vmem:[#allocation175_spill] sm:$0xff] %v2579_v29  ;;  %v2598_v25 = vmul.f32 %v1791_v1, %v4629_v46  ;;  %v2603_v29 = vmul.f32 %v1791_v1, %v4632_v58  ;;  %v4635_v42 = vstv %s4603_s19  ;;  %v4637_v53 = vstv %s4606_s17  ;;  %s4641_s13 = sld [smem:[#allocation35_spill]]  ;;  %s4645_s25 = sld [smem:[#allocation36_spill]] }
  0xf3   :  { %4625 = vst [vmem:[#allocation176_spill] sm:$0xff] %v2584_v49  ;;  %4627 = vst [vmem:[#allocation177_spill] sm:$0xff] %v2589_v50  ;;  %v308_v50 = vmul.f32 %v4635_v42, %v2591_v61  ;;  %v311_v21 = vmul.f32 %v4637_v53, %v2593_v33  ;;  %v4638_v57 = vstv %s4609_s16  ;;  %v4639_v46 = vstv %s4612_s6  ;;  %s4646_s11 = sld [smem:[#allocation112_spill]]  ;;  %s4648_s28 = sld [smem:[#allocation113_spill]] }
  0xf4   :  { %4631 = vst [vmem:[#allocation178_spill] sm:$0xff] %v2598_v25  ;;  %4633 = vst [vmem:[#allocation179_spill] sm:$0xff] %v2603_v29  ;;  %v325_v45 = vmul.f32 %v4638_v57, %v2591_v61  ;;  %v328_v25 = vmul.f32 %v4639_v46, %v2593_v33  ;;  %v4640_v41 = vstv %s4615_s8  ;;  %v4642_v58 = vstv %s4618_s4  ;;  %s4650_s5 = sld [smem:[#allocation114_spill]]  ;;  %s4652_s3 = sld [smem:[#allocation115_spill]] }
  0xf5   :  { %v345_v1 = vmul.f32 %v4640_v41, %v2591_v61  ;;  %v348_v49 = vmul.f32 %v4642_v58, %v2593_v33  ;;  %v4643_v54 = vstv %s4621_s1  ;;  %v4644_v42 = vstv %s4624_s23  ;;  %s4654_s23 = sld [smem:[#allocation38_spill]] }
  0xf6   :  { %v365_v29 = vmul.f32 %v4643_v54, %v2591_v61  ;;  %v368_v37 = vmul.f32 %v4644_v42, %v2593_v33  ;;  %v309_v53 = vadd.f32 %v308_v50, %v1947_v7  ;;  %v326_v57 = vadd.f32 %v325_v45, %v1959_v11 }
  0xf7   :  { %v4647_v46 = vstv %s4628_s20  ;;  %v4649_v41 = vstv %s4630_s2  ;;  %v346_v58 = vadd.f32 %v345_v1, %v1971_v15  ;;  %v4651_v42 = vstv %s4634_s22  ;;  %s4656_s2 = sld [smem:[#allocation116_spill]]  ;;  %s4658_s22 = sld [smem:[#allocation117_spill]] }
  0xf8   :  { %v385_v13 = vmul.f32 %v4647_v46, %v2591_v61  ;;  %v388_v10 = vmul.f32 %v4649_v41, %v2593_v33  ;;  %v366_v54 = vadd.f32 %v365_v29, %v1983_v19  ;;  %v405_v38 = vmul.f32 %v4651_v42, %v2591_v61  ;;  %s4662_s20 = sld [smem:[#allocation141_spill]] }
  0xf9   :  { %v4653_v7 = vstv %s4636_s24  ;;  %v312_v11 = vadd.f32 %v311_v21, %v309_v53  ;;  %v329_v45 = vadd.f32 %v328_v25, %v326_v57  ;;  %v4655_v17 = vstv %s4641_s13  ;;  %s4661_s24 = sld [smem:[#allocation25_spill]]  ;;  %s4664_s13 = sld [smem:[#allocation118_spill]] }
  0xfa   :  { %v408_v50 = vmul.f32 %v4653_v7, %v2593_v33  ;;  %v386_v46 = vadd.f32 %v385_v13, %v1995_v23  ;;  %v425_v41 = vmul.f32 %v4655_v17, %v2591_v61  ;;  %v349_v15 = vadd.f32 %v348_v49, %v346_v58 }
  0xfb   :  { %v369_v1 = vadd.f32 %v368_v37, %v366_v54  ;;  %v406_v19 = vadd.f32 %v405_v38, %v2007_v27  ;;  %v4657_v29 = vstv %s4645_s25  ;;  %v4659_v22 = vstv %s4646_s11  ;;  %s4667_s25 = sld [smem:[#allocation39_spill]] }
  0xfc   :  { %v428_v42 = vmul.f32 %v4657_v29, %v2593_v33  ;;  %v314_v0 = vadd.f32 %v4659_v22, %v312_v11  ;;  %v4660_v7 = vstv %s4648_s28  ;;  %v389_v25 = vadd.f32 %v388_v10, %v386_v46  ;;  %s4674_s28 = sld [smem:[#allocation44_spill]] }
  0xfd   :  { %v331_v21 = vadd.f32 %v4660_v7, %v329_v45  ;;  %v426_v23 = vadd.f32 %v425_v41, %v2019_v31  ;;  %v4663_v13 = vstv %s4650_s5  ;;  %v4665_v49 = vstv %s4652_s3  ;;  %s4669_s5 = sld [smem:[#allocation41_spill]]  ;;  %s4670_s3 = sld [smem:[#allocation31_spill]] }
  0xfe   :  { %v351_v17 = vadd.f32 %v4663_v13, %v349_v15  ;;  %v371_v37 = vadd.f32 %v4665_v49, %v369_v1  ;;  %v409_v27 = vadd.f32 %v408_v50, %v406_v19  ;;  %v4666_v38 = vstv %s4654_s23  ;;  %s4672_s23 = sld [smem:[#allocation42_spill]] }
  0xff   :  { %v445_v53 = vmul.f32 %v4666_v38, %v2591_v61  ;;  %v2667_v22 = vmax.f32 %v314_v0, 0.0  ;;  %v2669_v57 = vmax.f32 %v331_v21, 0.0  ;;  %v4668_v58 = vstv %s4656_s2  ;;  %s4678_s2 = sld [smem:[#allocation45_spill]] }
 0x100   :  { %v391_v10 = vadd.f32 %v4668_v58, %v389_v25  ;;  %v429_v31 = vadd.f32 %v428_v42, %v426_v23  ;;  %v2673_v54 = vmax.f32 %v351_v17, 0.0  ;;  %v2675_v11 = vmax.f32 %v371_v37, 0.0 }
 0x101   :  { %v4671_v45 = vstv %s4658_s22  ;;  %v446_v46 = vadd.f32 %v445_v53, %v2031_v35  ;;  %v4673_v0 = vstv %s4661_s24  ;;  %v4675_v15 = vstv %s4662_s20  ;;  %s4680_s22 = sld [smem:[#allocation119_spill]]  ;;  %s4683_s20 = sld [smem:[#allocation48_spill]] }
 0x102   :  { %v411_v50 = vadd.f32 %v4671_v45, %v409_v27  ;;  %v319_v41 = vmul.f32 %v4673_v0, %v2667_v22  ;;  %v337_v1 = vmul.f32 %v4675_v15, %v2669_v57  ;;  %v2686_v19 = vmax.f32 %v391_v10, 0.0  ;;  %s4682_s24 = sld [smem:[#allocation47_spill]] }
 0x103   :  { %v4676_v29 = vstv %s4664_s13  ;;  %v4677_v7 = vstv %s2307_s9  ;;  %v4679_v25 = vstv %s4553_s27  ;;  %v4681_v13 = vstv %s4667_s25  ;;  %s4686_s13 = sld [smem:[#allocation50_spill]]  ;;  %s4688_s27 = sld [smem:[#allocation51_spill]] }
 0x104   :  { %v431_v42 = vadd.f32 %v4676_v29, %v429_v31  ;;  %v357_v21 = vmul.f32 %v4677_v7, %v2673_v54  ;;  %v377_v35 = vmul.f32 %v4679_v25, %v2675_v11  ;;  %v2696_v23 = vmax.f32 %v411_v50, 0.0  ;;  %s4691_s25 = sld [smem:[#allocation53_spill]] }
 0x105   :  { %v448_v17 = vmul.f32 %v4681_v13, %v2593_v33  ;;  %v338_v49 = vadd.f32 %v337_v1, %v319_v41  ;;  %v4684_v37 = vstv %s2323_s10  ;;  %v4685_v53 = vstv %s4669_s5  ;;  %s4693_s5 = sld [smem:[#allocation120_spill]] }
 0x106   :  { %v397_v27 = vmul.f32 %v4684_v37, %v2686_v19  ;;  %v2704_v38 = vmax.f32 %v431_v42, 0.0  ;;  %v465_v58 = vmul.f32 %v4685_v53, %v2591_v61  ;;  %v4687_v10 = vstv %s4670_s3  ;;  %s4696_s3 = sld [smem:[#allocation54_spill]] }
 0x107   :  { %v417_v31 = vmul.f32 %v4687_v10, %v2696_v23  ;;  %v449_v45 = vadd.f32 %v448_v17, %v446_v46  ;;  %v4689_v50 = vstv %s4672_s23  ;;  %v4690_v15 = vstv %s4674_s28  ;;  %s4698_s28 = sld [smem:[#allocation121_spill]] }
 0x108   :  { %v468_v0 = vmul.f32 %v4689_v50, %v2593_v33  ;;  %v485_v41 = vmul.f32 %v4690_v15, %v2591_v61  ;;  %v358_v1 = vadd.f32 %v357_v21, %v338_v49  ;;  %v4692_v29 = vstv %s4558_s29  ;;  %s4702_s29 = sld [smem:[#allocation56_spill]] }
 0x109   :  { %v437_v42 = vmul.f32 %v4692_v29, %v2704_v38  ;;  %v466_v7 = vadd.f32 %v465_v58, %v2043_v39  ;;  %v4694_v25 = vstv %s4678_s2  ;;  %v4695_v37 = vstv %s4680_s22  ;;  %s4703_s22 = sld [smem:[#allocation122_spill]] }
 0x10a   :  { %v488_v13 = vmul.f32 %v4694_v25, %v2593_v33  ;;  %v451_v46 = vadd.f32 %v4695_v37, %v449_v45  ;;  %v486_v17 = vadd.f32 %v485_v41, %v2055_v43  ;;  %v4697_v53 = vstv %s4682_s24  ;;  %s4713_s24 = sld [smem:[#allocation59_spill]]  ;;  %s4726_s2 = sld [smem:[#allocation146_spill]] }
 0x10b   :  { %v505_v10 = vmul.f32 %v4697_v53, %v2591_v61  ;;  %v4699_v21 = vstv %s4683_s20  ;;  %v378_v50 = vadd.f32 %v377_v35, %v358_v1  ;;  %v469_v15 = vadd.f32 %v468_v0, %v466_v7  ;;  %s4705_s20 = sld [smem:[#allocation57_spill]] }
 0x10c   :  { %v508_v49 = vmul.f32 %v4699_v21, %v2593_v33  ;;  %v4700_v39 = vstv %s4686_s13  ;;  %v4701_v29 = vstv %s4688_s27  ;;  %v2740_v45 = vmax.f32 %v451_v46, 0.0  ;;  %s4708_s27 = sld [smem:[#allocation123_spill]]  ;;  %s4711_s13 = sld [smem:[#allocation144_spill]] }
 0x10d   :  { %v525_v58 = vmul.f32 %v4700_v39, %v2591_v61  ;;  %v528_v25 = vmul.f32 %v4701_v29, %v2593_v33  ;;  %v489_v37 = vadd.f32 %v488_v13, %v486_v17  ;;  %v506_v43 = vadd.f32 %v505_v10, %v2067_v47 }
 0x10e   :  { %v4704_v41 = vstv %s4691_s25  ;;  %v398_v21 = vadd.f32 %v397_v27, %v378_v50  ;;  %v4706_v35 = vstv %s4693_s5  ;;  %v4707_v7 = vstv %s4696_s3  ;;  %s4712_s25 = sld [smem:[#allocation124_spill]]  ;;  %s4722_s5 = sld [smem:[#allocation145_spill]] }
 0x10f   :  { %v545_v53 = vmul.f32 %v4704_v41, %v2591_v61  ;;  %v471_v0 = vadd.f32 %v4706_v35, %v469_v15  ;;  %v526_v1 = vadd.f32 %v525_v58, %v2079_v51  ;;  %v548_v39 = vmul.f32 %v4707_v7, %v2593_v33  ;;  %s4715_s3 = sld [smem:[#allocation60_spill]] }
 0x110   :  { %v4709_v46 = vstv %s2341_s26  ;;  %v4710_v17 = vstv %s4698_s28  ;;  %v509_v10 = vadd.f32 %v508_v49, %v506_v43  ;;  %v418_v27 = vadd.f32 %v417_v31, %v398_v21  ;;  %s4717_s26 = sld [smem:[#allocation37_spill]]  ;;  %s4719_s28 = sld [smem:[#allocation62_spill]] }
 0x111   :  { %v457_v13 = vmul.f32 %v4709_v46, %v2740_v45  ;;  %v491_v47 = vadd.f32 %v4710_v17, %v489_v37  ;;  %v546_v29 = vadd.f32 %v545_v53, %v2091_v55  ;;  %v2758_v50 = vmax.f32 %v471_v0, 0.0 }
 0x112   :  { %v529_v15 = vadd.f32 %v528_v25, %v526_v1  ;;  %v4714_v51 = vstv %s4702_s29  ;;  %v4716_v35 = vstv %s4703_s22  ;;  %v4718_v49 = vstv %s4705_s20  ;;  %s4723_s29 = sld [smem:[#allocation125_spill]]  ;;  %s4725_s22 = sld [smem:[#allocation63_spill]] }
 0x113   :  { %v565_v58 = vmul.f32 %v4714_v51, %v2591_v61  ;;  %v2763_v41 = vmax.f32 %v491_v47, 0.0  ;;  %v511_v7 = vadd.f32 %v4716_v35, %v509_v10  ;;  %v549_v46 = vadd.f32 %v548_v39, %v546_v29  ;;  %s4729_s20 = sld [smem:[#allocation65_spill]] }
 0x114   :  { %v568_v37 = vmul.f32 %v4718_v49, %v2593_v33  ;;  %v438_v55 = vadd.f32 %v437_v42, %v418_v27  ;;  %v4720_v31 = vstv %s2355_s14  ;;  %v4721_v53 = vstv %s4708_s27  ;;  %s4731_s27 = sld [smem:[#allocation66_spill]]  ;;  %s4734_s14 = sld [smem:[#allocation126_spill]] }
 0x115   :  { %v477_v43 = vmul.f32 %v4720_v31, %v2758_v50  ;;  %v531_v25 = vadd.f32 %v4721_v53, %v529_v15  ;;  %v566_v21 = vadd.f32 %v565_v58, %v2103_v59  ;;  %v4724_v0 = vstv %s4711_s13  ;;  %s4733_s13 = sld [smem:[#allocation68_spill]] }
 0x116   :  { %v497_v1 = vmul.f32 %v4724_v0, %v2763_v41  ;;  %v2779_v39 = vmax.f32 %v511_v7, 0.0  ;;  %v4727_v17 = vstv %s4712_s25  ;;  %v4728_v42 = vstv %s4713_s24  ;;  %s4736_s25 = sld [smem:[#allocation69_spill]]  ;;  %s4743_s24 = sld [smem:[#allocation127_spill]] }
 0x117   :  { %v551_v47 = vadd.f32 %v4727_v17, %v549_v46  ;;  %v585_v10 = vmul.f32 %v4728_v42, %v2591_v61  ;;  %v458_v29 = vadd.f32 %v457_v13, %v438_v55  ;;  %v2786_v27 = vmax.f32 %v531_v25, 0.0 }
 0x118   :  { %v569_v15 = vadd.f32 %v568_v37, %v566_v21  ;;  %v4730_v51 = vstv %s4715_s3  ;;  %v4732_v58 = vstv %s4717_s26  ;;  %v4735_v49 = vstv %s4719_s28  ;;  %s4739_s3 = sld [smem:[#allocation147_spill]]  ;;  %s4742_s26 = sld [smem:[#allocation71_spill]] }
 0x119   :  { %v588_v59 = vmul.f32 %v4730_v51, %v2593_v33  ;;  %v517_v35 = vmul.f32 %v4732_v58, %v2779_v39  ;;  %v2794_v7 = vmax.f32 %v551_v47, 0.0  ;;  %v586_v46 = vadd.f32 %v585_v10, %v2115_v63  ;;  %s4745_s28 = sld [smem:[#allocation72_spill]] }
 0x11a   :  { %v605_v31 = vmul.f32 %v4735_v49, %v2591_v61  ;;  %v478_v13 = vadd.f32 %v477_v43, %v458_v29  ;;  %v4737_v37 = vstv %s4722_s5  ;;  %v4738_v53 = vstv %s4723_s29  ;;  %s4750_s29 = sld [smem:[#allocation40_spill]]  ;;  %s4771_s5 = sld [smem:[#allocation149_spill]] }
 0x11b   :  { %v537_v55 = vmul.f32 %v4737_v37, %v2786_v27  ;;  %v571_v25 = vadd.f32 %v4738_v53, %v569_v15  ;;  %v4740_v21 = vstv %s4725_s22  ;;  %v4741_v17 = vstv %s4726_s2  ;;  %s4749_s2 = sld [smem:[#allocation74_spill]]  ;;  %s4753_s22 = sld [smem:[#allocation75_spill]] }
 0x11c   :  { %v608_v0 = vmul.f32 %v4740_v21, %v2593_v33  ;;  %v557_v47 = vmul.f32 %v4741_v17, %v2794_v7  ;;  %v589_v42 = vadd.f32 %v588_v59, %v586_v46  ;;  %v606_v63 = vadd.f32 %v605_v31, %v2127_v56 }
 0x11d   :  { %v4744_v10 = vstv %s4729_s20  ;;  %v498_v29 = vadd.f32 %v497_v1, %v478_v13  ;;  %v2815_v51 = vmax.f32 %v571_v25, 0.0  ;;  %v4746_v15 = vstv %s4731_s27  ;;  %s4752_s20 = sld [smem:[#allocation128_spill]]  ;;  %s4755_s27 = sld [smem:[#allocation129_spill]] }
 0x11e   :  { %v625_v43 = vmul.f32 %v4744_v10, %v2591_v61  ;;  %v628_v58 = vmul.f32 %v4746_v15, %v2593_v33  ;;  %v4747_v49 = vstv %s4733_s13  ;;  %v4748_v53 = vstv %s4734_s14  ;;  %s4758_s14 = sld [smem:[#allocation148_spill]]  ;;  %s4761_s13 = sld [smem:[#allocation78_spill]] }
 0x11f   :  { %v645_v37 = vmul.f32 %v4747_v49, %v2591_v61  ;;  %v591_v21 = vadd.f32 %v4748_v53, %v589_v42  ;;  %v609_v59 = vadd.f32 %v608_v0, %v606_v63  ;;  %v4751_v46 = vstv %s4736_s25  ;;  %s4760_s25 = sld [smem:[#allocation77_spill]] }
 0x120   :  { %v626_v56 = vadd.f32 %v625_v43, %v2139_v52  ;;  %v648_v31 = vmul.f32 %v4751_v46, %v2593_v33  ;;  %v518_v1 = vadd.f32 %v517_v35, %v498_v29  ;;  %v4754_v13 = vstv %s4739_s3  ;;  %s4763_s3 = sld [smem:[#allocation130_spill]] }
 0x121   :  { %v577_v25 = vmul.f32 %v4754_v13, %v2815_v51  ;;  %v646_v17 = vadd.f32 %v645_v37, %v2151_v48  ;;  %v4756_v10 = vstv %s4742_s26  ;;  %v2836_v42 = vmax.f32 %v591_v21, 0.0  ;;  %s4765_s26 = sld [smem:[#allocation43_spill]] }
 0x122   :  { %v665_v15 = vmul.f32 %v4756_v10, %v2591_v61  ;;  %v4757_v0 = vstv %s4743_s24  ;;  %v629_v63 = vadd.f32 %v628_v58, %v626_v56  ;;  %v4759_v43 = vstv %s4745_s28  ;;  %s4768_s28 = sld [smem:[#allocation80_spill]]  ;;  %s4769_s24 = sld [smem:[#allocation81_spill]] }
 0x123   :  { %v611_v52 = vadd.f32 %v4757_v0, %v609_v59  ;;  %v668_v49 = vmul.f32 %v4759_v43, %v2593_v33  ;;  %v538_v35 = vadd.f32 %v537_v55, %v518_v1  ;;  %v649_v29 = vadd.f32 %v648_v31, %v646_v17 }
 0x124   :  { %v666_v53 = vadd.f32 %v665_v15, %v2163_v44  ;;  %v4762_v48 = vstv %s4749_s2  ;;  %v4764_v21 = vstv %s4750_s29  ;;  %v4766_v58 = vstv %s4752_s20  ;;  %s4773_s2 = sld [smem:[#allocation131_spill]]  ;;  %s4777_s29 = sld [smem:[#allocation84_spill]] }
 0x125   :  { %v685_v37 = vmul.f32 %v4762_v48, %v2591_v61  ;;  %v597_v46 = vmul.f32 %v4764_v21, %v2836_v42  ;;  %v2850_v13 = vmax.f32 %v611_v52, 0.0  ;;  %v631_v59 = vadd.f32 %v4766_v58, %v629_v63  ;;  %s4782_s20 = sld [smem:[#allocation132_spill]] }
 0x126   :  { %v4767_v56 = vstv %s4753_s22  ;;  %v558_v55 = vadd.f32 %v557_v47, %v538_v35  ;;  %v4770_v31 = vstv %s4755_s27  ;;  %v669_v1 = vadd.f32 %v668_v49, %v666_v53  ;;  %s4776_s22 = sld [smem:[#allocation83_spill]]  ;;  %s4779_s27 = sld [smem:[#allocation46_spill]] }
 0x127   :  { %v688_v10 = vmul.f32 %v4767_v56, %v2593_v33  ;;  %v651_v44 = vadd.f32 %v4770_v31, %v649_v29  ;;  %v686_v17 = vadd.f32 %v685_v37, %v2175_v40  ;;  %v4772_v15 = vstv %s4758_s14  ;;  %s4781_s14 = sld [smem:[#allocation86_spill]] }
 0x128   :  { %v617_v0 = vmul.f32 %v4772_v15, %v2850_v13  ;;  %v2863_v52 = vmax.f32 %v631_v59, 0.0  ;;  %v4774_v63 = vstv %s4760_s25  ;;  %v4775_v48 = vstv %s4761_s13  ;;  %s4785_s13 = sld [smem:[#allocation87_spill]] }
 0x129   :  { %v705_v43 = vmul.f32 %v4774_v63, %v2591_v61  ;;  %v708_v21 = vmul.f32 %v4775_v48, %v2593_v33  ;;  %v578_v47 = vadd.f32 %v577_v25, %v558_v55  ;;  %v2871_v35 = vmax.f32 %v651_v44, 0.0 }
 0x12a   :  { %v4778_v49 = vstv %s4763_s3  ;;  %v689_v29 = vadd.f32 %v688_v10, %v686_v17  ;;  %v4780_v53 = vstv %s4765_s26  ;;  %v4783_v59 = vstv %s4768_s28  ;;  %s4787_s3 = sld [smem:[#allocation151_spill]]  ;;  %s4789_s26 = sld [smem:[#allocation89_spill]] }
 0x12b   :  { %v671_v40 = vadd.f32 %v4778_v49, %v669_v1  ;;  %v637_v37 = vmul.f32 %v4780_v53, %v2863_v52  ;;  %v706_v58 = vadd.f32 %v705_v43, %v2187_v36  ;;  %v725_v56 = vmul.f32 %v4783_v59, %v2591_v61  ;;  %s4791_s28 = sld [smem:[#allocation133_spill]] }
 0x12c   :  { %v4784_v31 = vstv %s4769_s24  ;;  %v598_v25 = vadd.f32 %v597_v46, %v578_v47  ;;  %v4786_v55 = vstv %s4771_s5  ;;  %v4788_v1 = vstv %s4773_s2  ;;  %s4793_s24 = sld [smem:[#allocation90_spill]]  ;;  %s4797_s2 = sld [smem:[#allocation92_spill]] }
 0x12d   :  { %v728_v15 = vmul.f32 %v4784_v31, %v2593_v33  ;;  %v657_v44 = vmul.f32 %v4786_v55, %v2871_v35  ;;  %v2888_v10 = vmax.f32 %v671_v40, 0.0  ;;  %v691_v17 = vadd.f32 %v4788_v1, %v689_v29  ;;  %s4798_s5 = sld [smem:[#allocation49_spill]] }
 0x12e   :  { %v709_v63 = vadd.f32 %v708_v21, %v706_v58  ;;  %v726_v36 = vadd.f32 %v725_v56, %v2199_v32  ;;  %v4790_v43 = vstv %s4776_s22  ;;  %v4792_v49 = vstv %s4777_s29  ;;  %s4800_s29 = sld [smem:[#allocation134_spill]]  ;;  %s4801_s22 = sld [smem:[#allocation93_spill]] }
 0x12f   :  { %v745_v48 = vmul.f32 %v4790_v43, %v2591_v61  ;;  %v748_v53 = vmul.f32 %v4792_v49, %v2593_v33  ;;  %v618_v46 = vadd.f32 %v617_v0, %v598_v25  ;;  %v4794_v47 = vstv %s4779_s27  ;;  %s4803_s27 = sld [smem:[#allocation135_spill]] }
 0x130   :  { %v677_v59 = vmul.f32 %v4794_v47, %v2888_v10  ;;  %v2902_v40 = vmax.f32 %v691_v17, 0.0  ;;  %v4795_v29 = vstv %s4781_s14  ;;  %v4796_v21 = vstv %s4782_s20  ;;  %s4808_s20 = sld [smem:[#allocation96_spill]] }
 0x131   :  { %v765_v31 = vmul.f32 %v4795_v29, %v2591_v61  ;;  %v711_v32 = vadd.f32 %v4796_v21, %v709_v63  ;;  %v729_v58 = vadd.f32 %v728_v15, %v726_v36  ;;  %v746_v56 = vadd.f32 %v745_v48, %v2211_v28 }
 0x132   :  { %v4799_v55 = vstv %s4785_s13  ;;  %v638_v0 = vadd.f32 %v637_v37, %v618_v46  ;;  %v4802_v25 = vstv %s4787_s3  ;;  %v4804_v49 = vstv %s4789_s26  ;;  %s4807_s13 = sld [smem:[#allocation95_spill]]  ;;  %s4810_s3 = sld [smem:[#allocation136_spill]] }
 0x133   :  { %v768_v1 = vmul.f32 %v4799_v55, %v2593_v33  ;;  %v697_v17 = vmul.f32 %v4802_v25, %v2902_v40  ;;  %v766_v43 = vadd.f32 %v765_v31, %v2223_v24  ;;  %v785_v47 = vmul.f32 %v4804_v49, %v2591_v61  ;;  %s4812_s26 = sld [smem:[#allocation52_spill]] }
 0x134   :  { %v2920_v63 = vmax.f32 %v711_v32, 0.0  ;;  %v4805_v15 = vstv %s4791_s28  ;;  %v749_v36 = vadd.f32 %v748_v53, %v746_v56  ;;  %v4806_v48 = vstv %s4793_s24  ;;  %s4816_s24 = sld [smem:[#allocation98_spill]]  ;;  %s4817_s28 = sld [smem:[#allocation99_spill]] }
 0x135   :  { %v731_v28 = vadd.f32 %v4805_v15, %v729_v58  ;;  %v788_v29 = vmul.f32 %v4806_v48, %v2593_v33  ;;  %v658_v37 = vadd.f32 %v657_v44, %v638_v0  ;;  %v769_v46 = vadd.f32 %v768_v1, %v766_v43 }
 0x136   :  { %v786_v21 = vadd.f32 %v785_v47, %v2235_v20  ;;  %v4809_v24 = vstv %s4797_s2  ;;  %v4811_v32 = vstv %s4798_s5  ;;  %v4814_v53 = vstv %s4800_s29  ;;  %s4820_s2 = sld [smem:[#allocation137_spill]]  ;;  %s4825_s5 = sld [smem:[#allocation102_spill]] }
 0x137   :  { %v805_v31 = vmul.f32 %v4809_v24, %v2591_v61  ;;  %v717_v55 = vmul.f32 %v4811_v32, %v2920_v63  ;;  %v2934_v25 = vmax.f32 %v731_v28, 0.0  ;;  %v751_v58 = vadd.f32 %v4814_v53, %v749_v36 }
 0x138   :  { %v4815_v56 = vstv %s4801_s22  ;;  %v678_v44 = vadd.f32 %v677_v59, %v658_v37  ;;  %v4818_v1 = vstv %s4803_s27  ;;  %v789_v0 = vadd.f32 %v788_v29, %v786_v21  ;;  %s4824_s22 = sld [smem:[#allocation101_spill]]  ;;  %s4830_s27 = sld [smem:[#allocation138_spill]] }
 0x139   :  { %4813 = vst [vmem:[#allocation180_spill] sm:$0xff] %v2934_v25  ;;  %v808_v49 = vmul.f32 %v4815_v56, %v2593_v33  ;;  %v771_v20 = vadd.f32 %v4818_v1, %v769_v46  ;;  %v806_v43 = vadd.f32 %v805_v31, %v2247_v16  ;;  %v4819_v47 = vstv %s4576_s15  ;;  %s4829_s15 = sld [smem:[#allocation104_spill]] }
 0x13a   :  { %v737_v15 = vmul.f32 %v4819_v47, %v2934_v25  ;;  %v2947_v28 = vmax.f32 %v751_v58, 0.0  ;;  %v4822_v36 = vstv %s4807_s13  ;;  %v4823_v24 = vstv %s4808_s20  ;;  %s4833_s20 = sld [smem:[#allocation105_spill]] }
 0x13b   :  { %v825_v48 = vmul.f32 %v4822_v36, %v2591_v61  ;;  %v828_v32 = vmul.f32 %v4823_v24, %v2593_v33  ;;  %v698_v59 = vadd.f32 %v697_v17, %v678_v44  ;;  %v2955_v37 = vmax.f32 %v771_v20, 0.0 }
 0x13c   :  { %4821 = vst [vmem:[#allocation181_spill] sm:$0xff] %v2947_v28  ;;  %v4827_v29 = vstv %s4810_s3  ;;  %v809_v46 = vadd.f32 %v808_v49, %v806_v43  ;;  %v4828_v21 = vstv %s4812_s26  ;;  %v4831_v58 = vstv %s4816_s24  ;;  %s4837_s3 = sld [smem:[#allocation107_spill]]  ;;  %s4839_s24 = sld [smem:[#allocation16_spill]] }
 0x13d   :  { %4826 = vst [vmem:[#allocation182_spill] sm:$0xff] %v2955_v37  ;;  %v791_v16 = vadd.f32 %v4827_v29, %v789_v0  ;;  %v757_v31 = vmul.f32 %v4828_v21, %v2947_v28  ;;  %v826_v53 = vadd.f32 %v825_v48, %v2258_v62  ;;  %v845_v56 = vmul.f32 %v4831_v58, %v2591_v61 }
 0x13e   :  { %v4832_v1 = vstv %s4817_s28  ;;  %v718_v17 = vadd.f32 %v717_v55, %v698_v59  ;;  %v4834_v44 = vstv %s2433_s30  ;;  %v4836_v0 = vstv %s4820_s2  ;;  %s4841_s28 = sld [smem:[#allocation108_spill]]  ;;  %s4846_s2 = sld [smem:[#allocation110_spill]] }
 0x13f   :  { %v848_v47 = vmul.f32 %v4832_v1, %v2593_v33  ;;  %v777_v20 = vmul.f32 %v4834_v44, %v2955_v37  ;;  %v2972_v49 = vmax.f32 %v791_v16, 0.0  ;;  %v811_v43 = vadd.f32 %v4836_v0, %v809_v46 }
 0x140   :  { %v829_v36 = vadd.f32 %v828_v32, %v826_v53  ;;  %v846_v62 = vadd.f32 %v845_v56, %v2270_v14  ;;  %v4838_v48 = vstv %s4824_s22  ;;  %v4840_v29 = vstv %s4825_s5  ;;  %s4850_s5 = sld [smem:[#allocation111_spill]] }
 0x141   :  { %4835 = vst [vmem:[#allocation183_spill] sm:$0xff] %v2972_v49  ;;  %v865_v24 = vmul.f32 %v4838_v48, %v2591_v61  ;;  %v868_v21 = vmul.f32 %v4840_v29, %v2593_v33  ;;  %v738_v55 = vadd.f32 %v737_v15, %v718_v17  ;;  %v4842_v59 = vstv %s2443_s12  ;;  %s4849_s12 = sld [smem:[#allocation19_spill]] }
 0x142   :  { %v797_v58 = vmul.f32 %v4842_v59, %v2972_v49  ;;  %v2986_v16 = vmax.f32 %v811_v43, 0.0  ;;  %v4844_v46 = vstv %s4829_s15  ;;  %v4845_v32 = vstv %s4830_s27  ;;  %s4852_s27 = sld [smem:[#allocation139_spill]] }
 0x143   :  { %v885_v1 = vmul.f32 %v4844_v46, %v2591_v61  ;;  %v831_v53 = vadd.f32 %v4845_v32, %v829_v36  ;;  %v849_v14 = vadd.f32 %v848_v47, %v846_v62  ;;  %v866_v56 = vadd.f32 %v865_v24, %v2298_v2  ;;  %v3013_v46 = vpop.permute.xlu1 %957 }
 0x144   :  { %4843 = vst [vmem:[#allocation184_spill] sm:$0xff] %v2986_v16  ;;  %v4847_v44 = vstv %s4833_s20  ;;  %v758_v48 = vadd.f32 %v757_v31, %v738_v55  ;;  %v4848_v15 = vstv %s4578_s0  ;;  %v4851_v29 = vstv %s4837_s3  ;;  %s4856_s20 = sld [smem:[#allocation159_spill]]  ;;  %v3011_v55 = vpop.permute.xlu0 %955  ;;  %s4858_s3 = sld [smem:[#allocation22_spill]] }
 0x145   :  { %v888_v0 = vmul.f32 %v4847_v44, %v2593_v33  ;;  %v817_v17 = vmul.f32 %v4848_v15, %v2986_v16  ;;  %v886_v43 = vadd.f32 %v885_v1, %v2314_v4  ;;  %v905_v59 = vmul.f32 %v4851_v29, %v2591_v61 }
 0x146   :  { %v3004_v47 = vmax.f32 %v831_v53, 0.0  ;;  %v4854_v36 = vstv %s4839_s24  ;;  %v869_v62 = vadd.f32 %v868_v21, %v866_v56  ;;  %v4855_v24 = vstv %s4841_s28 }
 0x147   :  { %v851_v2 = vadd.f32 %v4854_v36, %v849_v14  ;;  %v908_v31 = vmul.f32 %v4855_v24, %v2593_v33  ;;  %v778_v4 = vadd.f32 %v777_v20, %v758_v48  ;;  %v889_v1 = vadd.f32 %v888_v0, %v886_v43 }
 0x148   :  { %4853 = vst [vmem:[#allocation185_spill] sm:$0xff] %v3004_v47  ;;  %v906_v32 = vadd.f32 %v905_v59, %v2330_v5  ;;  %v4857_v53 = vstv %s4846_s2  ;;  %v4859_v21 = vstv %s4581_s21  ;;  %v4861_v15 = vstv %s4849_s12  ;;  %s4865_s2 = sld [smem:[#allocation140_spill]] }
 0x149   :  { %v925_v44 = vmul.f32 %v4857_v53, %v2591_v61  ;;  %v837_v14 = vmul.f32 %v4859_v21, %v3004_v47  ;;  %v3022_v56 = vmax.f32 %v851_v2, 0.0  ;;  %v871_v29 = vadd.f32 %v4861_v15, %v869_v62 }
 0x14a   :  { %v4862_v36 = vstv %s4850_s5  ;;  %v798_v20 = vadd.f32 %v797_v58, %v778_v4  ;;  %v4863_v0 = vstv %s4852_s27  ;;  %v909_v48 = vadd.f32 %v908_v31, %v906_v32  ;;  %s4871_s5 = sld [smem:[#allocation161_spill]] }
 0x14b   :  { %4860 = vst [vmem:[#allocation186_spill] sm:$0xff] %v3022_v56  ;;  %v928_v24 = vmul.f32 %v4862_v36, %v2593_v33  ;;  %v891_v5 = vadd.f32 %v4863_v0, %v889_v1  ;;  %v926_v61 = vadd.f32 %v925_v44, %v2346_v9  ;;  %v4864_v43 = vstv %s4856_s20 }
 0x14c   :  { %v857_v59 = vmul.f32 %v4864_v43, %v3022_v56  ;;  %v3035_v2 = vmax.f32 %v871_v29, 0.0  ;;  %v4867_v53 = vstv %s4603_s19  ;;  %v4868_v21 = vstv %s4606_s17  ;;  %s4876_s17 = sld [smem:[#allocation27_spill]]  ;;  %s4879_s19 = sld [smem:[#allocation64_spill]] }
 0x14d   :  { %v960_v62 = vmul.f32 %v3011_v55, %v4867_v53  ;;  %v962_v33 = vmul.f32 %v3013_v46, %v4868_v21  ;;  %v818_v58 = vadd.f32 %v817_v17, %v798_v20  ;;  %v3043_v4 = vmax.f32 %v891_v5, 0.0 }
 0x14e   :  { %4866 = vst [vmem:[#allocation187_spill] sm:$0xff] %v3035_v2  ;;  %v4870_v31 = vstv %s4858_s3  ;;  %v929_v9 = vadd.f32 %v928_v24, %v926_v61  ;;  %v4872_v32 = vstv %s4583_s18  ;;  %v4873_v29 = vstv %s4609_s16  ;;  %s4880_s18 = sld [smem:[#allocation29_spill]]  ;;  %s4882_s16 = sld [smem:[#allocation113_spill]] }
 0x14f   :  { %4869 = vst [vmem:[#allocation188_spill] sm:$0xff] %v3043_v4  ;;  %v911_v1 = vadd.f32 %v4870_v31, %v909_v48  ;;  %v877_v44 = vmul.f32 %v4872_v32, %v3035_v2  ;;  %v961_v15 = vadd.f32 %v960_v62, %v2284_v26  ;;  %v970_v36 = vmul.f32 %v3011_v55, %v4873_v29 }
 0x150   :  { %v4874_v0 = vstv %s4612_s6  ;;  %v838_v20 = vadd.f32 %v837_v14, %v818_v58  ;;  %v4875_v5 = vstv %s2465_s7  ;;  %v4878_v24 = vstv %s4865_s2  ;;  %s4884_s6 = sld [smem:[#allocation30_spill]]  ;;  %s4889_s7 = sld [smem:[#allocation32_spill]] }
 0x151   :  { %v972_v17 = vmul.f32 %v3013_v46, %v4874_v0  ;;  %v897_v48 = vmul.f32 %v4875_v5, %v3043_v4  ;;  %v3060_v43 = vmax.f32 %v911_v1, 0.0  ;;  %v931_v61 = vadd.f32 %v4878_v24, %v929_v9  ;;  %s4893_s2 = sld [smem:[#allocation33_spill]] }
 0x152   :  { %v963_v26 = vadd.f32 %v962_v33, %v961_v15  ;;  %v971_v53 = vadd.f32 %v970_v36, %v2289_v60  ;;  %v4881_v62 = vstv %s4615_s8  ;;  %v4883_v14 = vstv %s4618_s4  ;;  %s4890_s8 = sld [smem:[#allocation25_spill]]  ;;  %s4892_s4 = sld [smem:[#allocation114_spill]] }
 0x153   :  { %4877 = vst [vmem:[#allocation189_spill] sm:$0xff] %v3060_v43  ;;  %v983_v21 = vmul.f32 %v3011_v55, %v4881_v62  ;;  %v985_v58 = vmul.f32 %v3013_v46, %v4883_v14  ;;  %v858_v31 = vadd.f32 %v857_v59, %v838_v20  ;;  %v4885_v1 = vstv %s4871_s5  ;;  %s4901_s5 = sld [smem:[#allocation36_spill]] }
 0x154   :  { %v917_v32 = vmul.f32 %v4885_v1, %v3060_v43  ;;  %v3075_v29 = vmax.f32 %v931_v61, 0.0  ;;  %v4887_v9 = vstv %s4621_s1  ;;  %v4888_v33 = vstv %s4646_s11  ;;  %s4895_s1 = sld [smem:[#allocation115_spill]]  ;;  %s4898_s11 = sld [smem:[#allocation141_spill]] }
 0x155   :  { %v996_v0 = vmul.f32 %v3011_v55, %v4887_v9  ;;  %v964_v60 = vadd.f32 %v963_v26, %v4888_v33  ;;  %v973_v15 = vadd.f32 %v972_v17, %v971_v53  ;;  %v984_v36 = vadd.f32 %v983_v21, %v2305_v3 }
 0x156   :  { %4886 = vst [vmem:[#allocation190_spill] sm:$0xff] %v3075_v29  ;;  %v4891_v5 = vstv %s4876_s17  ;;  %v878_v59 = vadd.f32 %v877_v44, %v858_v31  ;;  %v4894_v20 = vstv %s4879_s19  ;;  %v4896_v14 = vstv %s4880_s18  ;;  %s4900_s17 = sld [smem:[#allocation35_spill]]  ;;  %s4903_s18 = sld [smem:[#allocation116_spill]] }
 0x157   :  { %v998_v24 = vmul.f32 %v3013_v46, %v4891_v5  ;;  %v937_v61 = vmul.f32 %v4894_v20, %v3075_v29  ;;  %v997_v62 = vadd.f32 %v996_v0, %v2321_v8  ;;  %v1009_v1 = vmul.f32 %v3011_v55, %v4896_v14 }
 0x158   :  { %v3093_v26 = vmax.f32 %v964_v60, 0.0  ;;  %v4897_v17 = vstv %s4882_s16  ;;  %v986_v53 = vadd.f32 %v985_v58, %v984_v36  ;;  %v4899_v21 = vstv %s4884_s6  ;;  %s4907_s16 = sld [smem:[#allocation38_spill]]  ;;  %s4909_s6 = sld [smem:[#allocation28_spill]] }
 0x159   :  { %v974_v3 = vadd.f32 %v973_v15, %v4897_v17  ;;  %v1011_v9 = vmul.f32 %v3013_v46, %v4899_v21  ;;  %v898_v44 = vadd.f32 %v897_v48, %v878_v59  ;;  %v999_v31 = vadd.f32 %v998_v24, %v997_v62 }
 0x15a   :  { %v1010_v33 = vadd.f32 %v1009_v1, %v2337_v30  ;;  %v4902_v5 = vstv %s4889_s7  ;;  %v4904_v0 = vstv %s4890_s8  ;;  %v4905_v15 = vstv %s4892_s4  ;;  %s4911_s7 = sld [smem:[#allocation117_spill]]  ;;  %s4917_s8 = sld [smem:[#allocation41_spill]] }
 0x15b   :  { %v1022_v8 = vmul.f32 %v3011_v55, %v4902_v5  ;;  %v967_v60 = vmul.f32 %v3093_v26, %v4904_v0  ;;  %v3107_v20 = vmax.f32 %v974_v3, 0.0  ;;  %v987_v58 = vadd.f32 %v986_v53, %v4905_v15  ;;  %s4921_s4 = sld [smem:[#allocation44_spill]] }
 0x15c   :  { %v4906_v36 = vstv %s4893_s2  ;;  %v918_v48 = vadd.f32 %v917_v32, %v898_v44  ;;  %v4908_v24 = vstv %s4895_s1  ;;  %v1012_v30 = vadd.f32 %v1011_v9, %v1010_v33  ;;  %s4915_s2 = sld [smem:[#allocation39_spill]]  ;;  %s1730_s1 = smov 1  }
 0x15d   :  { %v1024_v14 = vmul.f32 %v3013_v46, %v4906_v36  ;;  %v1000_v59 = vadd.f32 %v999_v31, %v4908_v24  ;;  %v1023_v62 = vadd.f32 %v1022_v8, %v2353_v34  ;;  %v4910_v1 = vstv %s4898_s11  ;;  %s4924_s11 = sld [smem:[#allocation45_spill]] }
 0x15e   :  { %v978_v17 = vmul.f32 %v3107_v20, %v4910_v1  ;;  %v3120_v3 = vmax.f32 %v987_v58, 0.0  ;;  %v4912_v21 = vstv %s4900_s17  ;;  %v4913_v5 = vstv %s4901_s5  ;;  %s4919_s5 = sld [smem:[#allocation118_spill]]  ;;  %s4925_s17 = sld [smem:[#allocation47_spill]] }
 0x15f   :  { %v1035_v53 = vmul.f32 %v3011_v55, %v4912_v21  ;;  %v1037_v0 = vmul.f32 %v3013_v46, %v4913_v5  ;;  %v938_v15 = vadd.f32 %v937_v61, %v918_v48  ;;  %v3128_v32 = vmax.f32 %v1000_v59, 0.0 }
 0x160   :  { %v4914_v44 = vstv %s4903_s18  ;;  %v1025_v34 = vadd.f32 %v1024_v14, %v1023_v62  ;;  %v979_v31 = vadd.f32 %v978_v17, %v967_v60  ;;  %v4916_v33 = vstv %s2307_s9  ;;  %s4923_s9 = sld [smem:[#allocation31_spill]] }
 0x161   :  { %v1013_v9 = vadd.f32 %v1012_v30, %v4914_v44  ;;  %v991_v8 = vmul.f32 %v3120_v3, %v4916_v33  ;;  %v1036_v58 = vadd.f32 %v1035_v53, %v2373_v18  ;;  %v4918_v36 = vstv %s4907_s16  ;;  %s4927_s18 = sld [smem:[#allocation119_spill]]  ;;  %s4931_s16 = sld [smem:[#allocation48_spill]] }
 0x162   :  { %v1048_v24 = vmul.f32 %v3011_v55, %v4918_v36  ;;  %v945_v61 = vsel %vm74_vm0, %v938_v15, 0.0  ;;  %v4920_v48 = vstv %s4909_s6  ;;  %v4922_v60 = vstv %s4911_s7  ;;  %s4932_s6 = sld [smem:[#allocation50_spill]]  ;;  %s4934_s7 = sld [smem:[#allocation142_spill]] }
 0x163   :  { %v1004_v59 = vmul.f32 %v3128_v32, %v4920_v48  ;;  %v3144_v14 = vmax.f32 %v1013_v9, 0.0  ;;  %v1026_v30 = vadd.f32 %v1025_v34, %v4922_v60  ;;  %946 = vrot.lane.b32.xlu0 %v945_v61, %s1730_s1  ;;  %v992_v18 = vadd.f32 %v991_v8, %v979_v31  ;;  %v4937_v48 = vld [vmem:[#allocation150_spill] sm:$0xff] }
 0x164   :  { %v1038_v62 = vadd.f32 %v1037_v0, %v1036_v58  ;;  %v1049_v1 = vadd.f32 %v1048_v24, %v2385_v12  ;;  %v4926_v17 = vstv %s4915_s2  ;;  %v4928_v53 = vstv %s2323_s10  ;;  %s4938_s10 = sld [smem:[#allocation120_spill]]  ;;  %s4943_s2 = sld [smem:[#allocation143_spill]] }
 0x165   :  { %v1050_v21 = vmul.f32 %v3013_v46, %v4926_v17  ;;  %v1017_v5 = vmul.f32 %v3144_v14, %v4928_v53  ;;  %v3156_v15 = vmax.f32 %v1026_v30, 0.0  ;;  %v4929_v44 = vstv %s4917_s8  ;;  %s4945_s8 = sld [smem:[#allocation121_spill]] }
 0x166   :  { %v1061_v9 = vmul.f32 %v3011_v55, %v4929_v44  ;;  %v4930_v34 = vstv %s4672_s23  ;;  %v1005_v0 = vadd.f32 %v1004_v59, %v992_v18  ;;  %v4933_v31 = vstv %s4919_s5  ;;  %s4941_s23 = sld [smem:[#allocation51_spill]]  ;;  %s4946_s5 = sld [smem:[#allocation53_spill]] }
 0x167   :  { %v1063_v33 = vmul.f32 %v3013_v46, %v4930_v34  ;;  %v1039_v12 = vadd.f32 %v1038_v62, %v4933_v31  ;;  %v1051_v8 = vadd.f32 %v1050_v21, %v1049_v1  ;;  %v4935_v58 = vstv %s4921_s4  ;;  %v4944_v21 = vld [vmem:[#allocation152_spill] sm:$0xff]  ;;  %s4949_s4 = sld [smem:[#allocation122_spill]] }
 0x168   :  { %v1074_v36 = vmul.f32 %v3011_v55, %v4935_v58  ;;  %v4936_v24 = vstv %s4923_s9  ;;  %v1062_v60 = vadd.f32 %v1061_v9, %v4937_v48  ;;  %v4939_v30 = vstv %s4924_s11  ;;  %v4947_v58 = vld [vmem:[#allocation154_spill] sm:$0xff]  ;;  %s4951_s9 = sld [smem:[#allocation54_spill]]  ;;  %s4954_s11 = sld [smem:[#allocation56_spill]] }
 0x169   :  { %v1030_v61 = vmul.f32 %v3156_v15, %v4936_v24  ;;  %v1076_v17 = vmul.f32 %v3013_v46, %v4939_v30  ;;  %v4940_v53 = vstv %s4925_s17  ;;  %v1018_v59 = vadd.f32 %v1017_v5, %v1005_v0  ;;  %s4955_s17 = sld [smem:[#allocation34_spill]] }
 0x16a   :  { %v1087_v44 = vmul.f32 %v3011_v55, %v4940_v53  ;;  %v3179_v18 = vmax.f32 %v1039_v12, 0.0  ;;  %v4942_v62 = vstv %s4927_s18  ;;  %v1075_v34 = vadd.f32 %v1074_v36, %v4944_v21  ;;  %s4958_s18 = sld [smem:[#allocation123_spill]] }
 0x16b   :  { %v1052_v1 = vadd.f32 %v1051_v8, %v4942_v62  ;;  %v1064_v31 = vadd.f32 %v1063_v33, %v1062_v60  ;;  %v4948_v24 = vstv %s4931_s16  ;;  %v4950_v30 = vstv %s4932_s6  ;;  %s4959_s16 = sld [smem:[#allocation57_spill]]  ;;  %s4961_s6 = sld [smem:[#allocation144_spill]] }
 0x16c   :  { %v1088_v9 = vadd.f32 %v1087_v44, %v4947_v58  ;;  %v1089_v48 = vmul.f32 %v3013_v46, %v4948_v24  ;;  %v1100_v53 = vmul.f32 %v3011_v55, %v4950_v30  ;;  %v1031_v5 = vadd.f32 %v1030_v61, %v1018_v59  ;;  %v4956_v44 = vld [vmem:[#allocation155_spill] sm:$0xff] }
 0x16d   :  { %v4952_v0 = vstv %s4934_s7  ;;  %v3194_v8 = vmax.f32 %v1052_v1, 0.0  ;;  %v1077_v62 = vadd.f32 %v1076_v17, %v1075_v34  ;;  %v4953_v36 = vstv %s4938_s10  ;;  %s4964_s7 = sld [smem:[#allocation59_spill]]  ;;  %s4966_s10 = sld [smem:[#allocation37_spill]] }
 0x16e   :  { %v1043_v12 = vmul.f32 %v3179_v18, %v4952_v0  ;;  %v1065_v33 = vadd.f32 %v1064_v31, %v4953_v36  ;;  %v1090_v60 = vadd.f32 %v1089_v48, %v1088_v9  ;;  %v1101_v21 = vadd.f32 %v1100_v53, %v4956_v44 }
 0x16f   :  { %v4957_v58 = vstv %s4941_s23  ;;  %v4960_v61 = vstv %s4943_s2  ;;  %v4962_v1 = vstv %s4945_s8  ;;  %v4963_v17 = vstv %s4946_s5  ;;  %s4968_s23 = sld [smem:[#allocation60_spill]]  ;;  %s4973_s8 = sld [smem:[#allocation62_spill]] }
 0x170   :  { %v1102_v24 = vmul.f32 %v3013_v46, %v4957_v58  ;;  %v1044_v30 = vadd.f32 %v1043_v12, %v1031_v5  ;;  %v1056_v59 = vmul.f32 %v3194_v8, %v4960_v61  ;;  %v1078_v0 = vadd.f32 %v1077_v62, %v4962_v1  ;;  %s4969_s2 = sld [smem:[#allocation124_spill]]  ;;  %v4970_v58 = vld [vmem:[#allocation158_spill] sm:$0xff]  ;;  %s4975_s5 = sld [smem:[#allocation145_spill]] }
 0x171   :  { %v1113_v34 = vmul.f32 %v3011_v55, %v4963_v17  ;;  %v3210_v31 = vmax.f32 %v1065_v33, 0.0  ;;  %v4965_v9 = vstv %s4949_s4  ;;  %v4967_v36 = vstv %s4951_s9  ;;  %s4977_s4 = sld [smem:[#allocation63_spill]]  ;;  %s4979_s9 = sld [smem:[#allocation65_spill]] }
 0x172   :  { %v1091_v48 = vadd.f32 %v1090_v60, %v4965_v9  ;;  %v1103_v53 = vadd.f32 %v1102_v24, %v1101_v21  ;;  %v1115_v44 = vmul.f32 %v3013_v46, %v4967_v36  ;;  %v1057_v5 = vadd.f32 %v1056_v59, %v1044_v30  ;;  %v4980_v36 = vld [vmem:[#allocation160_spill] sm:$0xff] }
 0x173   :  { %v3217_v12 = vmax.f32 %v1078_v0, 0.0  ;;  %v1114_v62 = vadd.f32 %v1113_v34, %v4970_v58  ;;  %v4971_v61 = vstv %s4954_s11  ;;  %v4972_v17 = vstv %s4955_s17  ;;  %s4981_s11 = sld [smem:[#allocation125_spill]]  ;;  %s4985_s17 = sld [smem:[#allocation66_spill]] }
 0x174   :  { %v1126_v1 = vmul.f32 %v3011_v55, %v4971_v61  ;;  %v1069_v33 = vmul.f32 %v3210_v31, %v4972_v17  ;;  %v3226_v60 = vmax.f32 %v1091_v48, 0.0  ;;  %v4974_v21 = vstv %s4958_s18  ;;  %s4987_s18 = sld [smem:[#allocation68_spill]] }
 0x175   :  { %v1104_v24 = vadd.f32 %v1103_v53, %v4974_v21  ;;  %v4976_v9 = vstv %s4959_s16  ;;  %v4978_v59 = vstv %s4961_s6  ;;  %v1116_v34 = vadd.f32 %v1115_v44, %v1114_v62  ;;  %s4988_s16 = sld [smem:[#allocation146_spill]]  ;;  %v4989_v62 = vld [vmem:[#allocation162_spill] sm:$0xff]  ;;  %s4991_s6 = sld [smem:[#allocation126_spill]] }
 0x176   :  { %v1128_v30 = vmul.f32 %v3013_v46, %v4976_v9  ;;  %v1082_v0 = vmul.f32 %v3217_v12, %v4978_v59  ;;  %v1127_v58 = vadd.f32 %v1126_v1, %v4980_v36  ;;  %v4982_v61 = vstv %s4964_s7  ;;  %s4995_s7 = sld [smem:[#allocation69_spill]] }
 0x177   :  { %v1139_v17 = vmul.f32 %v3011_v55, %v4982_v61  ;;  %v1070_v48 = vadd.f32 %v1069_v33, %v1057_v5  ;;  %v4983_v29 = vstv %s4966_s10  ;;  %v3243_v53 = vmax.f32 %v1104_v24, 0.0  ;;  %s4997_s10 = sld [smem:[#allocation147_spill]] }
 0x178   :  { %v1095_v43 = vmul.f32 %v3226_v60, %v4983_v29  ;;  %v4984_v21 = vstv %s4968_s23  ;;  %v4986_v4 = vstv %s4969_s2  ;;  %v1129_v44 = vadd.f32 %v1128_v30, %v1127_v58  ;;  %s4999_s23 = sld [smem:[#allocation127_spill]] }
 0x179   :  { %v1141_v9 = vmul.f32 %v3013_v46, %v4984_v21  ;;  %v1117_v59 = vadd.f32 %v1116_v34, %v4986_v4  ;;  %v1140_v1 = vadd.f32 %v1139_v17, %v4989_v62  ;;  %v4990_v36 = vstv %s4973_s8  ;;  %v4998_v17 = vld [vmem:[#allocation163_spill] sm:$0xff]  ;;  %s5000_s2 = sld [smem:[#allocation71_spill]]  ;;  %s5003_s8 = sld [smem:[#allocation128_spill]] }
 0x17a   :  { %v1152_v5 = vmul.f32 %v3011_v55, %v4990_v36  ;;  %v1083_v33 = vadd.f32 %v1082_v0, %v1070_v48  ;;  %v4992_v61 = vstv %s4975_s5  ;;  %v4993_v24 = vstv %s4977_s4  ;;  %v5001_v48 = vld [vmem:[#allocation164_spill] sm:$0xff]  ;;  %s5006_s5 = sld [smem:[#allocation72_spill]] }
 0x17b   :  { %v1108_v29 = vmul.f32 %v3243_v53, %v4992_v61  ;;  %v1154_v2 = vmul.f32 %v3013_v46, %v4993_v24  ;;  %v4994_v56 = vstv %s4979_s9  ;;  %v3263_v4 = vmax.f32 %v1117_v59, 0.0  ;;  %s5007_s4 = sld [smem:[#allocation40_spill]]  ;;  %s5010_s9 = sld [smem:[#allocation74_spill]] }
 0x17c   :  { %v1165_v21 = vmul.f32 %v3011_v55, %v4994_v56  ;;  %v4996_v30 = vstv %s4981_s11  ;;  %v1142_v58 = vadd.f32 %v1141_v9, %v1140_v1  ;;  %v1153_v62 = vadd.f32 %v1152_v5, %v4998_v17  ;;  %s5013_s11 = sld [smem:[#allocation129_spill]] }
 0x17d   :  { %v1130_v34 = vadd.f32 %v1129_v44, %v4996_v30  ;;  %v1096_v0 = vadd.f32 %v1095_v43, %v1083_v33  ;;  %v5002_v61 = vstv %s4985_s17  ;;  %v5004_v47 = vstv %s4987_s18  ;;  %s5015_s17 = sld [smem:[#allocation75_spill]]  ;;  %s5016_s18 = sld [smem:[#allocation148_spill]] }
 0x17e   :  { %v1166_v36 = vadd.f32 %v1165_v21, %v5001_v48  ;;  %v1167_v24 = vmul.f32 %v3013_v46, %v5002_v61  ;;  %v1178_v56 = vmul.f32 %v3011_v55, %v5004_v47  ;;  %v5005_v59 = vstv %s4988_s16  ;;  %v5011_v21 = vld [vmem:[#allocation165_spill] sm:$0xff]  ;;  %s5021_s16 = sld [smem:[#allocation43_spill]] }
 0x17f   :  { %v1121_v16 = vmul.f32 %v3263_v4, %v5005_v59  ;;  %v3278_v9 = vmax.f32 %v1130_v34, 0.0  ;;  %v5009_v44 = vstv %s4991_s6  ;;  %v1155_v5 = vadd.f32 %v1154_v2, %v1153_v62  ;;  %s5024_s6 = sld [smem:[#allocation78_spill]] }
 0x180   :  { %v1143_v1 = vadd.f32 %v1142_v58, %v5009_v44  ;;  %v1109_v43 = vadd.f32 %v1108_v29, %v1096_v0  ;;  %v1168_v33 = vadd.f32 %v1167_v24, %v1166_v36  ;;  %v1179_v30 = vadd.f32 %v1178_v56, %v5011_v21 }
 0x181   :  { %5008 = vst [vmem:[#allocation150_spill] sm:$0xff] %v3278_v9  ;;  %v5012_v17 = vstv %s4995_s7  ;;  %v5014_v47 = vstv %s4997_s10  ;;  %v5018_v34 = vstv %s4999_s23  ;;  %v5019_v58 = vstv %s5000_s2  ;;  %s5025_s7 = sld [smem:[#allocation130_spill]]  ;;  %s5029_s10 = sld [smem:[#allocation80_spill]] }
 0x182   :  { %v1180_v48 = vmul.f32 %v3013_v46, %v5012_v17  ;;  %v1134_v61 = vmul.f32 %v3278_v9, %v5014_v47  ;;  %v3289_v59 = vmax.f32 %v1143_v1, 0.0  ;;  %v1156_v49 = vadd.f32 %v1155_v5, %v5018_v34  ;;  %v5027_v5 = vld [vmem:[#allocation166_spill] sm:$0xff]  ;;  %s5032_s23 = sld [smem:[#allocation149_spill]]  ;;  %s5034_s2 = sld [smem:[#allocation81_spill]] }
 0x183   :  { %v1191_v2 = vmul.f32 %v3011_v55, %v5019_v58  ;;  %v1122_v29 = vadd.f32 %v1121_v16, %v1109_v43  ;;  %v5020_v62 = vstv %s5003_s8  ;;  %v5022_v24 = vstv %s5006_s5  ;;  %s5036_s8 = sld [smem:[#allocation83_spill]] }
 0x184   :  { %5017 = vst [vmem:[#allocation152_spill] sm:$0xff] %v3289_v59  ;;  %v1169_v0 = vadd.f32 %v1168_v33, %v5020_v62  ;;  %v1181_v36 = vadd.f32 %v1180_v48, %v1179_v30  ;;  %v1193_v56 = vmul.f32 %v3013_v46, %v5022_v24  ;;  %v5023_v44 = vstv %s5007_s4  ;;  %s5038_s5 = sld [smem:[#allocation131_spill]]  ;;  %s5043_s4 = sld [smem:[#allocation84_spill]] }
 0x185   :  { %v1147_v21 = vmul.f32 %v3289_v59, %v5023_v44  ;;  %v3304_v1 = vmax.f32 %v1156_v49, 0.0  ;;  %v1192_v17 = vadd.f32 %v1191_v2, %v5027_v5  ;;  %v5028_v47 = vstv %s5010_s9  ;;  %v5037_v2 = vld [vmem:[#allocation167_spill] sm:$0xff]  ;;  %s5045_s9 = sld [smem:[#allocation46_spill]] }
 0x186   :  { %v1204_v34 = vmul.f32 %v3011_v55, %v5028_v47  ;;  %v1135_v16 = vadd.f32 %v1134_v61, %v1122_v29  ;;  %v3310_v43 = vmax.f32 %v1169_v0, 0.0  ;;  %v5031_v33 = vstv %s5013_s11  ;;  %s5052_s11 = sld [smem:[#allocation87_spill]] }
 0x187   :  { %5026 = vst [vmem:[#allocation154_spill] sm:$0xff] %v3304_v1  ;;  %v1182_v30 = vadd.f32 %v1181_v36, %v5031_v33  ;;  %v5033_v48 = vstv %s5015_s17  ;;  %v5035_v62 = vstv %s5016_s18  ;;  %v1194_v24 = vadd.f32 %v1193_v56, %v1192_v17  ;;  %v5046_v17 = vld [vmem:[#allocation168_spill] sm:$0xff]  ;;  %s5055_s17 = sld [smem:[#allocation151_spill]]  ;;  %s5057_s18 = sld [smem:[#allocation133_spill]] }
 0x188   :  { %5030 = vst [vmem:[#allocation155_spill] sm:$0xff] %v3310_v43  ;;  %v1206_v58 = vmul.f32 %v3013_v46, %v5033_v48  ;;  %v1160_v49 = vmul.f32 %v3304_v1, %v5035_v62  ;;  %v1205_v44 = vadd.f32 %v1204_v34, %v5037_v2  ;;  %v5039_v5 = vstv %s4760_s25  ;;  %s5048_s25 = sld [smem:[#allocation132_spill]] }
 0x189   :  { %v1217_v61 = vmul.f32 %v3011_v55, %v5039_v5  ;;  %v1148_v29 = vadd.f32 %v1147_v21, %v1135_v16  ;;  %v5040_v0 = vstv %s5021_s16  ;;  %v3327_v36 = vmax.f32 %v1182_v30, 0.0  ;;  %s5058_s16 = sld [smem:[#allocation89_spill]] }
 0x18a   :  { %v1173_v47 = vmul.f32 %v3310_v43, %v5040_v0  ;;  %v5042_v33 = vstv %s5024_s6  ;;  %v5044_v59 = vstv %s5025_s7  ;;  %v1207_v56 = vadd.f32 %v1206_v58, %v1205_v44  ;;  %s5063_s6 = sld [smem:[#allocation90_spill]]  ;;  %s5064_s7 = sld [smem:[#allocation49_spill]] }
 0x18b   :  { %5041 = vst [vmem:[#allocation158_spill] sm:$0xff] %v3327_v36  ;;  %v1219_v48 = vmul.f32 %v3013_v46, %v5042_v33  ;;  %v1195_v62 = vadd.f32 %v1194_v24, %v5044_v59  ;;  %v1218_v34 = vadd.f32 %v1217_v61, %v5046_v17  ;;  %v5047_v2 = vstv %s5029_s10  ;;  %v5056_v61 = vld [vmem:[#allocation169_spill] sm:$0xff]  ;;  %s5067_s10 = sld [smem:[#allocation92_spill]] }
 0x18c   :  { %v1230_v21 = vmul.f32 %v3011_v55, %v5047_v2  ;;  %v1161_v16 = vadd.f32 %v1160_v49, %v1148_v29  ;;  %v5049_v5 = vstv %s5032_s23  ;;  %v5050_v0 = vstv %s5034_s2  ;;  %v5059_v29 = vld [vmem:[#allocation170_spill] sm:$0xff]  ;;  %s5072_s23 = sld [smem:[#allocation93_spill]]  ;;  %s5073_s2 = sld [smem:[#allocation153_spill]] }
 0x18d   :  { %v1186_v30 = vmul.f32 %v3327_v36, %v5049_v5  ;;  %v1232_v43 = vmul.f32 %v3013_v46, %v5050_v0  ;;  %v5051_v1 = vstv %s5036_s8  ;;  %v3347_v59 = vmax.f32 %v1195_v62, 0.0  ;;  %s5080_s8 = sld [smem:[#allocation96_spill]] }
 0x18e   :  { %v1243_v33 = vmul.f32 %v3011_v55, %v5051_v1  ;;  %v5054_v58 = vstv %s5038_s5  ;;  %v1220_v44 = vadd.f32 %v1219_v48, %v1218_v34  ;;  %v1231_v17 = vadd.f32 %v1230_v21, %v5056_v61  ;;  %s5081_s5 = sld [smem:[#allocation136_spill]] }
 0x18f   :  { %5053 = vst [vmem:[#allocation160_spill] sm:$0xff] %v3347_v59  ;;  %v1208_v24 = vadd.f32 %v1207_v56, %v5054_v58  ;;  %v1174_v49 = vadd.f32 %v1173_v47, %v1161_v16  ;;  %v5060_v5 = vstv %s5043_s4  ;;  %v5061_v36 = vstv %s4781_s14  ;;  %s5070_s14 = sld [smem:[#allocation135_spill]]  ;;  %s5084_s4 = sld [smem:[#allocation98_spill]] }
 0x190   :  { %v1244_v2 = vadd.f32 %v1243_v33, %v5059_v29  ;;  %v1245_v0 = vmul.f32 %v3013_v46, %v5060_v5  ;;  %v1256_v1 = vmul.f32 %v3011_v55, %v5061_v36  ;;  %v5062_v62 = vstv %s5045_s9  ;;  %v5068_v33 = vld [vmem:[#allocation171_spill] sm:$0xff]  ;;  %s5091_s9 = sld [smem:[#allocation137_spill]] }
 0x191   :  { %v1199_v9 = vmul.f32 %v3347_v59, %v5062_v62  ;;  %v3362_v48 = vmax.f32 %v1208_v24, 0.0  ;;  %v5066_v56 = vstv %s5048_s25  ;;  %v1233_v21 = vadd.f32 %v1232_v43, %v1231_v17  ;;  %s5097_s25 = sld [smem:[#allocation102_spill]] }
 0x192   :  { %v1221_v34 = vadd.f32 %v1220_v44, %v5066_v56  ;;  %v1187_v47 = vadd.f32 %v1186_v30, %v1174_v49  ;;  %v1246_v16 = vadd.f32 %v1245_v0, %v1244_v2  ;;  %v1257_v58 = vadd.f32 %v1256_v1, %v5068_v33 }
 0x193   :  { %5065 = vst [vmem:[#allocation162_spill] sm:$0xff] %v3362_v48  ;;  %v5069_v61 = vstv %s5052_s11  ;;  %v5071_v36 = vstv %s5055_s17  ;;  %v5075_v24 = vstv %s5057_s18  ;;  %v5076_v44 = vstv %s5058_s16  ;;  %s5099_s11 = sld [smem:[#allocation156_spill]]  ;;  %s5115_s18 = sld [smem:[#allocation110_spill]] }
 0x194   :  { %v1258_v29 = vmul.f32 %v3013_v46, %v5069_v61  ;;  %v1212_v5 = vmul.f32 %v3362_v48, %v5071_v36  ;;  %v3373_v62 = vmax.f32 %v1221_v34, 0.0  ;;  %v1234_v59 = vadd.f32 %v1233_v21, %v5075_v24  ;;  %v5082_v21 = vld [vmem:[#allocation172_spill] sm:$0xff]  ;;  %s3436_s17 = sld [smem:[#allocation10 + $0x8]]  ;;  %s3468_s16 = sld [smem:[#allocation10 + $0xe]] }
 0x195   :  { %v1269_v43 = vmul.f32 %v3011_v55, %v5076_v44  ;;  %v1200_v30 = vadd.f32 %v1199_v9, %v1187_v47  ;;  %v5077_v17 = vstv %s4800_s29  ;;  %v5078_v0 = vstv %s5063_s6  ;;  %s5088_s29 = sld [smem:[#allocation99_spill]] }
 0x196   :  { %5074 = vst [vmem:[#allocation163_spill] sm:$0xff] %v3373_v62  ;;  %v1247_v49 = vadd.f32 %v1246_v16, %v5077_v17  ;;  %v1259_v2 = vadd.f32 %v1258_v29, %v1257_v58  ;;  %v1271_v1 = vmul.f32 %v3013_v46, %v5078_v0  ;;  %v5079_v56 = vstv %s5064_s7  ;;  %s5123_s6 = sld [smem:[#allocation67_spill]]  ;;  %s3510_s7 = sld [smem:[#allocation10 + $0x17]] }
 0x197   :  { %v1225_v33 = vmul.f32 %v3373_v62, %v5079_v56  ;;  %v3388_v34 = vmax.f32 %v1234_v59, 0.0  ;;  %v1270_v61 = vadd.f32 %v1269_v43, %v5082_v21  ;;  %v5083_v36 = vstv %s5067_s10  ;;  %v5090_v43 = vld [vmem:[#allocation173_spill] sm:$0xff]  ;;  %s3534_s10 = sld [smem:[#allocation10 + $0x1d]] }
 0x198   :  { %v1282_v24 = vmul.f32 %v3011_v55, %v5083_v36  ;;  %v1213_v9 = vadd.f32 %v1212_v5, %v1200_v30  ;;  %v3394_v47 = vmax.f32 %v1247_v49, 0.0  ;;  %v5086_v16 = vstv %s5070_s14  ;;  %s3543_s14 = sld [smem:[#allocation10 + $0x20]] }
 0x199   :  { %v1260_v58 = vadd.f32 %v1259_v2, %v5086_v16  ;;  %v5087_v29 = vstv %s5072_s23  ;;  %v5089_v17 = vstv %s5073_s2  ;;  %v1272_v0 = vadd.f32 %v1271_v1, %v1270_v61  ;;  %v5098_v61 = vld [vmem:[#allocation174_spill] sm:$0xff]  ;;  %s3552_s23 = sld [smem:[#allocation10 + $0x23]]  ;;  %s3567_s2 = sld [smem:[#allocation10 + $0x29]] }
 0x19a   :  { %5085 = vst [vmem:[#allocation164_spill] sm:$0xff] %v3394_v47  ;;  %v1284_v44 = vmul.f32 %v3013_v46, %v5087_v29  ;;  %v1238_v59 = vmul.f32 %v3388_v34, %v5089_v17  ;;  %v1283_v56 = vadd.f32 %v1282_v24, %v5090_v43  ;;  %v5092_v21 = vstv %s4807_s13  ;;  %s5101_s13 = sld [smem:[#allocation138_spill]] }
 0x19b   :  { %v1295_v5 = vmul.f32 %v3011_v55, %v5092_v21  ;;  %v1226_v30 = vadd.f32 %v1225_v33, %v1213_v9  ;;  %v5093_v49 = vstv %s4812_s26  ;;  %v3411_v2 = vmax.f32 %v1260_v58, 0.0  ;;  %s5107_s26 = sld [smem:[#allocation105_spill]] }
 0x19c   :  { %v1251_v36 = vmul.f32 %v3394_v47, %v5093_v49  ;;  %v5095_v16 = vstv %s5080_s8  ;;  %v5096_v62 = vstv %s5081_s5  ;;  %v1285_v1 = vadd.f32 %v1284_v44, %v1283_v56  ;;  %s3573_s8 = sld [smem:[#allocation10 + $0x2c]]  ;;  %s3585_s5 = sld [smem:[#allocation10 + $0x32]] }
 0x19d   :  { %5094 = vst [vmem:[#allocation165_spill] sm:$0xff] %v3411_v2  ;;  %v1297_v29 = vmul.f32 %v3013_v46, %v5095_v16  ;;  %v1273_v48 = vadd.f32 %v1272_v0, %v5096_v62  ;;  %v1296_v24 = vadd.f32 %v1295_v5, %v5098_v61  ;;  %v5100_v17 = vstv %s5084_s4  ;;  %v5108_v5 = vld [vmem:[#allocation175_spill] sm:$0xff]  ;;  %s3594_s4 = sld [smem:[#allocation10 + $0x35]] }
 0x19e   :  { %v1308_v43 = vmul.f32 %v3011_v55, %v5100_v17  ;;  %v1239_v33 = vadd.f32 %v1238_v59, %v1226_v30  ;;  %v5102_v9 = vstv %s2433_s30  ;;  %v5103_v21 = vstv %s5088_s29  ;;  %v5109_v30 = vld [vmem:[#allocation176_spill] sm:$0xff]  ;;  %s5110_s30 = sld [smem:[#allocation107_spill]]  ;;  %s3603_s29 = sld [smem:[#allocation10 + $0x38]] }
 0x19f   :  { %v1264_v58 = vmul.f32 %v3411_v2, %v5102_v9  ;;  %v1310_v49 = vmul.f32 %v3013_v46, %v5103_v21  ;;  %v5104_v16 = vstv %s4824_s22  ;;  %v3431_v62 = vmax.f32 %v1273_v48, 0.0  ;;  %s3452_s22 = sld [smem:[#allocation10 + $0xb]] }
 0x1a0   :  { %v1321_v47 = vmul.f32 %v3011_v55, %v5104_v16  ;;  %v5106_v44 = vstv %s5091_s9  ;;  %v1298_v56 = vadd.f32 %v1297_v29, %v1296_v24  ;;  %v1309_v61 = vadd.f32 %v1308_v43, %v5108_v5  ;;  %s3612_s9 = sld [smem:[#allocation10 + $0x3b]] }
 0x1a1   :  { %5105 = vst [vmem:[#allocation166_spill] sm:$0xff] %v3431_v62  ;;  %v1286_v0 = vadd.f32 %v1285_v1, %v5106_v44  ;;  %v1252_v59 = vadd.f32 %v1251_v36, %v1239_v33  ;;  %v5111_v9 = vstv %s5097_s25  ;;  %v5112_v16 = vstv %s4829_s15  ;;  %v5116_v44 = vld [vmem:[#allocation177_spill] sm:$0xff]  ;;  %s5120_s15 = sld [smem:[#allocation111_spill]]  ;;  %s3621_s25 = sld [smem:[#allocation10 + $0x3e]] }
 0x1a2   :  { %v1322_v17 = vadd.f32 %v1321_v47, %v5109_v30  ;;  %v1323_v21 = vmul.f32 %v3013_v46, %v5111_v9  ;;  %v1334_v48 = vmul.f32 %v3011_v55, %v5112_v16  ;;  %v5113_v2 = vstv %s5099_s11  ;;  %s3630_s11 = sld [smem:[#allocation10 + $0x41]] }
 0x1a3   :  { %v1277_v29 = vmul.f32 %v3431_v62, %v5113_v2  ;;  %v3448_v1 = vmax.f32 %v1286_v0, 0.0  ;;  %v5114_v24 = vstv %s5101_s13  ;;  %v1311_v36 = vadd.f32 %v1310_v49, %v1309_v61  ;;  %s3639_s13 = sld [smem:[#allocation10 + $0x44]] }
 0x1a4   :  { %v1299_v43 = vadd.f32 %v1298_v56, %v5114_v24  ;;  %v1265_v47 = vadd.f32 %v1264_v58, %v1252_v59  ;;  %v1324_v33 = vadd.f32 %v1323_v21, %v1322_v17  ;;  %v1335_v5 = vadd.f32 %v1334_v48, %v5116_v44 }
 0x1a5   :  { %v5117_v30 = vstv %s5107_s26  ;;  %v5118_v16 = vstv %s4578_s0  ;;  %v5119_v62 = vstv %s4839_s24  ;;  %v5121_v49 = vstv %s5110_s30  ;;  %s5127_s0 = sld [smem:[#allocation70_spill]]  ;;  %s5134_s24 = sld [smem:[#allocation140_spill]] }
 0x1a6   :  { %v1336_v9 = vmul.f32 %v3013_v46, %v5117_v30  ;;  %v1290_v2 = vmul.f32 %v3448_v1, %v5118_v16  ;;  %v3461_v0 = vmax.f32 %v1299_v43, 0.0  ;;  %v1312_v56 = vadd.f32 %v1311_v36, %v5119_v62  ;;  %v5126_v62 = vld [vmem:[#allocation178_spill] sm:$0xff]  ;;  %s3648_s26 = sld [smem:[#allocation10 + $0x47]]  ;;  %s3659_s30 = sld [smem:[#allocation10 + $0x3]] }
 0x1a7   :  { %v1347_v61 = vmul.f32 %v3011_v55, %v5121_v49  ;;  %v1278_v58 = vadd.f32 %v1277_v29, %v1265_v47  ;;  %v5122_v59 = vstv %s4849_s12  ;;  %v5124_v48 = vstv %s4841_s28  ;;  %s3484_s12 = sld [smem:[#allocation10 + $0x11]]  ;;  %s5131_s28 = sld [smem:[#allocation58_spill]] }
 0x1a8   :  { %v1325_v17 = vadd.f32 %v1324_v33, %v5122_v59  ;;  %v1337_v21 = vadd.f32 %v1336_v9, %v1335_v5  ;;  %v1349_v24 = vmul.f32 %v3013_v46, %v5124_v48  ;;  %v5125_v44 = vstv %s4581_s21  ;;  %v5132_v48 = vld [vmem:[#allocation179_spill] sm:$0xff]  ;;  %s3494_s21 = sld [smem:[#allocation10 + $0x14]] }
 0x1a9   :  { %v1303_v43 = vmul.f32 %v3461_v0, %v5125_v44  ;;  %v3478_v30 = vmax.f32 %v1312_v56, 0.0  ;;  %v1348_v36 = vadd.f32 %v1347_v61, %v5126_v62  ;;  %v5128_v16 = vstv %s5115_s18  ;;  %s3667_s18 = sld [smem:[#allocation10 + $0x4d]] }
 0x1aa   :  { %v1360_v29 = vmul.f32 %v3011_v55, %v5128_v16  ;;  %v1291_v47 = vadd.f32 %v1290_v2, %v1278_v58  ;;  %v3486_v33 = vmax.f32 %v1325_v17, 0.0  ;;  %v5129_v5 = vstv %s4852_s27  ;;  %s5136_s27 = sld [smem:[#allocation61_spill]] }
 0x1ab   :  { %v1338_v9 = vadd.f32 %v1337_v21, %v5129_v5  ;;  %v5130_v49 = vstv %s5120_s15  ;;  %v1350_v59 = vadd.f32 %v1349_v24, %v1348_v36  ;;  %v5133_v55 = vstv %s5123_s6  ;;  %s3679_s15 = sld [smem:[#allocation10 + $0x50]] }
 0x1ac   :  { %v1362_v56 = vmul.f32 %v3013_v46, %v5130_v49  ;;  %v1361_v61 = vadd.f32 %v1360_v29, %v5132_v48  ;;  %v321_v44 = vmul.f32 %v5133_v55, %v2667_v22  ;;  %v359_v2 = vstv %s3436_s17  ;;  %s3657_s17 = sld [smem:[#allocation10]] }
 0x1ad   :  { %v1304_v58 = vadd.f32 %v1303_v43, %v1291_v47  ;;  %v5135_v17 = vstv %s4856_s20  ;;  %v3503_v62 = vmax.f32 %v1338_v9, 0.0  ;;  %v5137_v46 = vstv %s5127_s0  ;;  %s5140_s20 = sld [smem:[#allocation161_spill]] }
 0x1ae   :  { %v1316_v21 = vmul.f32 %v3478_v30, %v5135_v17  ;;  %v340_v24 = vmul.f32 %v5137_v46, %v2669_v57  ;;  %v5138_v36 = vstv %s4858_s3  ;;  %v1363_v29 = vadd.f32 %v1362_v56, %v1361_v61  ;;  %s3523_s3 = sld [smem:[#allocation10 + $0x1a]] }
 0x1af   :  { %v1351_v16 = vadd.f32 %v1350_v59, %v5138_v36  ;;  %v379_v5 = vstv %s3452_s22  ;;  %v5139_v48 = vstv %s5131_s28  ;;  %v360_v9 = vmul.f32 %v359_v2, %v2673_v54  ;;  %s3661_s22 = sld [smem:[#allocation10 + $0x4a]]  ;;  %s3713_s28 = sld [smem:[#allocation10 + $0x59]] }
 0x1b0   :  { %v1317_v49 = vadd.f32 %v1316_v21, %v1304_v58  ;;  %v1329_v43 = vmul.f32 %v3486_v33, %v5139_v48  ;;  %v341_v47 = vadd.f32 %v340_v24, %v321_v44  ;;  %v5141_v17 = vstv %s5134_s24  ;;  %s3736_s24 = sld [smem:[#allocation10 + $0xc]] }
 0x1b1   :  { %v3519_v55 = vmax.f32 %v1351_v16, 0.0  ;;  %v1364_v59 = vadd.f32 %v1363_v29, %v5141_v17  ;;  %v399_v56 = vstv %s3468_s16  ;;  %v5142_v58 = vstv %s5136_s27  ;;  %s3688_s16 = sld [smem:[#allocation10 + $0x6]]  ;;  %s3739_s27 = sld [smem:[#allocation10 + $0x5f]] }
 0x1b2   :  { %v1330_v61 = vadd.f32 %v1329_v43, %v1317_v49  ;;  %v1342_v21 = vmul.f32 %v3503_v62, %v5142_v58  ;;  %v361_v46 = vadd.f32 %v360_v9, %v341_v47  ;;  %v380_v44 = vmul.f32 %v379_v5, %v2675_v11 }
 0x1b3   :  { %v3532_v24 = vmax.f32 %v1364_v59, 0.0  ;;  %v419_v36 = vstv %s3484_s12  ;;  %v5143_v29 = vstv %s5140_s20  ;;  %v400_v43 = vmul.f32 %v399_v56, %v2686_v19  ;;  %s3711_s12 = sld [smem:[#allocation10 + $0x9]]  ;;  %s3778_s20 = sld [smem:[#allocation10 + $0x12]] }
 0x1b4   :  { %v1343_v16 = vadd.f32 %v1342_v21, %v1330_v61  ;;  %v1355_v49 = vmul.f32 %v3519_v55, %v5143_v29  ;;  %v381_v48 = vadd.f32 %v380_v44, %v361_v46  ;;  %v4284_v47 = vstv %s3494_s21 }
 0x1b5   :  { %v5144_v17 = vstv %s4879_s19  ;;  %v420_v61 = vmul.f32 %v419_v36, %v2696_v23  ;;  %v4282_v21 = vstv %s3510_s7  ;;  %v440_v29 = vmul.f32 %v4284_v47, %v2704_v38  ;;  %s3558_s19 = sld [smem:[#allocation10 + $0x26]] }
 0x1b6   :  { %v1356_v9 = vadd.f32 %v1355_v49, %v1343_v16  ;;  %v1368_v59 = vmul.f32 %v3532_v24, %v5144_v17  ;;  %v401_v58 = vadd.f32 %v400_v43, %v381_v48  ;;  %v4281_v16 = vstv %s3523_s3 }
 0x1b7   :  { %v460_v43 = vmul.f32 %v4282_v21, %v2740_v45 }
 0x1b8   :  { %v1369_v46 = vadd.f32 %v1368_v59, %v1356_v9  ;;  %v421_v44 = vadd.f32 %v420_v61, %v401_v58  ;;  %v4279_v9 = vstv %s3534_s10  ;;  %v480_v59 = vmul.f32 %v4281_v16, %v2758_v50 }
 0x1b9   :  { %v4280_v58 = vstv %s3543_s14 }
 0x1ba   :  { %v1374_v49 = vsel %vm74_vm0, %v1369_v46, 0.0  ;;  %v441_v48 = vadd.f32 %v440_v29, %v421_v44  ;;  %v500_v46 = vmul.f32 %v4279_v9, %v2763_v41  ;;  %v4283_v44 = vstv %s3552_s23 }
 0x1bb   :  { %1375 = vrot.lane.b32.xlu1 %v1374_v49, %s1730_s1  ;;  %s3579_s1 = sld [smem:[#allocation10 + $0x2f]]  ;;  %v520_v49 = vmul.f32 %v4280_v58, %v2779_v39  ;;  %v540_v9 = vmul.f32 %v4283_v44, %v2786_v27 }
 0x1bc   :  { %v461_v17 = vadd.f32 %v460_v43, %v441_v48  ;;  %v4285_v48 = vstv %s3558_s19  ;;  %v5145_v43 = vstv %s5123_s6  ;;  %s3690_s6 = sld [smem:[#allocation10 + $0x53]] }
 0x1bd   :  { %v560_v21 = vmul.f32 %v4285_v48, %v2794_v7 }
 0x1be   :  { %v481_v61 = vadd.f32 %v480_v59, %v461_v17  ;;  %v968_v17 = vmul.f32 %v3093_v26, %v5145_v43  ;;  %v993_v43 = vmul.f32 %v3120_v3, %v359_v2  ;;  %v4287_v2 = vstv %s3585_s5 }
 0x1c0   :  { %v501_v29 = vadd.f32 %v500_v46, %v481_v61  ;;  %v579_v61 = vstv %s3567_s2  ;;  %v5146_v46 = vstv %s5127_s0  ;;  %s3701_s0 = sld [smem:[#allocation10 + $0x56]]  ;;  %s3849_s2 = sld [smem:[#allocation10 + $0x21]] }
 0x1c1   :  { %v980_v58 = vmul.f32 %v3107_v20, %v5146_v46  ;;  %v580_v47 = vmul.f32 %v579_v61, %v2815_v51  ;;  %v1006_v46 = vmul.f32 %v3128_v32, %v379_v5  ;;  %v4289_v5 = vstv %s3594_s4 }
 0x1c2   :  { %v521_v59 = vadd.f32 %v520_v49, %v501_v29  ;;  %v599_v29 = vstv %s3573_s8  ;;  %s3862_s8 = sld [smem:[#allocation10 + $0x24]] }
 0x1c3   :  { %v981_v49 = vadd.f32 %v980_v58, %v968_v17  ;;  %v600_v58 = vmul.f32 %v599_v29, %v2836_v42 }
 0x1c4   :  { %v541_v16 = vadd.f32 %v540_v9, %v521_v59  ;;  %v4286_v9 = vstv %s3579_s1 }
 0x1c5   :  { %v994_v59 = vadd.f32 %v993_v43, %v981_v49  ;;  %v620_v49 = vmul.f32 %v4286_v9, %v2850_v13 }
 0x1c6   :  { %v561_v44 = vadd.f32 %v560_v21, %v541_v16  ;;  %v1019_v16 = vmul.f32 %v3144_v14, %v399_v56  ;;  %v4288_v56 = vstv %s3603_s29 }
 0x1c7   :  { %v1007_v21 = vadd.f32 %v1006_v46, %v994_v59  ;;  %v640_v59 = vmul.f32 %v4287_v2, %v2863_v52  ;;  %v5147_v46 = vstv %s3494_s21  ;;  %s3727_s21 = sld [smem:[#allocation10 + $0x5c]] }
 0x1c8   :  { %v581_v48 = vadd.f32 %v580_v47, %v561_v44  ;;  %v1032_v44 = vmul.f32 %v3156_v15, %v419_v36  ;;  %v4292_v36 = vstv %s3612_s9 }
 0x1c9   :  { %v1020_v47 = vadd.f32 %v1019_v16, %v1007_v21  ;;  %v660_v21 = vmul.f32 %v4289_v5, %v2871_v35 }
 0x1ca   :  { %v601_v17 = vadd.f32 %v600_v58, %v581_v48  ;;  %v1045_v58 = vmul.f32 %v3179_v18, %v5147_v46  ;;  %v700_v46 = vmul.f32 %v4292_v36, %v2902_v40  ;;  %v5153_v36 = vstv %s3558_s19  ;;  %s3836_s19 = sld [smem:[#allocation10 + $0x1e]] }
 0x1cb   :  { %v1033_v48 = vadd.f32 %v1032_v44, %v1020_v47  ;;  %v680_v47 = vmul.f32 %v4288_v56, %v2888_v10  ;;  %v4291_v44 = vstv %s3621_s25 }
 0x1cc   :  { %v621_v43 = vadd.f32 %v620_v49, %v601_v17  ;;  %v5148_v17 = vstv %s3510_s7  ;;  %s3758_s7 = sld [smem:[#allocation10 + $0xf]] }
 0x1cd   :  { %v1046_v16 = vadd.f32 %v1045_v58, %v1033_v48  ;;  %v1058_v49 = vmul.f32 %v3194_v8, %v5148_v17  ;;  %v4290_v58 = vstv %s3630_s11  ;;  %v5150_v17 = vstv %s3534_s10  ;;  %s3809_s10 = sld [smem:[#allocation10 + $0x18]] }
 0x1ce   :  { %v641_v9 = vadd.f32 %v640_v59, %v621_v43  ;;  %v5149_v59 = vstv %s3523_s3  ;;  %v1084_v56 = vmul.f32 %v3217_v12, %v5150_v17  ;;  %v5152_v17 = vstv %s3552_s23  ;;  %s3797_s3 = sld [smem:[#allocation10 + $0x15]]  ;;  %s3826_s23 = sld [smem:[#allocation10 + $0x1b]] }
 0x1cf   :  { %v1059_v43 = vadd.f32 %v1058_v49, %v1046_v16  ;;  %v1071_v48 = vmul.f32 %v3210_v31, %v5149_v59  ;;  %v720_v16 = vmul.f32 %v4291_v44, %v2920_v63 }
 0x1d0   :  { %v661_v2 = vadd.f32 %v660_v21, %v641_v9 }
 0x1d1   :  { %v1072_v21 = vadd.f32 %v1071_v48, %v1059_v43  ;;  %v740_v48 = vmul.f32 %v4290_v58, %v2934_v25  ;;  %v4297_v58 = vstv %s3661_s22 }
 0x1d2   :  { %v681_v9 = vadd.f32 %v680_v47, %v661_v2  ;;  %v4293_v2 = vstv %s3639_s13  ;;  %v5151_v47 = vstv %s3543_s14  ;;  %s1731_s14 = smov 2  }
 0x1d3   :  { %v1085_v49 = vadd.f32 %v1084_v56, %v1072_v21  ;;  %v1097_v59 = vmul.f32 %v3226_v60, %v5151_v47  ;;  %v1110_v56 = vmul.f32 %v3243_v53, %v5152_v17  ;;  %v4298_v47 = vstv %s3659_s30 }
 0x1d4   :  { %v701_v5 = vadd.f32 %v700_v46, %v681_v9  ;;  %v4294_v9 = vstv %s3648_s26 }
 0x1d5   :  { %v1098_v46 = vadd.f32 %v1097_v59, %v1085_v49  ;;  %v1123_v49 = vmul.f32 %v3263_v4, %v5153_v36 }
 0x1d6   :  { %v721_v43 = vadd.f32 %v720_v16, %v701_v5  ;;  %v760_v5 = vmul.f32 %v4293_v2, %v2947_v28  ;;  %v4296_v16 = vstv %s3657_s17  ;;  %v5154_v2 = vld [vmem:[#allocation150_spill] sm:$0xff]  ;;  %v5164_v28 = vld [vmem:[#allocation155_spill] sm:$0xff] }
 0x1d7   :  { %v1111_v44 = vadd.f32 %v1110_v56, %v1098_v46  ;;  %v1136_v46 = vmul.f32 %v5154_v2, %v579_v61  ;;  %v317_v36 = vmul.f32 %v4296_v16, %v2667_v22  ;;  %v334_v56 = vmul.f32 %v4298_v47, %v2669_v57  ;;  %v5156_v61 = vld [vmem:[#allocation152_spill] sm:$0xff]  ;;  %v5157_v22 = vld [vmem:[#allocation184_spill] sm:$0xff] }
 0x1d8   :  { %v741_v21 = vadd.f32 %v740_v48, %v721_v43  ;;  %v780_v43 = vmul.f32 %v4294_v9, %v2955_v37  ;;  %v5158_v16 = vstv %s3667_s18 }
 0x1d9   :  { %v1124_v17 = vadd.f32 %v1123_v49, %v1111_v44  ;;  %v1149_v49 = vmul.f32 %v5156_v61, %v599_v29  ;;  %v820_v57 = vmul.f32 %v5158_v16, %v5157_v22  ;;  %v335_v48 = vadd.f32 %v334_v56, %v317_v36 }
 0x1da   :  { %v761_v59 = vadd.f32 %v760_v5, %v741_v21  ;;  %v5155_v5 = vld [vmem:[#allocation183_spill] sm:$0xff]  ;;  %v5167_v36 = vstv %s3690_s6 }
 0x1db   :  { %v800_v9 = vmul.f32 %v4297_v58, %v5155_v5  ;;  %v1137_v44 = vadd.f32 %v1136_v46, %v1124_v17  ;;  %v5159_v17 = vstv %s3579_s1  ;;  %v5160_v46 = vld [vmem:[#allocation154_spill] sm:$0xff]  ;;  %s3872_s1 = sld [smem:[#allocation10 + $0x27]] }
 0x1dc   :  { %v781_v21 = vadd.f32 %v780_v43, %v761_v59  ;;  %v1162_v47 = vmul.f32 %v5160_v46, %v5159_v17  ;;  %v5163_v59 = vstv %s3585_s5  ;;  %v5165_v43 = vstv %s3688_s16  ;;  %v5166_v17 = vld [vmem:[#allocation186_spill] sm:$0xff]  ;;  %s3880_s5 = sld [smem:[#allocation10 + $0x2a]] }
 0x1dd   :  { %v1150_v58 = vadd.f32 %v1149_v49, %v1137_v44  ;;  %v1175_v25 = vmul.f32 %v5164_v28, %v5163_v59  ;;  %v354_v44 = vmul.f32 %v5165_v43, %v2673_v54  ;;  %v860_v56 = vmul.f32 %v5167_v36, %v5166_v17  ;;  %v5170_v54 = vld [vmem:[#allocation187_spill] sm:$0xff]  ;;  %v5173_v28 = vld [vmem:[#allocation160_spill] sm:$0xff] }
 0x1de   :  { %v801_v37 = vadd.f32 %v800_v9, %v781_v21  ;;  %v5161_v9 = vld [vmem:[#allocation185_spill] sm:$0xff]  ;;  %v5162_v21 = vstv %s3679_s15  ;;  %v5171_v43 = vstv %s3701_s0  ;;  %v5172_v17 = vstv %s3603_s29  ;;  %s3890_s29 = sld [smem:[#allocation10 + $0x30]] }
 0x1df   :  { %v840_v16 = vmul.f32 %v5162_v21, %v5161_v9  ;;  %v1163_v5 = vadd.f32 %v1162_v47, %v1150_v58  ;;  %v5168_v47 = vstv %s3594_s4  ;;  %v5169_v21 = vld [vmem:[#allocation158_spill] sm:$0xff]  ;;  %v355_v59 = vadd.f32 %v354_v44, %v335_v48  ;;  %s3885_s4 = sld [smem:[#allocation10 + $0x2d]] }
 0x1e0   :  { %v821_v29 = vadd.f32 %v820_v57, %v801_v37  ;;  %v4301_v37 = vstv %s3711_s12  ;;  %v1188_v22 = vmul.f32 %v5169_v21, %v5168_v47  ;;  %v1201_v46 = vmul.f32 %v5173_v28, %v5172_v17  ;;  %v5174_v57 = vld [vmem:[#allocation188_spill] sm:$0xff] }
 0x1e1   :  { %v1176_v58 = vadd.f32 %v1175_v25, %v1163_v5  ;;  %v374_v25 = vmul.f32 %v4301_v37, %v2675_v11  ;;  %v5175_v47 = vstv %s3713_s28  ;;  %v4302_v44 = vstv %s3736_s24  ;;  %v5181_v37 = vld [vmem:[#allocation163_spill] sm:$0xff] }
 0x1e2   :  { %v841_v49 = vadd.f32 %v840_v16, %v821_v29  ;;  %v880_v29 = vmul.f32 %v5171_v43, %v5170_v54  ;;  %v900_v48 = vmul.f32 %v5175_v47, %v5174_v57  ;;  %v5176_v43 = vstv %s3612_s9  ;;  %v5178_v54 = vld [vmem:[#allocation189_spill] sm:$0xff]  ;;  %s3895_s9 = sld [smem:[#allocation10 + $0x33]] }
 0x1e3   :  { %v1189_v36 = vadd.f32 %v1188_v22, %v1176_v58  ;;  %v5177_v22 = vld [vmem:[#allocation162_spill] sm:$0xff]  ;;  %v375_v17 = vadd.f32 %v374_v25, %v355_v59  ;;  %v5179_v28 = vstv %s3727_s21  ;;  %v394_v57 = vmul.f32 %v4302_v44, %v2686_v19  ;;  %v5186_v19 = vld [vmem:[#allocation164_spill] sm:$0xff] }
 0x1e4   :  { %v861_v9 = vadd.f32 %v860_v56, %v841_v49  ;;  %v1214_v58 = vmul.f32 %v5177_v22, %v5176_v43  ;;  %v920_v11 = vmul.f32 %v5179_v28, %v5178_v54  ;;  %v5182_v49 = vld [vmem:[#allocation190_spill] sm:$0xff]  ;;  %v413_v59 = vstv %s3758_s7  ;;  %s1732_s7 = smov [#allocation11]  }
 0x1e5   :  { %v1202_v56 = vadd.f32 %v1201_v46, %v1189_v36  ;;  %v5183_v46 = vstv %s3739_s27 }
 0x1e6   :  { %v881_v5 = vadd.f32 %v880_v29, %v861_v9  ;;  %v5180_v29 = vstv %s3621_s25  ;;  %v940_v36 = vmul.f32 %v5183_v46, %v5182_v49  ;;  %s3900_s25 = sld [smem:[#allocation10 + $0x36]] }
 0x1e7   :  { %v1215_v9 = vadd.f32 %v1214_v58, %v1202_v56  ;;  %v1227_v47 = vmul.f32 %v5181_v37, %v5180_v29  ;;  %v5185_v58 = vstv %s3639_s13  ;;  %s3910_s13 = sld [smem:[#allocation10 + $0x3c]] }
 0x1e8   :  { %v901_v16 = vadd.f32 %v900_v48, %v881_v5  ;;  %v5184_v5 = vstv %s3630_s11  ;;  %v395_v48 = vadd.f32 %v394_v57, %v375_v17  ;;  %v5188_v17 = vld [vmem:[#allocation165_spill] sm:$0xff]  ;;  %s3905_s11 = sld [smem:[#allocation10 + $0x39]] }
 0x1e9   :  { %v1228_v25 = vadd.f32 %v1227_v47, %v1215_v9  ;;  %v1240_v28 = vmul.f32 %v3388_v34, %v5184_v5  ;;  %v433_v9 = vstv %s3778_s20  ;;  %s1388_s20 = sshll.u32 %s1732_s7, 4  ;;  %s1389_s20 = int_to_ptr.vmem [resolvable:$true] %s1388_s20 }
 0x1ea   :  { %v921_v21 = vadd.f32 %v920_v11, %v901_v16  ;;  %v1253_v16 = vmul.f32 %v5186_v19, %v5185_v58  ;;  %v414_v11 = vmul.f32 %v413_v59, %v2696_v23  ;;  %v5192_v58 = vld [vmem:[#allocation166_spill] sm:$0xff]  ;;  %p1697_p10 = scmp.lt.s32.totalorder %s1389_s20, %s1389_s20 }
 0x1eb   :  { %v1241_v43 = vadd.f32 %v1240_v28, %v1228_v25  ;;  %v5190_v25 = vstv %s3659_s30  ;;  %s3925_s30 = sld [smem:[#allocation10 + $0x45]] }
 0x1ec   :  { %v941_v56 = vadd.f32 %v940_v36, %v921_v21  ;;  %v5187_v21 = vstv %s3648_s26  ;;  %v415_v46 = vadd.f32 %v414_v11, %v395_v48  ;;  %v5189_v36 = vstv %s3657_s17  ;;  %s3915_s26 = sld [smem:[#allocation10 + $0x3f]]  ;;  %s3920_s17 = sld [smem:[#allocation10 + $0x42]] }
 0x1ed   :  { %v1254_v57 = vadd.f32 %v1253_v16, %v1241_v43  ;;  %v1266_v47 = vmul.f32 %v5188_v17, %v5187_v21  ;;  %v966_v23 = vmul.f32 %v3093_v26, %v5189_v36  ;;  %v976_v5 = vmul.f32 %v3107_v20, %v5190_v25 }
 0x1ee   :  { %v949_v29 = vsel %vm74_vm0, %v941_v56, 0.0  ;;  %v5191_v56 = vstv %s3661_s22  ;;  %v453_v43 = vstv %s3797_s3  ;;  %v5193_v16 = vstv %s3667_s18  ;;  %s3930_s22 = sld [smem:[#allocation10 + $0x48]]  ;;  %s3935_s18 = sld [smem:[#allocation10 + $0x4b]] }
 0x1ef   :  { %950 = vrot.lane.b32.xlu0 %v949_v29, %s1731_s14  ;;  %v1267_v28 = vadd.f32 %v1266_v47, %v1254_v57  ;;  %v1279_v44 = vmul.f32 %v5192_v58, %v5191_v56  ;;  %v434_v29 = vmul.f32 %v433_v9, %v2704_v38  ;;  %v1292_v11 = vmul.f32 %v3448_v1, %v5193_v16  ;;  %s1692_s3 = scalar_lea.vmem %s1389_s20, 256 }
 0x1f0   :  { %v977_v21 = vadd.f32 %v976_v5, %v966_v23  ;;  %v5194_v57 = vstv %s3679_s15  ;;  %v454_v36 = vmul.f32 %v453_v43, %v2740_v45  ;;  %v473_v38 = vstv %s3809_s10  ;;  %s3940_s15 = sld [smem:[#allocation10 + $0x4e]]  ;;  %p1693_p9 = scmp.ne.s32.totalorder %s1389_s20, %s1692_s3 }
 0x1f1   :  { %v1280_v48 = vadd.f32 %v1279_v44, %v1267_v28  ;;  %v435_v26 = vadd.f32 %v434_v29, %v415_v46  ;;  %v1305_v47 = vmul.f32 %v3461_v0, %v5194_v57  ;;  %v5195_v25 = vstv %s3688_s16  ;;  %s3945_s16 = sld [smem:[#allocation10 + $0x51]]  ;;  %p1698_p11 = scmp.lt.s32.totalorder %s1692_s3, %s1692_s3 }
 0x1f2   :  { %v989_v44 = vmul.f32 %v3120_v3, %v5195_v25  ;;  %v5196_v56 = vstv %s3690_s6  ;;  %v474_v45 = vmul.f32 %v473_v38, %v2758_v50  ;;  %v5198_v3 = vstv %s3711_s12  ;;  %s3950_s6 = sld [smem:[#allocation10 + $0x54]]  ;;  %s3960_s12 = sld [smem:[#allocation10 + $0x5a]] }
 0x1f3   :  { %v1293_v20 = vadd.f32 %v1292_v11, %v1280_v48  ;;  %v1318_v46 = vmul.f32 %v3478_v30, %v5196_v56  ;;  %v455_v23 = vadd.f32 %v454_v36, %v435_v26  ;;  %v5197_v48 = vstv %s3701_s0  ;;  %s3955_s0 = sld [smem:[#allocation10 + $0x57]]  ;;  %p1699_p12 = por %p1698_p11, %p1697_p10 }
 0x1f4   :  { %v990_v5 = vadd.f32 %v989_v44, %v977_v21  ;;  %v1331_v16 = vmul.f32 %v3486_v33, %v5197_v48  ;;  %v493_v11 = vstv %s3826_s23  ;;  %v5200_v44 = vstv %s3727_s21 }
 0x1f5   :  { %v1306_v28 = vadd.f32 %v1305_v47, %v1293_v20  ;;  %v1002_v20 = vmul.f32 %v3128_v32, %v5198_v3  ;;  %v5199_v47 = vstv %s3713_s28  ;;  %v475_v21 = vadd.f32 %v474_v45, %v455_v23  ;;  %s3965_s28 = sld [smem:[#allocation10 + $0x5d]]  ;;  %p1700_p13 = pnand %p1699_p12, %p1693_p9 }
 0x1f6   :  { %v1344_v26 = vmul.f32 %v3503_v62, %v5199_v47  ;;  %v494_v56 = vmul.f32 %v493_v11, %v2763_v41  ;;  %v513_v50 = vstv %s3836_s19  ;;  %v533_v41 = vstv %s3849_s2 }
 0x1f7   :  { %v1319_v29 = vadd.f32 %v1318_v46, %v1306_v28  ;;  %v1003_v36 = vadd.f32 %v1002_v20, %v990_v5  ;;  %v1357_v28 = vmul.f32 %v3519_v55, %v5200_v44  ;;  %v5201_v46 = vstv %s3736_s24 }
 0x1f8   :  { %v1015_v48 = vmul.f32 %v3144_v14, %v5201_v46  ;;  %v495_v3 = vadd.f32 %v494_v56, %v475_v21  ;;  %v514_v45 = vmul.f32 %v513_v50, %v2779_v39  ;;  %v1028_v20 = vmul.f32 %v3156_v15, %v413_v59 }
 0x1f9   :  { %v1332_v57 = vadd.f32 %v1331_v16, %v1319_v29  ;;  %v5202_v29 = vstv %s3739_s27  ;;  %v553_v21 = vstv %s3862_s8  ;;  %v1041_v39 = vmul.f32 %v3179_v18, %v433_v9  ;;  %s5216_s27 = sld [smem:[#allocation191_spill]] }
 0x1fa   :  { %v1370_v16 = vmul.f32 %v3532_v24, %v5202_v29  ;;  %v1016_v23 = vadd.f32 %v1015_v48, %v1003_v36  ;;  %v515_v14 = vadd.f32 %v514_v45, %v495_v3  ;;  %v554_v44 = vmul.f32 %v553_v21, %v2794_v7 }
 0x1fb   :  { %v1345_v25 = vadd.f32 %v1344_v26, %v1332_v57  ;;  %v534_v26 = vmul.f32 %v533_v41, %v2786_v27  ;;  %v573_v15 = vstv %s3872_s1  ;;  %v1054_v59 = vmul.f32 %v3194_v8, %v453_v43 }
 0x1fc   :  { %v1029_v47 = vadd.f32 %v1028_v20, %v1016_v23  ;;  %v574_v27 = vmul.f32 %v573_v15, %v2815_v51  ;;  %v593_v46 = vstv %s3880_s5  ;;  %v1067_v18 = vmul.f32 %v3210_v31, %v473_v38 }
 0x1fd   :  { %v1358_v32 = vadd.f32 %v1357_v28, %v1345_v25  ;;  %v535_v36 = vadd.f32 %v534_v26, %v515_v14  ;;  %v594_v7 = vmul.f32 %v593_v46, %v2836_v42  ;;  %v1080_v8 = vmul.f32 %v3217_v12, %v493_v11 }
 0x1fe   :  { %v1042_v25 = vadd.f32 %v1041_v39, %v1029_v47  ;;  %v1093_v31 = vmul.f32 %v3226_v60, %v513_v50  ;;  %v653_v23 = vstv %s3895_s9  ;;  %v1106_v12 = vmul.f32 %v3243_v53, %v533_v41 }
 0x1ff   :  { %v1371_v5 = vadd.f32 %v1370_v16, %v1358_v32  ;;  %v555_v28 = vadd.f32 %v554_v44, %v535_v36  ;;  %v613_v32 = vstv %s3885_s4  ;;  %v633_v16 = vstv %s3890_s29  ;;  %v5203_v36 = vld [vmem:[#allocation154_spill] sm:$0xff] }
 0x200   :  { %v1055_v56 = vadd.f32 %v1054_v59, %v1042_v25  ;;  %v614_v51 = vmul.f32 %v613_v32, %v2850_v13  ;;  %v634_v42 = vmul.f32 %v633_v16, %v2863_v52  ;;  %v654_v13 = vmul.f32 %v653_v23, %v2871_v35 }
 0x201   :  { %v1378_v57 = vsel %vm74_vm0, %v1371_v5, 0.0  ;;  %v575_v9 = vadd.f32 %v574_v27, %v555_v28  ;;  %v673_v45 = vstv %s3900_s25  ;;  %v1119_v60 = vmul.f32 %v3263_v4, %v553_v21  ;;  %v5205_v28 = vld [vmem:[#allocation155_spill] sm:$0xff] }
 0x202   :  { %1379 = vrot.lane.b32.xlu1 %v1378_v57, %s1731_s14  ;;  %v1068_v48 = vadd.f32 %v1067_v18, %v1055_v56  ;;  %v674_v52 = vmul.f32 %v673_v45, %v2888_v10  ;;  %v693_v57 = vstv %s3905_s11  ;;  %v1132_v53 = vmul.f32 %v5154_v2, %v573_v15  ;;  %v5204_v15 = vld [vmem:[#allocation180_spill] sm:$0xff] }
 0x203   :  { %v595_v43 = vadd.f32 %v594_v7, %v575_v9  ;;  %v694_v35 = vmul.f32 %v693_v57, %v2902_v40  ;;  %v713_v47 = vstv %s3910_s13  ;;  %v1145_v4 = vmul.f32 %v5156_v61, %v593_v46  ;;  %v5206_v46 = vld [vmem:[#allocation181_spill] sm:$0xff]  ;;  %v5207_v9 = vld [vmem:[#allocation158_spill] sm:$0xff] }
 0x204   :  { %v1081_v29 = vadd.f32 %v1080_v8, %v1068_v48  ;;  %v714_v10 = vmul.f32 %v713_v47, %v2920_v63  ;;  %v733_v39 = vstv %s3915_s26  ;;  %v1158_v2 = vmul.f32 %v5203_v36, %v613_v32  ;;  %v5208_v8 = vld [vmem:[#allocation182_spill] sm:$0xff]  ;;  %v5214_v36 = vld [vmem:[#allocation187_spill] sm:$0xff] }
 0x205   :  { %v615_v38 = vadd.f32 %v614_v51, %v595_v43  ;;  %v734_v40 = vmul.f32 %v733_v39, %v5204_v15  ;;  %v753_v59 = vstv %s3920_s17  ;;  %v1171_v61 = vmul.f32 %v5205_v28, %v633_v16  ;;  %v5209_v51 = vld [vmem:[#allocation160_spill] sm:$0xff]  ;;  %v5215_v15 = vld [vmem:[#allocation188_spill] sm:$0xff] }
 0x206   :  { %v1094_v3 = vadd.f32 %v1093_v31, %v1081_v29  ;;  %v754_v63 = vmul.f32 %v753_v59, %v5206_v46  ;;  %v773_v18 = vstv %s3925_s30  ;;  %v1184_v48 = vmul.f32 %v5207_v9, %v653_v23 }
 0x207   :  { %v635_v11 = vadd.f32 %v634_v42, %v615_v38  ;;  %v774_v43 = vmul.f32 %v773_v18, %v5208_v8  ;;  %v793_v29 = vstv %s3930_s22  ;;  %v1197_v16 = vmul.f32 %v5209_v51, %v673_v45  ;;  %v947_v8 = vpop.permute.xlu0 %946 }
 0x208   :  { %v1107_v5 = vadd.f32 %v1106_v12, %v1094_v3  ;;  %v5210_v3 = vld [vmem:[#allocation183_spill] sm:$0xff]  ;;  %v813_v12 = vstv %s3935_s18  ;;  %v1210_v23 = vmul.f32 %v5177_v22, %v693_v57  ;;  %v1223_v45 = vmul.f32 %v5181_v37, %v713_v47 }
 0x209   :  { %v655_v50 = vadd.f32 %v654_v13, %v635_v11  ;;  %v794_v42 = vmul.f32 %v793_v29, %v5210_v3  ;;  %v5211_v13 = vld [vmem:[#allocation184_spill] sm:$0xff]  ;;  %v1236_v22 = vmul.f32 %v3388_v34, %v733_v39  ;;  %v1249_v37 = vmul.f32 %v5186_v19, %v753_v59 }
 0x20a   :  { %v1120_v20 = vadd.f32 %v1119_v60, %v1107_v5  ;;  %v814_v60 = vmul.f32 %v813_v12, %v5211_v13  ;;  %v1262_v34 = vmul.f32 %v5188_v17, %v773_v18  ;;  %v913_v28 = vstv %s3960_s12 }
 0x20b   :  { %v675_v41 = vadd.f32 %v674_v52, %v655_v50  ;;  %v833_v50 = vstv %s3940_s15  ;;  %v914_v19 = vmul.f32 %v913_v28, %v5178_v54  ;;  %v933_v59 = vstv %s3965_s28 }
 0x20c   :  { %v1133_v14 = vadd.f32 %v1132_v53, %v1120_v20  ;;  %v5212_v53 = vld [vmem:[#allocation185_spill] sm:$0xff]  ;;  %v1288_v46 = vmul.f32 %v3448_v1, %v813_v12  ;;  %v1301_v17 = vmul.f32 %v3461_v0, %v833_v50  ;;  %v943_v54 = vstv %s5216_s27 }
 0x20d   :  { %v695_v26 = vadd.f32 %v694_v35, %v675_v41  ;;  %v834_v41 = vmul.f32 %v833_v50, %v5212_v53 }
 0x20e   :  { %v1146_v21 = vadd.f32 %v1145_v4, %v1133_v14  ;;  %v853_v14 = vstv %s3945_s16  ;;  %v5213_v4 = vld [vmem:[#allocation186_spill] sm:$0xff] }
 0x20f   :  { %v715_v25 = vadd.f32 %v714_v10, %v695_v26  ;;  %v854_v26 = vmul.f32 %v853_v14, %v5213_v4 }
 0x210   :  { %v1159_v44 = vadd.f32 %v1158_v2, %v1146_v21  ;;  %v873_v21 = vstv %s3950_s6 }
 0x211   :  { %v735_v56 = vadd.f32 %v734_v40, %v715_v25  ;;  %v874_v2 = vmul.f32 %v873_v21, %v5214_v36  ;;  %v893_v25 = vstv %s3955_s0 }
 0x212   :  { %v1172_v27 = vadd.f32 %v1171_v61, %v1159_v44  ;;  %v894_v40 = vmul.f32 %v893_v25, %v5215_v15  ;;  %v1275_v61 = vmul.f32 %v5192_v58, %v793_v29  ;;  %v1327_v29 = vmul.f32 %v3486_v33, %v873_v21 }
 0x213   :  { %v755_v7 = vadd.f32 %v754_v63, %v735_v56 }
 0x214   :  { %v1185_v32 = vadd.f32 %v1184_v48, %v1172_v27  ;;  %v934_v48 = vmul.f32 %v933_v59, %v5182_v49 }
 0x215   :  { %v775_v31 = vadd.f32 %v774_v43, %v755_v7 }
 0x216   :  { %v1198_v38 = vadd.f32 %v1197_v16, %v1185_v32  ;;  %v1314_v32 = vmul.f32 %v3478_v30, %v853_v14 }
 0x217   :  { %v795_v11 = vadd.f32 %v794_v42, %v775_v31  ;;  %v1340_v31 = vmul.f32 %v3503_v62, %v893_v25  ;;  %v1366_v42 = vmul.f32 %v3532_v24, %v933_v59 }
 0x218   :  { %v1211_v5 = vadd.f32 %v1210_v23, %v1198_v38  ;;  %v1353_v38 = vmul.f32 %v3519_v55, %v913_v28 }
 0x219   :  { %v815_v20 = vadd.f32 %v814_v60, %v795_v11 }
 0x21a   :  { %v1224_v52 = vadd.f32 %v1223_v45, %v1211_v5 }
 0x21b   :  { %v835_v57 = vadd.f32 %v834_v41, %v815_v20 }
 0x21c   :  { %v1237_v35 = vadd.f32 %v1236_v22, %v1224_v52 }
 0x21d   :  { %v855_v47 = vadd.f32 %v854_v26, %v835_v57 }
 0x21e   :  { %v1250_v10 = vadd.f32 %v1249_v37, %v1237_v35 }
 0x21f   :  { %v875_v39 = vadd.f32 %v874_v2, %v855_v47 }
 0x220   :  { %v1263_v44 = vadd.f32 %v1262_v34, %v1250_v10 }
 0x221   :  { %v895_v56 = vadd.f32 %v894_v40, %v875_v39 }
 0x222   :  { %v1276_v27 = vadd.f32 %v1275_v61, %v1263_v44 }
 0x223   :  { %v915_v63 = vadd.f32 %v914_v19, %v895_v56 }
 0x224   :  { %v1289_v9 = vadd.f32 %v1288_v46, %v1276_v27 }
 0x225   :  { %v935_v18 = vadd.f32 %v934_v48, %v915_v63 }
 0x226   :  { %v1302_v7 = vadd.f32 %v1301_v17, %v1289_v9 }
 0x227   :  { %v942_v58 = vsel %vm74_vm0, %v935_v18, 0.0 }
 0x228   :  { %v1315_v43 = vadd.f32 %v1314_v32, %v1302_v7  ;;  %v944_v1 = vadd.f32 %v943_v54, %v942_v58 }
 0x22a   :  { %v948_v51 = vadd.f32 %v947_v8, %v944_v1  ;;  %v1328_v49 = vadd.f32 %v1327_v29, %v1315_v43 }
 0x22c   :  { %v1341_v30 = vadd.f32 %v1340_v31, %v1328_v49 }
 0x22d   :  { %v1376_v23 = vpop.permute.xlu1 %1375 }
 0x22e   :  { %v1354_v3 = vadd.f32 %v1353_v38, %v1341_v30 }
 0x230   :  { %v1367_v12 = vadd.f32 %v1366_v42, %v1354_v3 }
 0x232   :  { %v1372_v11 = vsel %vm74_vm0, %v1367_v12, 0.0 }
 0x233   :  { %v1373_v5 = vadd.f32 %v1372_v11, %v943_v54 }
 0x235   :  { %v1377_v33 = vadd.f32 %v1376_v23, %v1373_v5 }
 0x261   :  { %v951_v16 = vpop.permute.xlu0 %950 }
 0x262   :  { %v952_v0 = vadd.f32 %v951_v16, %v948_v51 }
 0x264   :  { %953 = vst [vmem:[#allocation11] sm:$0xff] %v952_v0 }
 0x274   :  { %v1380_v13 = vpop.permute.xlu1 %1379 }
 0x275   :  { %v1381_v60 = vadd.f32 %v1380_v13, %v1377_v33 }
 0x277   :  { %1382 = vst [vmem:[#allocation11 + $0x8] sm:$0xff] %v1381_v60 }
 0x278   :  { %1703 = shalt.err (!%p1700_p13)
}
 0x279   :  { %s5217_s23 = sld [smem:[#allocation192_spill]] }
 0x27f   :  { %s1704_s19 = scalar_lea.hbm %s5217_s23, 256 }
 0x280   :  { %p1705_p0 = scmp.ne.s32.totalorder %s5217_s23, %s1704_s19  ;;  %p1708_p1 = scmp.lt.u32.totalorder %s1704_s19, %s5217_s23 }
 0x282   :  { %p1710_p2 = pnand %p1708_p1, %p1705_p0 }
 0x284   :  { %1713 = shalt.err (!%p1710_p2)
}
 0x285   :  { %s5218_s4 = smov 8   ;;  %s5219_s29 = smov 128  }
 0x286   :  { %1394 = dma.vmem_to_hbm [thread:$0]  %s1389_s20, 256, %s5217_s23, [#allocation5], %s5219_s29, %s5219_s29, %s5218_s4  }
 0x287   :  { %1720 = dma.done.wait [#allocation5], 256  }
 0x288   :  { %1721 = vsyncadd [#allocation5], 4294967040 }
 0x289   :  { %1398 = vsyncpa [#allocation4], 1 }
 0x28a   :  { %1399 = vsyncpa [#allocation5], 1 }
 0x28b   :  { %1400 = vsyncpa [#allocation6], 1 }
 0x28c   :  { %1401 = vsyncpa [#allocation9], 1 }

</bundles_post_ra>
